<compile_context>
chip_gen: v5e
topology: v5e:2x2
jax: 0.10.0
libtpu: 0.0.40
codegen_flags: <defaults>
</compile_context>

<pallas_src>
import functools
import numpy as np
import jax
import jax.numpy as jnp
from jax.experimental import pallas as pl
from jax.experimental.pallas import tpu as pltpu


# ----------------------------- deterministic "parameters" -----------------------------

def hann_window(n_fft: int) -> np.ndarray:
    # torch.hann_window(n_fft, periodic=True)
    n = np.arange(n_fft, dtype=np.float64)
    return 0.5 - 0.5 * np.cos(2.0 * np.pi * n / n_fft)


def windowed_dft_matrices(n_fft: int, n_freq: int):
    # X[k] = sum_n w[n] x[n] exp(-2*pi*i*k*n/n_fft), onesided k = 0..n_fft//2.
    # Window is folded in:  cos_m[n,k] = w[n]*cos(ang), sin_m[n,k] = -w[n]*sin(ang).
    w = hann_window(n_fft)[:, None]                               # (n_fft, 1)
    n = np.arange(n_fft, dtype=np.float64)[:, None]
    k = np.arange(n_freq, dtype=np.float64)[None, :]
    ang = 2.0 * np.pi * n * k / n_fft
    cos_m = (w * np.cos(ang)).astype(np.float32)                  # (n_fft, n_freq)
    sin_m = (-w * np.sin(ang)).astype(np.float32)                 # (n_fft, n_freq)
    return cos_m, sin_m


def melscale_fbanks_htk(n_freqs: int, f_min: float, f_max: float,
                        n_mels: int, sample_rate: int) -> np.ndarray:
    # torchaudio.functional.melscale_fbanks(..., norm=None, mel_scale="htk")
    all_freqs = np.linspace(0.0, sample_rate // 2, n_freqs)
    m_min = 2595.0 * np.log10(1.0 + f_min / 700.0)
    m_max = 2595.0 * np.log10(1.0 + f_max / 700.0)
    m_pts = np.linspace(m_min, m_max, n_mels + 2)
    f_pts = 700.0 * (10.0 ** (m_pts / 2595.0) - 1.0)
    f_diff = f_pts[1:] - f_pts[:-1]
    slopes = f_pts[None, :] - all_freqs[:, None]                  # (n_freqs, n_mels + 2)
    down = -slopes[:, :-2] / f_diff[:-1]
    up = slopes[:, 2:] / f_diff[1:]
    fb = np.maximum(0.0, np.minimum(down, up))                    # (n_freqs, n_mels)
    return fb.astype(np.float32)


def _round_up(x: int, m: int) -> int:
    return ((x + m - 1) // m) * m


def _pick_tile_and_vmem():
    # Conservative defaults that are safe on v7x (64 MiB physical VMEM, 32 MiB scoped default).
    tile_m, vmem_bytes = 512, 32 << 20
    try:
        info = pltpu.get_tpu_info()
        cap = getattr(info, "vmem_capacity_bytes", None)
        if cap is not None and cap >= (100 << 20):    # v5e / v6e class: 128 MiB VMEM
            tile_m, vmem_bytes = 1024, 64 << 20
    except Exception:
        pass
    return tile_m, vmem_bytes


# ------------------------------------ Pallas kernel ------------------------------------

def _mel_kernel(frames_ref, dft_ref, fb_ref, out_ref, *, f_pad: int):
    x = frames_ref[...]                                                   # (TM, n_fft)
    # Fused windowed DFT: one MXU matmul, f32 accumulation; re/im are 128-aligned lane slices.
    y = jnp.dot(x, dft_ref[...], preferred_element_type=jnp.float32)      # (TM, 2*F_pad) f32
    re = y[:, :f_pad]
    im = y[:, f_pad:]
    mag = jnp.sqrt(re * re + im * im)                                     # power=1 magnitude (f32)
    mel = jnp.dot(mag.astype(fb_ref.dtype), fb_ref[...],
                  preferred_element_type=jnp.float32)                     # (TM, Mel_pad) f32
    # sqrt / log / max run on the VPU/EUP slots, which are idle under the MXU-bound roofline.
    out_ref[...] = jnp.log(jnp.maximum(mel, 1e-5))


# ------------------------------------- host wrapper -------------------------------------

class MelSpectrogramFeaturesPallas:
    def __init__(self, sample_rate=24000, n_fft=1024, hop_length=256, n_mels=100,
                 padding="center", use_bf16=True):
        if padding not in ("center", "same"):
            raise ValueError("Padding must be 'center' or 'same'.")
        self.padding = padding
        self.sample_rate = sample_rate
        self.n_fft = n_fft
        self.hop = hop_length
        self.n_mels = n_mels
        self.n_freq = n_fft // 2 + 1
        self.use_bf16 = use_bf16

        cos_m, sin_m = windowed_dft_matrices(n_fft, self.n_freq)          # window folded in
        fb = melscale_fbanks_htk(self.n_freq, 0.0, float(sample_rate // 2),
                                 n_mels, sample_rate)                      # (n_freq, n_mels)

        # Drop the Nyquist bin iff its mel-filterbank row is (numerically) zero, which holds for
        # f_min=0 / f_max=sr/2 with the HTK construction.  513 -> 512 freq bins = exactly 4*128,
        # removing the 513->640 lane padding waste (-20% MXU flops on both matmuls).
        drop_nyquist = (self.n_freq == n_fft // 2 + 1) and float(np.abs(fb[-1]).max()) < 1e-6
        n_keep = self.n_freq - 1 if drop_nyquist else self.n_freq

        self.f_pad = _round_up(n_keep, 128)                               # 512 with defaults
        self.mel_pad = _round_up(self.n_mels, 128)                        # 100 -> 128

        # Fused (cos | -sin) RHS, zero-padded on the frequency axis: (n_fft, 2*F_pad).
        dft_p = np.zeros((n_fft, 2 * self.f_pad), np.float32)
        dft_p[:, :n_keep] = cos_m[:, :n_keep]
        dft_p[:, self.f_pad:self.f_pad + n_keep] = sin_m[:, :n_keep]
        # Mel filterbank, zero-padded: (F_pad, Mel_pad).  Padded rows see zero magnitude and the
        # padded mel columns are sliced off, so results are unchanged.
        fb_p = np.zeros((self.f_pad, self.mel_pad), np.float32)
        fb_p[:n_keep, :self.n_mels] = fb[:n_keep]

        cdtype = jnp.bfloat16 if use_bf16 else jnp.float32
        self.dft = jnp.asarray(dft_p, dtype=cdtype)                       # (n_fft, 2*F_pad)
        self.fb = jnp.asarray(fb_p, dtype=cdtype)                         # (F_pad, Mel_pad)

        self.tile_m, self.vmem_limit_bytes = _pick_tile_and_vmem()

    # -- framing ---------------------------------------------------------------------------

    def _frame(self, audio: jnp.ndarray):
        """audio: (C, num_samples) -> frames (C, T, n_fft), T."""
        audio = audio.astype(jnp.float32)
        c, n = audio.shape
        if self.padding == "center":
            pad = self.n_fft // 2
            if n <= pad:
                raise ValueError("num_samples must exceed n_fft // 2 for reflect padding.")
            audio_p = jnp.pad(audio, ((0, 0), (pad, pad)), mode="reflect")
        else:
            # 'same' in this module == torchaudio Spectrogram(center=False): no pre-padding.
            audio_p = audio
        n_padded = audio_p.shape[1]
        t = 1 + (n_padded - self.n_fft) // self.hop

        audio_p = audio_p.astype(jnp.bfloat16 if self.use_bf16 else jnp.float32)
        if self.n_fft % self.hop == 0:
            # Overlapping frames built from hop-strided contiguous slices (no XLA gather):
            #   frame[t] = audio_p[t*hop : t*hop + n_fft]
            #            = concat_o audio_p[(t+o)*hop : (t+o+1)*hop],  o = 0..n_fft/hop-1.
            parts = [audio_p[:, o * self.hop:(o + t) * self.hop].reshape(c, t, self.hop)
                     for o in range(self.n_fft // self.hop)]
            frames = jnp.concatenate(parts, axis=-1)                       # (C, T, n_fft)
        else:
            # TODO(synk): gather fallback for non-divisible hop; 4x HBM expansion vs in-kernel
            # hop-strided decomposition of the DFT matmul.
            idx = np.arange(t)[:, None] * self.hop + np.arange(self.n_fft)[None, :]
            frames = audio_p[:, idx]
        return frames, t

    # -- pallas_call -----------------------------------------------------------------------

    def _pallas_mel(self, frames_flat, m_pad, tile_m, single_buffer_consts: bool):
        # Grid-invariant operands: keep them resident once (Buffered(1)) instead of wasting
        # VMEM on a second buffer that never changes.
        const_kwargs = dict(pipeline_mode=pl.Buffered(1)) if single_buffer_consts else {}
        grid = (m_pad // tile_m,)
        return pl.pallas_call(
            functools.partial(_mel_kernel, f_pad=self.f_pad),
            out_shape=jax.ShapeDtypeStruct((m_pad, self.mel_pad), jnp.float32),
            grid_spec=pltpu.PrefetchScalarGridSpec(
                num_scalar_prefetch=0,
                grid=grid,
                in_specs=[
                    pl.BlockSpec((tile_m, self.n_fft), lambda i: (i, 0)),
                    pl.BlockSpec((self.n_fft, 2 * self.f_pad), lambda i: (0, 0),
                                 **const_kwargs),
                    pl.BlockSpec((self.f_pad, self.mel_pad), lambda i: (0, 0),
                                 **const_kwargs),
                ],
                out_specs=pl.BlockSpec((tile_m, self.mel_pad), lambda i: (i, 0)),
            ),
            compiler_params=pltpu.CompilerParams(
                dimension_semantics=("parallel",),
                vmem_limit_bytes=self.vmem_limit_bytes,
            ),
        )(frames_flat, self.dft, self.fb)

    # -- forward ---------------------------------------------------------------------------

    def __call__(self, audio: jnp.ndarray) -> jnp.ndarray:
        """audio: (num_channels, num_samples) -> (num_channels, n_mels, n_frames)"""
        frames, t = self._frame(audio)
        c = frames.shape[0]
        m_total = c * t

        # Ensure >= 2 grid steps when possible so the ("parallel",) axis can shard across
        # v7x's two TensorCores; cap at the per-part tile_m (VMEM-derived).
        tile_m = min(self.tile_m, max(8, _round_up(-(-m_total // 2), 8)))
        m_pad = _round_up(m_total, tile_m)

        frames_flat = frames.reshape(m_total, self.n_fft)
        if m_pad != m_total:
            frames_flat = jnp.pad(frames_flat, ((0, m_pad - m_total), (0, 0)))

        try:
            out = self._pallas_mel(frames_flat, m_pad, tile_m, single_buffer_consts=True)
        except Exception:
            # TODO(synk): this JAX build rejected pl.Buffered(1); fall back to default
            # double-buffering of the grid-invariant dft/fb operands (~2 MiB extra VMEM).
            out = self._pallas_mel(frames_flat, m_pad, tile_m, single_buffer_consts=False)

        # Drop padded rows / mel bins, restore PyTorch layout (C, n_mels, T).
        mel = out[:m_total, :self.n_mels].reshape(c, t, self.n_mels)
        return jnp.transpose(mel, (0, 2, 1))


# ----------------------------------------- main -----------------------------------------

if __name__ == "__main__":
    key = jax.random.PRNGKey(0)
    num_channels, num_samples = 2, 4096          # small audio; module defaults otherwise
    audio = jax.random.normal(key, (num_channels, num_samples), dtype=jnp.float32)

    mod = MelSpectrogramFeaturesPallas(sample_rate=24000, n_fft=1024, hop_length=256,
                                       n_mels=100, padding="center")
    feats = mod(audio)
    feats = jax.block_until_ready(feats)

    expected_frames = 1 + num_samples // 256
    assert feats.shape == (num_channels, 100, expected_frames), feats.shape
    assert bool(jnp.all(jnp.isfinite(feats)))
    print("KERNEL_OK")
</pallas_src>

<mosaic_0001>
module attributes {stable_mosaic.version = 11 : i64} {
  func.func @_mel_kernel(%arg0: i32, %arg1: memref<24x1024xbf16, #tpu.memory_space<vmem>>, %arg2: memref<1024x1024xbf16, #tpu.memory_space<vmem>>, %arg3: memref<512x128xbf16, #tpu.memory_space<vmem>>, %arg4: memref<24x128xf32, #tpu.memory_space<vmem>>) attributes {dimension_semantics = [#tpu.dimension_semantics<parallel>], iteration_bounds = array<i64: 2>, scalar_prefetch = 0 : i64, scratch_operands = 0 : i64, tpu.core_type = #tpu.core_type<tc>, window_params = [{transform_indices = @transform_0, window_bounds = array<i64: 24, 1024>}, {pipeline_mode = #tpu.pipeline_mode<synchronous>, transform_indices = @transform_1, window_bounds = array<i64: 1024, 1024>}, {pipeline_mode = #tpu.pipeline_mode<synchronous>, transform_indices = @transform_2, window_bounds = array<i64: 512, 128>}, {transform_indices = @transform_3, window_bounds = array<i64: 24, 128>}]} {
    %c0 = arith.constant 0 : index
    %c0_0 = arith.constant 0 : index
    %0 = vector.load %arg1[%c0, %c0_0] : memref<24x1024xbf16, #tpu.memory_space<vmem>>, vector<24x1024xbf16>
    %c0_1 = arith.constant 0 : index
    %c0_2 = arith.constant 0 : index
    %1 = vector.load %arg2[%c0_1, %c0_2] : memref<1024x1024xbf16, #tpu.memory_space<vmem>>, vector<1024x1024xbf16>
    %cst = arith.constant dense<0.000000e+00> : vector<24x1024xf32>
    %2 = tpu.matmul %0, %1, %cst {dimension_numbers = #tpu.dot_dimension_numbers<[1], [0], [0], [1], [0, 0, 1, 1], [], []>} : vector<24x1024xbf16>, vector<1024x1024xbf16>, vector<24x1024xf32> -> vector<24x1024xf32>
    %3 = vector.extract_strided_slice %2 {offsets = [0, 0], sizes = [24, 512], strides = [1, 1]} : vector<24x1024xf32> to vector<24x512xf32>
    %4 = vector.extract_strided_slice %2 {offsets = [0, 512], sizes = [24, 512], strides = [1, 1]} : vector<24x1024xf32> to vector<24x512xf32>
    %5 = arith.mulf %3, %3 : vector<24x512xf32>
    %6 = arith.mulf %4, %4 : vector<24x512xf32>
    %7 = arith.addf %5, %6 : vector<24x512xf32>
    %8 = math.sqrt %7 : vector<24x512xf32>
    %9 = arith.truncf %8 : vector<24x512xf32> to vector<24x512xbf16>
    %c0_3 = arith.constant 0 : index
    %c0_4 = arith.constant 0 : index
    %10 = vector.load %arg3[%c0_3, %c0_4] : memref<512x128xbf16, #tpu.memory_space<vmem>>, vector<512x128xbf16>
    %cst_5 = arith.constant dense<0.000000e+00> : vector<24x128xf32>
    %11 = tpu.matmul %9, %10, %cst_5 {dimension_numbers = #tpu.dot_dimension_numbers<[1], [0], [0], [1], [0, 0, 1, 1], [], []>} : vector<24x512xbf16>, vector<512x128xbf16>, vector<24x128xf32> -> vector<24x128xf32>
    %cst_6 = arith.constant 9.99999974E-6 : f32
    %12 = vector.broadcast %cst_6 : f32 to vector<24x128xf32>
    %13 = arith.maximumf %11, %12 : vector<24x128xf32>
    %14 = math.log %13 : vector<24x128xf32>
    %c0_7 = arith.constant 0 : index
    %c0_8 = arith.constant 0 : index
    %15 = vector.load %arg4[%c0_7, %c0_8] : memref<24x128xf32, #tpu.memory_space<vmem>>, vector<24x128xf32>
    tpu.vector_store %arg4[%c0_7, %c0_8], %14 {strides = array<i32>} : memref<24x128xf32, #tpu.memory_space<vmem>>, vector<24x128xf32>,
    return
  }
  func.func @transform_0(%arg0: i32) -> (i32, i32) {
    %c0_i32 = arith.constant 0 : i32
    %c0_i32_0 = arith.constant 0 : i32
    return %arg0, %c0_i32 : i32, i32
  }
  func.func @transform_1(%arg0: i32) -> (i32, i32) {
    %c0_i32 = arith.constant 0 : i32
    %c0_i32_0 = arith.constant 0 : i32
    %c0_i32_1 = arith.constant 0 : i32
    return %c0_i32, %c0_i32_0 : i32, i32
  }
  func.func @transform_2(%arg0: i32) -> (i32, i32) {
    %c0_i32 = arith.constant 0 : i32
    %c0_i32_0 = arith.constant 0 : i32
    %c0_i32_1 = arith.constant 0 : i32
    return %c0_i32, %c0_i32_0 : i32, i32
  }
  func.func @transform_3(%arg0: i32) -> (i32, i32) {
    %c0_i32 = arith.constant 0 : i32
    %c0_i32_0 = arith.constant 0 : i32
    return %arg0, %c0_i32 : i32, i32
  }
}

module attributes {stable_mosaic.version = 11 : i64} {
  func.func @_mel_kernel(%arg0: i32, %arg1: memref<24x1024xbf16, #tpu.memory_space<vmem>>, %arg2: memref<1024x1024xbf16, #tpu.memory_space<vmem>>, %arg3: memref<512x128xbf16, #tpu.memory_space<vmem>>, %arg4: memref<24x128xf32, #tpu.memory_space<vmem>>) attributes {dimension_semantics = [#tpu.dimension_semantics<parallel>], iteration_bounds = array<i64: 2>, scalar_prefetch = 0 : i64, scratch_operands = 0 : i64, tpu.core_type = #tpu.core_type<tc>, window_params = [{transform_indices = @transform_0, window_bounds = array<i64: 24, 1024>}, {pipeline_mode = #tpu.pipeline_mode<synchronous>, transform_indices = @transform_1, window_bounds = array<i64: 1024, 1024>}, {pipeline_mode = #tpu.pipeline_mode<synchronous>, transform_indices = @transform_2, window_bounds = array<i64: 512, 128>}, {transform_indices = @transform_3, window_bounds = array<i64: 24, 128>}]} {
    %c0 = arith.constant 0 : index
    %c0_0 = arith.constant 0 : index
    %0 = vector.load %arg1[%c0, %c0_0] : memref<24x1024xbf16, #tpu.memory_space<vmem>>, vector<24x1024xbf16>
    %c0_1 = arith.constant 0 : index
    %c0_2 = arith.constant 0 : index
    %1 = vector.load %arg2[%c0_1, %c0_2] : memref<1024x1024xbf16, #tpu.memory_space<vmem>>, vector<1024x1024xbf16>
    %cst = arith.constant dense<0.000000e+00> : vector<24x1024xf32>
    %2 = tpu.matmul %0, %1, %cst {dimension_numbers = #tpu.dot_dimension_numbers<[1], [0], [0], [1], [0, 0, 1, 1], [], []>} : vector<24x1024xbf16>, vector<1024x1024xbf16>, vector<24x1024xf32> -> vector<24x1024xf32>
    %3 = vector.extract_strided_slice %2 {offsets = [0, 0], sizes = [24, 512], strides = [1, 1]} : vector<24x1024xf32> to vector<24x512xf32>
    %4 = vector.extract_strided_slice %2 {offsets = [0, 512], sizes = [24, 512], strides = [1, 1]} : vector<24x1024xf32> to vector<24x512xf32>
    %5 = arith.mulf %3, %3 : vector<24x512xf32>
    %6 = arith.mulf %4, %4 : vector<24x512xf32>
    %7 = arith.addf %5, %6 : vector<24x512xf32>
    %8 = math.sqrt %7 : vector<24x512xf32>
    %9 = arith.truncf %8 : vector<24x512xf32> to vector<24x512xbf16>
    %c0_3 = arith.constant 0 : index
    %c0_4 = arith.constant 0 : index
    %10 = vector.load %arg3[%c0_3, %c0_4] : memref<512x128xbf16, #tpu.memory_space<vmem>>, vector<512x128xbf16>
    %cst_5 = arith.constant dense<0.000000e+00> : vector<24x128xf32>
    %11 = tpu.matmul %9, %10, %cst_5 {dimension_numbers = #tpu.dot_dimension_numbers<[1], [0], [0], [1], [0, 0, 1, 1], [], []>} : vector<24x512xbf16>, vector<512x128xbf16>, vector<24x128xf32> -> vector<24x128xf32>
    %cst_6 = arith.constant 9.99999974E-6 : f32
    %12 = vector.broadcast %cst_6 : f32 to vector<24x128xf32>
    %13 = arith.maximumf %11, %12 : vector<24x128xf32>
    %14 = math.log %13 : vector<24x128xf32>
    %c0_7 = arith.constant 0 : index
    %c0_8 = arith.constant 0 : index
    %15 = vector.load %arg4[%c0_7, %c0_8] : memref<24x128xf32, #tpu.memory_space<vmem>>, vector<24x128xf32>
    tpu.vector_store %arg4[%c0_7, %c0_8], %14 {strides = array<i32>} : memref<24x128xf32, #tpu.memory_space<vmem>>, vector<24x128xf32>,
    return
  }
  func.func @transform_0(%arg0: i32) -> (i32, i32) {
    %c0_i32 = arith.constant 0 : i32
    %c0_i32_0 = arith.constant 0 : i32
    return %arg0, %c0_i32 : i32, i32
  }
  func.func @transform_1(%arg0: i32) -> (i32, i32) {
    %c0_i32 = arith.constant 0 : i32
    %c0_i32_0 = arith.constant 0 : i32
    %c0_i32_1 = arith.constant 0 : i32
    return %c0_i32, %c0_i32_0 : i32, i32
  }
  func.func @transform_2(%arg0: i32) -> (i32, i32) {
    %c0_i32 = arith.constant 0 : i32
    %c0_i32_0 = arith.constant 0 : i32
    %c0_i32_1 = arith.constant 0 : i32
    return %c0_i32, %c0_i32_0 : i32, i32
  }
  func.func @transform_3(%arg0: i32) -> (i32, i32) {
    %c0_i32 = arith.constant 0 : i32
    %c0_i32_0 = arith.constant 0 : i32
    return %arg0, %c0_i32 : i32, i32
  }
}

</mosaic_0001>

<bundles_post_ra>
// kernel: tpu_custom_call.1
= control target key start
LH: loop header
LB: loop body
LE: loop exit
PB: predicated region body
PF: predicated region fallthrough
CT: control target
= control target key end

     0   :  { %8 = vsyncpa [#allocation3], 0  ;;  %s8761_s0 = inlined_call_operand.hbm [shape: bf16[48,1024], index: 0, kind: input, shape index: {}]   ;;  %s8762_s1 = inlined_call_operand.hbm [shape: bf16[1024,1024], index: 1, kind: input, shape index: {}]   ;;  %s8763_s2 = inlined_call_operand.hbm [shape: bf16[512,128], index: 2, kind: input, shape index: {}]   ;;  %s8764_s3 = inlined_call_operand.hbm [shape: f32[48,128], index: 3, kind: output, shape index: {}]  }
   0x1   :  { %10 = vsyncpa [#allocation3 + $0x1], 0 }
   0x2   :  { %11 = vsyncpa [#allocation6], 0 }
   0x3   :  { %12 = vsyncpa [#allocation4], 0 }
   0x4   :  { %14 = vsyncpa [#allocation4 + $0x1], 0  ;;  %s8240_s12 = smov 0   ;;  %s8242_s13 = smov 0  }
   0x5   :  { %s8244_s14 = smov 0   ;;  %s8246_s15 = smov 0  }
   0x6 LB: > { %s8261_s16 = sadd.s32 4294967295, %s8210_s15   ;;  %s5167_s17 = sadd.s32 4294967294, %s8210_s15   ;;  %s8210_s15 = sphi %s8246_s15, %s8776_s15   ;;  %s8206_s14 = sphi %s8244_s14, %s8775_s14   ;;  %s8202_s13 = sphi %s8242_s13, %s8774_s13   ;;  %s8198_s12 = sphi %s8240_s12, %s8773_s12  }
   0x7   : > { %p40_p0 = scmp.ne.s32.totalorder %s8202_s13, %s8198_s12  ;;  %p41_p1 = scmp.eq.s32.totalorder %s8261_s16, 0 }
   0x8   : > { %p106_p2 = scmp.eq.s32.totalorder %s8261_s16, 1  ;;  %p112_p3 = scmp.eq.s32.totalorder %s5167_s17, 1 }
   0x9   : > { %p8270_p4 = por %p41_p1, %p40_p0  ;;  %p5168_p5 = scmp.ge.s32.totalorder %s8210_s15, 1 }
   0xa   : > { %p8275_p6 = por %p112_p3, %p40_p0  ;;  %p119_p7 = scmp.lt.s32.totalorder %s8210_s15, 3 }
   0xb   : > { %s130_s22 = sshll.u32 %s8762_s1, 4  ;;  %s8212_s24 = smov [#allocation5]   ;;  %s131_s22 = int_to_ptr.hbm [resolvable:$true] %s130_s22 }
   0xc   : > { %p8283_p8 = pnand %p5168_p5, %p119_p7  ;;  %s132_s25 = sshll.u32 %s8212_s24, 4  ;;  %s133_s25 = int_to_ptr.vmem [resolvable:$true] %s132_s25 }
   0xd   : > { %s144_s28 = sshll.u32 %s8763_s2, 4  ;;  %s8765_s29 = smov 512   ;;  %s145_s28 = int_to_ptr.hbm [resolvable:$true] %s144_s28 }
   0xe   : > { %p7959_p9 = pneg %p8283_p8  ;;  %s8214_s30 = smov 32  }
   0xf   : > { %s8215_s4 = smov [#allocation7]   ;;  %s8216_s6 = smov 64  }
  0x10   : > { %p7960_p10 = pnand %p7959_p9, %p41_p1  ;;  %s146_s5 = sshll.u32 %s8215_s4, 4  ;;  %s147_s5 = int_to_ptr.vmem [resolvable:$true] %s146_s5 }
  0x11   : > { %s8217_s7 = smov 4   ;;  %s8299_s8 = sadd.s32 1, %s8210_s15  }
  0x12   : > { %7962 = dma.hbm_to_vmem [thread:$0]  (!%p7960_p10), %s131_s22, 65536, %s133_s25, [#allocation6], %s8765_s29, %s8765_s29, %s8214_s30  }
  0x13   : > { %7965 = dma.hbm_to_vmem [thread:$0]  (!%p7960_p10), %s145_s28, 4096, %s147_s5, [#allocation6], %s8216_s6, %s8216_s6, %s8217_s7  }
  0x14   : > { %s24_s9 = ssub.s32 %s8210_s15, %s8299_s8  ;;  %s27_s10 = sadd.s32 1, %s8206_s14 }
  0x15   : > { %p25_p12 = scmp.eq.s32.totalorder %s24_s9, 0  ;;  %p34_p13 = scmp.ne.s32.totalorder %s8206_s14, %s8202_s13 }
  0x16   : > { %p35_p0 = scmp.eq.s32.totalorder %s8210_s15, 0  ;;  %p7976_p7 = scmp.lt.s32.totalorder %s8210_s15, 2 }
  0x17   : > { %s8308_s11 = scalar_select %p25_p12, %s8206_s14, %s27_s10  }
  0x18   : > { %p36_p3 = por %p35_p0, %p34_p13  ;;  %p8312_p5 = por %p106_p2, %p34_p13 }
  0x19   : > { %s160_s20 = sand.u32 1, %s8206_s14   ;;  %s7943_s22 = smul.u32 96, %s8210_s15 }
  0x1a   : > { %s7944_s21 = smul.u32 96, %s160_s20  ;;  %p8319_p9 = pnand %p7976_p7, %p36_p3 }
  0x1b   : > { %s170_s27 = scalar_lea.hbm %s8761_s0, %s7943_s22  ;;  %s161_s6 = scalar_lea.sflag [#allocation3], %s160_s20 }
  0x1c   : > { %s164_s28 = scalar_lea.vmem [#allocation2], %s7944_s21  ;;  %s171_s5 = sshll.u32 %s170_s27, 4  ;;  %s172_s5 = int_to_ptr.hbm [resolvable:$true] %s171_s5 }
  0x1d   : > { %s173_s4 = sshll.u32 %s164_s28, 4  ;;  %s8110_s7 = sshra.s32 %s172_s5, 4  ;;  %s174_s4 = int_to_ptr.vmem [resolvable:$true] %s173_s4  ;;  %s8111_s7 = int_to_ptr.hbm [resolvable:$true] %s8110_s7 }
  0x1e   : > { %s8112_s9 = scalar_lea.hbm %s8111_s7, 96  ;;  %p8114_p10 = pneg %p8319_p9 }
  0x1f   : > { %p8113_p2 = scmp.ne.s32.totalorder %s8111_s7, %s8112_s9  ;;  %s8117_s25 = scalar_lea.hbm %s8761_s0, 192 }
  0x20   : > { %p8118_p0 = scmp.lt.s32.totalorder %s8111_s7, %s8761_s0  ;;  %p8119_p3 = scmp.lt.s32.totalorder %s8117_s25, %s8112_s9 }
  0x21   : > { %p8115_p12 = pnand %p8114_p10, %p8113_p2 }
  0x22   : > { %p8120_p7 = por %p8119_p3, %p8118_p0 }
  0x23   : > { %p8116_p13 = pneg %p8115_p12 }
  0x25   : > { %p8121_p11 = pnand %p8120_p7, %p8116_p13 }
  0x27   : > { %8124 = shalt.err (!%p8121_p11)
}
  0x28   : > { %s8771_s20 = smov 512   ;;  %185 = sbr.rel (%p8283_p8) target bundleno = 1222 (0x4c6), region = 32 }
  0x29   : > { %7969 = dma.hbm_to_vmem [thread:$0]  (!%p8319_p9), %s172_s5, 1536, %s174_s4, %s161_s6, %s8771_s20, %s8771_s20, %s8214_s30  }
  0x2a   : > { %s8342_s29 = sand.u32 (!%p8283_p8), 1, %s8202_s13  }
  0x2b   : > { %s7945_s21 = smul.u32 (!%p8283_p8), 96, %s8342_s29  ;;  %s188_s27 = scalar_lea.sflag (!%p8283_p8), [#allocation3], %s8342_s29 }
  0x2d   : > { %s8346_s28 = scalar_lea.vmem [#allocation2], %s7945_s21 }
  0x2e   : > { %8185 = dma.done.wait (%p8270_p4), %s188_s27, 1536  }
  0x2f   : > { %8187 = vsyncadd (%p8270_p4), %s188_s27, 4294965760 }
  0x30   : > { %8189 = dma.done.wait (%p41_p1), [#allocation6], 69632  }
  0x31   : > { %8191 = vsyncadd (%p41_p1), [#allocation6], 4294897664  ;;  %v5435_v0 = vld [vmem:[#allocation5 + $0x1c0] sm:$0xf]  ;;  %s7946_s18 = smul.u32 24, %s8342_s29  ;;  %s5060_s9 = scalar_lea.sflag [#allocation4], %s8342_s29 }
  0x32   : > { %v7458_v1 = vld [vmem:[#allocation5 + $0x1dc] sm:$0xf0]  ;;  %s7942_s30 = smul.u32 24, %s8261_s16  ;;  %s8160_s22 = scalar_lea.hbm %s8764_s3, 48 }
  0x33   : > { %v5691_v2 = vld [vmem:[#allocation5 + $0x3c0] sm:$0xf]  ;;  %v5436_v3 = vor.u32 %v7458_v1, %v5435_v0  ;;  %s224_s23 = scalar_lea.vmem [#allocation8], %s7946_s18 }
  0x34   : > { %v7522_v4 = vld [vmem:[#allocation5 + $0x3dc] sm:$0xf0]  ;;  %s5071_s5 = scalar_lea.hbm %s8764_s3, %s7942_s30  ;;  %s5072_s6 = sshll.u32 %s224_s23, 4  ;;  %s5073_s6 = int_to_ptr.vmem [resolvable:$true] %s5072_s6 }
  0x35   : > { %v5947_v5 = vld [vmem:[#allocation5 + $0x5c0] sm:$0xf]  ;;  %v5692_v7 = vor.u32 %v7522_v4, %v5691_v2  ;;  %3379 = vmatpush.bf16.msra.mxu0 %v5436_v3  ;;  %s5074_s7 = sshll.u32 %s5071_s5, 4  ;;  %s5075_s7 = int_to_ptr.hbm [resolvable:$true] %s5074_s7 }
  0x36   : > { %v7586_v6 = vld [vmem:[#allocation5 + $0x5dc] sm:$0xf0]  ;;  %s8154_s16 = sshra.s32 %s5075_s7, 4  ;;  %s8155_s16 = int_to_ptr.hbm [resolvable:$true] %s8154_s16 }
  0x37   : > { %v5948_v8 = vor.u32 %v7586_v6, %v5947_v5  ;;  %v6203_v9 = vld [vmem:[#allocation5 + $0x7c0] sm:$0xf]  ;;  %3397 = vmatpush.bf16.msra.mxu1 %v5692_v7  ;;  %s8156_s10 = scalar_lea.hbm %s8155_s16, 24  ;;  %p8161_p11 = scmp.lt.s32.totalorder %s8155_s16, %s8764_s3 }
  0x38   : > { %v7650_v10 = vld [vmem:[#allocation5 + $0x7dc] sm:$0xf0]  ;;  %p8157_p1 = scmp.ne.s32.totalorder %s8155_s16, %s8156_s10  ;;  %p8162_p9 = scmp.lt.s32.totalorder %s8160_s22, %s8156_s10 }
  0x39   : > { %v5403_v11 = vld [vmem:[#allocation5 + $0x180] sm:$0xf]  ;;  %v6204_v12 = vor.u32 %v7650_v10, %v6203_v9  ;;  %3415 = vmatpush.bf16.msra.mxu2 %v5948_v8 }
  0x3a   : > { %v7450_v13 = vld [vmem:[#allocation5 + $0x19c] sm:$0xf0]  ;;  %p8158_p4 = pnand %p8157_p1, %p8312_p5  ;;  %p8163_p2 = por %p8162_p9, %p8161_p11 }
  0x3b   : > { %v5659_v14 = vld [vmem:[#allocation5 + $0x380] sm:$0xf]  ;;  %v5404_v16 = vor.u32 %v7450_v13, %v5403_v11  ;;  %3433 = vmatpush.bf16.msra.mxu3 %v6204_v12 }
  0x3c   : > { %v7514_v15 = vld [vmem:[#allocation5 + $0x39c] sm:$0xf0]  ;;  %p8159_p8 = pneg %p8158_p4 }
  0x3d   : > { %v5660_v17 = vor.u32 %v7514_v15, %v5659_v14  ;;  %v5915_v18 = vld [vmem:[#allocation5 + $0x580] sm:$0xf]  ;;  %3380 = vmatpush.bf16.msra.mxu0 %v5404_v16 }
  0x3e   : > { %v7578_v19 = vld [vmem:[#allocation5 + $0x59c] sm:$0xf0]  ;;  %p8164_p10 = pnand %p8163_p2, %p8159_p8 }
  0x3f   : > { %v6171_v20 = vld [vmem:[#allocation5 + $0x780] sm:$0xf]  ;;  %v5916_v21 = vor.u32 %v7578_v19, %v5915_v18  ;;  %3398 = vmatpush.bf16.msra.mxu1 %v5660_v17 }
  0x40   : > { %v7642_v22 = vld [vmem:[#allocation5 + $0x79c] sm:$0xf0] }
  0x41   : > { %v5371_v23 = vld [vmem:[#allocation5 + $0x140] sm:$0xf]  ;;  %v6172_v25 = vor.u32 %v7642_v22, %v6171_v20  ;;  %3416 = vmatpush.bf16.msra.mxu2 %v5916_v21 }
  0x42   : > { %v7442_v24 = vld [vmem:[#allocation5 + $0x15c] sm:$0xf0] }
  0x43   : > { %v5627_v26 = vld [vmem:[#allocation5 + $0x340] sm:$0xf]  ;;  %v5372_v29 = vor.u32 %v7442_v24, %v5371_v23  ;;  %3434 = vmatpush.bf16.msra.mxu3 %v6172_v25 }
  0x44   : > { %v7506_v27 = vld [vmem:[#allocation5 + $0x35c] sm:$0xf0] }
  0x45   : > { %v5883_v28 = vld [vmem:[#allocation5 + $0x540] sm:$0xf]  ;;  %v5628_v33 = vor.u32 %v7506_v27, %v5627_v26  ;;  %3381 = vmatpush.bf16.msra.mxu0 %v5372_v29 }
  0x46   : > { %v7570_v30 = vld [vmem:[#allocation5 + $0x55c] sm:$0xf0] }
  0x47   : > { %v6139_v31 = vld [vmem:[#allocation5 + $0x740] sm:$0xf]  ;;  %v5884_v34 = vor.u32 %v7570_v30, %v5883_v28  ;;  %3399 = vmatpush.bf16.msra.mxu1 %v5628_v33  ;;  %v7390_v30 = vld [vmem:[%s8346_s28 + $0x4] sm:$0xf] }
  0x48   : > { %v7634_v32 = vld [vmem:[#allocation5 + $0x75c] sm:$0xf0] }
  0x49   : > { %v5339_v35 = vld [vmem:[#allocation5 + $0x100] sm:$0xf]  ;;  %v6140_v38 = vor.u32 %v7634_v32, %v6139_v31  ;;  %3417 = vmatpush.bf16.msra.mxu2 %v5884_v34  ;;  %v5181_v31 = vld [vmem:[%s8346_s28 + $0x20] sm:$0xf0] }
  0x4a   : > { %v7434_v36 = vld [vmem:[#allocation5 + $0x11c] sm:$0xf0] }
  0x4b   : > { %v5595_v37 = vld [vmem:[#allocation5 + $0x300] sm:$0xf]  ;;  %v5340_v44 = vor.u32 %v7434_v36, %v5339_v35  ;;  %3435 = vmatpush.bf16.msra.mxu3 %v6140_v38  ;;  %v5187_v35 = vld [vmem:[%s8346_s28 + $0x8] sm:$0xf] }
  0x4c   : > { %v7498_v39 = vld [vmem:[#allocation5 + $0x31c] sm:$0xf0] }
  0x4d   : > { %v5851_v40 = vld [vmem:[#allocation5 + $0x500] sm:$0xf]  ;;  %v5596_v45 = vor.u32 %v7498_v39, %v5595_v37  ;;  %3382 = vmatpush.bf16.msra.mxu0 %v5340_v44 }
  0x4e   : > { %v7562_v41 = vld [vmem:[#allocation5 + $0x51c] sm:$0xf0] }
  0x4f   : > { %v6107_v42 = vld [vmem:[#allocation5 + $0x700] sm:$0xf]  ;;  %v5852_v46 = vor.u32 %v7562_v41, %v5851_v40  ;;  %3400 = vmatpush.bf16.msra.mxu1 %v5596_v45  ;;  %v7395_v40 = vld [vmem:[%s8346_s28 + $0x24] sm:$0xf0]  ;;  %v7391_v41 = vld [vmem:[%s8346_s28 + $0xc] sm:$0xf] }
  0x50   : > { %v7626_v43 = vld [vmem:[#allocation5 + $0x71c] sm:$0xf0] }
  0x51   : > { %v5307_v47 = vld [vmem:[#allocation5 + $0xc0] sm:$0xf]  ;;  %v6108_v50 = vor.u32 %v7626_v43, %v6107_v42  ;;  %3418 = vmatpush.bf16.msra.mxu2 %v5852_v46  ;;  %v5189_v42 = vld [vmem:[%s8346_s28 + $0x28] sm:$0xf0] }
  0x52   : > { %v7426_v48 = vld [vmem:[#allocation5 + $0xdc] sm:$0xf0] }
  0x53   : > { %v5563_v49 = vld [vmem:[#allocation5 + $0x2c0] sm:$0xf]  ;;  %v5308_v56 = vor.u32 %v7426_v48, %v5307_v47  ;;  %3436 = vmatpush.bf16.msra.mxu3 %v6108_v50 }
  0x54   : > { %v7490_v51 = vld [vmem:[#allocation5 + $0x2dc] sm:$0xf0] }
  0x55   : > { %v5819_v52 = vld [vmem:[#allocation5 + $0x4c0] sm:$0xf]  ;;  %v5564_v57 = vor.u32 %v7490_v51, %v5563_v49  ;;  %3383 = vmatpush.bf16.msra.mxu0 %v5308_v56 }
  0x56   : > { %v7554_v53 = vld [vmem:[#allocation5 + $0x4dc] sm:$0xf0] }
  0x57   : > { %v6075_v54 = vld [vmem:[#allocation5 + $0x6c0] sm:$0xf]  ;;  %v5820_v58 = vor.u32 %v7554_v53, %v5819_v52  ;;  %3401 = vmatpush.bf16.msra.mxu1 %v5564_v57  ;;  %v8366_v53 = vor.u32 %v7390_v30, %v5181_v31  ;;  %v8370_v57 = vor.u32 %v7391_v41, %v5189_v42 }
  0x58   : > { %v7618_v55 = vld [vmem:[#allocation5 + $0x6dc] sm:$0xf0] }
  0x59   : > { %v5275_v59 = vld [vmem:[#allocation5 + $0x80] sm:$0xf]  ;;  %v6076_v62 = vor.u32 %v7618_v55, %v6075_v54  ;;  %3419 = vmatpush.bf16.msra.mxu2 %v5820_v58  ;;  %v8368_v54 = vor.u32 %v7395_v40, %v5187_v35 }
  0x5a   : > { %v7418_v60 = vld [vmem:[#allocation5 + $0x9c] sm:$0xf0] }
  0x5b   : > { %v5531_v61 = vld [vmem:[#allocation5 + $0x280] sm:$0xf]  ;;  %v5276_v4 = vor.u32 %v7418_v60, %v5275_v59  ;;  %3437 = vmatpush.bf16.msra.mxu3 %v6076_v62 }
  0x5c   : > { %v7482_v63 = vld [vmem:[#allocation5 + $0x29c] sm:$0xf0] }
  0x5d   : > { %v5787_v0 = vld [vmem:[#allocation5 + $0x480] sm:$0xf]  ;;  %v5532_v5 = vor.u32 %v7482_v63, %v5531_v61  ;;  %3384 = vmatpush.bf16.msra.mxu0 %v5276_v4 }
  0x5e   : > { %v7546_v1 = vld [vmem:[#allocation5 + $0x49c] sm:$0xf0] }
  0x5f   : > { %v6043_v2 = vld [vmem:[#allocation5 + $0x680] sm:$0xf]  ;;  %v5788_v6 = vor.u32 %v7546_v1, %v5787_v0  ;;  %3402 = vmatpush.bf16.msra.mxu1 %v5532_v5 }
  0x60   : > { %v7610_v3 = vld [vmem:[#allocation5 + $0x69c] sm:$0xf0] }
  0x61   : > { %v5243_v7 = vld [vmem:[#allocation5 + $0x40] sm:$0xf]  ;;  %v6044_v10 = vor.u32 %v7610_v3, %v6043_v2  ;;  %3420 = vmatpush.bf16.msra.mxu2 %v5788_v6 }
  0x62   : > { %v7410_v8 = vld [vmem:[#allocation5 + $0x5c] sm:$0xf0] }
  0x63   : > { %v5499_v9 = vld [vmem:[#allocation5 + $0x240] sm:$0xf]  ;;  %v5244_v17 = vor.u32 %v7410_v8, %v5243_v7  ;;  %3438 = vmatpush.bf16.msra.mxu3 %v6044_v10 }
  0x64   : > { %v7474_v11 = vld [vmem:[#allocation5 + $0x25c] sm:$0xf0] }
  0x65   : > { %v5755_v12 = vld [vmem:[#allocation5 + $0x440] sm:$0xf]  ;;  %v5500_v21 = vor.u32 %v7474_v11, %v5499_v9  ;;  %3385 = vmatpush.bf16.msra.mxu0 %v5244_v17 }
  0x66   : > { %v7538_v13 = vld [vmem:[#allocation5 + $0x45c] sm:$0xf0] }
  0x67   : > { %v6011_v14 = vld [vmem:[#allocation5 + $0x640] sm:$0xf]  ;;  %v5756_v22 = vor.u32 %v7538_v13, %v5755_v12  ;;  %3403 = vmatpush.bf16.msra.mxu1 %v5500_v21 }
  0x68   : > { %v7602_v15 = vld [vmem:[#allocation5 + $0x65c] sm:$0xf0] }
  0x69   : > { %v5211_v16 = vld [vmem:[#allocation5] sm:$0xf]  ;;  %v6012_v26 = vor.u32 %v7602_v15, %v6011_v14  ;;  %3421 = vmatpush.bf16.msra.mxu2 %v5756_v22 }
  0x6a   : > { %v7402_v18 = vld [vmem:[#allocation5 + $0x1c] sm:$0xf0] }
  0x6b   : > { %v5467_v19 = vld [vmem:[#allocation5 + $0x200] sm:$0xf]  ;;  %v5212_v34 = vor.u32 %v7402_v18, %v5211_v16  ;;  %3439 = vmatpush.bf16.msra.mxu3 %v6012_v26 }
  0x6c   : > { %v7466_v20 = vld [vmem:[#allocation5 + $0x21c] sm:$0xf0] }
  0x6d   : > { %v5723_v23 = vld [vmem:[#allocation5 + $0x400] sm:$0xf]  ;;  %v5468_v38 = vor.u32 %v7466_v20, %v5467_v19  ;;  %3386 = vmatpush.bf16.msra.mxu0 %v5212_v34  ;;  %v236_v20 = vld [vmem:[%s8346_s28 + $0x48] sm:$0xff] }
  0x6e   : > { %v7530_v24 = vld [vmem:[#allocation5 + $0x41c] sm:$0xf0] }
  0x6f   : > { %v5979_v25 = vld [vmem:[#allocation5 + $0x600] sm:$0xf]  ;;  %v5724_v39 = vor.u32 %v7530_v24, %v5723_v23  ;;  %3404 = vmatpush.bf16.msra.mxu1 %v5468_v38 }
  0x70   : > { %v7594_v27 = vld [vmem:[#allocation5 + $0x61c] sm:$0xf0] }
  0x71   : > { %v5179_v28 = vld [vmem:[%s8346_s28] sm:$0xf]  ;;  %v5980_v43 = vor.u32 %v7594_v27, %v5979_v25  ;;  %3422 = vmatpush.bf16.msra.mxu2 %v5724_v39 }
  0x72   : > { %v7394_v29 = vld [vmem:[%s8346_s28 + $0x1c] sm:$0xf0]  ;;  %3405 = vmatmul.bf16.vlgmr.msra.gmra.mxu1 %v8366_v53 }
  0x73   : > { %v6971_v32 = vld [vmem:[#allocation5 + $0xdc0] sm:$0xf]  ;;  %v8364_v48 = vor.u32 %v7394_v29, %v5179_v28  ;;  %3440 = vmatpush.bf16.msra.mxu3 %v5980_v43 }
  0x74   : > { %v7842_v33 = vld [vmem:[#allocation5 + $0xddc] sm:$0xf0]  ;;  %3423 = vmatmul.bf16.vlgmr.msra.gmra.mxu2 %v8368_v54 }
  0x75   : > { %v6715_v36 = vld [vmem:[#allocation5 + $0xbc0] sm:$0xf]  ;;  %v6972_v44 = vor.u32 %v7842_v33, %v6971_v32  ;;  %3387 = vmatmul.bf16.vlgmr.msra.gmra.mxu0 %v8364_v48  ;;  %v781_v32 = vunpack.c.l.b16 %v236_v20 }
  0x76   : > { %v7778_v37 = vld [vmem:[#allocation5 + $0xbdc] sm:$0xf0]  ;;  %3441 = vmatmul.bf16.vlgmr.msra.gmra.mxu3 %v8370_v57 }
  0x77   : > { %v6459_v45 = vld [vmem:[#allocation5 + $0x9c0] sm:$0xf]  ;;  %v6716_v49 = vor.u32 %v7778_v37, %v6715_v36  ;;  %3487 = vmatpush.bf16.msrb.mxu2 %v6972_v44  ;;  %v782_v36 = vunpack.c.h.b16 %v236_v20  ;;  %v7518_v20 = vld [vmem:[#allocation5 + $0x3c4] sm:$0xf] }
  0x78   : > { %v7714_v46 = vld [vmem:[#allocation5 + $0x9dc] sm:$0xf0] }
  0x79   : > { %v7227_v47 = vld [vmem:[#allocation5 + $0xfc0] sm:$0xf]  ;;  %v6460_v58 = vor.u32 %v7714_v46, %v6459_v45  ;;  %3469 = vmatpush.bf16.msrb.mxu1 %v6716_v49  ;;  %v8382_v49 = vpack.c.b16 %v781_v32, %v781_v32 }
  0x7a   : > { %v7906_v50 = vld [vmem:[#allocation5 + $0xfdc] sm:$0xf0] }
  0x7b   : > { %v6939_v51 = vld [vmem:[#allocation5 + $0xd80] sm:$0xf]  ;;  %v7228_v59 = vor.u32 %v7906_v50, %v7227_v47  ;;  %3451 = vmatpush.bf16.msrb.mxu0 %v6460_v58 }
  0x7c   : > { %v7834_v52 = vld [vmem:[#allocation5 + $0xd9c] sm:$0xf0] }
  0x7d   : > { %v6683_v55 = vld [vmem:[#allocation5 + $0xb80] sm:$0xf]  ;;  %v6940_v60 = vor.u32 %v7834_v52, %v6939_v51  ;;  %3505 = vmatpush.bf16.msrb.mxu3 %v7228_v59  ;;  %v8384_v52 = vpack.c.b16 %v782_v36, %v782_v36 }
  0x7e   : > { %v7770_v56 = vld [vmem:[#allocation5 + $0xb9c] sm:$0xf0] }
  0x7f   : > { %v6427_v61 = vld [vmem:[#allocation5 + $0x980] sm:$0xf]  ;;  %v6684_v0 = vor.u32 %v7770_v56, %v6683_v55  ;;  %3488 = vmatpush.bf16.msrb.mxu2 %v6940_v60 }
  0x80   : > { %v7706_v62 = vld [vmem:[#allocation5 + $0x99c] sm:$0xf0] }
  0x81   : > { %v7195_v63 = vld [vmem:[#allocation5 + $0xf80] sm:$0xf]  ;;  %v6428_v6 = vor.u32 %v7706_v62, %v6427_v61  ;;  %3470 = vmatpush.bf16.msrb.mxu1 %v6684_v0 }
  0x82   : > { %v7898_v1 = vld [vmem:[#allocation5 + $0xf9c] sm:$0xf0] }
  0x83   : > { %v6907_v2 = vld [vmem:[#allocation5 + $0xd40] sm:$0xf]  ;;  %v7196_v7 = vor.u32 %v7898_v1, %v7195_v63  ;;  %3452 = vmatpush.bf16.msrb.mxu0 %v6428_v6 }
  0x84   : > { %v7826_v3 = vld [vmem:[#allocation5 + $0xd5c] sm:$0xf0]  ;;  %3428 = vmatmul.bf16.gmra.mxu2 %v8382_v49 }
  0x85   : > { %v6651_v4 = vld [vmem:[#allocation5 + $0xb40] sm:$0xf]  ;;  %v6908_v8 = vor.u32 %v7826_v3, %v6907_v2  ;;  %3506 = vmatpush.bf16.msrb.mxu3 %v7196_v7 }
  0x86   : > { %v7762_v5 = vld [vmem:[#allocation5 + $0xb5c] sm:$0xf0]  ;;  %3446 = vmatmul.bf16.gmra.mxu3 %v8384_v52 }
  0x87   : > { %v6395_v9 = vld [vmem:[#allocation5 + $0x940] sm:$0xf]  ;;  %v6652_v12 = vor.u32 %v7762_v5, %v6651_v4  ;;  %3489 = vmatpush.bf16.msrb.mxu2 %v6908_v8 }
  0x88   : > { %v7698_v10 = vld [vmem:[#allocation5 + $0x95c] sm:$0xf0] }
  0x89   : > { %v7163_v11 = vld [vmem:[#allocation5 + $0xf40] sm:$0xf]  ;;  %v6396_v19 = vor.u32 %v7698_v10, %v6395_v9  ;;  %3471 = vmatpush.bf16.msrb.mxu1 %v6652_v12 }
  0x8a   : > { %v7890_v13 = vld [vmem:[#allocation5 + $0xf5c] sm:$0xf0] }
  0x8b   : > { %v6875_v14 = vld [vmem:[#allocation5 + $0xd00] sm:$0xf]  ;;  %v7164_v21 = vor.u32 %v7890_v13, %v7163_v11  ;;  %3453 = vmatpush.bf16.msrb.mxu0 %v6396_v19 }
  0x8c   : > { %v7818_v15 = vld [vmem:[#allocation5 + $0xd1c] sm:$0xf0] }
  0x8d   : > { %v6619_v16 = vld [vmem:[#allocation5 + $0xb00] sm:$0xf]  ;;  %v6876_v22 = vor.u32 %v7818_v15, %v6875_v14  ;;  %3507 = vmatpush.bf16.msrb.mxu3 %v7164_v21  ;;  %v5693_v21 = vld [vmem:[#allocation5 + $0x3e0] sm:$0xf0] }
  0x8e   : > { %v7754_v17 = vld [vmem:[#allocation5 + $0xb1c] sm:$0xf0]  ;;  %v5696_v36 = vor.u32 %v7518_v20, %v5693_v21  ;;  %v5341_v20 = vld [vmem:[#allocation5 + $0x120] sm:$0xf0] }
  0x8f   : > { %v235_v18 = vld [vmem:[%s8346_s28 + $0x40] sm:$0xff]  ;;  %v6620_v26 = vor.u32 %v7754_v17, %v6619_v16  ;;  %3490 = vmatpush.bf16.msrb.mxu2 %v6876_v22 }
  0x90   : > { %v6363_v23 = vld [vmem:[#allocation5 + $0x900] sm:$0xf]  ;;  %v779_v28 = vunpack.c.l.b16 %v235_v18  ;;  %v780_v31 = vunpack.c.h.b16 %v235_v18  ;;  %v7582_v16 = vld [vmem:[#allocation5 + $0x5c4] sm:$0xf] }
  0x91   : > { %v7690_v24 = vld [vmem:[#allocation5 + $0x91c] sm:$0xf0]  ;;  %3472 = vmatpush.bf16.msrb.mxu1 %v6620_v26  ;;  %v5949_v17 = vld [vmem:[#allocation5 + $0x5e0] sm:$0xf0] }
  0x92   : > { %v7131_v25 = vld [vmem:[#allocation5 + $0xf00] sm:$0xf]  ;;  %v6364_v35 = vor.u32 %v7690_v24, %v6363_v23  ;;  %v8378_v42 = vpack.c.b16 %v779_v28, %v779_v28  ;;  %v8380_v47 = vpack.c.b16 %v780_v31, %v780_v31  ;;  %v5195_v28 = vld [vmem:[%s8346_s28 + $0x10] sm:$0xf]  ;;  %v5197_v31 = vld [vmem:[%s8346_s28 + $0x30] sm:$0xf0]  ;;  %v5952_v32 = vor.u32 %v7582_v16, %v5949_v17 }
  0x93   : > { %v7882_v27 = vld [vmem:[#allocation5 + $0xf1c] sm:$0xf0]  ;;  %v5853_v16 = vld [vmem:[#allocation5 + $0x520] sm:$0xf0] }
  0x94   : > { %v6843_v29 = vld [vmem:[#allocation5 + $0xcc0] sm:$0xf]  ;;  %v7132_v37 = vor.u32 %v7882_v27, %v7131_v25  ;;  %3454 = vmatpush.bf16.msrb.mxu0 %v6364_v35  ;;  %3410 = vmatmul.bf16.gmra.mxu1 %v8380_v47  ;;  %v7646_v35 = vld [vmem:[#allocation5 + $0x7c4] sm:$0xf] }
  0x95   : > { %v7810_v30 = vld [vmem:[#allocation5 + $0xcdc] sm:$0xf0]  ;;  %3392 = vmatmul.bf16.gmra.mxu0 %v8378_v42 }
  0x96   : > { %v6587_v33 = vld [vmem:[#allocation5 + $0xac0] sm:$0xf]  ;;  %v6844_v38 = vor.u32 %v7810_v30, %v6843_v29  ;;  %3508 = vmatpush.bf16.msrb.mxu3 %v7132_v37  ;;  %v7396_v29 = vld [vmem:[%s8346_s28 + $0x2c] sm:$0xf0]  ;;  %v7392_v30 = vld [vmem:[%s8346_s28 + $0x14] sm:$0xf] }
  0x97   : > { %v7746_v34 = vld [vmem:[#allocation5 + $0xadc] sm:$0xf0]  ;;  %v6205_v37 = vld [vmem:[#allocation5 + $0x7e0] sm:$0xf0] }
  0x98   : > { %v6331_v39 = vld [vmem:[#allocation5 + $0x8c0] sm:$0xf]  ;;  %v6588_v43 = vor.u32 %v7746_v34, %v6587_v33  ;;  %3491 = vmatpush.bf16.msrb.mxu2 %v6844_v38  ;;  %v7454_v33 = vld [vmem:[#allocation5 + $0x1c4] sm:$0xf] }
  0x99   : > { %v7682_v40 = vld [vmem:[#allocation5 + $0x8dc] sm:$0xf0]  ;;  %v5437_v34 = vld [vmem:[#allocation5 + $0x1e0] sm:$0xf0] }
  0x9a   : > { %v7099_v41 = vld [vmem:[#allocation5 + $0xec0] sm:$0xf]  ;;  %v6332_v55 = vor.u32 %v7682_v40, %v6331_v39  ;;  %3473 = vmatpush.bf16.msrb.mxu1 %v6588_v43  ;;  %v7574_v38 = vld [vmem:[#allocation5 + $0x584] sm:$0xf]  ;;  %v7397_v43 = vld [vmem:[%s8346_s28 + $0x34] sm:$0xf0] }
  0x9b   : > { %v7874_v44 = vld [vmem:[#allocation5 + $0xedc] sm:$0xf0]  ;;  %v5917_v39 = vld [vmem:[#allocation5 + $0x5a0] sm:$0xf0] }
  0x9c   : > { %v6811_v45 = vld [vmem:[#allocation5 + $0xc80] sm:$0xf]  ;;  %v7100_v56 = vor.u32 %v7874_v44, %v7099_v41  ;;  %3455 = vmatpush.bf16.msrb.mxu0 %v6332_v55  ;;  %v5203_v41 = vld [vmem:[%s8346_s28 + $0x18] sm:$0xf]  ;;  %v7393_v44 = vld [vmem:[%s8346_s28 + $0x1c] sm:$0xf] }
  0x9d   : > { %v7802_v46 = vld [vmem:[#allocation5 + $0xc9c] sm:$0xf0]  ;;  %v5405_v55 = vld [vmem:[#allocation5 + $0x1a0] sm:$0xf0] }
  0x9e   : > { %v6555_v50 = vld [vmem:[#allocation5 + $0xa80] sm:$0xf]  ;;  %v6812_v58 = vor.u32 %v7802_v46, %v6811_v45  ;;  %3509 = vmatpush.bf16.msrb.mxu3 %v7100_v56  ;;  %v5205_v46 = vld [vmem:[%s8346_s28 + $0x38] sm:$0xf0]  ;;  %v6208_v56 = vor.u32 %v7646_v35, %v6205_v37  ;;  %v7486_v37 = vld [vmem:[#allocation5 + $0x2c4] sm:$0xf] }
  0x9f   : > { %v7738_v51 = vld [vmem:[#allocation5 + $0xa9c] sm:$0xf0] }
  0xa0   : > { %v6299_v59 = vld [vmem:[#allocation5 + $0x880] sm:$0xf]  ;;  %v6556_v62 = vor.u32 %v7738_v51, %v6555_v50  ;;  %3492 = vmatpush.bf16.msrb.mxu2 %v6812_v58  ;;  %v5440_v50 = vor.u32 %v7454_v33, %v5437_v34  ;;  %v7446_v51 = vld [vmem:[#allocation5 + $0x184] sm:$0xf]  ;;  %v5920_v58 = vor.u32 %v7574_v38, %v5917_v39 }
  0xa1   : > { %v7674_v60 = vld [vmem:[#allocation5 + $0x89c] sm:$0xf0]  ;;  %v7422_v33 = vld [vmem:[#allocation5 + $0xc4] sm:$0xf] }
  0xa2   : > { %v7067_v61 = vld [vmem:[#allocation5 + $0xe80] sm:$0xf]  ;;  %v6300_v4 = vor.u32 %v7674_v60, %v6299_v59  ;;  %3474 = vmatpush.bf16.msrb.mxu1 %v6556_v62  ;;  %v7510_v59 = vld [vmem:[#allocation5 + $0x384] sm:$0xf]  ;;  %v8398_v62 = vor.u32 %v7396_v29, %v5195_v28  ;;  %v237_v29 = vld [vmem:[%s8346_s28 + $0x50] sm:$0xff] }
  0xa3   : > { %v7866_v63 = vld [vmem:[#allocation5 + $0xe9c] sm:$0xf0]  ;;  %v5661_v60 = vld [vmem:[#allocation5 + $0x3a0] sm:$0xf0] }
  0xa4   : > { %v6779_v0 = vld [vmem:[#allocation5 + $0xc40] sm:$0xf]  ;;  %v7068_v6 = vor.u32 %v7866_v63, %v7067_v61  ;;  %3456 = vmatpush.bf16.msrb.mxu0 %v6300_v4  ;;  %v7638_v61 = vld [vmem:[#allocation5 + $0x784] sm:$0xf]  ;;  %v8400_v63 = vor.u32 %v7392_v30, %v5197_v31  ;;  %v8404_v4 = vor.u32 %v7393_v44, %v5205_v46 }
  0xa5   : > { %v7794_v1 = vld [vmem:[#allocation5 + $0xc5c] sm:$0xf0]  ;;  %v5821_v28 = vld [vmem:[#allocation5 + $0x4e0] sm:$0xf0] }
  0xa6   : > { %v6523_v2 = vld [vmem:[#allocation5 + $0xa40] sm:$0xf]  ;;  %v6780_v7 = vor.u32 %v7794_v1, %v6779_v0  ;;  %3510 = vmatpush.bf16.msrb.mxu3 %v7068_v6  ;;  %v6173_v0 = vld [vmem:[#allocation5 + $0x7a0] sm:$0xf0]  ;;  %v5664_v6 = vor.u32 %v7510_v59, %v5661_v60 }
  0xa7   : > { %v7730_v3 = vld [vmem:[#allocation5 + $0xa5c] sm:$0xf0]  ;;  %v7566_v1 = vld [vmem:[#allocation5 + $0x544] sm:$0xf] }
  0xa8   : > { %v6267_v5 = vld [vmem:[#allocation5 + $0x840] sm:$0xf]  ;;  %v6524_v11 = vor.u32 %v7730_v3, %v6523_v2  ;;  %3493 = vmatpush.bf16.msrb.mxu2 %v6780_v7  ;;  %v5885_v2 = vld [vmem:[#allocation5 + $0x560] sm:$0xf0]  ;;  %v8402_v3 = vor.u32 %v7397_v43, %v5203_v41  ;;  %v784_v41 = vunpack.c.h.b16 %v237_v29 }
  0xa9   : > { %v7666_v8 = vld [vmem:[#allocation5 + $0x85c] sm:$0xf0]  ;;  %v7438_v7 = vld [vmem:[#allocation5 + $0x144] sm:$0xf] }
  0xaa   : > { %v7035_v9 = vld [vmem:[#allocation5 + $0xe40] sm:$0xf]  ;;  %v6268_v18 = vor.u32 %v7666_v8, %v6267_v5  ;;  %3475 = vmatpush.bf16.msrb.mxu1 %v6524_v11  ;;  %v5408_v5 = vor.u32 %v7446_v51, %v5405_v55  ;;  %v5373_v8 = vld [vmem:[#allocation5 + $0x160] sm:$0xf0] }
  0xab   : > { %v7858_v10 = vld [vmem:[#allocation5 + $0xe5c] sm:$0xf0]  ;;  %v7502_v11 = vld [vmem:[#allocation5 + $0x344] sm:$0xf]  ;;  %v5376_v17 = vor.u32 %v7438_v7, %v5373_v8 }
  0xac   : > { %v6747_v12 = vld [vmem:[#allocation5 + $0xc00] sm:$0xf]  ;;  %v7036_v22 = vor.u32 %v7858_v10, %v7035_v9  ;;  %3457 = vmatpush.bf16.msrb.mxu0 %v6268_v18  ;;  %v6176_v9 = vor.u32 %v7638_v61, %v6173_v0  ;;  %v5888_v10 = vor.u32 %v7566_v1, %v5885_v2  ;;  %v5309_v34 = vld [vmem:[#allocation5 + $0xe0] sm:$0xf0] }
  0xad   : > { %v7786_v13 = vld [vmem:[#allocation5 + $0xc1c] sm:$0xf0]  ;;  %v5565_v38 = vld [vmem:[#allocation5 + $0x2e0] sm:$0xf0]  ;;  %v5312_v51 = vor.u32 %v7422_v33, %v5309_v34 }
  0xae   : > { %v6491_v14 = vld [vmem:[#allocation5 + $0xa00] sm:$0xf]  ;;  %v6748_v23 = vor.u32 %v7786_v13, %v6747_v12  ;;  %3511 = vmatpush.bf16.msrb.mxu3 %v7036_v22  ;;  %v5629_v12 = vld [vmem:[#allocation5 + $0x360] sm:$0xf0]  ;;  %v5568_v55 = vor.u32 %v7486_v37, %v5565_v38 }
  0xaf   : > { %v7722_v15 = vld [vmem:[#allocation5 + $0xa1c] sm:$0xf0]  ;;  %v7630_v13 = vld [vmem:[#allocation5 + $0x744] sm:$0xf]  ;;  %v5632_v18 = vor.u32 %v7502_v11, %v5629_v12 }
  0xb0   : > { %v6235_v19 = vld [vmem:[#allocation5 + $0x800] sm:$0xf]  ;;  %v6492_v27 = vor.u32 %v7722_v15, %v6491_v14  ;;  %3494 = vmatpush.bf16.msrb.mxu2 %v6748_v23  ;;  %v6141_v14 = vld [vmem:[#allocation5 + $0x760] sm:$0xf0] }
  0xb1   : > { %v7658_v24 = vld [vmem:[#allocation5 + $0x81c] sm:$0xf0]  ;;  %v7558_v15 = vld [vmem:[#allocation5 + $0x504] sm:$0xf]  ;;  %v6144_v21 = vor.u32 %v7630_v13, %v6141_v14 }
  0xb2   : > { %v7003_v25 = vld [vmem:[#allocation5 + $0xe00] sm:$0xf]  ;;  %v6236_v40 = vor.u32 %v7658_v24, %v6235_v19  ;;  %3476 = vmatpush.bf16.msrb.mxu1 %v6492_v27  ;;  %v7430_v19 = vld [vmem:[#allocation5 + $0x104] sm:$0xf]  ;;  %v5856_v22 = vor.u32 %v7558_v15, %v5853_v16 }
  0xb3   : > { %v7850_v26 = vld [vmem:[#allocation5 + $0xe1c] sm:$0xf0]  ;;  %3495 = vmatmul.bf16.vlgmr.msrb.gmra.mxu2 %v8402_v3  ;;  %v7494_v23 = vld [vmem:[#allocation5 + $0x304] sm:$0xf]  ;;  %v5344_v30 = vor.u32 %v7430_v19, %v5341_v20 }
  0xb4   : > { %v7004_v45 = vor.u32 %v7850_v26, %v7003_v25  ;;  %3559 = vmatpush.bf16.msra.mxu2 %v5952_v32  ;;  %3458 = vmatpush.bf16.msrb.mxu0 %v6236_v40  ;;  %v5597_v24 = vld [vmem:[#allocation5 + $0x320] sm:$0xf0]  ;;  %v238_v32 = vld [vmem:[%s8346_s28 + $0x58] sm:$0xff]  ;;  %v783_v40 = vunpack.c.l.b16 %v237_v29 }
  0xb5   : > { %3477 = vmatmul.bf16.vlgmr.msrb.gmra.mxu1 %v8400_v63  ;;  %v7622_v25 = vld [vmem:[#allocation5 + $0x704] sm:$0xf]  ;;  %v5600_v31 = vor.u32 %v7494_v23, %v5597_v24  ;;  %v785_v46 = vunpack.c.l.b16 %v238_v32 }
  0xb6   : > { %3541 = vmatpush.bf16.msra.mxu1 %v5696_v36  ;;  %3512 = vmatpush.bf16.msrb.mxu3 %v7004_v45  ;;  %v6109_v26 = vld [vmem:[#allocation5 + $0x720] sm:$0xf0]  ;;  %v8412_v2 = vpack.c.b16 %v783_v40, %v783_v40 }
  0xb7   : > { %3459 = vmatmul.bf16.vlgmr.msrb.gmra.mxu0 %v8398_v62  ;;  %v7550_v27 = vld [vmem:[#allocation5 + $0x4c4] sm:$0xf]  ;;  %v6112_v35 = vor.u32 %v7622_v25, %v6109_v26 }
  0xb8   : > { %3523 = vmatpush.bf16.msra.mxu0 %v5440_v50  ;;  %3560 = vmatpush.bf16.msra.mxu2 %v5920_v58  ;;  %v5824_v36 = vor.u32 %v7550_v27, %v5821_v28  ;;  %v7614_v39 = vld [vmem:[#allocation5 + $0x6c4] sm:$0xf]  ;;  %v786_v50 = vunpack.c.h.b16 %v238_v32 }
  0xb9   : > { %3513 = vmatmul.bf16.vlgmr.msrb.gmra.mxu3 %v8404_v4  ;;  %v6077_v43 = vld [vmem:[#allocation5 + $0x6e0] sm:$0xf0] }
  0xba   : > { %3577 = vmatpush.bf16.msra.mxu3 %v6208_v56  ;;  %3542 = vmatpush.bf16.msra.mxu1 %v5664_v6  ;;  %v7542_v44 = vld [vmem:[#allocation5 + $0x484] sm:$0xf]  ;;  %v6080_v59 = vor.u32 %v7614_v39, %v6077_v43 }
  0xbb   : > { %v5789_v45 = vld [vmem:[#allocation5 + $0x4a0] sm:$0xf0] }
  0xbc   : > { %3524 = vmatpush.bf16.msra.mxu0 %v5408_v5  ;;  %3561 = vmatpush.bf16.msra.mxu2 %v5888_v10  ;;  %v7414_v56 = vld [vmem:[#allocation5 + $0x84] sm:$0xf]  ;;  %v5792_v60 = vor.u32 %v7542_v44, %v5789_v45  ;;  %v8414_v5 = vpack.c.b16 %v784_v41, %v784_v41  ;;  %v8418_v10 = vpack.c.b16 %v786_v50, %v786_v50 }
  0xbd   : > { %v5277_v58 = vld [vmem:[#allocation5 + $0xa0] sm:$0xf0] }
  0xbe   : > { %3578 = vmatpush.bf16.msra.mxu3 %v6176_v9  ;;  %3543 = vmatpush.bf16.msra.mxu1 %v5632_v18  ;;  %v7478_v61 = vld [vmem:[#allocation5 + $0x284] sm:$0xf]  ;;  %v8416_v9 = vpack.c.b16 %v785_v46, %v785_v46  ;;  %v5280_v11 = vor.u32 %v7414_v56, %v5277_v58 }
  0xbf   : > { %v5533_v0 = vld [vmem:[#allocation5 + $0x2a0] sm:$0xf0] }
  0xc0   : > { %3525 = vmatpush.bf16.msra.mxu0 %v5376_v17  ;;  %3562 = vmatpush.bf16.msra.mxu2 %v5856_v22  ;;  %v7606_v1 = vld [vmem:[#allocation5 + $0x684] sm:$0xf]  ;;  %v5536_v12 = vor.u32 %v7478_v61, %v5533_v0 }
  0xc1   : > { %v6045_v6 = vld [vmem:[#allocation5 + $0x6a0] sm:$0xf0] }
  0xc2   : > { %3579 = vmatpush.bf16.msra.mxu3 %v6144_v21  ;;  %3544 = vmatpush.bf16.msra.mxu1 %v5600_v31  ;;  %v7534_v7 = vld [vmem:[#allocation5 + $0x444] sm:$0xf]  ;;  %v6048_v15 = vor.u32 %v7606_v1, %v6045_v6 }
  0xc3   : > { %v5757_v8 = vld [vmem:[#allocation5 + $0x460] sm:$0xf0]  ;;  %3500 = vmatmul.bf16.gmra.mxu2 %v8416_v9 }
  0xc4   : > { %3526 = vmatpush.bf16.msra.mxu0 %v5344_v30  ;;  %3563 = vmatpush.bf16.msra.mxu2 %v5824_v36  ;;  %v7406_v13 = vld [vmem:[#allocation5 + $0x44] sm:$0xf]  ;;  %v5760_v16 = vor.u32 %v7534_v7, %v5757_v8 }
  0xc5   : > { %v5245_v14 = vld [vmem:[#allocation5 + $0x60] sm:$0xf0]  ;;  %3482 = vmatmul.bf16.gmra.mxu1 %v8414_v5 }
  0xc6   : > { %3580 = vmatpush.bf16.msra.mxu3 %v6112_v35  ;;  %3545 = vmatpush.bf16.msra.mxu1 %v5568_v55  ;;  %v7470_v17 = vld [vmem:[#allocation5 + $0x244] sm:$0xf]  ;;  %v5248_v25 = vor.u32 %v7406_v13, %v5245_v14 }
  0xc7   : > { %v5501_v18 = vld [vmem:[#allocation5 + $0x260] sm:$0xf0]  ;;  %3464 = vmatmul.bf16.gmra.mxu0 %v8412_v2 }
  0xc8   : > { %3527 = vmatpush.bf16.msra.mxu0 %v5312_v51  ;;  %3564 = vmatpush.bf16.msra.mxu2 %v5792_v60  ;;  %v7598_v19 = vld [vmem:[#allocation5 + $0x644] sm:$0xf]  ;;  %v5504_v26 = vor.u32 %v7470_v17, %v5501_v18 }
  0xc9   : > { %v6013_v20 = vld [vmem:[#allocation5 + $0x660] sm:$0xf0]  ;;  %3518 = vmatmul.bf16.gmra.mxu3 %v8418_v10 }
  0xca   : > { %3581 = vmatpush.bf16.msra.mxu3 %v6080_v59  ;;  %v7526_v21 = vld [vmem:[#allocation5 + $0x404] sm:$0xf]  ;;  %3546 = vmatpush.bf16.msra.mxu1 %v5536_v12  ;;  %v6016_v30 = vor.u32 %v7598_v19, %v6013_v20 }
  0xcb   : > { %v5725_v22 = vld [vmem:[#allocation5 + $0x420] sm:$0xf0] }
  0xcc   : > { %v7838_v23 = vld [vmem:[#allocation5 + $0xdc4] sm:$0xf]  ;;  %3528 = vmatpush.bf16.msra.mxu0 %v5280_v11  ;;  %3565 = vmatpush.bf16.msra.mxu2 %v5760_v16  ;;  %v5728_v31 = vor.u32 %v7526_v21, %v5725_v22 }
  0xcd   : > { %v6973_v24 = vld [vmem:[#allocation5 + $0xde0] sm:$0xf0] }
  0xce   : > { %v7398_v27 = vld [vmem:[#allocation5 + $0x4] sm:$0xf]  ;;  %3582 = vmatpush.bf16.msra.mxu3 %v6048_v15  ;;  %v6976_v35 = vor.u32 %v7838_v23, %v6973_v24  ;;  %3547 = vmatpush.bf16.msra.mxu1 %v5504_v26 }
  0xcf   : > { %v5213_v28 = vld [vmem:[#allocation5 + $0x20] sm:$0xf0] }
  0xd0   : > { %v7462_v29 = vld [vmem:[#allocation5 + $0x204] sm:$0xf]  ;;  %3529 = vmatpush.bf16.msra.mxu0 %v5248_v25  ;;  %v5216_v43 = vor.u32 %v7398_v27, %v5213_v28  ;;  %3566 = vmatpush.bf16.msra.mxu2 %v5728_v31 }
  0xd1   : > { %v5469_v32 = vld [vmem:[#allocation5 + $0x220] sm:$0xf0] }
  0xd2   : > { %v7590_v33 = vld [vmem:[#allocation5 + $0x604] sm:$0xf]  ;;  %v5472_v44 = vor.u32 %v7462_v29, %v5469_v32  ;;  %3583 = vmatpush.bf16.msra.mxu3 %v6016_v30 }
  0xd3   : > { %v5981_v34 = vld [vmem:[#allocation5 + $0x620] sm:$0xf0]  ;;  %3567 = vmatmul.bf16.vlgmr.msra.gmra.mxu2 %v8368_v54 }
  0xd4   : > { %v7710_v36 = vld [vmem:[#allocation5 + $0x9c4] sm:$0xf]  ;;  %v5984_v50 = vor.u32 %v7590_v33, %v5981_v34  ;;  %3631 = vmatpush.bf16.msrb.mxu2 %v6976_v35  ;;  %3530 = vmatpush.bf16.msra.mxu0 %v5216_v43 }
  0xd5   : > { %v6461_v37 = vld [vmem:[#allocation5 + $0x9e0] sm:$0xf0]  ;;  %3548 = vmatpush.bf16.msra.mxu1 %v5472_v44 }
  0xd6   : > { %v7774_v38 = vld [vmem:[#allocation5 + $0xbc4] sm:$0xf]  ;;  %v6464_v51 = vor.u32 %v7710_v36, %v6461_v37  ;;  %3584 = vmatpush.bf16.msra.mxu3 %v5984_v50 }
  0xd7   : > { %v6717_v39 = vld [vmem:[#allocation5 + $0xbe0] sm:$0xf0]  ;;  %3531 = vmatmul.bf16.vlgmr.msra.gmra.mxu0 %v8364_v48 }
  0xd8   : > { %v7902_v40 = vld [vmem:[#allocation5 + $0xfc4] sm:$0xf]  ;;  %v6720_v55 = vor.u32 %v7774_v38, %v6717_v39  ;;  %3595 = vmatpush.bf16.msrb.mxu0 %v6464_v51  ;;  %3549 = vmatmul.bf16.vlgmr.msra.gmra.mxu1 %v8366_v53 }
  0xd9   : > { %v7229_v41 = vld [vmem:[#allocation5 + $0xfe0] sm:$0xf0]  ;;  %3585 = vmatmul.bf16.vlgmr.msra.gmra.mxu3 %v8370_v57 }
  0xda   : > { %v7830_v45 = vld [vmem:[#allocation5 + $0xd84] sm:$0xf]  ;;  %v7232_v56 = vor.u32 %v7902_v40, %v7229_v41  ;;  %3613 = vmatpush.bf16.msrb.mxu1 %v6720_v55 }
  0xdb   : > { %v6941_v46 = vld [vmem:[#allocation5 + $0xda0] sm:$0xf0] }
  0xdc   : > { %v7702_v58 = vld [vmem:[#allocation5 + $0x984] sm:$0xf]  ;;  %v6944_v60 = vor.u32 %v7830_v45, %v6941_v46  ;;  %3649 = vmatpush.bf16.msrb.mxu3 %v7232_v56 }
  0xdd   : > { %v6429_v59 = vld [vmem:[#allocation5 + $0x9a0] sm:$0xf0] }
  0xde   : > { %v7766_v61 = vld [vmem:[#allocation5 + $0xb84] sm:$0xf]  ;;  %v6432_v1 = vor.u32 %v7702_v58, %v6429_v59  ;;  %3632 = vmatpush.bf16.msrb.mxu2 %v6944_v60 }
  0xdf   : > { %v6685_v0 = vld [vmem:[#allocation5 + $0xba0] sm:$0xf0] }
  0xe0   : > { %v7894_v6 = vld [vmem:[#allocation5 + $0xf84] sm:$0xf]  ;;  %v6688_v14 = vor.u32 %v7766_v61, %v6685_v0  ;;  %3596 = vmatpush.bf16.msrb.mxu0 %v6432_v1 }
  0xe1   : > { %v7197_v7 = vld [vmem:[#allocation5 + $0xfa0] sm:$0xf0] }
  0xe2   : > { %v7822_v8 = vld [vmem:[#allocation5 + $0xd44] sm:$0xf]  ;;  %v7200_v15 = vor.u32 %v7894_v6, %v7197_v7  ;;  %3614 = vmatpush.bf16.msrb.mxu1 %v6688_v14 }
  0xe3   : > { %v6909_v11 = vld [vmem:[#allocation5 + $0xd60] sm:$0xf0]  ;;  %3572 = vmatmul.bf16.gmra.mxu2 %v8382_v49 }
  0xe4   : > { %v7694_v12 = vld [vmem:[#allocation5 + $0x944] sm:$0xf]  ;;  %v6912_v18 = vor.u32 %v7822_v8, %v6909_v11  ;;  %3650 = vmatpush.bf16.msrb.mxu3 %v7200_v15 }
  0xe5   : > { %v6397_v13 = vld [vmem:[#allocation5 + $0x960] sm:$0xf0] }
  0xe6   : > { %v7758_v16 = vld [vmem:[#allocation5 + $0xb44] sm:$0xf]  ;;  %v6400_v19 = vor.u32 %v7694_v12, %v6397_v13  ;;  %3633 = vmatpush.bf16.msrb.mxu2 %v6912_v18 }
  0xe7   : > { %v6653_v17 = vld [vmem:[#allocation5 + $0xb60] sm:$0xf0]  ;;  %3536 = vmatmul.bf16.gmra.mxu0 %v8378_v42 }
  0xe8   : > { %v7886_v20 = vld [vmem:[#allocation5 + $0xf44] sm:$0xf]  ;;  %v6656_v26 = vor.u32 %v7758_v16, %v6653_v17  ;;  %3597 = vmatpush.bf16.msrb.mxu0 %v6400_v19  ;;  %3554 = vmatmul.bf16.gmra.mxu1 %v8380_v47 }
  0xe9   : > { %v7165_v21 = vld [vmem:[#allocation5 + $0xf60] sm:$0xf0]  ;;  %3590 = vmatmul.bf16.gmra.mxu3 %v8384_v52 }
  0xea   : > { %v7814_v22 = vld [vmem:[#allocation5 + $0xd04] sm:$0xf]  ;;  %v7168_v27 = vor.u32 %v7886_v20, %v7165_v21  ;;  %3615 = vmatpush.bf16.msrb.mxu1 %v6656_v26  ;;  %v5955_v26 = vld [vmem:[#allocation5 + $0x5c8] sm:$0xf] }
  0xeb   : > { %v6877_v23 = vld [vmem:[#allocation5 + $0xd20] sm:$0xf0] }
  0xec   : > { %v7686_v24 = vld [vmem:[#allocation5 + $0x904] sm:$0xf]  ;;  %v6880_v30 = vor.u32 %v7814_v22, %v6877_v23  ;;  %3651 = vmatpush.bf16.msrb.mxu3 %v7168_v27  ;;  %v7587_v27 = vld [vmem:[#allocation5 + $0x5e4] sm:$0xf0] }
  0xed   : > { %v6365_v25 = vld [vmem:[#allocation5 + $0x920] sm:$0xf0] }
  0xee   : > { %v7750_v28 = vld [vmem:[#allocation5 + $0xb04] sm:$0xf]  ;;  %v6368_v31 = vor.u32 %v7686_v24, %v6365_v25  ;;  %3634 = vmatpush.bf16.msrb.mxu2 %v6880_v30 }
  0xef   : > { %v6621_v29 = vld [vmem:[#allocation5 + $0xb20] sm:$0xf0] }
  0xf0   : > { %v7878_v32 = vld [vmem:[#allocation5 + $0xf04] sm:$0xf]  ;;  %v6624_v38 = vor.u32 %v7750_v28, %v6621_v29  ;;  %3598 = vmatpush.bf16.msrb.mxu0 %v6368_v31  ;;  %v5443_v28 = vld [vmem:[#allocation5 + $0x1c8] sm:$0xf] }
  0xf1   : > { %v7133_v33 = vld [vmem:[#allocation5 + $0xf20] sm:$0xf0]  ;;  %v7459_v29 = vld [vmem:[#allocation5 + $0x1e4] sm:$0xf0] }
  0xf2   : > { %v7806_v34 = vld [vmem:[#allocation5 + $0xcc4] sm:$0xf]  ;;  %v7136_v39 = vor.u32 %v7878_v32, %v7133_v33  ;;  %3616 = vmatpush.bf16.msrb.mxu1 %v6624_v38  ;;  %v5699_v38 = vld [vmem:[#allocation5 + $0x3c8] sm:$0xf] }
  0xf3   : > { %v6845_v35 = vld [vmem:[#allocation5 + $0xce0] sm:$0xf0] }
  0xf4   : > { %v7678_v36 = vld [vmem:[#allocation5 + $0x8c4] sm:$0xf]  ;;  %v6848_v43 = vor.u32 %v7806_v34, %v6845_v35  ;;  %3652 = vmatpush.bf16.msrb.mxu3 %v7136_v39  ;;  %v7523_v39 = vld [vmem:[#allocation5 + $0x3e4] sm:$0xf0] }
  0xf5   : > { %v6333_v37 = vld [vmem:[#allocation5 + $0x8e0] sm:$0xf0] }
  0xf6   : > { %v7742_v40 = vld [vmem:[#allocation5 + $0xac4] sm:$0xf]  ;;  %v6336_v44 = vor.u32 %v7678_v36, %v6333_v37  ;;  %3635 = vmatpush.bf16.msrb.mxu2 %v6848_v43  ;;  %v6211_v43 = vld [vmem:[#allocation5 + $0x7c8] sm:$0xf] }
  0xf7   : > { %v6589_v41 = vld [vmem:[#allocation5 + $0xae0] sm:$0xf0] }
  0xf8   : > { %v7870_v45 = vld [vmem:[#allocation5 + $0xec4] sm:$0xf]  ;;  %v6592_v58 = vor.u32 %v7742_v40, %v6589_v41  ;;  %3599 = vmatpush.bf16.msrb.mxu0 %v6336_v44  ;;  %v5956_v40 = vor.u32 %v7587_v27, %v5955_v26  ;;  %v5444_v41 = vor.u32 %v7459_v29, %v5443_v28  ;;  %v7651_v44 = vld [vmem:[#allocation5 + $0x7e4] sm:$0xf0] }
  0xf9   : > { %v7101_v46 = vld [vmem:[#allocation5 + $0xee0] sm:$0xf0]  ;;  %v5347_v26 = vld [vmem:[#allocation5 + $0x108] sm:$0xf] }
  0xfa   : > { %v7798_v50 = vld [vmem:[#allocation5 + $0xc84] sm:$0xf]  ;;  %v7104_v59 = vor.u32 %v7870_v45, %v7101_v46  ;;  %3617 = vmatpush.bf16.msrb.mxu1 %v6592_v58  ;;  %v5923_v45 = vld [vmem:[#allocation5 + $0x588] sm:$0xf]  ;;  %v5700_v58 = vor.u32 %v7523_v39, %v5699_v38 }
  0xfb   : > { %v6813_v51 = vld [vmem:[#allocation5 + $0xca0] sm:$0xf0]  ;;  %v7579_v46 = vld [vmem:[#allocation5 + $0x5a4] sm:$0xf0] }
  0xfc   : > { %v7670_v55 = vld [vmem:[#allocation5 + $0x884] sm:$0xf]  ;;  %v6816_v0 = vor.u32 %v7798_v50, %v6813_v51  ;;  %3653 = vmatpush.bf16.msrb.mxu3 %v7104_v59  ;;  %v5411_v50 = vld [vmem:[#allocation5 + $0x188] sm:$0xf]  ;;  %v6212_v59 = vor.u32 %v7651_v44, %v6211_v43 }
  0xfd   : > { %v6301_v56 = vld [vmem:[#allocation5 + $0x8a0] sm:$0xf0]  ;;  %v7451_v51 = vld [vmem:[#allocation5 + $0x1a4] sm:$0xf0] }
  0xfe   : > { %v7734_v60 = vld [vmem:[#allocation5 + $0xa84] sm:$0xf]  ;;  %v6304_v1 = vor.u32 %v7670_v55, %v6301_v56  ;;  %3636 = vmatpush.bf16.msrb.mxu2 %v6816_v0  ;;  %v5412_v0 = vor.u32 %v7451_v51, %v5411_v50  ;;  %v7435_v27 = vld [vmem:[#allocation5 + $0x124] sm:$0xf0] }
  0xff   : > { %v6557_v61 = vld [vmem:[#allocation5 + $0xaa0] sm:$0xf0]  ;;  %v5603_v28 = vld [vmem:[#allocation5 + $0x308] sm:$0xf] }
 0x100   : > { %v7862_v6 = vld [vmem:[#allocation5 + $0xe84] sm:$0xf]  ;;  %v6560_v14 = vor.u32 %v7734_v60, %v6557_v61  ;;  %3600 = vmatpush.bf16.msrb.mxu0 %v6304_v1  ;;  %v5667_v60 = vld [vmem:[#allocation5 + $0x388] sm:$0xf]  ;;  %v5924_v61 = vor.u32 %v7579_v46, %v5923_v45 }
 0x101   : > { %v7069_v7 = vld [vmem:[#allocation5 + $0xea0] sm:$0xf0]  ;;  %v7515_v1 = vld [vmem:[#allocation5 + $0x3a4] sm:$0xf0] }
 0x102   : > { %v7790_v8 = vld [vmem:[#allocation5 + $0xc44] sm:$0xf]  ;;  %v7072_v15 = vor.u32 %v7862_v6, %v7069_v7  ;;  %3618 = vmatpush.bf16.msrb.mxu1 %v6560_v14  ;;  %v6179_v6 = vld [vmem:[#allocation5 + $0x788] sm:$0xf] }
 0x103   : > { %v6781_v11 = vld [vmem:[#allocation5 + $0xc60] sm:$0xf0]  ;;  %v7643_v7 = vld [vmem:[#allocation5 + $0x7a4] sm:$0xf0] }
 0x104   : > { %v7662_v12 = vld [vmem:[#allocation5 + $0x844] sm:$0xf]  ;;  %v6784_v19 = vor.u32 %v7790_v8, %v6781_v11  ;;  %3654 = vmatpush.bf16.msrb.mxu3 %v7072_v15  ;;  %v5891_v8 = vld [vmem:[#allocation5 + $0x548] sm:$0xf] }
 0x105   : > { %v6269_v13 = vld [vmem:[#allocation5 + $0x860] sm:$0xf0]  ;;  %v7571_v11 = vld [vmem:[#allocation5 + $0x564] sm:$0xf0] }
 0x106   : > { %v7726_v16 = vld [vmem:[#allocation5 + $0xa44] sm:$0xf]  ;;  %v6272_v20 = vor.u32 %v7662_v12, %v6269_v13  ;;  %3637 = vmatpush.bf16.msrb.mxu2 %v6784_v19  ;;  %v5668_v12 = vor.u32 %v7515_v1, %v5667_v60  ;;  %v6180_v13 = vor.u32 %v7643_v7, %v6179_v6  ;;  %v5379_v14 = vld [vmem:[#allocation5 + $0x148] sm:$0xf] }
 0x107   : > { %v6525_v17 = vld [vmem:[#allocation5 + $0xa60] sm:$0xf0]  ;;  %v7443_v15 = vld [vmem:[#allocation5 + $0x164] sm:$0xf0] }
 0x108   : > { %v7854_v18 = vld [vmem:[#allocation5 + $0xe44] sm:$0xf]  ;;  %v6528_v30 = vor.u32 %v7726_v16, %v6525_v17  ;;  %3601 = vmatpush.bf16.msrb.mxu0 %v6272_v20  ;;  %v5635_v16 = vld [vmem:[#allocation5 + $0x348] sm:$0xf]  ;;  %v5892_v20 = vor.u32 %v7571_v11, %v5891_v8 }
 0x109   : > { %v7037_v21 = vld [vmem:[#allocation5 + $0xe60] sm:$0xf0]  ;;  %v7507_v17 = vld [vmem:[#allocation5 + $0x364] sm:$0xf0] }
 0x10a   : > { %v7782_v22 = vld [vmem:[#allocation5 + $0xc04] sm:$0xf]  ;;  %v7040_v31 = vor.u32 %v7854_v18, %v7037_v21  ;;  %3619 = vmatpush.bf16.msrb.mxu1 %v6528_v30  ;;  %v6147_v18 = vld [vmem:[#allocation5 + $0x748] sm:$0xf]  ;;  %v5380_v21 = vor.u32 %v7443_v15, %v5379_v14 }
 0x10b   : > { %v6749_v23 = vld [vmem:[#allocation5 + $0xc20] sm:$0xf0]  ;;  %v7635_v19 = vld [vmem:[#allocation5 + $0x764] sm:$0xf0] }
 0x10c   : > { %v7654_v24 = vld [vmem:[#allocation5 + $0x804] sm:$0xf]  ;;  %v6752_v35 = vor.u32 %v7782_v22, %v6749_v23  ;;  %3655 = vmatpush.bf16.msrb.mxu3 %v7040_v31  ;;  %v5859_v22 = vld [vmem:[#allocation5 + $0x508] sm:$0xf] }
 0x10d   : > { %v6237_v25 = vld [vmem:[#allocation5 + $0x820] sm:$0xf0]  ;;  %v7563_v23 = vld [vmem:[#allocation5 + $0x524] sm:$0xf0] }
 0x10e   : > { %v7718_v32 = vld [vmem:[#allocation5 + $0xa04] sm:$0xf]  ;;  %v6240_v36 = vor.u32 %v7654_v24, %v6237_v25  ;;  %3638 = vmatpush.bf16.msrb.mxu2 %v6752_v35  ;;  %v5636_v24 = vor.u32 %v7507_v17, %v5635_v16  ;;  %v6148_v25 = vor.u32 %v7635_v19, %v6147_v18  ;;  %v7499_v29 = vld [vmem:[#allocation5 + $0x324] sm:$0xf0] }
 0x10f   : > { %v6493_v33 = vld [vmem:[#allocation5 + $0xa20] sm:$0xf0]  ;;  %v6115_v30 = vld [vmem:[#allocation5 + $0x708] sm:$0xf] }
 0x110   : > { %v7846_v34 = vld [vmem:[#allocation5 + $0xe04] sm:$0xf]  ;;  %v6496_v55 = vor.u32 %v7718_v32, %v6493_v33  ;;  %3602 = vmatpush.bf16.msrb.mxu0 %v6240_v36  ;;  %v7627_v31 = vld [vmem:[#allocation5 + $0x724] sm:$0xf0]  ;;  %v5860_v32 = vor.u32 %v7563_v23, %v5859_v22  ;;  %v5348_v33 = vor.u32 %v7435_v27, %v5347_v26  ;;  %v5604_v36 = vor.u32 %v7499_v29, %v5603_v28 }
 0x111   : > { %v7005_v37 = vld [vmem:[#allocation5 + $0xe20] sm:$0xf0]  ;;  %3639 = vmatmul.bf16.vlgmr.msrb.gmra.mxu2 %v8402_v3  ;;  %v7555_v35 = vld [vmem:[#allocation5 + $0x4e4] sm:$0xf0] }
 0x112   : > { %v7008_v56 = vor.u32 %v7846_v34, %v7005_v37  ;;  %3703 = vmatpush.bf16.msra.mxu2 %v5956_v40  ;;  %3620 = vmatpush.bf16.msrb.mxu1 %v6496_v55  ;;  %v5827_v34 = vld [vmem:[#allocation5 + $0x4c8] sm:$0xf]  ;;  %v6116_v37 = vor.u32 %v7627_v31, %v6115_v30 }
 0x113   : > { %3603 = vmatmul.bf16.vlgmr.msrb.gmra.mxu0 %v8398_v62  ;;  %v5315_v38 = vld [vmem:[#allocation5 + $0xc8] sm:$0xf]  ;;  %v5828_v45 = vor.u32 %v7555_v35, %v5827_v34 }
 0x114   : > { %3667 = vmatpush.bf16.msra.mxu0 %v5444_v41  ;;  %3656 = vmatpush.bf16.msrb.mxu3 %v7008_v56  ;;  %v7427_v39 = vld [vmem:[#allocation5 + $0xe4] sm:$0xf0] }
 0x115   : > { %3621 = vmatmul.bf16.vlgmr.msrb.gmra.mxu1 %v8400_v63  ;;  %v5571_v40 = vld [vmem:[#allocation5 + $0x2c8] sm:$0xf]  ;;  %v5316_v46 = vor.u32 %v7427_v39, %v5315_v38 }
 0x116   : > { %3685 = vmatpush.bf16.msra.mxu1 %v5700_v58  ;;  %3704 = vmatpush.bf16.msra.mxu2 %v5924_v61  ;;  %v7491_v41 = vld [vmem:[#allocation5 + $0x2e4] sm:$0xf0] }
 0x117   : > { %3657 = vmatmul.bf16.vlgmr.msrb.gmra.mxu3 %v8404_v4  ;;  %v6083_v43 = vld [vmem:[#allocation5 + $0x6c8] sm:$0xf]  ;;  %v5572_v55 = vor.u32 %v7491_v41, %v5571_v40 }
 0x118   : > { %3721 = vmatpush.bf16.msra.mxu3 %v6212_v59  ;;  %3668 = vmatpush.bf16.msra.mxu0 %v5412_v0  ;;  %v7619_v44 = vld [vmem:[#allocation5 + $0x6e4] sm:$0xf0] }
 0x119   : > { %v5795_v50 = vld [vmem:[#allocation5 + $0x488] sm:$0xf]  ;;  %v6084_v56 = vor.u32 %v7619_v44, %v6083_v43 }
 0x11a   : > { %3686 = vmatpush.bf16.msra.mxu1 %v5668_v12  ;;  %3705 = vmatpush.bf16.msra.mxu2 %v5892_v20  ;;  %v7547_v51 = vld [vmem:[#allocation5 + $0x4a4] sm:$0xf0] }
 0x11b   : > { %v5283_v58 = vld [vmem:[#allocation5 + $0x88] sm:$0xf]  ;;  %v5796_v6 = vor.u32 %v7547_v51, %v5795_v50 }
 0x11c   : > { %3722 = vmatpush.bf16.msra.mxu3 %v6180_v13  ;;  %3669 = vmatpush.bf16.msra.mxu0 %v5380_v21  ;;  %v7419_v59 = vld [vmem:[#allocation5 + $0xa4] sm:$0xf0] }
 0x11d   : > { %v5539_v60 = vld [vmem:[#allocation5 + $0x288] sm:$0xf]  ;;  %v5284_v7 = vor.u32 %v7419_v59, %v5283_v58 }
 0x11e   : > { %3687 = vmatpush.bf16.msra.mxu1 %v5636_v24  ;;  %3706 = vmatpush.bf16.msra.mxu2 %v5860_v32  ;;  %v7483_v61 = vld [vmem:[#allocation5 + $0x2a4] sm:$0xf0] }
 0x11f   : > { %v6051_v0 = vld [vmem:[#allocation5 + $0x688] sm:$0xf]  ;;  %v5540_v12 = vor.u32 %v7483_v61, %v5539_v60 }
 0x120   : > { %3723 = vmatpush.bf16.msra.mxu3 %v6148_v25  ;;  %3670 = vmatpush.bf16.msra.mxu0 %v5348_v33  ;;  %v7611_v1 = vld [vmem:[#allocation5 + $0x6a4] sm:$0xf0] }
 0x121   : > { %v5763_v8 = vld [vmem:[#allocation5 + $0x448] sm:$0xf]  ;;  %v6052_v13 = vor.u32 %v7611_v1, %v6051_v0  ;;  %3644 = vmatmul.bf16.gmra.mxu2 %v8416_v9 }
 0x122   : > { %3688 = vmatpush.bf16.msra.mxu1 %v5604_v36  ;;  %3707 = vmatpush.bf16.msra.mxu2 %v5828_v45  ;;  %v7539_v11 = vld [vmem:[#allocation5 + $0x464] sm:$0xf0] }
 0x123   : > { %v5251_v14 = vld [vmem:[#allocation5 + $0x48] sm:$0xf]  ;;  %v5764_v21 = vor.u32 %v7539_v11, %v5763_v8  ;;  %3608 = vmatmul.bf16.gmra.mxu0 %v8412_v2 }
 0x124   : > { %3724 = vmatpush.bf16.msra.mxu3 %v6116_v37  ;;  %3671 = vmatpush.bf16.msra.mxu0 %v5316_v46  ;;  %v7411_v15 = vld [vmem:[#allocation5 + $0x64] sm:$0xf0] }
 0x125   : > { %v5507_v16 = vld [vmem:[#allocation5 + $0x248] sm:$0xf]  ;;  %v5252_v22 = vor.u32 %v7411_v15, %v5251_v14  ;;  %3626 = vmatmul.bf16.gmra.mxu1 %v8414_v5 }
 0x126   : > { %3689 = vmatpush.bf16.msra.mxu1 %v5572_v55  ;;  %v7475_v17 = vld [vmem:[#allocation5 + $0x264] sm:$0xf0]  ;;  %3708 = vmatpush.bf16.msra.mxu2 %v5796_v6 }
 0x127   : > { %v6019_v18 = vld [vmem:[#allocation5 + $0x648] sm:$0xf]  ;;  %v5508_v26 = vor.u32 %v7475_v17, %v5507_v16  ;;  %3662 = vmatmul.bf16.gmra.mxu3 %v8418_v10  ;;  %v3388_v17 = vpop.f32.mrf.mxu0 }
 0x128   : > { %3725 = vmatpush.bf16.msra.mxu3 %v6084_v56  ;;  %v7603_v19 = vld [vmem:[#allocation5 + $0x664] sm:$0xf0]  ;;  %3672 = vmatpush.bf16.msra.mxu0 %v5284_v7 }
 0x129   : > { %v5731_v20 = vld [vmem:[#allocation5 + $0x408] sm:$0xf]  ;;  %v6020_v27 = vor.u32 %v7603_v19, %v6019_v18 }
 0x12a   : > { %v7531_v23 = vld [vmem:[#allocation5 + $0x424] sm:$0xf0]  ;;  %3690 = vmatpush.bf16.msra.mxu1 %v5540_v12  ;;  %3709 = vmatpush.bf16.msra.mxu2 %v5764_v21  ;;  %v3406_v21 = vpop.f32.mrf.mxu1 }
 0x12b   : > { %v5219_v24 = vld [vmem:[#allocation5 + $0x8] sm:$0xf]  ;;  %v5732_v37 = vor.u32 %v7531_v23, %v5731_v20 }
 0x12c   : > { %v7403_v25 = vld [vmem:[#allocation5 + $0x24] sm:$0xf0]  ;;  %3726 = vmatpush.bf16.msra.mxu3 %v6052_v13  ;;  %3673 = vmatpush.bf16.msra.mxu0 %v5252_v22  ;;  %v3407_v22 = vadd.f32 %v3406_v21, %v3388_v17 }
 0x12d   : > { %v5475_v28 = vld [vmem:[#allocation5 + $0x208] sm:$0xf]  ;;  %v5220_v38 = vor.u32 %v7403_v25, %v5219_v24 }
 0x12e   : > { %v7467_v29 = vld [vmem:[#allocation5 + $0x224] sm:$0xf0]  ;;  %3691 = vmatpush.bf16.msra.mxu1 %v5508_v26  ;;  %3710 = vmatpush.bf16.msra.mxu2 %v5732_v37 }
 0x12f   : > { %v5987_v30 = vld [vmem:[#allocation5 + $0x608] sm:$0xf]  ;;  %v5476_v43 = vor.u32 %v7467_v29, %v5475_v28 }
 0x130   : > { %v7595_v31 = vld [vmem:[#allocation5 + $0x624] sm:$0xf0]  ;;  %3727 = vmatpush.bf16.msra.mxu3 %v6020_v27  ;;  %3674 = vmatpush.bf16.msra.mxu0 %v5220_v38 }
 0x131   : > { %v6979_v32 = vld [vmem:[#allocation5 + $0xdc8] sm:$0xf]  ;;  %v5988_v44 = vor.u32 %v7595_v31, %v5987_v30  ;;  %3711 = vmatmul.bf16.vlgmr.msra.gmra.mxu2 %v8368_v54 }
 0x132   : > { %v7843_v33 = vld [vmem:[#allocation5 + $0xde4] sm:$0xf0]  ;;  %3692 = vmatpush.bf16.msra.mxu1 %v5476_v43 }
 0x133   : > { %v6467_v34 = vld [vmem:[#allocation5 + $0x9c8] sm:$0xf]  ;;  %v6980_v45 = vor.u32 %v7843_v33, %v6979_v32  ;;  %3675 = vmatmul.bf16.vlgmr.msra.gmra.mxu0 %v8364_v48 }
 0x134   : > { %v7715_v35 = vld [vmem:[#allocation5 + $0x9e4] sm:$0xf0]  ;;  %3728 = vmatpush.bf16.msra.mxu3 %v5988_v44 }
 0x135   : > { %v6723_v36 = vld [vmem:[#allocation5 + $0xbc8] sm:$0xf]  ;;  %v6468_v46 = vor.u32 %v7715_v35, %v6467_v34  ;;  %3775 = vmatpush.bf16.msrb.mxu2 %v6980_v45  ;;  %3693 = vmatmul.bf16.vlgmr.msra.gmra.mxu1 %v8366_v53 }
 0x136   : > { %v7779_v39 = vld [vmem:[#allocation5 + $0xbe4] sm:$0xf0] }
 0x137   : > { %v7235_v40 = vld [vmem:[#allocation5 + $0xfc8] sm:$0xf]  ;;  %v6724_v55 = vor.u32 %v7779_v39, %v6723_v36  ;;  %3739 = vmatpush.bf16.msrb.mxu0 %v6468_v46  ;;  %3729 = vmatmul.bf16.vlgmr.msra.gmra.mxu3 %v8370_v57  ;;  %v3424_v39 = vpop.f32.mrf.mxu2 }
 0x138   : > { %v7907_v41 = vld [vmem:[#allocation5 + $0xfe4] sm:$0xf0]  ;;  %v3425_v46 = vadd.f32 %v3424_v39, %v3407_v22 }
 0x139   : > { %v6947_v50 = vld [vmem:[#allocation5 + $0xd88] sm:$0xf]  ;;  %v7236_v56 = vor.u32 %v7907_v41, %v7235_v40  ;;  %3757 = vmatpush.bf16.msrb.mxu1 %v6724_v55 }
 0x13a   : > { %v7835_v51 = vld [vmem:[#allocation5 + $0xda4] sm:$0xf0] }
 0x13b   : > { %v6435_v58 = vld [vmem:[#allocation5 + $0x988] sm:$0xf]  ;;  %v6948_v6 = vor.u32 %v7835_v51, %v6947_v50  ;;  %3793 = vmatpush.bf16.msrb.mxu3 %v7236_v56  ;;  %v3442_v50 = vpop.f32.mrf.mxu3  ;;  %v3390_v51 = vpop.f32.mrf.mxu0 }
 0x13c   : > { %v7707_v59 = vld [vmem:[#allocation5 + $0x9a4] sm:$0xf0] }
 0x13d   : > { %v6691_v60 = vld [vmem:[#allocation5 + $0xb88] sm:$0xf]  ;;  %v6436_v7 = vor.u32 %v7707_v59, %v6435_v58  ;;  %3776 = vmatpush.bf16.msrb.mxu2 %v6948_v6  ;;  %v3408_v59 = vpop.f32.mrf.mxu1 }
 0x13e   : > { %v7771_v61 = vld [vmem:[#allocation5 + $0xba4] sm:$0xf0] }
 0x13f   : > { %v7203_v0 = vld [vmem:[#allocation5 + $0xf88] sm:$0xf]  ;;  %v6692_v8 = vor.u32 %v7771_v61, %v6691_v60  ;;  %3740 = vmatpush.bf16.msrb.mxu0 %v6436_v7  ;;  %v8444_v61 = vadd.f32 %v3442_v50, %v3425_v46  ;;  %v3426_v22 = vpop.f32.mrf.mxu2 }
 0x140   : > { %v7899_v1 = vld [vmem:[#allocation5 + $0xfa4] sm:$0xf0] }
 0x141   : > { %v7204_v11 = vor.u32 %v7899_v1, %v7203_v0  ;;  %v6915_v12 = vld [vmem:[#allocation5 + $0xd48] sm:$0xf]  ;;  %3758 = vmatpush.bf16.msrb.mxu1 %v6692_v8  ;;  %v3409_v0 = vadd.f32 %v3408_v59, %v3390_v51  ;;  %3716 = vmatmul.bf16.gmra.mxu2 %v8382_v49  ;;  %v7455_v59 = vld [vmem:[#allocation5 + $0x1cc] sm:$0xf] }
 0x142   : > { %v7827_v13 = vld [vmem:[#allocation5 + $0xd64] sm:$0xf0] }
 0x143   : > { %v6403_v14 = vld [vmem:[#allocation5 + $0x948] sm:$0xf]  ;;  %3794 = vmatpush.bf16.msrb.mxu3 %v7204_v11  ;;  %v6916_v23 = vor.u32 %v7827_v13, %v6915_v12  ;;  %3680 = vmatmul.bf16.gmra.mxu0 %v8378_v42 }
 0x144   : > { %v7699_v15 = vld [vmem:[#allocation5 + $0x964] sm:$0xf0] }
 0x145   : > { %v6659_v16 = vld [vmem:[#allocation5 + $0xb48] sm:$0xf]  ;;  %v6404_v24 = vor.u32 %v7699_v15, %v6403_v14  ;;  %3777 = vmatpush.bf16.msrb.mxu2 %v6916_v23  ;;  %3698 = vmatmul.bf16.gmra.mxu1 %v8380_v47 }
 0x146   : > { %v7763_v18 = vld [vmem:[#allocation5 + $0xb64] sm:$0xf0] }
 0x147   : > { %v7171_v19 = vld [vmem:[#allocation5 + $0xf48] sm:$0xf]  ;;  %v6660_v27 = vor.u32 %v7763_v18, %v6659_v16  ;;  %3741 = vmatpush.bf16.msrb.mxu0 %v6404_v24  ;;  %3734 = vmatmul.bf16.gmra.mxu3 %v8384_v52 }
 0x148   : > { %v7891_v20 = vld [vmem:[#allocation5 + $0xf64] sm:$0xf0] }
 0x149   : > { %v6883_v25 = vld [vmem:[#allocation5 + $0xd08] sm:$0xf]  ;;  %v7172_v28 = vor.u32 %v7891_v20, %v7171_v19  ;;  %3759 = vmatpush.bf16.msrb.mxu1 %v6660_v27 }
 0x14a   : > { %v7819_v26 = vld [vmem:[#allocation5 + $0xd24] sm:$0xf0] }
 0x14b   : > { %v6371_v29 = vld [vmem:[#allocation5 + $0x908] sm:$0xf]  ;;  %v6884_v35 = vor.u32 %v7819_v26, %v6883_v25  ;;  %3795 = vmatpush.bf16.msrb.mxu3 %v7172_v28  ;;  %v3427_v28 = vadd.f32 %v3426_v22, %v3409_v0  ;;  %v7519_v0 = vld [vmem:[#allocation5 + $0x3cc] sm:$0xf] }
 0x14c   : > { %v7691_v30 = vld [vmem:[#allocation5 + $0x924] sm:$0xf0] }
 0x14d   : > { %v6627_v31 = vld [vmem:[#allocation5 + $0xb08] sm:$0xf]  ;;  %v6372_v36 = vor.u32 %v7691_v30, %v6371_v29  ;;  %3778 = vmatpush.bf16.msrb.mxu2 %v6884_v35  ;;  %v3444_v29 = vpop.f32.mrf.mxu3  ;;  %v3393_v30 = vpop.f32.mrf.mxu0 }
 0x14e   : > { %v7755_v32 = vld [vmem:[#allocation5 + $0xb24] sm:$0xf0] }
 0x14f   : > { %v7139_v33 = vld [vmem:[#allocation5 + $0xf08] sm:$0xf]  ;;  %v6628_v40 = vor.u32 %v7755_v32, %v6627_v31  ;;  %3742 = vmatpush.bf16.msrb.mxu0 %v6372_v36 }
 0x150   : > { %v7883_v34 = vld [vmem:[#allocation5 + $0xf24] sm:$0xf0] }
 0x151   : > { %v6851_v37 = vld [vmem:[#allocation5 + $0xcc8] sm:$0xf]  ;;  %v7140_v41 = vor.u32 %v7883_v34, %v7139_v33  ;;  %3760 = vmatpush.bf16.msrb.mxu1 %v6628_v40  ;;  %v3411_v34 = vpop.f32.mrf.mxu1 }
 0x152   : > { %v7811_v38 = vld [vmem:[#allocation5 + $0xce4] sm:$0xf0] }
 0x153   : > { %v6339_v43 = vld [vmem:[#allocation5 + $0x8c8] sm:$0xf]  ;;  %v6852_v60 = vor.u32 %v7811_v38, %v6851_v37  ;;  %3796 = vmatpush.bf16.msrb.mxu3 %v7140_v41  ;;  %v8446_v37 = vadd.f32 %v3444_v29, %v3427_v28  ;;  %v3412_v38 = vadd.f32 %v3411_v34, %v3393_v30  ;;  %v5669_v29 = vld [vmem:[#allocation5 + $0x3a8] sm:$0xf0] }
 0x154   : > { %v7683_v44 = vld [vmem:[#allocation5 + $0x8e4] sm:$0xf0]  ;;  %v7639_v30 = vld [vmem:[#allocation5 + $0x78c] sm:$0xf] }
 0x155   : > { %v6595_v45 = vld [vmem:[#allocation5 + $0xac8] sm:$0xf]  ;;  %v6340_v1 = vor.u32 %v7683_v44, %v6339_v43  ;;  %3779 = vmatpush.bf16.msrb.mxu2 %v6852_v60  ;;  %v5445_v60 = vld [vmem:[#allocation5 + $0x1e8] sm:$0xf0] }
 0x156   : > { %v7747_v55 = vld [vmem:[#allocation5 + $0xae4] sm:$0xf0] }
 0x157   : > { %v7107_v56 = vld [vmem:[#allocation5 + $0xec8] sm:$0xf]  ;;  %v6596_v8 = vor.u32 %v7747_v55, %v6595_v45  ;;  %3743 = vmatpush.bf16.msrb.mxu0 %v6340_v1 }
 0x158   : > { %v7875_v58 = vld [vmem:[#allocation5 + $0xee4] sm:$0xf0] }
 0x159   : > { %v6819_v6 = vld [vmem:[#allocation5 + $0xc88] sm:$0xf]  ;;  %v7108_v11 = vor.u32 %v7875_v58, %v7107_v56  ;;  %3761 = vmatpush.bf16.msrb.mxu1 %v6596_v8  ;;  %v7583_v56 = vld [vmem:[#allocation5 + $0x5cc] sm:$0xf]  ;;  %v3413_v22 = vpop.f32.mrf.mxu1 }
 0x15a   : > { %v7803_v7 = vld [vmem:[#allocation5 + $0xca4] sm:$0xf0]  ;;  %v5957_v58 = vld [vmem:[#allocation5 + $0x5e8] sm:$0xf0] }
 0x15b   : > { %v6307_v12 = vld [vmem:[#allocation5 + $0x888] sm:$0xf]  ;;  %v6820_v18 = vor.u32 %v7803_v7, %v6819_v6  ;;  %3797 = vmatpush.bf16.msrb.mxu3 %v7108_v11  ;;  %v5701_v7 = vld [vmem:[#allocation5 + $0x3e8] sm:$0xf0] }
 0x15c   : > { %v7675_v13 = vld [vmem:[#allocation5 + $0x8a4] sm:$0xf0]  ;;  %v7647_v8 = vld [vmem:[#allocation5 + $0x7cc] sm:$0xf] }
 0x15d   : > { %v6563_v14 = vld [vmem:[#allocation5 + $0xa88] sm:$0xf]  ;;  %v6308_v19 = vor.u32 %v7675_v13, %v6307_v12  ;;  %3780 = vmatpush.bf16.msrb.mxu2 %v6820_v18  ;;  %v6213_v11 = vld [vmem:[#allocation5 + $0x7e8] sm:$0xf0]  ;;  %v3429_v12 = vpop.f32.mrf.mxu2  ;;  %v5960_v18 = vor.u32 %v7583_v56, %v5957_v58 }
 0x15e   : > { %v7739_v15 = vld [vmem:[#allocation5 + $0xaa4] sm:$0xf0]  ;;  %v5317_v22 = vld [vmem:[#allocation5 + $0xe8] sm:$0xf0] }
 0x15f   : > { %v7075_v16 = vld [vmem:[#allocation5 + $0xe88] sm:$0xf]  ;;  %v6564_v23 = vor.u32 %v7739_v15, %v6563_v14  ;;  %3744 = vmatpush.bf16.msrb.mxu0 %v6308_v19  ;;  %v3430_v15 = vadd.f32 %v3429_v12, %v3412_v38  ;;  %v5448_v19 = vor.u32 %v7455_v59, %v5445_v60  ;;  %v5893_v38 = vld [vmem:[#allocation5 + $0x568] sm:$0xf0] }
 0x160   : > { %v7867_v17 = vld [vmem:[#allocation5 + $0xea4] sm:$0xf0]  ;;  %v7559_v60 = vld [vmem:[#allocation5 + $0x50c] sm:$0xf] }
 0x161   : > { %v6787_v20 = vld [vmem:[#allocation5 + $0xc48] sm:$0xf]  ;;  %v7076_v24 = vor.u32 %v7867_v17, %v7075_v16  ;;  %3762 = vmatpush.bf16.msrb.mxu1 %v6564_v23  ;;  %v3447_v16 = vpop.f32.mrf.mxu3  ;;  %v3395_v17 = vpop.f32.mrf.mxu0  ;;  %v5704_v23 = vor.u32 %v7519_v0, %v5701_v7  ;;  %v5861_v0 = vld [vmem:[#allocation5 + $0x528] sm:$0xf0] }
 0x162   : > { %v7795_v21 = vld [vmem:[#allocation5 + $0xc64] sm:$0xf0]  ;;  %v8452_v28 = vadd.f32 %v3447_v16, %v3430_v15  ;;  %v7431_v7 = vld [vmem:[#allocation5 + $0x10c] sm:$0xf] }
 0x163   : > { %v6275_v25 = vld [vmem:[#allocation5 + $0x848] sm:$0xf]  ;;  %v6788_v35 = vor.u32 %v7795_v21, %v6787_v20  ;;  %3798 = vmatpush.bf16.msrb.mxu3 %v7076_v24  ;;  %v7575_v20 = vld [vmem:[#allocation5 + $0x58c] sm:$0xf]  ;;  %v6216_v24 = vor.u32 %v7647_v8, %v6213_v11 }
 0x164   : > { %v7667_v26 = vld [vmem:[#allocation5 + $0x864] sm:$0xf0]  ;;  %v5925_v21 = vld [vmem:[#allocation5 + $0x5a8] sm:$0xf0] }
 0x165   : > { %v6531_v27 = vld [vmem:[#allocation5 + $0xa48] sm:$0xf]  ;;  %v6276_v39 = vor.u32 %v7667_v26, %v6275_v25  ;;  %3781 = vmatpush.bf16.msrb.mxu2 %v6788_v35  ;;  %v7447_v25 = vld [vmem:[#allocation5 + $0x18c] sm:$0xf] }
 0x166   : > { %v7731_v31 = vld [vmem:[#allocation5 + $0xa64] sm:$0xf0]  ;;  %v5413_v26 = vld [vmem:[#allocation5 + $0x1a8] sm:$0xf0] }
 0x167   : > { %v7043_v32 = vld [vmem:[#allocation5 + $0xe48] sm:$0xf]  ;;  %v6532_v44 = vor.u32 %v7731_v31, %v6531_v27  ;;  %3745 = vmatpush.bf16.msrb.mxu0 %v6276_v39  ;;  %v7511_v27 = vld [vmem:[#allocation5 + $0x38c] sm:$0xf]  ;;  %v3431_v39 = vpop.f32.mrf.mxu2 }
 0x168   : > { %v7859_v33 = vld [vmem:[#allocation5 + $0xe64] sm:$0xf0]  ;;  %v6181_v31 = vld [vmem:[#allocation5 + $0x7a8] sm:$0xf0]  ;;  %v5672_v34 = vor.u32 %v7511_v27, %v5669_v29 }
 0x169   : > { %v6755_v36 = vld [vmem:[#allocation5 + $0xc08] sm:$0xf]  ;;  %v7044_v45 = vor.u32 %v7859_v33, %v7043_v32  ;;  %3763 = vmatpush.bf16.msrb.mxu1 %v6532_v44  ;;  %v5928_v32 = vor.u32 %v7575_v20, %v5925_v21  ;;  %v5416_v33 = vor.u32 %v7447_v25, %v5413_v26  ;;  %v6184_v35 = vor.u32 %v7639_v30, %v6181_v31  ;;  %v3449_v44 = vpop.f32.mrf.mxu3  ;;  %v5349_v8 = vld [vmem:[#allocation5 + $0x128] sm:$0xf0] }
 0x16a   : > { %v7787_v40 = vld [vmem:[#allocation5 + $0xc24] sm:$0xf0]  ;;  %v7495_v11 = vld [vmem:[#allocation5 + $0x30c] sm:$0xf]  ;;  %v5352_v16 = vor.u32 %v7431_v7, %v5349_v8 }
 0x16b   : > { %v6243_v41 = vld [vmem:[#allocation5 + $0x808] sm:$0xf]  ;;  %v6756_v1 = vor.u32 %v7787_v40, %v6755_v36  ;;  %3799 = vmatpush.bf16.msrb.mxu3 %v7044_v45  ;;  %v7567_v36 = vld [vmem:[#allocation5 + $0x54c] sm:$0xf] }
 0x16c   : > { %v7659_v43 = vld [vmem:[#allocation5 + $0x824] sm:$0xf0]  ;;  %v7439_v40 = vld [vmem:[#allocation5 + $0x14c] sm:$0xf]  ;;  %v5896_v58 = vor.u32 %v7567_v36, %v5893_v38 }
 0x16d   : > { %v6499_v46 = vld [vmem:[#allocation5 + $0xa08] sm:$0xf]  ;;  %v6244_v6 = vor.u32 %v7659_v43, %v6243_v41  ;;  %3782 = vmatpush.bf16.msrb.mxu2 %v6756_v1  ;;  %v5381_v41 = vld [vmem:[#allocation5 + $0x168] sm:$0xf0] }
 0x16e   : > { %v7723_v50 = vld [vmem:[#allocation5 + $0xa24] sm:$0xf0]  ;;  %v7503_v43 = vld [vmem:[#allocation5 + $0x34c] sm:$0xf]  ;;  %v5384_v59 = vor.u32 %v7439_v40, %v5381_v41 }
 0x16f   : > { %v7011_v51 = vld [vmem:[#allocation5 + $0xe08] sm:$0xf]  ;;  %v6500_v13 = vor.u32 %v7723_v50, %v6499_v46  ;;  %3746 = vmatpush.bf16.msrb.mxu0 %v6244_v6  ;;  %v5637_v45 = vld [vmem:[#allocation5 + $0x368] sm:$0xf0] }
 0x170   : > { %v7851_v55 = vld [vmem:[#allocation5 + $0xe24] sm:$0xf0]  ;;  %v7631_v46 = vld [vmem:[#allocation5 + $0x74c] sm:$0xf]  ;;  %v5640_v1 = vor.u32 %v7503_v43, %v5637_v45  ;;  %3783 = vmatmul.bf16.vlgmr.msrb.gmra.mxu2 %v8402_v3 }
 0x171   : > { %v7012_v14 = vor.u32 %v7851_v55, %v7011_v51  ;;  %3764 = vmatpush.bf16.msrb.mxu1 %v6500_v13  ;;  %3847 = vmatpush.bf16.msra.mxu2 %v5960_v18  ;;  %v6149_v50 = vld [vmem:[#allocation5 + $0x768] sm:$0xf0]  ;;  %v3460_v51 = vpop.f32.mrf.mxu0  ;;  %v3478_v55 = vpop.f32.mrf.mxu1 }
 0x172   : > { %v3461_v56 = vadd.f32 %v3460_v51, %v8444_v61  ;;  %v6152_v6 = vor.u32 %v7631_v46, %v6149_v50  ;;  %3747 = vmatmul.bf16.vlgmr.msrb.gmra.mxu0 %v8398_v62  ;;  %v5605_v13 = vld [vmem:[#allocation5 + $0x328] sm:$0xf0]  ;;  %v5864_v61 = vor.u32 %v7559_v60, %v5861_v0  ;;  %v3514_v25 = vpop.f32.mrf.mxu3 }
 0x173   : > { %3800 = vmatpush.bf16.msrb.mxu3 %v7012_v14  ;;  %3811 = vmatpush.bf16.msra.mxu0 %v5448_v19  ;;  %v7623_v14 = vld [vmem:[#allocation5 + $0x70c] sm:$0xf]  ;;  %v5608_v19 = vor.u32 %v7495_v11, %v5605_v13 }
 0x174   : > { %v3479_v12 = vadd.f32 %v3478_v55, %v3461_v56  ;;  %3765 = vmatmul.bf16.vlgmr.msrb.gmra.mxu1 %v8400_v63  ;;  %v6117_v15 = vld [vmem:[#allocation5 + $0x728] sm:$0xf0] }
 0x175   : > { %3829 = vmatpush.bf16.msra.mxu1 %v5704_v23  ;;  %3848 = vmatpush.bf16.msra.mxu2 %v5928_v32  ;;  %v7551_v17 = vld [vmem:[#allocation5 + $0x4cc] sm:$0xf]  ;;  %v6120_v20 = vor.u32 %v7623_v14, %v6117_v15 }
 0x176   : > { %3801 = vmatmul.bf16.vlgmr.msrb.gmra.mxu3 %v8404_v4  ;;  %v5829_v18 = vld [vmem:[#allocation5 + $0x4e8] sm:$0xf0] }
 0x177   : > { %3865 = vmatpush.bf16.msra.mxu3 %v6216_v24  ;;  %3812 = vmatpush.bf16.msra.mxu0 %v5416_v33  ;;  %v7423_v21 = vld [vmem:[#allocation5 + $0xcc] sm:$0xf]  ;;  %v3496_v24 = vpop.f32.mrf.mxu2 }
 0x178   : > { %v7487_v23 = vld [vmem:[#allocation5 + $0x2cc] sm:$0xf]  ;;  %v3497_v30 = vadd.f32 %v3496_v24, %v3479_v12 }
 0x179   : > { %3830 = vmatpush.bf16.msra.mxu1 %v5672_v34  ;;  %3849 = vmatpush.bf16.msra.mxu2 %v5896_v58  ;;  %v5573_v26 = vld [vmem:[#allocation5 + $0x2e8] sm:$0xf0]  ;;  %v3462_v31 = vpop.f32.mrf.mxu0  ;;  %v3480_v32 = vpop.f32.mrf.mxu1  ;;  %v5832_v34 = vor.u32 %v7551_v17, %v5829_v18 }
 0x17a   : > { %v7615_v27 = vld [vmem:[#allocation5 + $0x6cc] sm:$0xf]  ;;  %v3463_v33 = vadd.f32 %v3462_v31, %v8446_v37  ;;  %v8460_v39 = vadd.f32 %v3514_v25, %v3497_v30  ;;  %v5576_v40 = vor.u32 %v7487_v23, %v5573_v26  ;;  %v3516_v11 = vpop.f32.mrf.mxu3 }
 0x17b   : > { %3866 = vmatpush.bf16.msra.mxu3 %v6184_v35  ;;  %3813 = vmatpush.bf16.msra.mxu0 %v5384_v59  ;;  %v6085_v29 = vld [vmem:[#allocation5 + $0x6e8] sm:$0xf0]  ;;  %v5320_v35 = vor.u32 %v7423_v21, %v5317_v22 }
 0x17c   : > { %v7543_v36 = vld [vmem:[#allocation5 + $0x48c] sm:$0xf]  ;;  %v6088_v41 = vor.u32 %v7615_v27, %v6085_v29  ;;  %v3481_v46 = vadd.f32 %v3480_v32, %v3463_v33 }
 0x17d   : > { %3831 = vmatpush.bf16.msra.mxu1 %v5640_v1  ;;  %3850 = vmatpush.bf16.msra.mxu2 %v5864_v61  ;;  %v5797_v38 = vld [vmem:[#allocation5 + $0x4a8] sm:$0xf0] }
 0x17e   : > { %v7415_v43 = vld [vmem:[#allocation5 + $0x8c] sm:$0xf]  ;;  %v5800_v37 = vor.u32 %v7543_v36, %v5797_v38 }
 0x17f   : > { %3867 = vmatpush.bf16.msra.mxu3 %v6152_v6  ;;  %3814 = vmatpush.bf16.msra.mxu0 %v5352_v16  ;;  %v5285_v44 = vld [vmem:[#allocation5 + $0xa8] sm:$0xf0]  ;;  %v3498_v8 = vpop.f32.mrf.mxu2 }
 0x180   : > { %v7479_v45 = vld [vmem:[#allocation5 + $0x28c] sm:$0xf]  ;;  %v5288_v56 = vor.u32 %v7415_v43, %v5285_v44  ;;  %v3499_v15 = vadd.f32 %v3498_v8, %v3481_v46  ;;  %3788 = vmatmul.bf16.gmra.mxu2 %v8416_v9 }
 0x181   : > { %3832 = vmatpush.bf16.msra.mxu1 %v5608_v19  ;;  %v5541_v50 = vld [vmem:[#allocation5 + $0x2a8] sm:$0xf0]  ;;  %3851 = vmatpush.bf16.msra.mxu2 %v5832_v34  ;;  %v3465_v61 = vpop.f32.mrf.mxu0  ;;  %v3483_v16 = vpop.f32.mrf.mxu1 }
 0x182   : > { %v7607_v51 = vld [vmem:[#allocation5 + $0x68c] sm:$0xf]  ;;  %v5544_v60 = vor.u32 %v7479_v45, %v5541_v50  ;;  %v3466_v18 = vadd.f32 %v3465_v61, %v8452_v28  ;;  %v8463_v24 = vadd.f32 %v3516_v11, %v3499_v15  ;;  %3752 = vmatmul.bf16.gmra.mxu0 %v8412_v2 }
 0x183   : > { %3868 = vmatpush.bf16.msra.mxu3 %v6120_v20  ;;  %v6053_v55 = vld [vmem:[#allocation5 + $0x6a8] sm:$0xf0]  ;;  %3815 = vmatpush.bf16.msra.mxu0 %v5320_v35 }
 0x184   : > { %v7535_v58 = vld [vmem:[#allocation5 + $0x44c] sm:$0xf]  ;;  %v6056_v0 = vor.u32 %v7607_v51, %v6053_v55  ;;  %v3484_v31 = vadd.f32 %v3483_v16, %v3466_v18  ;;  %3770 = vmatmul.bf16.gmra.mxu1 %v8414_v5  ;;  %v3519_v51 = vpop.f32.mrf.mxu3 }
 0x185   : > { %v5765_v59 = vld [vmem:[#allocation5 + $0x468] sm:$0xf0]  ;;  %3833 = vmatpush.bf16.msra.mxu1 %v5576_v40  ;;  %3852 = vmatpush.bf16.msra.mxu2 %v5800_v37 }
 0x186   : > { %v7407_v1 = vld [vmem:[#allocation5 + $0x4c] sm:$0xf]  ;;  %v5768_v19 = vor.u32 %v7535_v58, %v5765_v59  ;;  %3806 = vmatmul.bf16.gmra.mxu3 %v8418_v10 }
 0x187   : > { %3869 = vmatpush.bf16.msra.mxu3 %v6088_v41  ;;  %v5253_v6 = vld [vmem:[#allocation5 + $0x68] sm:$0xf0]  ;;  %3816 = vmatpush.bf16.msra.mxu0 %v5288_v56  ;;  %v3501_v50 = vpop.f32.mrf.mxu2 }
 0x188   : > { %v7471_v7 = vld [vmem:[#allocation5 + $0x24c] sm:$0xf]  ;;  %v5256_v20 = vor.u32 %v7407_v1, %v5253_v6  ;;  %v3502_v59 = vadd.f32 %v3501_v50, %v3484_v31 }
 0x189   : > { %v5509_v12 = vld [vmem:[#allocation5 + $0x268] sm:$0xf0]  ;;  %3834 = vmatpush.bf16.msra.mxu1 %v5544_v60  ;;  %3853 = vmatpush.bf16.msra.mxu2 %v5768_v19  ;;  %v3467_v60 = vpop.f32.mrf.mxu0 }
 0x18a   : > { %v7599_v13 = vld [vmem:[#allocation5 + $0x64c] sm:$0xf]  ;;  %v5512_v25 = vor.u32 %v7471_v7, %v5509_v12  ;;  %v8469_v15 = vadd.f32 %v3519_v51, %v3502_v59 }
 0x18b   : > { %v6021_v14 = vld [vmem:[#allocation5 + $0x668] sm:$0xf0]  ;;  %3870 = vmatpush.bf16.msra.mxu3 %v6056_v0  ;;  %3817 = vmatpush.bf16.msra.mxu0 %v5256_v20  ;;  %v3485_v0 = vpop.f32.mrf.mxu1 }
 0x18c   : > { %v7527_v17 = vld [vmem:[#allocation5 + $0x40c] sm:$0xf]  ;;  %v6024_v26 = vor.u32 %v7599_v13, %v6021_v14 }
 0x18d   : > { %v5733_v21 = vld [vmem:[#allocation5 + $0x428] sm:$0xf0]  ;;  %3835 = vmatpush.bf16.msra.mxu1 %v5512_v25 }
 0x18e   : > { %v7399_v22 = vld [vmem:[#allocation5 + $0xc] sm:$0xf]  ;;  %v5736_v38 = vor.u32 %v7527_v17, %v5733_v21 }
 0x18f   : > { %v5221_v23 = vld [vmem:[#allocation5 + $0x28] sm:$0xf0]  ;;  %3871 = vmatpush.bf16.msra.mxu3 %v6024_v26  ;;  %v3503_v25 = vpop.f32.mrf.mxu2  ;;  %v3521_v26 = vpop.f32.mrf.mxu3 }
 0x190   : > { %v7463_v27 = vld [vmem:[#allocation5 + $0x20c] sm:$0xf]  ;;  %v5224_v40 = vor.u32 %v7399_v22, %v5221_v23  ;;  %3854 = vmatpush.bf16.msra.mxu2 %v5736_v38 }
 0x191   : > { %v5477_v29 = vld [vmem:[#allocation5 + $0x228] sm:$0xf0]  ;;  %v3532_v31 = vpop.f32.mrf.mxu0 }
 0x192   : > { %v7591_v30 = vld [vmem:[#allocation5 + $0x60c] sm:$0xf]  ;;  %v5480_v45 = vor.u32 %v7463_v27, %v5477_v29  ;;  %3818 = vmatpush.bf16.msra.mxu0 %v5224_v40 }
 0x193   : > { %v5989_v28 = vld [vmem:[#allocation5 + $0x628] sm:$0xf0]  ;;  %3855 = vmatmul.bf16.vlgmr.msra.gmra.mxu2 %v8368_v54 }
 0x194   : > { %v7839_v32 = vld [vmem:[#allocation5 + $0xdcc] sm:$0xf]  ;;  %v5992_v46 = vor.u32 %v7591_v30, %v5989_v28  ;;  %3836 = vmatpush.bf16.msra.mxu1 %v5480_v45  ;;  %v3550_v28 = vpop.f32.mrf.mxu1 }
 0x195   : > { %v6981_v33 = vld [vmem:[#allocation5 + $0xde8] sm:$0xf0]  ;;  %3819 = vmatmul.bf16.vlgmr.msra.gmra.mxu0 %v8364_v48 }
 0x196   : > { %v7711_v34 = vld [vmem:[#allocation5 + $0x9cc] sm:$0xf]  ;;  %v6984_v55 = vor.u32 %v7839_v32, %v6981_v33  ;;  %3872 = vmatpush.bf16.msra.mxu3 %v5992_v46  ;;  %v3551_v32 = vadd.f32 %v3550_v28, %v3532_v31 }
 0x197   : > { %v6469_v35 = vld [vmem:[#allocation5 + $0x9e8] sm:$0xf0]  ;;  %3837 = vmatmul.bf16.vlgmr.msra.gmra.mxu1 %v8366_v53 }
 0x198   : > { %v7775_v36 = vld [vmem:[#allocation5 + $0xbcc] sm:$0xf]  ;;  %v6472_v37 = vor.u32 %v7711_v34, %v6469_v35  ;;  %3919 = vmatpush.bf16.msrb.mxu2 %v6984_v55 }
 0x199   : > { %v6725_v41 = vld [vmem:[#allocation5 + $0xbe8] sm:$0xf0]  ;;  %3873 = vmatmul.bf16.vlgmr.msra.gmra.mxu3 %v8370_v57 }
 0x19a   : > { %v7903_v43 = vld [vmem:[#allocation5 + $0xfcc] sm:$0xf]  ;;  %v6728_v1 = vor.u32 %v7775_v36, %v6725_v41  ;;  %3883 = vmatpush.bf16.msrb.mxu0 %v6472_v37 }
 0x19b   : > { %v7237_v44 = vld [vmem:[#allocation5 + $0xfe8] sm:$0xf0] }
 0x19c   : > { %v7831_v56 = vld [vmem:[#allocation5 + $0xd8c] sm:$0xf]  ;;  %v7240_v6 = vor.u32 %v7903_v43, %v7237_v44  ;;  %3901 = vmatpush.bf16.msrb.mxu1 %v6728_v1 }
 0x19d   : > { %v6949_v58 = vld [vmem:[#allocation5 + $0xda8] sm:$0xf0] }
 0x19e   : > { %v7703_v7 = vld [vmem:[#allocation5 + $0x98c] sm:$0xf]  ;;  %v6952_v61 = vor.u32 %v7831_v56, %v6949_v58  ;;  %3937 = vmatpush.bf16.msrb.mxu3 %v7240_v6  ;;  %v3568_v6 = vpop.f32.mrf.mxu2 }
 0x19f   : > { %v6437_v8 = vld [vmem:[#allocation5 + $0x9a8] sm:$0xf0] }
 0x1a0   : > { %v7767_v11 = vld [vmem:[#allocation5 + $0xb8c] sm:$0xf]  ;;  %v6440_v16 = vor.u32 %v7703_v7, %v6437_v8  ;;  %3920 = vmatpush.bf16.msrb.mxu2 %v6952_v61  ;;  %v3586_v7 = vpop.f32.mrf.mxu3  ;;  %v3552_v61 = vpop.f32.mrf.mxu1 }
 0x1a1   : > { %v6693_v12 = vld [vmem:[#allocation5 + $0xba8] sm:$0xf0] }
 0x1a2   : > { %v7895_v13 = vld [vmem:[#allocation5 + $0xf8c] sm:$0xf]  ;;  %v6696_v17 = vor.u32 %v7767_v11, %v6693_v12  ;;  %3884 = vmatpush.bf16.msrb.mxu0 %v6440_v16 }
 0x1a3   : > { %v7205_v14 = vld [vmem:[#allocation5 + $0xfa8] sm:$0xf0]  ;;  %3860 = vmatmul.bf16.gmra.mxu2 %v8382_v49 }
 0x1a4   : > { %v7208_v18 = vor.u32 %v7895_v13, %v7205_v14  ;;  %v7823_v19 = vld [vmem:[#allocation5 + $0xd4c] sm:$0xf]  ;;  %3902 = vmatpush.bf16.msrb.mxu1 %v6696_v17  ;;  %v3569_v13 = vadd.f32 %v3568_v6, %v3551_v32  ;;  %v3534_v14 = vpop.f32.mrf.mxu0 }
 0x1a5   : > { %v6917_v20 = vld [vmem:[#allocation5 + $0xd68] sm:$0xf0]  ;;  %v3553_v16 = vadd.f32 %v3552_v61, %v3534_v14  ;;  %3824 = vmatmul.bf16.gmra.mxu0 %v8378_v42 }
 0x1a6   : > { %v7695_v21 = vld [vmem:[#allocation5 + $0x94c] sm:$0xf]  ;;  %3938 = vmatpush.bf16.msrb.mxu3 %v7208_v18  ;;  %v6920_v33 = vor.u32 %v7823_v19, %v6917_v20 }
 0x1a7   : > { %v6405_v22 = vld [vmem:[#allocation5 + $0x968] sm:$0xf0]  ;;  %3842 = vmatmul.bf16.gmra.mxu1 %v8380_v47 }
 0x1a8   : > { %v7759_v23 = vld [vmem:[#allocation5 + $0xb4c] sm:$0xf]  ;;  %v6408_v34 = vor.u32 %v7695_v21, %v6405_v22  ;;  %3921 = vmatpush.bf16.msrb.mxu2 %v6920_v33  ;;  %v8475_v21 = vadd.f32 %v3586_v7, %v3569_v13 }
 0x1a9   : > { %v6661_v27 = vld [vmem:[#allocation5 + $0xb68] sm:$0xf0]  ;;  %3878 = vmatmul.bf16.gmra.mxu3 %v8384_v52 }
 0x1aa   : > { %v7887_v29 = vld [vmem:[#allocation5 + $0xf4c] sm:$0xf]  ;;  %v6664_v38 = vor.u32 %v7759_v23, %v6661_v27  ;;  %3885 = vmatpush.bf16.msrb.mxu0 %v6408_v34 }
 0x1ab   : > { %v7173_v30 = vld [vmem:[#allocation5 + $0xf68] sm:$0xf0] }
 0x1ac   : > { %v7815_v35 = vld [vmem:[#allocation5 + $0xd0c] sm:$0xf]  ;;  %v7176_v40 = vor.u32 %v7887_v29, %v7173_v30  ;;  %3903 = vmatpush.bf16.msrb.mxu1 %v6664_v38 }
 0x1ad   : > { %v6885_v36 = vld [vmem:[#allocation5 + $0xd28] sm:$0xf0] }
 0x1ae   : > { %v7687_v41 = vld [vmem:[#allocation5 + $0x90c] sm:$0xf]  ;;  %v6888_v51 = vor.u32 %v7815_v35, %v6885_v36  ;;  %3939 = vmatpush.bf16.msrb.mxu3 %v7176_v40 }
 0x1af   : > { %v6373_v43 = vld [vmem:[#allocation5 + $0x928] sm:$0xf0] }
 0x1b0   : > { %v7751_v44 = vld [vmem:[#allocation5 + $0xb0c] sm:$0xf]  ;;  %v6376_v55 = vor.u32 %v7687_v41, %v6373_v43  ;;  %3922 = vmatpush.bf16.msrb.mxu2 %v6888_v51  ;;  %v3570_v43 = vpop.f32.mrf.mxu2 }
 0x1b1   : > { %v6629_v45 = vld [vmem:[#allocation5 + $0xb28] sm:$0xf0]  ;;  %v3571_v51 = vadd.f32 %v3570_v43, %v3553_v16  ;;  %v5963_v16 = vld [vmem:[#allocation5 + $0x5d0] sm:$0xf] }
 0x1b2   : > { %v7879_v46 = vld [vmem:[#allocation5 + $0xf0c] sm:$0xf]  ;;  %v6632_v58 = vor.u32 %v7751_v44, %v6629_v45  ;;  %3886 = vmatpush.bf16.msrb.mxu0 %v6376_v55  ;;  %v3588_v44 = vpop.f32.mrf.mxu3  ;;  %v3537_v55 = vpop.f32.mrf.mxu0 }
 0x1b3   : > { %v7141_v50 = vld [vmem:[#allocation5 + $0xf28] sm:$0xf0]  ;;  %v8477_v7 = vadd.f32 %v3588_v44, %v3571_v51  ;;  %v5419_v44 = vld [vmem:[#allocation5 + $0x190] sm:$0xf] }
 0x1b4   : > { %v7807_v37 = vld [vmem:[#allocation5 + $0xccc] sm:$0xf]  ;;  %v7144_v59 = vor.u32 %v7879_v46, %v7141_v50  ;;  %3904 = vmatpush.bf16.msrb.mxu1 %v6632_v58  ;;  %v6187_v51 = vld [vmem:[#allocation5 + $0x790] sm:$0xf] }
 0x1b5   : > { %v6853_v56 = vld [vmem:[#allocation5 + $0xce8] sm:$0xf0] }
 0x1b6   : > { %v7679_v60 = vld [vmem:[#allocation5 + $0x8cc] sm:$0xf]  ;;  %v6856_v17 = vor.u32 %v7807_v37, %v6853_v56  ;;  %3940 = vmatpush.bf16.msrb.mxu3 %v7144_v59  ;;  %v3555_v37 = vpop.f32.mrf.mxu1 }
 0x1b7   : > { %v6341_v0 = vld [vmem:[#allocation5 + $0x8e8] sm:$0xf0]  ;;  %v3556_v58 = vadd.f32 %v3555_v37, %v3537_v55  ;;  %v7644_v55 = vld [vmem:[#allocation5 + $0x7ac] sm:$0xf0] }
 0x1b8   : > { %v7743_v1 = vld [vmem:[#allocation5 + $0xacc] sm:$0xf]  ;;  %v6344_v18 = vor.u32 %v7679_v60, %v6341_v0  ;;  %3923 = vmatpush.bf16.msrb.mxu2 %v6856_v17  ;;  %v7588_v17 = vld [vmem:[#allocation5 + $0x5ec] sm:$0xf0] }
 0x1b9   : > { %v6597_v8 = vld [vmem:[#allocation5 + $0xae8] sm:$0xf0] }
 0x1ba   : > { %v7871_v11 = vld [vmem:[#allocation5 + $0xecc] sm:$0xf]  ;;  %v6600_v22 = vor.u32 %v7743_v1, %v6597_v8  ;;  %3887 = vmatpush.bf16.msrb.mxu0 %v6344_v18  ;;  %v5451_v18 = vld [vmem:[#allocation5 + $0x1d0] sm:$0xf] }
 0x1bb   : > { %v7109_v12 = vld [vmem:[#allocation5 + $0xee8] sm:$0xf0] }
 0x1bc   : > { %v7799_v19 = vld [vmem:[#allocation5 + $0xc8c] sm:$0xf]  ;;  %v7112_v23 = vor.u32 %v7871_v11, %v7109_v12  ;;  %3905 = vmatpush.bf16.msrb.mxu1 %v6600_v22 }
 0x1bd   : > { %v6821_v20 = vld [vmem:[#allocation5 + $0xca8] sm:$0xf0] }
 0x1be   : > { %v7671_v25 = vld [vmem:[#allocation5 + $0x88c] sm:$0xf]  ;;  %v6824_v28 = vor.u32 %v7799_v19, %v6821_v20  ;;  %3941 = vmatpush.bf16.msrb.mxu3 %v7112_v23  ;;  %v7460_v19 = vld [vmem:[#allocation5 + $0x1ec] sm:$0xf0] }
 0x1bf   : > { %v6309_v26 = vld [vmem:[#allocation5 + $0x8a8] sm:$0xf0]  ;;  %v5707_v20 = vld [vmem:[#allocation5 + $0x3d0] sm:$0xf] }
 0x1c0   : > { %v7735_v27 = vld [vmem:[#allocation5 + $0xa8c] sm:$0xf]  ;;  %v6312_v32 = vor.u32 %v7671_v25, %v6309_v26  ;;  %3924 = vmatpush.bf16.msrb.mxu2 %v6824_v28  ;;  %v7524_v25 = vld [vmem:[#allocation5 + $0x3ec] sm:$0xf0]  ;;  %v3591_v28 = vpop.f32.mrf.mxu3 }
 0x1c1   : > { %v6565_v29 = vld [vmem:[#allocation5 + $0xaa8] sm:$0xf0]  ;;  %v6219_v26 = vld [vmem:[#allocation5 + $0x7d0] sm:$0xf] }
 0x1c2   : > { %v7863_v30 = vld [vmem:[#allocation5 + $0xe8c] sm:$0xf]  ;;  %v6568_v35 = vor.u32 %v7735_v27, %v6565_v29  ;;  %3888 = vmatpush.bf16.msrb.mxu0 %v6312_v32  ;;  %v7652_v27 = vld [vmem:[#allocation5 + $0x7ec] sm:$0xf0]  ;;  %v5964_v32 = vor.u32 %v7588_v17, %v5963_v16 }
 0x1c3   : > { %v7077_v31 = vld [vmem:[#allocation5 + $0xea8] sm:$0xf0]  ;;  %v6220_v43 = vor.u32 %v7652_v27, %v6219_v26  ;;  %v7636_v16 = vld [vmem:[#allocation5 + $0x76c] sm:$0xf0] }
 0x1c4   : > { %v7791_v33 = vld [vmem:[#allocation5 + $0xc4c] sm:$0xf]  ;;  %v7080_v36 = vor.u32 %v7863_v30, %v7077_v31  ;;  %3906 = vmatpush.bf16.msrb.mxu1 %v6568_v35  ;;  %v3573_v31 = vpop.f32.mrf.mxu2  ;;  %v7580_v35 = vld [vmem:[#allocation5 + $0x5ac] sm:$0xf0] }
 0x1c5   : > { %v6789_v34 = vld [vmem:[#allocation5 + $0xc68] sm:$0xf0] }
 0x1c6   : > { %v7663_v38 = vld [vmem:[#allocation5 + $0x84c] sm:$0xf]  ;;  %v6792_v59 = vor.u32 %v7791_v33, %v6789_v34  ;;  %3942 = vmatpush.bf16.msrb.mxu3 %v7080_v36  ;;  %v5452_v33 = vor.u32 %v7460_v19, %v5451_v18  ;;  %v5931_v34 = vld [vmem:[#allocation5 + $0x590] sm:$0xf]  ;;  %v3574_v36 = vadd.f32 %v3573_v31, %v3556_v58 }
 0x1c7   : > { %v6277_v40 = vld [vmem:[#allocation5 + $0x868] sm:$0xf0]  ;;  %v5611_v31 = vld [vmem:[#allocation5 + $0x310] sm:$0xf] }
 0x1c8   : > { %v7727_v41 = vld [vmem:[#allocation5 + $0xa4c] sm:$0xf]  ;;  %v6280_v60 = vor.u32 %v7663_v38, %v6277_v40  ;;  %3925 = vmatpush.bf16.msrb.mxu2 %v6792_v59  ;;  %v3539_v38 = vpop.f32.mrf.mxu0  ;;  %v3557_v40 = vpop.f32.mrf.mxu1  ;;  %v8483_v37 = vadd.f32 %v3591_v28, %v3574_v36  ;;  %v5835_v36 = vld [vmem:[#allocation5 + $0x4d0] sm:$0xf] }
 0x1c9   : > { %v6533_v45 = vld [vmem:[#allocation5 + $0xa68] sm:$0xf0]  ;;  %v7556_v38 = vld [vmem:[#allocation5 + $0x4ec] sm:$0xf0] }
 0x1ca   : > { %v7855_v46 = vld [vmem:[#allocation5 + $0xe4c] sm:$0xf]  ;;  %v6536_v8 = vor.u32 %v7727_v41, %v6533_v45  ;;  %3889 = vmatpush.bf16.msrb.mxu0 %v6280_v60  ;;  %v5708_v41 = vor.u32 %v7524_v25, %v5707_v20  ;;  %v7452_v45 = vld [vmem:[#allocation5 + $0x1ac] sm:$0xf0]  ;;  %v6188_v60 = vor.u32 %v7644_v55, %v6187_v51 }
 0x1cb   : > { %v7045_v50 = vld [vmem:[#allocation5 + $0xe68] sm:$0xf0]  ;;  %v5420_v58 = vor.u32 %v7452_v45, %v5419_v44  ;;  %v7564_v25 = vld [vmem:[#allocation5 + $0x52c] sm:$0xf0] }
 0x1cc   : > { %v7783_v56 = vld [vmem:[#allocation5 + $0xc0c] sm:$0xf]  ;;  %v7048_v11 = vor.u32 %v7855_v46, %v7045_v50  ;;  %3907 = vmatpush.bf16.msrb.mxu1 %v6536_v8  ;;  %v5675_v46 = vld [vmem:[#allocation5 + $0x390] sm:$0xf] }
 0x1cd   : > { %v6757_v0 = vld [vmem:[#allocation5 + $0xc28] sm:$0xf0]  ;;  %v7516_v50 = vld [vmem:[#allocation5 + $0x3ac] sm:$0xf0] }
 0x1ce   : > { %v7655_v1 = vld [vmem:[#allocation5 + $0x80c] sm:$0xf]  ;;  %v6760_v22 = vor.u32 %v7783_v56, %v6757_v0  ;;  %3943 = vmatpush.bf16.msrb.mxu3 %v7048_v11  ;;  %v5932_v56 = vor.u32 %v7580_v35, %v5931_v34  ;;  %v5676_v59 = vor.u32 %v7516_v50, %v5675_v46  ;;  %v5899_v0 = vld [vmem:[#allocation5 + $0x550] sm:$0xf] }
 0x1cf   : > { %v6245_v6 = vld [vmem:[#allocation5 + $0x828] sm:$0xf0]  ;;  %v7444_v8 = vld [vmem:[#allocation5 + $0x16c] sm:$0xf0] }
 0x1d0   : > { %v7719_v12 = vld [vmem:[#allocation5 + $0xa0c] sm:$0xf]  ;;  %v6248_v23 = vor.u32 %v7655_v1, %v6245_v6  ;;  %3926 = vmatpush.bf16.msrb.mxu2 %v6760_v22  ;;  %v7572_v1 = vld [vmem:[#allocation5 + $0x56c] sm:$0xf0]  ;;  %v3604_v17 = vpop.f32.mrf.mxu0  ;;  %v3622_v18 = vpop.f32.mrf.mxu1 }
 0x1d1   : > { %v6501_v13 = vld [vmem:[#allocation5 + $0xa28] sm:$0xf0]  ;;  %v5387_v6 = vld [vmem:[#allocation5 + $0x150] sm:$0xf]  ;;  %v3605_v19 = vadd.f32 %v3604_v17, %v8475_v21  ;;  %v5900_v20 = vor.u32 %v7572_v1, %v5899_v0  ;;  %v5836_v1 = vor.u32 %v7556_v38, %v5835_v36 }
 0x1d2   : > { %v7847_v14 = vld [vmem:[#allocation5 + $0xe0c] sm:$0xf]  ;;  %v6504_v29 = vor.u32 %v7719_v12, %v6501_v13  ;;  %3890 = vmatpush.bf16.msrb.mxu0 %v6248_v23  ;;  %v5643_v11 = vld [vmem:[#allocation5 + $0x350] sm:$0xf]  ;;  %v3575_v12 = vpop.f32.mrf.mxu2  ;;  %v3593_v13 = vpop.f32.mrf.mxu3  ;;  %v5388_v22 = vor.u32 %v7444_v8, %v5387_v6 }
 0x1d3   : > { %v7013_v61 = vld [vmem:[#allocation5 + $0xe28] sm:$0xf0]  ;;  %v5867_v23 = vld [vmem:[#allocation5 + $0x510] sm:$0xf]  ;;  %v3623_v28 = vadd.f32 %v3622_v18, %v3605_v19  ;;  %3927 = vmatmul.bf16.vlgmr.msrb.gmra.mxu2 %v8402_v3 }
 0x1d4   : > { %v7016_v30 = vor.u32 %v7847_v14, %v7013_v61  ;;  %3908 = vmatpush.bf16.msrb.mxu1 %v6504_v29  ;;  %3991 = vmatpush.bf16.msra.mxu2 %v5964_v32  ;;  %v7508_v14 = vld [vmem:[#allocation5 + $0x36c] sm:$0xf0]  ;;  %v5868_v21 = vor.u32 %v7564_v25, %v5867_v23 }
 0x1d5   : > { %v6155_v61 = vld [vmem:[#allocation5 + $0x750] sm:$0xf]  ;;  %v5644_v26 = vor.u32 %v7508_v14, %v5643_v11  ;;  %3891 = vmatmul.bf16.vlgmr.msrb.gmra.mxu0 %v8398_v62 }
 0x1d6   : > { %3944 = vmatpush.bf16.msrb.mxu3 %v7016_v30  ;;  %3955 = vmatpush.bf16.msra.mxu0 %v5452_v33  ;;  %v6156_v27 = vor.u32 %v7636_v16, %v6155_v61  ;;  %v5355_v29 = vld [vmem:[#allocation5 + $0x110] sm:$0xf] }
 0x1d7   : > { %v7436_v30 = vld [vmem:[#allocation5 + $0x12c] sm:$0xf0]  ;;  %3909 = vmatmul.bf16.vlgmr.msrb.gmra.mxu1 %v8400_v63 }
 0x1d8   : > { %3973 = vmatpush.bf16.msra.mxu1 %v5708_v41  ;;  %3992 = vmatpush.bf16.msra.mxu2 %v5932_v56  ;;  %v7500_v32 = vld [vmem:[#allocation5 + $0x32c] sm:$0xf0]  ;;  %v5356_v35 = vor.u32 %v7436_v30, %v5355_v29 }
 0x1d9   : > { %v6123_v33 = vld [vmem:[#allocation5 + $0x710] sm:$0xf]  ;;  %3945 = vmatmul.bf16.vlgmr.msrb.gmra.mxu3 %v8404_v4  ;;  %v5612_v40 = vor.u32 %v7500_v32, %v5611_v31 }
 0x1da   : > { %4009 = vmatpush.bf16.msra.mxu3 %v6220_v43  ;;  %3956 = vmatpush.bf16.msra.mxu0 %v5420_v58  ;;  %v7628_v34 = vld [vmem:[#allocation5 + $0x72c] sm:$0xf0]  ;;  %v3640_v46 = vpop.f32.mrf.mxu2  ;;  %v3658_v50 = vpop.f32.mrf.mxu3 }
 0x1db   : > { %v6124_v41 = vor.u32 %v7628_v34, %v6123_v33  ;;  %v5323_v43 = vld [vmem:[#allocation5 + $0xd0] sm:$0xf]  ;;  %v3641_v58 = vadd.f32 %v3640_v46, %v3623_v28 }
 0x1dc   : > { %3974 = vmatpush.bf16.msra.mxu1 %v5676_v59  ;;  %3993 = vmatpush.bf16.msra.mxu2 %v5900_v20  ;;  %v7428_v44 = vld [vmem:[#allocation5 + $0xec] sm:$0xf0]  ;;  %v3606_v59 = vpop.f32.mrf.mxu0 }
 0x1dd   : > { %v5579_v45 = vld [vmem:[#allocation5 + $0x2d0] sm:$0xf]  ;;  %v3607_v0 = vadd.f32 %v3606_v59, %v8477_v7  ;;  %v5324_v6 = vor.u32 %v7428_v44, %v5323_v43  ;;  %v8491_v12 = vadd.f32 %v3658_v50, %v3641_v58 }
 0x1de   : > { %4010 = vmatpush.bf16.msra.mxu3 %v6188_v60  ;;  %3957 = vmatpush.bf16.msra.mxu0 %v5388_v22  ;;  %v7492_v51 = vld [vmem:[#allocation5 + $0x2ec] sm:$0xf0]  ;;  %v3624_v60 = vpop.f32.mrf.mxu1 }
 0x1df   : > { %v6091_v55 = vld [vmem:[#allocation5 + $0x6d0] sm:$0xf]  ;;  %v5580_v13 = vor.u32 %v7492_v51, %v5579_v45  ;;  %v3625_v18 = vadd.f32 %v3624_v60, %v3607_v0 }
 0x1e0   : > { %3975 = vmatpush.bf16.msra.mxu1 %v5644_v26  ;;  %v7620_v56 = vld [vmem:[#allocation5 + $0x6ec] sm:$0xf0]  ;;  %3994 = vmatpush.bf16.msra.mxu2 %v5868_v21 }
 0x1e1   : > { %v5803_v8 = vld [vmem:[#allocation5 + $0x490] sm:$0xf]  ;;  %v6092_v14 = vor.u32 %v7620_v56, %v6091_v55 }
 0x1e2   : > { %4011 = vmatpush.bf16.msra.mxu3 %v6156_v27  ;;  %3958 = vmatpush.bf16.msra.mxu0 %v5356_v35  ;;  %v7548_v11 = vld [vmem:[#allocation5 + $0x4ac] sm:$0xf0]  ;;  %v3642_v32 = vpop.f32.mrf.mxu2  ;;  %v3660_v33 = vpop.f32.mrf.mxu3 }
 0x1e3   : > { %v5291_v61 = vld [vmem:[#allocation5 + $0x90] sm:$0xf]  ;;  %v5804_v7 = vor.u32 %v7548_v11, %v5803_v8  ;;  %v3643_v36 = vadd.f32 %v3642_v32, %v3625_v18  ;;  %3932 = vmatmul.bf16.gmra.mxu2 %v8416_v9 }
 0x1e4   : > { %3976 = vmatpush.bf16.msra.mxu1 %v5612_v40  ;;  %v7420_v16 = vld [vmem:[#allocation5 + $0xac] sm:$0xf0]  ;;  %3995 = vmatpush.bf16.msra.mxu2 %v5836_v1  ;;  %v3609_v38 = vpop.f32.mrf.mxu0 }
 0x1e5   : > { %v5547_v17 = vld [vmem:[#allocation5 + $0x290] sm:$0xf]  ;;  %v5292_v23 = vor.u32 %v7420_v16, %v5291_v61  ;;  %v3610_v43 = vadd.f32 %v3609_v38, %v8483_v37  ;;  %v8494_v55 = vadd.f32 %v3660_v33, %v3643_v36  ;;  %3896 = vmatmul.bf16.gmra.mxu0 %v8412_v2 }
 0x1e6   : > { %4012 = vmatpush.bf16.msra.mxu3 %v6124_v41  ;;  %v7484_v19 = vld [vmem:[#allocation5 + $0x2ac] sm:$0xf0]  ;;  %3959 = vmatpush.bf16.msra.mxu0 %v5324_v6  ;;  %v3627_v40 = vpop.f32.mrf.mxu1 }
 0x1e7   : > { %v6059_v20 = vld [vmem:[#allocation5 + $0x690] sm:$0xf]  ;;  %v5548_v27 = vor.u32 %v7484_v19, %v5547_v17  ;;  %v3628_v1 = vadd.f32 %v3627_v40, %v3610_v43  ;;  %3914 = vmatmul.bf16.gmra.mxu1 %v8414_v5 }
 0x1e8   : > { %v7612_v22 = vld [vmem:[#allocation5 + $0x6ac] sm:$0xf0]  ;;  %3977 = vmatpush.bf16.msra.mxu1 %v5580_v13  ;;  %3996 = vmatpush.bf16.msra.mxu2 %v5804_v7 }
 0x1e9   : > { %v5771_v25 = vld [vmem:[#allocation5 + $0x450] sm:$0xf]  ;;  %v6060_v29 = vor.u32 %v7612_v22, %v6059_v20  ;;  %3950 = vmatmul.bf16.gmra.mxu3 %v8418_v10 }
 0x1ea   : > { %v7540_v26 = vld [vmem:[#allocation5 + $0x46c] sm:$0xf0]  ;;  %4013 = vmatpush.bf16.msra.mxu3 %v6092_v14  ;;  %3960 = vmatpush.bf16.msra.mxu0 %v5292_v23  ;;  %v3645_v7 = vpop.f32.mrf.mxu2  ;;  %v3663_v23 = vpop.f32.mrf.mxu3 }
 0x1eb   : > { %v5259_v30 = vld [vmem:[#allocation5 + $0x50] sm:$0xf]  ;;  %v5772_v44 = vor.u32 %v7540_v26, %v5771_v25 }
 0x1ec   : > { %v7412_v31 = vld [vmem:[#allocation5 + $0x6c] sm:$0xf0]  ;;  %3978 = vmatpush.bf16.msra.mxu1 %v5548_v27 }
 0x1ed   : > { %v5515_v28 = vld [vmem:[#allocation5 + $0x250] sm:$0xf]  ;;  %v5260_v45 = vor.u32 %v7412_v31, %v5259_v30  ;;  %3997 = vmatpush.bf16.msra.mxu2 %v5772_v44  ;;  %v3646_v30 = vadd.f32 %v3645_v7, %v3628_v1  ;;  %v3611_v31 = vpop.f32.mrf.mxu0 }
 0x1ee   : > { %v7476_v34 = vld [vmem:[#allocation5 + $0x26c] sm:$0xf0]  ;;  %4014 = vmatpush.bf16.msra.mxu3 %v6060_v29 }
 0x1ef   : > { %v6027_v21 = vld [vmem:[#allocation5 + $0x650] sm:$0xf]  ;;  %v5516_v56 = vor.u32 %v7476_v34, %v5515_v28  ;;  %3961 = vmatpush.bf16.msra.mxu0 %v5260_v45  ;;  %v3629_v28 = vpop.f32.mrf.mxu1 }
 0x1f0   : > { %v7604_v35 = vld [vmem:[#allocation5 + $0x66c] sm:$0xf0] }
 0x1f1   : > { %v5739_v41 = vld [vmem:[#allocation5 + $0x410] sm:$0xf]  ;;  %v6028_v58 = vor.u32 %v7604_v35, %v6027_v21  ;;  %3979 = vmatpush.bf16.msra.mxu1 %v5516_v56 }
 0x1f2   : > { %v7532_v46 = vld [vmem:[#allocation5 + $0x42c] sm:$0xf0] }
 0x1f3   : > { %v5227_v50 = vld [vmem:[#allocation5 + $0x10] sm:$0xf]  ;;  %v5740_v61 = vor.u32 %v7532_v46, %v5739_v41  ;;  %4015 = vmatpush.bf16.msra.mxu3 %v6028_v58  ;;  %v8500_v41 = vadd.f32 %v3663_v23, %v3646_v30 }
 0x1f4   : > { %v7404_v51 = vld [vmem:[#allocation5 + $0x2c] sm:$0xf0] }
 0x1f5   : > { %v5483_v59 = vld [vmem:[#allocation5 + $0x210] sm:$0xf]  ;;  %v5228_v16 = vor.u32 %v7404_v51, %v5227_v50  ;;  %3998 = vmatpush.bf16.msra.mxu2 %v5740_v61 }
 0x1f6   : > { %v7468_v60 = vld [vmem:[#allocation5 + $0x22c] sm:$0xf0] }
 0x1f7   : > { %v5995_v0 = vld [vmem:[#allocation5 + $0x610] sm:$0xf]  ;;  %v5484_v20 = vor.u32 %v7468_v60, %v5483_v59  ;;  %3962 = vmatpush.bf16.msra.mxu0 %v5228_v16  ;;  %v3647_v60 = vpop.f32.mrf.mxu2 }
 0x1f8   : > { %v7596_v37 = vld [vmem:[#allocation5 + $0x62c] sm:$0xf0]  ;;  %3999 = vmatmul.bf16.vlgmr.msra.gmra.mxu2 %v8368_v54 }
 0x1f9   : > { %v6987_v6 = vld [vmem:[#allocation5 + $0xdd0] sm:$0xf]  ;;  %v5996_v22 = vor.u32 %v7596_v37, %v5995_v0  ;;  %3980 = vmatpush.bf16.msra.mxu1 %v5484_v20  ;;  %v3665_v0 = vpop.f32.mrf.mxu3 }
 0x1fa   : > { %v7844_v8 = vld [vmem:[#allocation5 + $0xdec] sm:$0xf0]  ;;  %3963 = vmatmul.bf16.vlgmr.msra.gmra.mxu0 %v8364_v48 }
 0x1fb   : > { %v6475_v11 = vld [vmem:[#allocation5 + $0x9d0] sm:$0xf]  ;;  %v6988_v25 = vor.u32 %v7844_v8, %v6987_v6  ;;  %4016 = vmatpush.bf16.msra.mxu3 %v5996_v22  ;;  %v3676_v8 = vpop.f32.mrf.mxu0 }
 0x1fc   : > { %v7716_v13 = vld [vmem:[#allocation5 + $0x9ec] sm:$0xf0]  ;;  %3981 = vmatmul.bf16.vlgmr.msra.gmra.mxu1 %v8366_v53 }
 0x1fd   : > { %v6731_v14 = vld [vmem:[#allocation5 + $0xbd0] sm:$0xf]  ;;  %v6476_v26 = vor.u32 %v7716_v13, %v6475_v11  ;;  %4063 = vmatpush.bf16.msrb.mxu2 %v6988_v25  ;;  %v3694_v11 = vpop.f32.mrf.mxu1 }
 0x1fe   : > { %v7780_v17 = vld [vmem:[#allocation5 + $0xbec] sm:$0xf0]  ;;  %v3695_v13 = vadd.f32 %v3694_v11, %v3676_v8  ;;  %4017 = vmatmul.bf16.vlgmr.msra.gmra.mxu3 %v8370_v57 }
 0x1ff   : > { %v7243_v18 = vld [vmem:[#allocation5 + $0xfd0] sm:$0xf]  ;;  %v6732_v32 = vor.u32 %v7780_v17, %v6731_v14  ;;  %4027 = vmatpush.bf16.msrb.mxu0 %v6476_v26 }
 0x200   : > { %v7908_v19 = vld [vmem:[#allocation5 + $0xfec] sm:$0xf0] }
 0x201   : > { %v6955_v27 = vld [vmem:[#allocation5 + $0xd90] sm:$0xf]  ;;  %v7244_v33 = vor.u32 %v7908_v19, %v7243_v18  ;;  %4045 = vmatpush.bf16.msrb.mxu1 %v6732_v32 }
 0x202   : > { %v7836_v29 = vld [vmem:[#allocation5 + $0xdac] sm:$0xf0] }
 0x203   : > { %v6443_v34 = vld [vmem:[#allocation5 + $0x990] sm:$0xf]  ;;  %v6956_v43 = vor.u32 %v7836_v29, %v6955_v27  ;;  %4081 = vmatpush.bf16.msrb.mxu3 %v7244_v33 }
 0x204   : > { %v7708_v21 = vld [vmem:[#allocation5 + $0x9ac] sm:$0xf0] }
 0x205   : > { %v6699_v35 = vld [vmem:[#allocation5 + $0xb90] sm:$0xf]  ;;  %v6444_v44 = vor.u32 %v7708_v21, %v6443_v34  ;;  %4064 = vmatpush.bf16.msrb.mxu2 %v6956_v43 }
 0x206   : > { %v7772_v36 = vld [vmem:[#allocation5 + $0xbac] sm:$0xf0] }
 0x207   : > { %v7211_v38 = vld [vmem:[#allocation5 + $0xf90] sm:$0xf]  ;;  %v6700_v45 = vor.u32 %v7772_v36, %v6699_v35  ;;  %4028 = vmatpush.bf16.msrb.mxu0 %v6444_v44  ;;  %v3712_v35 = vpop.f32.mrf.mxu2  ;;  %v3730_v36 = vpop.f32.mrf.mxu3 }
 0x208   : > { %v7900_v40 = vld [vmem:[#allocation5 + $0xfac] sm:$0xf0]  ;;  %v3713_v44 = vadd.f32 %v3712_v35, %v3695_v13  ;;  %4004 = vmatmul.bf16.gmra.mxu2 %v8382_v49 }
 0x209   : > { %v7212_v46 = vor.u32 %v7900_v40, %v7211_v38  ;;  %v6923_v50 = vld [vmem:[#allocation5 + $0xd50] sm:$0xf]  ;;  %4046 = vmatpush.bf16.msrb.mxu1 %v6700_v45  ;;  %v3678_v45 = vpop.f32.mrf.mxu0 }
 0x20a   : > { %v7828_v51 = vld [vmem:[#allocation5 + $0xd6c] sm:$0xf0]  ;;  %v8506_v60 = vadd.f32 %v3730_v36, %v3713_v44  ;;  %3968 = vmatmul.bf16.gmra.mxu0 %v8378_v42 }
 0x20b   : > { %v6411_v56 = vld [vmem:[#allocation5 + $0x950] sm:$0xf]  ;;  %4082 = vmatpush.bf16.msrb.mxu3 %v7212_v46  ;;  %v6924_v14 = vor.u32 %v7828_v51, %v6923_v50  ;;  %v3696_v46 = vpop.f32.mrf.mxu1 }
 0x20c   : > { %v7700_v58 = vld [vmem:[#allocation5 + $0x96c] sm:$0xf0]  ;;  %v3697_v50 = vadd.f32 %v3696_v46, %v3678_v45  ;;  %3986 = vmatmul.bf16.gmra.mxu1 %v8380_v47 }
 0x20d   : > { %v6667_v59 = vld [vmem:[#allocation5 + $0xb50] sm:$0xf]  ;;  %v6412_v61 = vor.u32 %v7700_v58, %v6411_v56  ;;  %4065 = vmatpush.bf16.msrb.mxu2 %v6924_v14 }
 0x20e   : > { %v7764_v1 = vld [vmem:[#allocation5 + $0xb6c] sm:$0xf0]  ;;  %4022 = vmatmul.bf16.gmra.mxu3 %v8384_v52 }
 0x20f   : > { %v7179_v37 = vld [vmem:[#allocation5 + $0xf50] sm:$0xf]  ;;  %v6668_v18 = vor.u32 %v7764_v1, %v6667_v59  ;;  %4029 = vmatpush.bf16.msrb.mxu0 %v6412_v61 }
 0x210   : > { %v7892_v6 = vld [vmem:[#allocation5 + $0xf6c] sm:$0xf0] }
 0x211   : > { %v6891_v16 = vld [vmem:[#allocation5 + $0xd10] sm:$0xf]  ;;  %v7180_v19 = vor.u32 %v7892_v6, %v7179_v37  ;;  %4047 = vmatpush.bf16.msrb.mxu1 %v6668_v18 }
 0x212   : > { %v7820_v17 = vld [vmem:[#allocation5 + $0xd2c] sm:$0xf0] }
 0x213   : > { %v6379_v20 = vld [vmem:[#allocation5 + $0x910] sm:$0xf]  ;;  %v6892_v27 = vor.u32 %v7820_v17, %v6891_v16  ;;  %4083 = vmatpush.bf16.msrb.mxu3 %v7180_v19 }
 0x214   : > { %v7692_v22 = vld [vmem:[#allocation5 + $0x92c] sm:$0xf0] }
 0x215   : > { %v6635_v7 = vld [vmem:[#allocation5 + $0xb10] sm:$0xf]  ;;  %v6380_v29 = vor.u32 %v7692_v22, %v6379_v20  ;;  %4066 = vmatpush.bf16.msrb.mxu2 %v6892_v27 }
 0x216   : > { %v7756_v23 = vld [vmem:[#allocation5 + $0xb2c] sm:$0xf0] }
 0x217   : > { %v7147_v25 = vld [vmem:[#allocation5 + $0xf10] sm:$0xf]  ;;  %v6636_v28 = vor.u32 %v7756_v23, %v6635_v7  ;;  %4030 = vmatpush.bf16.msrb.mxu0 %v6380_v29 }
 0x218   : > { %v7884_v26 = vld [vmem:[#allocation5 + $0xf2c] sm:$0xf0] }
 0x219   : > { %v6859_v30 = vld [vmem:[#allocation5 + $0xcd0] sm:$0xf]  ;;  %v7148_v32 = vor.u32 %v7884_v26, %v7147_v25  ;;  %4048 = vmatpush.bf16.msrb.mxu1 %v6636_v28  ;;  %v3714_v25 = vpop.f32.mrf.mxu2  ;;  %v3732_v26 = vpop.f32.mrf.mxu3 }
 0x21a   : > { %v7812_v31 = vld [vmem:[#allocation5 + $0xcec] sm:$0xf0]  ;;  %v3681_v28 = vpop.f32.mrf.mxu0 }
 0x21b   : > { %v6347_v33 = vld [vmem:[#allocation5 + $0x8d0] sm:$0xf]  ;;  %v6860_v51 = vor.u32 %v7812_v31, %v6859_v30  ;;  %4084 = vmatpush.bf16.msrb.mxu3 %v7148_v32  ;;  %v3715_v31 = vadd.f32 %v3714_v25, %v3697_v50  ;;  %v3699_v32 = vpop.f32.mrf.mxu1 }
 0x21c   : > { %v7684_v34 = vld [vmem:[#allocation5 + $0x8ec] sm:$0xf0] }
 0x21d   : > { %v6603_v21 = vld [vmem:[#allocation5 + $0xad0] sm:$0xf]  ;;  %v6348_v56 = vor.u32 %v7684_v34, %v6347_v33  ;;  %4067 = vmatpush.bf16.msrb.mxu2 %v6860_v51  ;;  %v3700_v34 = vadd.f32 %v3699_v32, %v3681_v28  ;;  %v7512_v28 = vld [vmem:[#allocation5 + $0x394] sm:$0xf] }
 0x21e   : > { %v7748_v38 = vld [vmem:[#allocation5 + $0xaec] sm:$0xf0]  ;;  %v5677_v32 = vld [vmem:[#allocation5 + $0x3b0] sm:$0xf0] }
 0x21f   : > { %v7115_v40 = vld [vmem:[#allocation5 + $0xed0] sm:$0xf]  ;;  %v6604_v0 = vor.u32 %v7748_v38, %v6603_v21  ;;  %4031 = vmatpush.bf16.msrb.mxu0 %v6348_v56 }
 0x220   : > { %v7876_v43 = vld [vmem:[#allocation5 + $0xeec] sm:$0xf0] }
 0x221   : > { %v6827_v58 = vld [vmem:[#allocation5 + $0xc90] sm:$0xf]  ;;  %v7116_v1 = vor.u32 %v7876_v43, %v7115_v40  ;;  %4049 = vmatpush.bf16.msrb.mxu1 %v6604_v0  ;;  %v8508_v43 = vadd.f32 %v3732_v26, %v3715_v31  ;;  %v7456_v0 = vld [vmem:[#allocation5 + $0x1d4] sm:$0xf] }
 0x222   : > { %v7804_v59 = vld [vmem:[#allocation5 + $0xcac] sm:$0xf0]  ;;  %v3683_v25 = vpop.f32.mrf.mxu0  ;;  %v5421_v31 = vld [vmem:[#allocation5 + $0x1b0] sm:$0xf0] }
 0x223   : > { %v6315_v37 = vld [vmem:[#allocation5 + $0x890] sm:$0xf]  ;;  %v6828_v61 = vor.u32 %v7804_v59, %v6827_v58  ;;  %4085 = vmatpush.bf16.msrb.mxu3 %v7116_v1  ;;  %v7584_v58 = vld [vmem:[#allocation5 + $0x5d4] sm:$0xf]  ;;  %v3701_v26 = vpop.f32.mrf.mxu1 }
 0x224   : > { %v7676_v6 = vld [vmem:[#allocation5 + $0x8ac] sm:$0xf0]  ;;  %v5965_v59 = vld [vmem:[#allocation5 + $0x5f0] sm:$0xf0] }
 0x225   : > { %v6571_v8 = vld [vmem:[#allocation5 + $0xa90] sm:$0xf]  ;;  %v6316_v16 = vor.u32 %v7676_v6, %v6315_v37  ;;  %4068 = vmatpush.bf16.msrb.mxu2 %v6828_v61  ;;  %v5453_v1 = vld [vmem:[#allocation5 + $0x1f0] sm:$0xf0] }
 0x226   : > { %v7740_v11 = vld [vmem:[#allocation5 + $0xaac] sm:$0xf0]  ;;  %v7520_v37 = vld [vmem:[#allocation5 + $0x3d4] sm:$0xf] }
 0x227   : > { %v7083_v13 = vld [vmem:[#allocation5 + $0xe90] sm:$0xf]  ;;  %v6572_v19 = vor.u32 %v7740_v11, %v6571_v8  ;;  %4032 = vmatpush.bf16.msrb.mxu0 %v6316_v16  ;;  %v5709_v11 = vld [vmem:[#allocation5 + $0x3f0] sm:$0xf0] }
 0x228   : > { %v7868_v14 = vld [vmem:[#allocation5 + $0xeac] sm:$0xf0]  ;;  %v6125_v25 = vld [vmem:[#allocation5 + $0x730] sm:$0xf0] }
 0x229   : > { %v6795_v17 = vld [vmem:[#allocation5 + $0xc50] sm:$0xf]  ;;  %v7084_v20 = vor.u32 %v7868_v14, %v7083_v13  ;;  %4050 = vmatpush.bf16.msrb.mxu1 %v6572_v19  ;;  %v7648_v13 = vld [vmem:[#allocation5 + $0x7d4] sm:$0xf]  ;;  %v5968_v19 = vor.u32 %v7584_v58, %v5965_v59 }
 0x22a   : > { %v7796_v18 = vld [vmem:[#allocation5 + $0xc6c] sm:$0xf0]  ;;  %v6221_v14 = vld [vmem:[#allocation5 + $0x7f0] sm:$0xf0] }
 0x22b   : > { %v6283_v22 = vld [vmem:[#allocation5 + $0x850] sm:$0xf]  ;;  %v6796_v21 = vor.u32 %v7796_v18, %v6795_v17  ;;  %4086 = vmatpush.bf16.msrb.mxu3 %v7084_v20  ;;  %v3717_v17 = vpop.f32.mrf.mxu2  ;;  %v3735_v18 = vpop.f32.mrf.mxu3  ;;  %v5456_v20 = vor.u32 %v7456_v0, %v5453_v1  ;;  %v5645_v59 = vld [vmem:[#allocation5 + $0x370] sm:$0xf0] }
 0x22c   : > { %v7668_v7 = vld [vmem:[#allocation5 + $0x86c] sm:$0xf0]  ;;  %v7632_v0 = vld [vmem:[#allocation5 + $0x754] sm:$0xf] }
 0x22d   : > { %v6539_v23 = vld [vmem:[#allocation5 + $0xa50] sm:$0xf]  ;;  %v6284_v35 = vor.u32 %v7668_v7, %v6283_v22  ;;  %4069 = vmatpush.bf16.msrb.mxu2 %v6796_v21  ;;  %v7576_v22 = vld [vmem:[#allocation5 + $0x594] sm:$0xf] }
 0x22e   : > { %v7732_v27 = vld [vmem:[#allocation5 + $0xa6c] sm:$0xf0]  ;;  %v5933_v7 = vld [vmem:[#allocation5 + $0x5b0] sm:$0xf0] }
 0x22f   : > { %v7051_v29 = vld [vmem:[#allocation5 + $0xe50] sm:$0xf]  ;;  %v6540_v44 = vor.u32 %v7732_v27, %v6539_v23  ;;  %4033 = vmatpush.bf16.msrb.mxu0 %v6284_v35  ;;  %v3718_v23 = vadd.f32 %v3717_v17, %v3700_v34  ;;  %v5712_v27 = vor.u32 %v7520_v37, %v5709_v11  ;;  %v6189_v21 = vld [vmem:[#allocation5 + $0x7b0] sm:$0xf0]  ;;  %v3748_v37 = vpop.f32.mrf.mxu0 }
 0x230   : > { %v7860_v30 = vld [vmem:[#allocation5 + $0xe6c] sm:$0xf0]  ;;  %v6157_v1 = vld [vmem:[#allocation5 + $0x770] sm:$0xf0] }
 0x231   : > { %v6763_v33 = vld [vmem:[#allocation5 + $0xc10] sm:$0xf]  ;;  %v7052_v45 = vor.u32 %v7860_v30, %v7051_v29  ;;  %4051 = vmatpush.bf16.msrb.mxu1 %v6540_v44  ;;  %v6224_v29 = vor.u32 %v7648_v13, %v6221_v14  ;;  %v7448_v30 = vld [vmem:[#allocation5 + $0x194] sm:$0xf]  ;;  %v8514_v35 = vadd.f32 %v3735_v18, %v3718_v23  ;;  %v6160_v17 = vor.u32 %v7632_v0, %v6157_v1 }
 0x232   : > { %v7788_v36 = vld [vmem:[#allocation5 + $0xc2c] sm:$0xf0]  ;;  %v5424_v34 = vor.u32 %v7448_v30, %v5421_v31  ;;  %v7568_v44 = vld [vmem:[#allocation5 + $0x554] sm:$0xf] }
 0x233   : > { %v6251_v38 = vld [vmem:[#allocation5 + $0x810] sm:$0xf]  ;;  %v6764_v6 = vor.u32 %v7788_v36, %v6763_v33  ;;  %4087 = vmatpush.bf16.msrb.mxu3 %v7052_v45  ;;  %v7640_v33 = vld [vmem:[#allocation5 + $0x794] sm:$0xf]  ;;  %v5936_v36 = vor.u32 %v7576_v22, %v5933_v7  ;;  %v3737_v58 = vpop.f32.mrf.mxu3 }
 0x234   : > { %v7660_v40 = vld [vmem:[#allocation5 + $0x82c] sm:$0xf0]  ;;  %v5901_v45 = vld [vmem:[#allocation5 + $0x570] sm:$0xf0] }
 0x235   : > { %v6507_v46 = vld [vmem:[#allocation5 + $0xa10] sm:$0xf]  ;;  %v6252_v8 = vor.u32 %v7660_v40, %v6251_v38  ;;  %4070 = vmatpush.bf16.msrb.mxu2 %v6764_v6  ;;  %v5680_v38 = vor.u32 %v7512_v28, %v5677_v32  ;;  %v6192_v40 = vor.u32 %v7640_v33, %v6189_v21  ;;  %v3766_v6 = vpop.f32.mrf.mxu1  ;;  %v5904_v11 = vor.u32 %v7568_v44, %v5901_v45  ;;  %v7560_v14 = vld [vmem:[#allocation5 + $0x514] sm:$0xf] }
 0x236   : > { %v7724_v51 = vld [vmem:[#allocation5 + $0xa2c] sm:$0xf0]  ;;  %v7432_v18 = vld [vmem:[#allocation5 + $0x114] sm:$0xf] }
 0x237   : > { %v7019_v50 = vld [vmem:[#allocation5 + $0xe10] sm:$0xf]  ;;  %v6508_v61 = vor.u32 %v7724_v51, %v6507_v46  ;;  %4034 = vmatpush.bf16.msrb.mxu0 %v6252_v8  ;;  %v7440_v46 = vld [vmem:[#allocation5 + $0x154] sm:$0xf]  ;;  %v3749_v8 = vadd.f32 %v3748_v37, %v8506_v60  ;;  %v3750_v45 = vpop.f32.mrf.mxu0 }
 0x238   : > { %v7852_v56 = vld [vmem:[#allocation5 + $0xe2c] sm:$0xf0]  ;;  %v5389_v51 = vld [vmem:[#allocation5 + $0x170] sm:$0xf0]  ;;  %4071 = vmatmul.bf16.vlgmr.msrb.gmra.mxu2 %v8402_v3 }
 0x239   : > { %v7020_v16 = vor.u32 %v7852_v56, %v7019_v50  ;;  %4052 = vmatpush.bf16.msrb.mxu1 %v6508_v61  ;;  %4135 = vmatpush.bf16.msra.mxu2 %v5968_v19  ;;  %v7504_v50 = vld [vmem:[#allocation5 + $0x354] sm:$0xf]  ;;  %v3719_v56 = vpop.f32.mrf.mxu2  ;;  %v5392_v13 = vor.u32 %v7440_v46, %v5389_v51  ;;  %v3767_v22 = vadd.f32 %v3766_v6, %v3749_v8 }
 0x23a   : > { %v5869_v61 = vld [vmem:[#allocation5 + $0x530] sm:$0xf0]  ;;  %4035 = vmatmul.bf16.vlgmr.msrb.gmra.mxu0 %v8398_v62  ;;  %v3751_v51 = vadd.f32 %v3750_v45, %v8508_v43 }
 0x23b   : > { %4088 = vmatpush.bf16.msrb.mxu3 %v7020_v16  ;;  %4099 = vmatpush.bf16.msra.mxu0 %v5456_v20  ;;  %v5648_v16 = vor.u32 %v7504_v50, %v5645_v59  ;;  %v5357_v19 = vld [vmem:[#allocation5 + $0x130] sm:$0xf0]  ;;  %v5872_v60 = vor.u32 %v7560_v14, %v5869_v61 }
 0x23c   : > { %v7496_v20 = vld [vmem:[#allocation5 + $0x314] sm:$0xf]  ;;  %4053 = vmatmul.bf16.vlgmr.msrb.gmra.mxu1 %v8400_v63  ;;  %v5360_v26 = vor.u32 %v7432_v18, %v5357_v19 }
 0x23d   : > { %4117 = vmatpush.bf16.msra.mxu1 %v5712_v27  ;;  %4136 = vmatpush.bf16.msra.mxu2 %v5936_v36  ;;  %v5613_v7 = vld [vmem:[#allocation5 + $0x330] sm:$0xf0]  ;;  %v3802_v36 = vpop.f32.mrf.mxu3  ;;  %v3768_v46 = vpop.f32.mrf.mxu1 }
 0x23e   : > { %v7624_v23 = vld [vmem:[#allocation5 + $0x714] sm:$0xf]  ;;  %4089 = vmatmul.bf16.vlgmr.msrb.gmra.mxu3 %v8404_v4  ;;  %v5616_v30 = vor.u32 %v7496_v20, %v5613_v7 }
 0x23f   : > { %4153 = vmatpush.bf16.msra.mxu3 %v6224_v29  ;;  %4100 = vmatpush.bf16.msra.mxu0 %v5424_v34  ;;  %v7552_v27 = vld [vmem:[#allocation5 + $0x4d4] sm:$0xf]  ;;  %v6128_v31 = vor.u32 %v7624_v23, %v6125_v25 }
 0x240   : > { %v5837_v29 = vld [vmem:[#allocation5 + $0x4f0] sm:$0xf0] }
 0x241   : > { %4118 = vmatpush.bf16.msra.mxu1 %v5680_v38  ;;  %4137 = vmatpush.bf16.msra.mxu2 %v5904_v11  ;;  %v7424_v28 = vld [vmem:[#allocation5 + $0xd4] sm:$0xf]  ;;  %v3784_v21 = vpop.f32.mrf.mxu2  ;;  %v5840_v50 = vor.u32 %v7552_v27, %v5837_v29 }
 0x242   : > { %v5325_v32 = vld [vmem:[#allocation5 + $0xf0] sm:$0xf0]  ;;  %v3785_v44 = vadd.f32 %v3784_v21, %v3767_v22 }
 0x243   : > { %4154 = vmatpush.bf16.msra.mxu3 %v6192_v40  ;;  %4101 = vmatpush.bf16.msra.mxu0 %v5392_v13  ;;  %v7488_v33 = vld [vmem:[#allocation5 + $0x2d4] sm:$0xf]  ;;  %v5328_v56 = vor.u32 %v7424_v28, %v5325_v32  ;;  %v3769_v13 = vadd.f32 %v3768_v46, %v3751_v51  ;;  %v3753_v28 = vpop.f32.mrf.mxu0 }
 0x244   : > { %v5581_v34 = vld [vmem:[#allocation5 + $0x2f0] sm:$0xf0]  ;;  %v8522_v0 = vadd.f32 %v3802_v36, %v3785_v44  ;;  %v3754_v21 = vadd.f32 %v3753_v28, %v8514_v35 }
 0x245   : > { %4119 = vmatpush.bf16.msra.mxu1 %v5648_v16  ;;  %v7616_v38 = vld [vmem:[#allocation5 + $0x6d4] sm:$0xf]  ;;  %4138 = vmatpush.bf16.msra.mxu2 %v5872_v60  ;;  %v5584_v1 = vor.u32 %v7488_v33, %v5581_v34  ;;  %v3771_v32 = vpop.f32.mrf.mxu1 }
 0x246   : > { %v6093_v40 = vld [vmem:[#allocation5 + $0x6f0] sm:$0xf0] }
 0x247   : > { %4155 = vmatpush.bf16.msra.mxu3 %v6160_v17  ;;  %4102 = vmatpush.bf16.msra.mxu0 %v5360_v26  ;;  %v7544_v58 = vld [vmem:[#allocation5 + $0x494] sm:$0xf]  ;;  %v6096_v37 = vor.u32 %v7616_v38, %v6093_v40  ;;  %v3804_v26 = vpop.f32.mrf.mxu3 }
 0x248   : > { %v5805_v59 = vld [vmem:[#allocation5 + $0x4b0] sm:$0xf0]  ;;  %4076 = vmatmul.bf16.gmra.mxu2 %v8416_v9 }
 0x249   : > { %4120 = vmatpush.bf16.msra.mxu1 %v5616_v30  ;;  %v7416_v6 = vld [vmem:[#allocation5 + $0x94] sm:$0xf]  ;;  %4139 = vmatpush.bf16.msra.mxu2 %v5840_v50  ;;  %v5808_v43 = vor.u32 %v7544_v58, %v5805_v59  ;;  %v3786_v60 = vpop.f32.mrf.mxu2  ;;  %v3772_v59 = vadd.f32 %v3771_v32, %v3754_v21 }
 0x24a   : > { %v5293_v8 = vld [vmem:[#allocation5 + $0xb0] sm:$0xf0]  ;;  %4040 = vmatmul.bf16.gmra.mxu0 %v8412_v2 }
 0x24b   : > { %4156 = vmatpush.bf16.msra.mxu3 %v6128_v31  ;;  %v7480_v11 = vld [vmem:[#allocation5 + $0x294] sm:$0xf]  ;;  %4103 = vmatpush.bf16.msra.mxu0 %v5328_v56  ;;  %v5296_v17 = vor.u32 %v7416_v6, %v5293_v8  ;;  %v3787_v31 = vadd.f32 %v3786_v60, %v3769_v13 }
 0x24c   : > { %v5549_v14 = vld [vmem:[#allocation5 + $0x2b0] sm:$0xf0]  ;;  %4058 = vmatmul.bf16.gmra.mxu1 %v8414_v5 }
 0x24d   : > { %v7608_v61 = vld [vmem:[#allocation5 + $0x694] sm:$0xf]  ;;  %4121 = vmatpush.bf16.msra.mxu1 %v5584_v1  ;;  %v5552_v20 = vor.u32 %v7480_v11, %v5549_v14  ;;  %4140 = vmatpush.bf16.msra.mxu2 %v5808_v43  ;;  %v8525_v45 = vadd.f32 %v3804_v26, %v3787_v31  ;;  %v3755_v26 = vpop.f32.mrf.mxu0 }
 0x24e   : > { %v6061_v16 = vld [vmem:[#allocation5 + $0x6b0] sm:$0xf0]  ;;  %4094 = vmatmul.bf16.gmra.mxu3 %v8418_v10 }
 0x24f   : > { %v7536_v18 = vld [vmem:[#allocation5 + $0x454] sm:$0xf]  ;;  %4157 = vmatpush.bf16.msra.mxu3 %v6096_v37  ;;  %v6064_v22 = vor.u32 %v7608_v61, %v6061_v16  ;;  %4104 = vmatpush.bf16.msra.mxu0 %v5296_v17 }
 0x250   : > { %v5773_v19 = vld [vmem:[#allocation5 + $0x470] sm:$0xf0] }
 0x251   : > { %v7408_v7 = vld [vmem:[#allocation5 + $0x54] sm:$0xf]  ;;  %v5776_v36 = vor.u32 %v7536_v18, %v5773_v19  ;;  %4122 = vmatpush.bf16.msra.mxu1 %v5552_v20  ;;  %v3789_v19 = vpop.f32.mrf.mxu2  ;;  %v3807_v20 = vpop.f32.mrf.mxu3 }
 0x252   : > { %v5261_v23 = vld [vmem:[#allocation5 + $0x70] sm:$0xf0]  ;;  %v3790_v60 = vadd.f32 %v3789_v19, %v3772_v59 }
 0x253   : > { %v7472_v25 = vld [vmem:[#allocation5 + $0x254] sm:$0xf]  ;;  %v5264_v34 = vor.u32 %v7408_v7, %v5261_v23  ;;  %4158 = vmatpush.bf16.msra.mxu3 %v6064_v22  ;;  %4141 = vmatpush.bf16.msra.mxu2 %v5776_v36 }
 0x254   : > { %v5517_v27 = vld [vmem:[#allocation5 + $0x270] sm:$0xf0] }
 0x255   : > { %v7600_v29 = vld [vmem:[#allocation5 + $0x654] sm:$0xf]  ;;  %v5520_v46 = vor.u32 %v7472_v25, %v5517_v27  ;;  %4105 = vmatpush.bf16.msra.mxu0 %v5264_v34  ;;  %v3773_v27 = vpop.f32.mrf.mxu1  ;;  %v8531_v34 = vadd.f32 %v3807_v20, %v3790_v60 }
 0x256   : > { %v6029_v30 = vld [vmem:[#allocation5 + $0x670] sm:$0xf0] }
 0x257   : > { %v7528_v33 = vld [vmem:[#allocation5 + $0x414] sm:$0xf]  ;;  %v6032_v51 = vor.u32 %v7600_v29, %v6029_v30  ;;  %4123 = vmatpush.bf16.msra.mxu1 %v5520_v46 }
 0x258   : > { %v5741_v38 = vld [vmem:[#allocation5 + $0x430] sm:$0xf0] }
 0x259   : > { %v7400_v40 = vld [vmem:[#allocation5 + $0x14] sm:$0xf]  ;;  %v5744_v13 = vor.u32 %v7528_v33, %v5741_v38  ;;  %4159 = vmatpush.bf16.msra.mxu3 %v6032_v51 }
 0x25a   : > { %v5229_v44 = vld [vmem:[#allocation5 + $0x30] sm:$0xf0] }
 0x25b   : > { %v7464_v50 = vld [vmem:[#allocation5 + $0x214] sm:$0xf]  ;;  %v5232_v14 = vor.u32 %v7400_v40, %v5229_v44  ;;  %4142 = vmatpush.bf16.msra.mxu2 %v5744_v13 }
 0x25c   : > { %v5485_v56 = vld [vmem:[#allocation5 + $0x230] sm:$0xf0] }
 0x25d   : > { %v7592_v58 = vld [vmem:[#allocation5 + $0x614] sm:$0xf]  ;;  %v5488_v17 = vor.u32 %v7464_v50, %v5485_v56  ;;  %4106 = vmatpush.bf16.msra.mxu0 %v5232_v14  ;;  %v3838_v13 = vpop.f32.mrf.mxu1 }
 0x25e   : > { %v5997_v35 = vld [vmem:[#allocation5 + $0x630] sm:$0xf0]  ;;  %4143 = vmatmul.bf16.vlgmr.msra.gmra.mxu2 %v8368_v54 }
 0x25f   : > { %v7840_v1 = vld [vmem:[#allocation5 + $0xdd4] sm:$0xf]  ;;  %v6000_v18 = vor.u32 %v7592_v58, %v5997_v35  ;;  %4124 = vmatpush.bf16.msra.mxu1 %v5488_v17  ;;  %v3791_v35 = vpop.f32.mrf.mxu2 }
 0x260   : > { %v6989_v37 = vld [vmem:[#allocation5 + $0xdf0] sm:$0xf0]  ;;  %4107 = vmatmul.bf16.vlgmr.msra.gmra.mxu0 %v8364_v48 }
 0x261   : > { %v7712_v6 = vld [vmem:[#allocation5 + $0x9d4] sm:$0xf]  ;;  %v6992_v22 = vor.u32 %v7840_v1, %v6989_v37  ;;  %4160 = vmatpush.bf16.msra.mxu3 %v6000_v18  ;;  %v3809_v1 = vpop.f32.mrf.mxu3 }
 0x262   : > { %v6477_v8 = vld [vmem:[#allocation5 + $0x9f0] sm:$0xf0]  ;;  %4125 = vmatmul.bf16.vlgmr.msra.gmra.mxu1 %v8366_v53 }
 0x263   : > { %v7776_v11 = vld [vmem:[#allocation5 + $0xbd4] sm:$0xf]  ;;  %v6480_v7 = vor.u32 %v7712_v6, %v6477_v8  ;;  %4207 = vmatpush.bf16.msrb.mxu2 %v6992_v22 }
 0x264   : > { %v6733_v61 = vld [vmem:[#allocation5 + $0xbf0] sm:$0xf0]  ;;  %4161 = vmatmul.bf16.vlgmr.msra.gmra.mxu3 %v8370_v57 }
 0x265   : > { %v7904_v16 = vld [vmem:[#allocation5 + $0xfd4] sm:$0xf]  ;;  %v6736_v29 = vor.u32 %v7776_v11, %v6733_v61  ;;  %4171 = vmatpush.bf16.msrb.mxu0 %v6480_v7  ;;  %v3820_v11 = vpop.f32.mrf.mxu0 }
 0x266   : > { %v7245_v43 = vld [vmem:[#allocation5 + $0xff0] sm:$0xf0]  ;;  %v3839_v14 = vadd.f32 %v3838_v13, %v3820_v11 }
 0x267   : > { %v7832_v23 = vld [vmem:[#allocation5 + $0xd94] sm:$0xf]  ;;  %v7248_v30 = vor.u32 %v7904_v16, %v7245_v43  ;;  %4189 = vmatpush.bf16.msrb.mxu1 %v6736_v29 }
 0x268   : > { %v6957_v25 = vld [vmem:[#allocation5 + $0xdb0] sm:$0xf0] }
 0x269   : > { %v7704_v31 = vld [vmem:[#allocation5 + $0x994] sm:$0xf]  ;;  %v6960_v38 = vor.u32 %v7832_v23, %v6957_v25  ;;  %4225 = vmatpush.bf16.msrb.mxu3 %v7248_v30 }
 0x26a   : > { %v6445_v28 = vld [vmem:[#allocation5 + $0x9b0] sm:$0xf0] }
 0x26b   : > { %v7768_v32 = vld [vmem:[#allocation5 + $0xb94] sm:$0xf]  ;;  %v6448_v40 = vor.u32 %v7704_v31, %v6445_v28  ;;  %4208 = vmatpush.bf16.msrb.mxu2 %v6960_v38  ;;  %v3874_v38 = vpop.f32.mrf.mxu3 }
 0x26c   : > { %v6701_v33 = vld [vmem:[#allocation5 + $0xbb0] sm:$0xf0] }
 0x26d   : > { %v7896_v21 = vld [vmem:[#allocation5 + $0xf94] sm:$0xf]  ;;  %v6704_v44 = vor.u32 %v7768_v32, %v6701_v33  ;;  %4172 = vmatpush.bf16.msrb.mxu0 %v6448_v40 }
 0x26e   : > { %v7213_v36 = vld [vmem:[#allocation5 + $0xfb0] sm:$0xf0]  ;;  %4148 = vmatmul.bf16.gmra.mxu2 %v8382_v49 }
 0x26f   : > { %v7216_v46 = vor.u32 %v7896_v21, %v7213_v36  ;;  %v7824_v51 = vld [vmem:[#allocation5 + $0xd54] sm:$0xf]  ;;  %4190 = vmatpush.bf16.msrb.mxu1 %v6704_v44  ;;  %v3856_v36 = vpop.f32.mrf.mxu2 }
 0x270   : > { %v6925_v50 = vld [vmem:[#allocation5 + $0xd70] sm:$0xf0]  ;;  %4112 = vmatmul.bf16.gmra.mxu0 %v8378_v42 }
 0x271   : > { %v7696_v56 = vld [vmem:[#allocation5 + $0x954] sm:$0xf]  ;;  %4226 = vmatpush.bf16.msrb.mxu3 %v7216_v46  ;;  %v6928_v61 = vor.u32 %v7824_v51, %v6925_v50  ;;  %v3857_v51 = vadd.f32 %v3856_v36, %v3839_v14  ;;  %v3822_v50 = vpop.f32.mrf.mxu0 }
 0x272   : > { %v6413_v58 = vld [vmem:[#allocation5 + $0x970] sm:$0xf0]  ;;  %4130 = vmatmul.bf16.gmra.mxu1 %v8380_v47 }
 0x273   : > { %v7760_v59 = vld [vmem:[#allocation5 + $0xb54] sm:$0xf]  ;;  %v6416_v16 = vor.u32 %v7696_v56, %v6413_v58  ;;  %4209 = vmatpush.bf16.msrb.mxu2 %v6928_v61  ;;  %v3840_v56 = vpop.f32.mrf.mxu1 }
 0x274   : > { %v6669_v37 = vld [vmem:[#allocation5 + $0xb70] sm:$0xf0]  ;;  %v3841_v58 = vadd.f32 %v3840_v56, %v3822_v50  ;;  %4166 = vmatmul.bf16.gmra.mxu3 %v8384_v52 }
 0x275   : > { %v7888_v6 = vld [vmem:[#allocation5 + $0xf54] sm:$0xf]  ;;  %v6672_v18 = vor.u32 %v7760_v59, %v6669_v37  ;;  %4173 = vmatpush.bf16.msrb.mxu0 %v6416_v16 }
 0x276   : > { %v7181_v8 = vld [vmem:[#allocation5 + $0xf70] sm:$0xf0] }
 0x277   : > { %v7816_v43 = vld [vmem:[#allocation5 + $0xd14] sm:$0xf]  ;;  %v7184_v19 = vor.u32 %v7888_v6, %v7181_v8  ;;  %4191 = vmatpush.bf16.msrb.mxu1 %v6672_v18  ;;  %v8537_v6 = vadd.f32 %v3874_v38, %v3857_v51 }
 0x278   : > { %v6893_v17 = vld [vmem:[#allocation5 + $0xd30] sm:$0xf0] }
 0x279   : > { %v7688_v20 = vld [vmem:[#allocation5 + $0x914] sm:$0xf]  ;;  %v6896_v26 = vor.u32 %v7816_v43, %v6893_v17  ;;  %4227 = vmatpush.bf16.msrb.mxu3 %v7184_v19 }
 0x27a   : > { %v6381_v22 = vld [vmem:[#allocation5 + $0x930] sm:$0xf0] }
 0x27b   : > { %v7752_v7 = vld [vmem:[#allocation5 + $0xb14] sm:$0xf]  ;;  %v6384_v27 = vor.u32 %v7688_v20, %v6381_v22  ;;  %4210 = vmatpush.bf16.msrb.mxu2 %v6896_v26 }
 0x27c   : > { %v6637_v23 = vld [vmem:[#allocation5 + $0xb30] sm:$0xf0] }
 0x27d   : > { %v7880_v25 = vld [vmem:[#allocation5 + $0xf14] sm:$0xf]  ;;  %v6640_v31 = vor.u32 %v7752_v7, %v6637_v23  ;;  %4174 = vmatpush.bf16.msrb.mxu0 %v6384_v27  ;;  %v3858_v27 = vpop.f32.mrf.mxu2 }
 0x27e   : > { %v7149_v60 = vld [vmem:[#allocation5 + $0xf30] sm:$0xf0] }
 0x27f   : > { %v7808_v29 = vld [vmem:[#allocation5 + $0xcd4] sm:$0xf]  ;;  %v7152_v28 = vor.u32 %v7880_v25, %v7149_v60  ;;  %4192 = vmatpush.bf16.msrb.mxu1 %v6640_v31 }
 0x280   : > { %v6861_v30 = vld [vmem:[#allocation5 + $0xcf0] sm:$0xf0] }
 0x281   : > { %v7680_v32 = vld [vmem:[#allocation5 + $0x8d4] sm:$0xf]  ;;  %v6864_v59 = vor.u32 %v7808_v29, %v6861_v30  ;;  %4228 = vmatpush.bf16.msrb.mxu3 %v7152_v28  ;;  %v3876_v29 = vpop.f32.mrf.mxu3 }
 0x282   : > { %v6349_v33 = vld [vmem:[#allocation5 + $0x8f0] sm:$0xf0] }
 0x283   : > { %v7744_v21 = vld [vmem:[#allocation5 + $0xad4] sm:$0xf]  ;;  %v6352_v35 = vor.u32 %v7680_v32, %v6349_v33  ;;  %4211 = vmatpush.bf16.msrb.mxu2 %v6864_v59  ;;  %v3859_v32 = vadd.f32 %v3858_v27, %v3841_v58  ;;  %v3825_v33 = vpop.f32.mrf.mxu0  ;;  %v5939_v27 = vld [vmem:[#allocation5 + $0x598] sm:$0xf] }
 0x284   : > { %v6605_v40 = vld [vmem:[#allocation5 + $0xaf0] sm:$0xf0] }
 0x285   : > { %v7872_v44 = vld [vmem:[#allocation5 + $0xed4] sm:$0xf]  ;;  %v6608_v8 = vor.u32 %v7744_v21, %v6605_v40  ;;  %4175 = vmatpush.bf16.msrb.mxu0 %v6352_v35  ;;  %v3843_v21 = vpop.f32.mrf.mxu1  ;;  %v8539_v56 = vadd.f32 %v3876_v29, %v3859_v32  ;;  %v7581_v29 = vld [vmem:[#allocation5 + $0x5b4] sm:$0xf0] }
 0x286   : > { %v7117_v46 = vld [vmem:[#allocation5 + $0xef0] sm:$0xf0]  ;;  %v3844_v38 = vadd.f32 %v3843_v21, %v3825_v33  ;;  %v5427_v21 = vld [vmem:[#allocation5 + $0x198] sm:$0xf] }
 0x287   : > { %v7800_v1 = vld [vmem:[#allocation5 + $0xc94] sm:$0xf]  ;;  %v7120_v11 = vor.u32 %v7872_v44, %v7117_v46  ;;  %4193 = vmatpush.bf16.msrb.mxu1 %v6608_v8 }
 0x288   : > { %v6829_v37 = vld [vmem:[#allocation5 + $0xcb0] sm:$0xf0] }
 0x289   : > { %v7672_v13 = vld [vmem:[#allocation5 + $0x894] sm:$0xf]  ;;  %v6832_v18 = vor.u32 %v7800_v1, %v6829_v37  ;;  %4229 = vmatpush.bf16.msrb.mxu3 %v7120_v11  ;;  %v5971_v11 = vld [vmem:[#allocation5 + $0x5d8] sm:$0xf] }
 0x28a   : > { %v6317_v61 = vld [vmem:[#allocation5 + $0x8b0] sm:$0xf0] }
 0x28b   : > { %v7736_v16 = vld [vmem:[#allocation5 + $0xa94] sm:$0xf]  ;;  %v6320_v19 = vor.u32 %v7672_v13, %v6317_v61  ;;  %4212 = vmatpush.bf16.msrb.mxu2 %v6832_v18  ;;  %v7589_v13 = vld [vmem:[#allocation5 + $0x5f4] sm:$0xf0] }
 0x28c   : > { %v6573_v43 = vld [vmem:[#allocation5 + $0xab0] sm:$0xf0]  ;;  %v5459_v61 = vld [vmem:[#allocation5 + $0x1d8] sm:$0xf] }
 0x28d   : > { %v7864_v14 = vld [vmem:[#allocation5 + $0xe94] sm:$0xf]  ;;  %v6576_v7 = vor.u32 %v7736_v16, %v6573_v43  ;;  %4176 = vmatpush.bf16.msrb.mxu0 %v6320_v19  ;;  %v7461_v16 = vld [vmem:[#allocation5 + $0x1f4] sm:$0xf0] }
 0x28e   : > { %v7085_v17 = vld [vmem:[#allocation5 + $0xeb0] sm:$0xf0]  ;;  %v5715_v43 = vld [vmem:[#allocation5 + $0x3d8] sm:$0xf] }
 0x28f   : > { %v7792_v20 = vld [vmem:[#allocation5 + $0xc54] sm:$0xf]  ;;  %v7088_v23 = vor.u32 %v7864_v14, %v7085_v17  ;;  %4194 = vmatpush.bf16.msrb.mxu1 %v6576_v7  ;;  %v7525_v18 = vld [vmem:[#allocation5 + $0x3f4] sm:$0xf0] }
 0x290   : > { %v6797_v22 = vld [vmem:[#allocation5 + $0xc70] sm:$0xf0]  ;;  %v6227_v19 = vld [vmem:[#allocation5 + $0x7d8] sm:$0xf]  ;;  %v5716_v32 = vor.u32 %v7525_v18, %v5715_v43 }
 0x291   : > { %v7664_v25 = vld [vmem:[#allocation5 + $0x854] sm:$0xf]  ;;  %v6800_v40 = vor.u32 %v7792_v20, %v6797_v22  ;;  %4230 = vmatpush.bf16.msrb.mxu3 %v7088_v23  ;;  %v7653_v20 = vld [vmem:[#allocation5 + $0x7f4] sm:$0xf0]  ;;  %v3861_v23 = vpop.f32.mrf.mxu2 }
 0x292   : > { %v6285_v60 = vld [vmem:[#allocation5 + $0x870] sm:$0xf0]  ;;  %v6228_v33 = vor.u32 %v7653_v20, %v6227_v19  ;;  %v7509_v43 = vld [vmem:[#allocation5 + $0x374] sm:$0xf0] }
 0x293   : > { %v7728_v26 = vld [vmem:[#allocation5 + $0xa54] sm:$0xf]  ;;  %v6288_v44 = vor.u32 %v7664_v25, %v6285_v60  ;;  %4213 = vmatpush.bf16.msrb.mxu2 %v6800_v40  ;;  %v3879_v25 = vpop.f32.mrf.mxu3  ;;  %v5972_v60 = vor.u32 %v7589_v13, %v5971_v11  ;;  %v5683_v40 = vld [vmem:[#allocation5 + $0x398] sm:$0xf] }
 0x294   : > { %v6541_v30 = vld [vmem:[#allocation5 + $0xa70] sm:$0xf0]  ;;  %v7445_v11 = vld [vmem:[#allocation5 + $0x174] sm:$0xf0] }
 0x295   : > { %v7856_v31 = vld [vmem:[#allocation5 + $0xe54] sm:$0xf]  ;;  %v6544_v59 = vor.u32 %v7728_v26, %v6541_v30  ;;  %4177 = vmatpush.bf16.msrb.mxu0 %v6288_v44  ;;  %v5460_v26 = vor.u32 %v7461_v16, %v5459_v61  ;;  %v3862_v30 = vadd.f32 %v3861_v23, %v3844_v38  ;;  %v7517_v44 = vld [vmem:[#allocation5 + $0x3b4] sm:$0xf0] }
 0x296   : > { %v7053_v28 = vld [vmem:[#allocation5 + $0xe70] sm:$0xf0]  ;;  %v5651_v13 = vld [vmem:[#allocation5 + $0x358] sm:$0xf] }
 0x297   : > { %v7784_v36 = vld [vmem:[#allocation5 + $0xc14] sm:$0xf]  ;;  %v7056_v35 = vor.u32 %v7856_v31, %v7053_v28  ;;  %4195 = vmatpush.bf16.msrb.mxu1 %v6544_v59  ;;  %v3827_v31 = vpop.f32.mrf.mxu0  ;;  %v3845_v28 = vpop.f32.mrf.mxu1  ;;  %v5940_v59 = vor.u32 %v7581_v29, %v5939_v27  ;;  %v5875_v23 = vld [vmem:[#allocation5 + $0x518] sm:$0xf] }
 0x298   : > { %v6765_v46 = vld [vmem:[#allocation5 + $0xc30] sm:$0xf0]  ;;  %v5363_v27 = vld [vmem:[#allocation5 + $0x118] sm:$0xf] }
 0x299   : > { %v7656_v51 = vld [vmem:[#allocation5 + $0x814] sm:$0xf]  ;;  %v6768_v14 = vor.u32 %v7784_v36, %v6765_v46  ;;  %4231 = vmatpush.bf16.msrb.mxu3 %v7056_v35  ;;  %v7453_v36 = vld [vmem:[#allocation5 + $0x1b4] sm:$0xf0]  ;;  %v5684_v35 = vor.u32 %v7517_v44, %v5683_v40  ;;  %v3863_v61 = vpop.f32.mrf.mxu2 }
 0x29a   : > { %v6253_v50 = vld [vmem:[#allocation5 + $0x830] sm:$0xf0]  ;;  %v6195_v46 = vld [vmem:[#allocation5 + $0x798] sm:$0xf]  ;;  %v5428_v38 = vor.u32 %v7453_v36, %v5427_v21 }
 0x29b   : > { %v7720_v1 = vld [vmem:[#allocation5 + $0xa14] sm:$0xf]  ;;  %v6256_v17 = vor.u32 %v7656_v51, %v6253_v50  ;;  %4214 = vmatpush.bf16.msrb.mxu2 %v6768_v14  ;;  %v7645_v51 = vld [vmem:[#allocation5 + $0x7b4] sm:$0xf0]  ;;  %v8545_v50 = vadd.f32 %v3879_v25, %v3862_v30  ;;  %v3881_v16 = vpop.f32.mrf.mxu3 }
 0x29c   : > { %v6509_v37 = vld [vmem:[#allocation5 + $0xa30] sm:$0xf0]  ;;  %v6163_v14 = vld [vmem:[#allocation5 + $0x758] sm:$0xf] }
 0x29d   : > { %v7848_v58 = vld [vmem:[#allocation5 + $0xe14] sm:$0xf]  ;;  %v6512_v22 = vor.u32 %v7720_v1, %v6509_v37  ;;  %4178 = vmatpush.bf16.msrb.mxu0 %v6256_v17  ;;  %v6196_v1 = vor.u32 %v7645_v51, %v6195_v46  ;;  %v5907_v37 = vld [vmem:[#allocation5 + $0x558] sm:$0xf] }
 0x29e   : > { %v7021_v8 = vld [vmem:[#allocation5 + $0xe30] sm:$0xf0]  ;;  %v7637_v17 = vld [vmem:[#allocation5 + $0x774] sm:$0xf0]  ;;  %4215 = vmatmul.bf16.vlgmr.msrb.gmra.mxu2 %v8402_v3 }
 0x29f   : > { %v7024_v7 = vor.u32 %v7848_v58, %v7021_v8  ;;  %4196 = vmatpush.bf16.msrb.mxu1 %v6512_v22  ;;  %4279 = vmatpush.bf16.msra.mxu2 %v5972_v60  ;;  %v7573_v58 = vld [vmem:[#allocation5 + $0x574] sm:$0xf0]  ;;  %v3892_v18 = vpop.f32.mrf.mxu0  ;;  %v3910_v19 = vpop.f32.mrf.mxu1  ;;  %v5652_v60 = vor.u32 %v7509_v43, %v5651_v13 }
 0x2a0   : > { %v5395_v8 = vld [vmem:[#allocation5 + $0x158] sm:$0xf]  ;;  %v3893_v20 = vadd.f32 %v3892_v18, %v8537_v6  ;;  %v5908_v22 = vor.u32 %v7573_v58, %v5907_v37  ;;  %4179 = vmatmul.bf16.vlgmr.msrb.gmra.mxu0 %v8398_v62 }
 0x2a1   : > { %4232 = vmatpush.bf16.msrb.mxu3 %v7024_v7  ;;  %4243 = vmatpush.bf16.msra.mxu0 %v5460_v26  ;;  %v5396_v7 = vor.u32 %v7445_v11, %v5395_v8  ;;  %v7565_v25 = vld [vmem:[#allocation5 + $0x534] sm:$0xf0]  ;;  %v6164_v26 = vor.u32 %v7637_v17, %v6163_v14 }
 0x2a2   : > { %v7437_v29 = vld [vmem:[#allocation5 + $0x134] sm:$0xf0]  ;;  %v3911_v31 = vadd.f32 %v3910_v19, %v3893_v20  ;;  %4197 = vmatmul.bf16.vlgmr.msrb.gmra.mxu1 %v8400_v63  ;;  %v5876_v6 = vor.u32 %v7565_v25, %v5875_v23 }
 0x2a3   : > { %4261 = vmatpush.bf16.msra.mxu1 %v5716_v32  ;;  %4280 = vmatpush.bf16.msra.mxu2 %v5940_v59  ;;  %v5619_v30 = vld [vmem:[#allocation5 + $0x318] sm:$0xf]  ;;  %v5364_v21 = vor.u32 %v7437_v29, %v5363_v27 }
 0x2a4   : > { %v7501_v28 = vld [vmem:[#allocation5 + $0x334] sm:$0xf0]  ;;  %4233 = vmatmul.bf16.vlgmr.msrb.gmra.mxu3 %v8404_v4 }
 0x2a5   : > { %4297 = vmatpush.bf16.msra.mxu3 %v6228_v33  ;;  %4244 = vmatpush.bf16.msra.mxu0 %v5428_v38  ;;  %v6131_v32 = vld [vmem:[#allocation5 + $0x718] sm:$0xf]  ;;  %v5620_v44 = vor.u32 %v7501_v28, %v5619_v30 }
 0x2a6   : > { %v7629_v33 = vld [vmem:[#allocation5 + $0x734] sm:$0xf0] }
 0x2a7   : > { %4262 = vmatpush.bf16.msra.mxu1 %v5684_v35  ;;  %4281 = vmatpush.bf16.msra.mxu2 %v5908_v22  ;;  %v5843_v36 = vld [vmem:[#allocation5 + $0x4d8] sm:$0xf]  ;;  %v6132_v46 = vor.u32 %v7629_v33, %v6131_v32  ;;  %v3928_v35 = vpop.f32.mrf.mxu2  ;;  %v3894_v13 = vpop.f32.mrf.mxu0 }
 0x2a8   : > { %v7557_v40 = vld [vmem:[#allocation5 + $0x4f4] sm:$0xf0]  ;;  %v3929_v11 = vadd.f32 %v3928_v35, %v3911_v31  ;;  %v3912_v61 = vpop.f32.mrf.mxu1  ;;  %v3895_v16 = vadd.f32 %v3894_v13, %v8539_v56 }
 0x2a9   : > { %4298 = vmatpush.bf16.msra.mxu3 %v6196_v1  ;;  %4245 = vmatpush.bf16.msra.mxu0 %v5396_v7  ;;  %v5331_v51 = vld [vmem:[#allocation5 + $0xd8] sm:$0xf]  ;;  %v3946_v1 = vpop.f32.mrf.mxu3  ;;  %v5844_v43 = vor.u32 %v7557_v40, %v5843_v36 }
 0x2aa   : > { %v7429_v59 = vld [vmem:[#allocation5 + $0xf4] sm:$0xf0]  ;;  %v8553_v19 = vadd.f32 %v3946_v1, %v3929_v11 }
 0x2ab   : > { %4263 = vmatpush.bf16.msra.mxu1 %v5652_v60  ;;  %v5587_v38 = vld [vmem:[#allocation5 + $0x2d8] sm:$0xf]  ;;  %4282 = vmatpush.bf16.msra.mxu2 %v5876_v6  ;;  %v5332_v14 = vor.u32 %v7429_v59, %v5331_v51  ;;  %v3913_v60 = vadd.f32 %v3912_v61, %v3895_v16 }
 0x2ac   : > { %v7493_v37 = vld [vmem:[#allocation5 + $0x2f4] sm:$0xf0] }
 0x2ad   : > { %4299 = vmatpush.bf16.msra.mxu3 %v6164_v26  ;;  %v6099_v58 = vld [vmem:[#allocation5 + $0x6d8] sm:$0xf]  ;;  %4246 = vmatpush.bf16.msra.mxu0 %v5364_v21  ;;  %v5588_v20 = vor.u32 %v7493_v37, %v5587_v38 }
 0x2ae   : > { %v7621_v8 = vld [vmem:[#allocation5 + $0x6f4] sm:$0xf0]  ;;  %4220 = vmatmul.bf16.gmra.mxu2 %v8416_v9 }
 0x2af   : > { %v5811_v17 = vld [vmem:[#allocation5 + $0x498] sm:$0xf]  ;;  %4264 = vmatpush.bf16.msra.mxu1 %v5620_v44  ;;  %v6100_v22 = vor.u32 %v7621_v8, %v6099_v58  ;;  %4283 = vmatpush.bf16.msra.mxu2 %v5844_v43  ;;  %v3930_v40 = vpop.f32.mrf.mxu2  ;;  %v3897_v35 = vpop.f32.mrf.mxu0 }
 0x2b0   : > { %v7549_v18 = vld [vmem:[#allocation5 + $0x4b4] sm:$0xf0]  ;;  %v3931_v38 = vadd.f32 %v3930_v40, %v3913_v60  ;;  %v3915_v1 = vpop.f32.mrf.mxu1  ;;  %v3898_v58 = vadd.f32 %v3897_v35, %v8545_v50  ;;  %4184 = vmatmul.bf16.gmra.mxu0 %v8412_v2 }
 0x2b1   : > { %4300 = vmatpush.bf16.msra.mxu3 %v6132_v46  ;;  %v5299_v7 = vld [vmem:[#allocation5 + $0x98] sm:$0xf]  ;;  %4247 = vmatpush.bf16.msra.mxu0 %v5332_v14  ;;  %v5812_v56 = vor.u32 %v7549_v18, %v5811_v17  ;;  %v3948_v44 = vpop.f32.mrf.mxu3 }
 0x2b2   : > { %v7421_v23 = vld [vmem:[#allocation5 + $0xb4] sm:$0xf0]  ;;  %v8556_v43 = vadd.f32 %v3948_v44, %v3931_v38  ;;  %4202 = vmatmul.bf16.gmra.mxu1 %v8414_v5 }
 0x2b3   : > { %v5555_v25 = vld [vmem:[#allocation5 + $0x298] sm:$0xf]  ;;  %v5300_v30 = vor.u32 %v7421_v23, %v5299_v7  ;;  %4265 = vmatpush.bf16.msra.mxu1 %v5588_v20  ;;  %4284 = vmatpush.bf16.msra.mxu2 %v5812_v56  ;;  %v3916_v7 = vadd.f32 %v3915_v1, %v3898_v58 }
 0x2b4   : > { %v7485_v26 = vld [vmem:[#allocation5 + $0x2b4] sm:$0xf0]  ;;  %4238 = vmatmul.bf16.gmra.mxu3 %v8418_v10 }
 0x2b5   : > { %v6067_v27 = vld [vmem:[#allocation5 + $0x698] sm:$0xf]  ;;  %4301 = vmatpush.bf16.msra.mxu3 %v6100_v22  ;;  %v5556_v32 = vor.u32 %v7485_v26, %v5555_v25  ;;  %4248 = vmatpush.bf16.msra.mxu0 %v5300_v30 }
 0x2b6   : > { %v7613_v29 = vld [vmem:[#allocation5 + $0x6b4] sm:$0xf0] }
 0x2b7   : > { %v5779_v31 = vld [vmem:[#allocation5 + $0x458] sm:$0xf]  ;;  %v6068_v33 = vor.u32 %v7613_v29, %v6067_v27  ;;  %4266 = vmatpush.bf16.msra.mxu1 %v5556_v32 }
 0x2b8   : > { %v7541_v28 = vld [vmem:[#allocation5 + $0x474] sm:$0xf0]  ;;  %v3917_v38 = vpop.f32.mrf.mxu1 }
 0x2b9   : > { %v5267_v6 = vld [vmem:[#allocation5 + $0x58] sm:$0xf]  ;;  %v5780_v8 = vor.u32 %v7541_v28, %v5779_v31  ;;  %4302 = vmatpush.bf16.msra.mxu3 %v6068_v33 }
 0x2ba   : > { %v7413_v21 = vld [vmem:[#allocation5 + $0x74] sm:$0xf0] }
 0x2bb   : > { %v5523_v36 = vld [vmem:[#allocation5 + $0x258] sm:$0xf]  ;;  %v5268_v11 = vor.u32 %v7413_v21, %v5267_v6  ;;  %4285 = vmatpush.bf16.msra.mxu2 %v5780_v8  ;;  %v3933_v6 = vpop.f32.mrf.mxu2  ;;  %v3951_v21 = vpop.f32.mrf.mxu3 }
 0x2bc   : > { %v7477_v46 = vld [vmem:[#allocation5 + $0x274] sm:$0xf0] }
 0x2bd   : > { %v6035_v51 = vld [vmem:[#allocation5 + $0x658] sm:$0xf]  ;;  %v5524_v14 = vor.u32 %v7477_v46, %v5523_v36  ;;  %4249 = vmatpush.bf16.msra.mxu0 %v5268_v11 }
 0x2be   : > { %v7605_v59 = vld [vmem:[#allocation5 + $0x674] sm:$0xf0] }
 0x2bf   : > { %v5747_v37 = vld [vmem:[#allocation5 + $0x418] sm:$0xf]  ;;  %v6036_v17 = vor.u32 %v7605_v59, %v6035_v51  ;;  %4267 = vmatpush.bf16.msra.mxu1 %v5524_v14  ;;  %v3934_v51 = vadd.f32 %v3933_v6, %v3916_v7  ;;  %v3899_v59 = vpop.f32.mrf.mxu0 }
 0x2c0   : > { %v7533_v13 = vld [vmem:[#allocation5 + $0x434] sm:$0xf0] }
 0x2c1   : > { %v5235_v61 = vld [vmem:[#allocation5 + $0x18] sm:$0xf]  ;;  %v5748_v29 = vor.u32 %v7533_v13, %v5747_v37  ;;  %4303 = vmatpush.bf16.msra.mxu3 %v6036_v17 }
 0x2c2   : > { %v7405_v16 = vld [vmem:[#allocation5 + $0x34] sm:$0xf0] }
 0x2c3   : > { %v5491_v18 = vld [vmem:[#allocation5 + $0x218] sm:$0xf]  ;;  %v5236_v56 = vor.u32 %v7405_v16, %v5235_v61  ;;  %4286 = vmatpush.bf16.msra.mxu2 %v5748_v29  ;;  %v8562_v16 = vadd.f32 %v3951_v21, %v3934_v51 }
 0x2c4   : > { %v7469_v20 = vld [vmem:[#allocation5 + $0x234] sm:$0xf0] }
 0x2c5   : > { %v6003_v22 = vld [vmem:[#allocation5 + $0x618] sm:$0xf]  ;;  %v5492_v32 = vor.u32 %v7469_v20, %v5491_v18  ;;  %4250 = vmatpush.bf16.msra.mxu0 %v5236_v56 }
 0x2c6   : > { %v7597_v50 = vld [vmem:[#allocation5 + $0x634] sm:$0xf0]  ;;  %4287 = vmatmul.bf16.vlgmr.msra.gmra.mxu2 %v8368_v54 }
 0x2c7   : > { %v6995_v23 = vld [vmem:[#allocation5 + $0xdd8] sm:$0xf]  ;;  %v6004_v33 = vor.u32 %v7597_v50, %v6003_v22  ;;  %4268 = vmatpush.bf16.msra.mxu1 %v5492_v32 }
 0x2c8   : > { %v7845_v25 = vld [vmem:[#allocation5 + $0xdf4] sm:$0xf0]  ;;  %4251 = vmatmul.bf16.vlgmr.msra.gmra.mxu0 %v8364_v48 }
 0x2c9   : > { %v6483_v60 = vld [vmem:[#allocation5 + $0x9d8] sm:$0xf]  ;;  %v6996_v36 = vor.u32 %v7845_v25, %v6995_v23  ;;  %4304 = vmatpush.bf16.msra.mxu3 %v6004_v33 }
 0x2ca   : > { %v7717_v26 = vld [vmem:[#allocation5 + $0x9f4] sm:$0xf0]  ;;  %4269 = vmatmul.bf16.vlgmr.msra.gmra.mxu1 %v8366_v53 }
 0x2cb   : > { %v6739_v27 = vld [vmem:[#allocation5 + $0xbd8] sm:$0xf]  ;;  %v6484_v40 = vor.u32 %v7717_v26, %v6483_v60  ;;  %4351 = vmatpush.bf16.msrb.mxu2 %v6996_v36  ;;  %v3935_v60 = vpop.f32.mrf.mxu2  ;;  %v3953_v26 = vpop.f32.mrf.mxu3 }
 0x2cc   : > { %v7781_v30 = vld [vmem:[#allocation5 + $0xbf4] sm:$0xf0]  ;;  %4305 = vmatmul.bf16.vlgmr.msra.gmra.mxu3 %v8370_v57 }
 0x2cd   : > { %v7251_v31 = vld [vmem:[#allocation5 + $0xfd8] sm:$0xf]  ;;  %v6740_v35 = vor.u32 %v7781_v30, %v6739_v27  ;;  %4315 = vmatpush.bf16.msrb.mxu0 %v6484_v40  ;;  %v3964_v30 = vpop.f32.mrf.mxu0 }
 0x2ce   : > { %v7909_v28 = vld [vmem:[#allocation5 + $0xff4] sm:$0xf0] }
 0x2cf   : > { %v6963_v44 = vld [vmem:[#allocation5 + $0xd98] sm:$0xf]  ;;  %v7252_v1 = vor.u32 %v7909_v28, %v7251_v31  ;;  %4333 = vmatpush.bf16.msrb.mxu1 %v6740_v35  ;;  %v3982_v31 = vpop.f32.mrf.mxu1 }
 0x2d0   : > { %v7837_v46 = vld [vmem:[#allocation5 + $0xdb4] sm:$0xf0]  ;;  %v3983_v28 = vadd.f32 %v3982_v31, %v3964_v30 }
 0x2d1   : > { %v6451_v37 = vld [vmem:[#allocation5 + $0x998] sm:$0xf]  ;;  %v6964_v14 = vor.u32 %v7837_v46, %v6963_v44  ;;  %4369 = vmatpush.bf16.msrb.mxu3 %v7252_v1 }
 0x2d2   : > { %v7709_v58 = vld [vmem:[#allocation5 + $0x9b4] sm:$0xf0] }
 0x2d3   : > { %v6707_v8 = vld [vmem:[#allocation5 + $0xb98] sm:$0xf]  ;;  %v6452_v17 = vor.u32 %v7709_v58, %v6451_v37  ;;  %4352 = vmatpush.bf16.msrb.mxu2 %v6964_v14 }
 0x2d4   : > { %v7773_v11 = vld [vmem:[#allocation5 + $0xbb4] sm:$0xf0] }
 0x2d5   : > { %v7219_v13 = vld [vmem:[#allocation5 + $0xf98] sm:$0xf]  ;;  %v6708_v18 = vor.u32 %v7773_v11, %v6707_v8  ;;  %4316 = vmatpush.bf16.msrb.mxu0 %v6452_v17 }
 0x2d6   : > { %v7901_v61 = vld [vmem:[#allocation5 + $0xfb4] sm:$0xf0]  ;;  %4292 = vmatmul.bf16.gmra.mxu2 %v8382_v49 }
 0x2d7   : > { %v7220_v20 = vor.u32 %v7901_v61, %v7219_v13  ;;  %v6931_v22 = vld [vmem:[#allocation5 + $0xd58] sm:$0xf]  ;;  %4334 = vmatpush.bf16.msrb.mxu1 %v6708_v18  ;;  %v4000_v18 = vpop.f32.mrf.mxu2  ;;  %v3984_v60 = vpop.f32.mrf.mxu1 }
 0x2d8   : > { %v7829_v7 = vld [vmem:[#allocation5 + $0xd74] sm:$0xf0]  ;;  %4256 = vmatmul.bf16.gmra.mxu0 %v8378_v42 }
 0x2d9   : > { %v6419_v50 = vld [vmem:[#allocation5 + $0x958] sm:$0xf]  ;;  %4370 = vmatpush.bf16.msrb.mxu3 %v7220_v20  ;;  %v6932_v32 = vor.u32 %v7829_v7, %v6931_v22  ;;  %v4018_v20 = vpop.f32.mrf.mxu3 }
 0x2da   : > { %v7701_v23 = vld [vmem:[#allocation5 + $0x974] sm:$0xf0]  ;;  %4274 = vmatmul.bf16.gmra.mxu1 %v8380_v47 }
 0x2db   : > { %v6675_v25 = vld [vmem:[#allocation5 + $0xb58] sm:$0xf]  ;;  %v6420_v33 = vor.u32 %v7701_v23, %v6419_v50  ;;  %4353 = vmatpush.bf16.msrb.mxu2 %v6932_v32  ;;  %v4001_v23 = vadd.f32 %v4000_v18, %v3983_v28 }
 0x2dc   : > { %v7765_v27 = vld [vmem:[#allocation5 + $0xb74] sm:$0xf0]  ;;  %4310 = vmatmul.bf16.gmra.mxu3 %v8384_v52 }
 0x2dd   : > { %v7187_v29 = vld [vmem:[#allocation5 + $0xf58] sm:$0xf]  ;;  %v6676_v36 = vor.u32 %v7765_v27, %v6675_v25  ;;  %4317 = vmatpush.bf16.msrb.mxu0 %v6420_v33  ;;  %v3966_v25 = vpop.f32.mrf.mxu0  ;;  %v8568_v31 = vadd.f32 %v4018_v20, %v4001_v23 }
 0x2de   : > { %v7893_v56 = vld [vmem:[#allocation5 + $0xf74] sm:$0xf0]  ;;  %v3985_v26 = vadd.f32 %v3984_v60, %v3966_v25 }
 0x2df   : > { %v6899_v6 = vld [vmem:[#allocation5 + $0xd18] sm:$0xf]  ;;  %v7188_v40 = vor.u32 %v7893_v56, %v7187_v29  ;;  %4335 = vmatpush.bf16.msrb.mxu1 %v6676_v36 }
 0x2e0   : > { %v7821_v21 = vld [vmem:[#allocation5 + $0xd34] sm:$0xf0] }
 0x2e1   : > { %v6387_v44 = vld [vmem:[#allocation5 + $0x918] sm:$0xf]  ;;  %v6900_v1 = vor.u32 %v7821_v21, %v6899_v6  ;;  %4371 = vmatpush.bf16.msrb.mxu3 %v7188_v40 }
 0x2e2   : > { %v7693_v46 = vld [vmem:[#allocation5 + $0x934] sm:$0xf0] }
 0x2e3   : > { %v6643_v51 = vld [vmem:[#allocation5 + $0xb18] sm:$0xf]  ;;  %v6388_v37 = vor.u32 %v7693_v46, %v6387_v44  ;;  %4354 = vmatpush.bf16.msrb.mxu2 %v6900_v1 }
 0x2e4   : > { %v7757_v59 = vld [vmem:[#allocation5 + $0xb34] sm:$0xf0] }
 0x2e5   : > { %v7155_v38 = vld [vmem:[#allocation5 + $0xf18] sm:$0xf]  ;;  %v6644_v11 = vor.u32 %v7757_v59, %v6643_v51  ;;  %4318 = vmatpush.bf16.msrb.mxu0 %v6388_v37  ;;  %v3969_v20 = vpop.f32.mrf.mxu0 }
 0x2e6   : > { %v7885_v35 = vld [vmem:[#allocation5 + $0xf34] sm:$0xf0] }
 0x2e7   : > { %v6867_v58 = vld [vmem:[#allocation5 + $0xcd8] sm:$0xf]  ;;  %v7156_v13 = vor.u32 %v7885_v35, %v7155_v38  ;;  %4336 = vmatpush.bf16.msrb.mxu1 %v6644_v11  ;;  %v4002_v11 = vpop.f32.mrf.mxu2 }
 0x2e8   : > { %v7813_v8 = vld [vmem:[#allocation5 + $0xcf4] sm:$0xf0]  ;;  %v4003_v18 = vadd.f32 %v4002_v11, %v3985_v26 }
 0x2e9   : > { %v6355_v61 = vld [vmem:[#allocation5 + $0x8d8] sm:$0xf]  ;;  %v6868_v27 = vor.u32 %v7813_v8, %v6867_v58  ;;  %4372 = vmatpush.bf16.msrb.mxu3 %v7156_v13  ;;  %v4020_v13 = vpop.f32.mrf.mxu3 }
 0x2ea   : > { %v7685_v14 = vld [vmem:[#allocation5 + $0x8f4] sm:$0xf0] }
 0x2eb   : > { %v6611_v17 = vld [vmem:[#allocation5 + $0xad8] sm:$0xf]  ;;  %v6356_v29 = vor.u32 %v7685_v14, %v6355_v61  ;;  %4355 = vmatpush.bf16.msrb.mxu2 %v6868_v27 }
 0x2ec   : > { %v7749_v22 = vld [vmem:[#allocation5 + $0xaf4] sm:$0xf0] }
 0x2ed   : > { %v7123_v7 = vld [vmem:[#allocation5 + $0xed8] sm:$0xf]  ;;  %v6612_v32 = vor.u32 %v7749_v22, %v6611_v17  ;;  %4319 = vmatpush.bf16.msrb.mxu0 %v6356_v29  ;;  %v3987_v22 = vpop.f32.mrf.mxu1 }
 0x2ee   : > { %v7877_v50 = vld [vmem:[#allocation5 + $0xef4] sm:$0xf0] }
 0x2ef   : > { %v6835_v56 = vld [vmem:[#allocation5 + $0xc98] sm:$0xf]  ;;  %v7124_v33 = vor.u32 %v7877_v50, %v7123_v7  ;;  %4337 = vmatpush.bf16.msrb.mxu1 %v6612_v32  ;;  %v3988_v50 = vadd.f32 %v3987_v22, %v3969_v20  ;;  %v3971_v20 = vpop.f32.mrf.mxu0 }
 0x2f0   : > { %v7805_v30 = vld [vmem:[#allocation5 + $0xcb4] sm:$0xf0]  ;;  %v7433_v20 = vld [vmem:[#allocation5 + $0x11c] sm:$0xf] }
 0x2f1   : > { %v6323_v6 = vld [vmem:[#allocation5 + $0x898] sm:$0xf]  ;;  %v6836_v46 = vor.u32 %v7805_v30, %v6835_v56  ;;  %4373 = vmatpush.bf16.msrb.mxu3 %v7124_v33  ;;  %v8570_v56 = vadd.f32 %v4020_v13, %v4003_v18  ;;  %v4023_v11 = vpop.f32.mrf.mxu3 }
 0x2f2   : > { %v7677_v21 = vld [vmem:[#allocation5 + $0x8b4] sm:$0xf0] }
 0x2f3   : > { %v6579_v36 = vld [vmem:[#allocation5 + $0xa98] sm:$0xf]  ;;  %v6324_v51 = vor.u32 %v7677_v21, %v6323_v6  ;;  %4356 = vmatpush.bf16.msrb.mxu2 %v6836_v46  ;;  %v7521_v46 = vld [vmem:[#allocation5 + $0x3dc] sm:$0xf] }
 0x2f4   : > { %v7741_v40 = vld [vmem:[#allocation5 + $0xab4] sm:$0xf0] }
 0x2f5   : > { %v7091_v28 = vld [vmem:[#allocation5 + $0xe98] sm:$0xf]  ;;  %v6580_v35 = vor.u32 %v7741_v40, %v6579_v36  ;;  %4320 = vmatpush.bf16.msrb.mxu0 %v6324_v51  ;;  %v7585_v36 = vld [vmem:[#allocation5 + $0x5dc] sm:$0xf]  ;;  %v3989_v22 = vpop.f32.mrf.mxu1 }
 0x2f6   : > { %v7869_v44 = vld [vmem:[#allocation5 + $0xeb4] sm:$0xf0]  ;;  %v5973_v40 = vld [vmem:[#allocation5 + $0x5f8] sm:$0xf0] }
 0x2f7   : > { %v6803_v59 = vld [vmem:[#allocation5 + $0xc58] sm:$0xf]  ;;  %v7092_v1 = vor.u32 %v7869_v44, %v7091_v28  ;;  %4338 = vmatpush.bf16.msrb.mxu1 %v6580_v35  ;;  %v7457_v28 = vld [vmem:[#allocation5 + $0x1dc] sm:$0xf]  ;;  %v5976_v13 = vor.u32 %v7585_v36, %v5973_v40 }
 0x2f8   : > { %v7797_v38 = vld [vmem:[#allocation5 + $0xc74] sm:$0xf0]  ;;  %v5461_v44 = vld [vmem:[#allocation5 + $0x1f8] sm:$0xf0] }
 0x2f9   : > { %v6291_v37 = vld [vmem:[#allocation5 + $0x858] sm:$0xf]  ;;  %v6804_v23 = vor.u32 %v7797_v38, %v6803_v59  ;;  %4374 = vmatpush.bf16.msrb.mxu3 %v7092_v1  ;;  %v5717_v38 = vld [vmem:[#allocation5 + $0x3f8] sm:$0xf0] }
 0x2fa   : > { %v7669_v58 = vld [vmem:[#allocation5 + $0x874] sm:$0xf0]  ;;  %v7649_v35 = vld [vmem:[#allocation5 + $0x7dc] sm:$0xf] }
 0x2fb   : > { %v6547_v8 = vld [vmem:[#allocation5 + $0xa58] sm:$0xf]  ;;  %v6292_v25 = vor.u32 %v7669_v58, %v6291_v37  ;;  %4357 = vmatpush.bf16.msrb.mxu2 %v6804_v23  ;;  %v6229_v1 = vld [vmem:[#allocation5 + $0x7f8] sm:$0xf0]  ;;  %v5720_v23 = vor.u32 %v7521_v46, %v5717_v38 }
 0x2fc   : > { %v7733_v61 = vld [vmem:[#allocation5 + $0xa74] sm:$0xf0]  ;;  %v7569_v36 = vld [vmem:[#allocation5 + $0x55c] sm:$0xf] }
 0x2fd   : > { %v7059_v14 = vld [vmem:[#allocation5 + $0xe58] sm:$0xf]  ;;  %v6548_v30 = vor.u32 %v7733_v61, %v6547_v8  ;;  %4321 = vmatpush.bf16.msrb.mxu0 %v6292_v25  ;;  %v4005_v8 = vpop.f32.mrf.mxu2  ;;  %v5464_v61 = vor.u32 %v7457_v28, %v5461_v44  ;;  %v6232_v25 = vor.u32 %v7649_v35, %v6229_v1  ;;  %v5909_v40 = vld [vmem:[#allocation5 + $0x578] sm:$0xf0] }
 0x2fe   : > { %v7861_v17 = vld [vmem:[#allocation5 + $0xe74] sm:$0xf0]  ;;  %v4006_v18 = vadd.f32 %v4005_v8, %v3988_v50  ;;  %v7441_v28 = vld [vmem:[#allocation5 + $0x15c] sm:$0xf] }
 0x2ff   : > { %v6771_v7 = vld [vmem:[#allocation5 + $0xc18] sm:$0xf]  ;;  %v7060_v32 = vor.u32 %v7861_v17, %v7059_v14  ;;  %4339 = vmatpush.bf16.msrb.mxu1 %v6548_v30  ;;  %v7577_v14 = vld [vmem:[#allocation5 + $0x59c] sm:$0xf] }
 0x300   : > { %v7789_v60 = vld [vmem:[#allocation5 + $0xc34] sm:$0xf0]  ;;  %v5941_v17 = vld [vmem:[#allocation5 + $0x5b8] sm:$0xf0] }
 0x301   : > { %v6259_v27 = vld [vmem:[#allocation5 + $0x818] sm:$0xf]  ;;  %v6772_v51 = vor.u32 %v7789_v60, %v6771_v7  ;;  %4375 = vmatpush.bf16.msrb.mxu3 %v7060_v32  ;;  %v7449_v7 = vld [vmem:[#allocation5 + $0x19c] sm:$0xf] }
 0x302   : > { %v7661_v29 = vld [vmem:[#allocation5 + $0x834] sm:$0xf0]  ;;  %v5429_v60 = vld [vmem:[#allocation5 + $0x1b8] sm:$0xf0] }
 0x303   : > { %v6515_v33 = vld [vmem:[#allocation5 + $0xa18] sm:$0xf]  ;;  %v6260_v59 = vor.u32 %v7661_v29, %v6259_v27  ;;  %v7513_v27 = vld [vmem:[#allocation5 + $0x39c] sm:$0xf]  ;;  %4358 = vmatpush.bf16.msrb.mxu2 %v6772_v51  ;;  %v5432_v50 = vor.u32 %v7449_v7, %v5429_v60 }
 0x304   : > { %v7725_v6 = vld [vmem:[#allocation5 + $0xa34] sm:$0xf0]  ;;  %v5685_v29 = vld [vmem:[#allocation5 + $0x3b8] sm:$0xf0] }
 0x305   : > { %v7027_v26 = vld [vmem:[#allocation5 + $0xe18] sm:$0xf]  ;;  %v6516_v37 = vor.u32 %v7725_v6, %v6515_v33  ;;  %4322 = vmatpush.bf16.msrb.mxu0 %v6260_v59  ;;  %v7641_v30 = vld [vmem:[#allocation5 + $0x79c] sm:$0xf]  ;;  %v8576_v33 = vadd.f32 %v4023_v11, %v4006_v18  ;;  %v5944_v6 = vor.u32 %v7577_v14, %v5941_v17  ;;  %v4007_v51 = vpop.f32.mrf.mxu2  ;;  %v4025_v59 = vpop.f32.mrf.mxu3  ;;  %v5912_v11 = vor.u32 %v7569_v36, %v5909_v40 }
 0x306   : > { %v7853_v21 = vld [vmem:[#allocation5 + $0xe34] sm:$0xf0]  ;;  %v6197_v32 = vld [vmem:[#allocation5 + $0x7b8] sm:$0xf0]  ;;  %4359 = vmatmul.bf16.vlgmr.msrb.gmra.mxu2 %v8402_v3 }
 0x307   : > { %v7028_v58 = vor.u32 %v7853_v21, %v7027_v26  ;;  %4340 = vmatpush.bf16.msrb.mxu1 %v6516_v37  ;;  %4423 = vmatpush.bf16.msra.mxu2 %v5976_v13  ;;  %v5688_v26 = vor.u32 %v7513_v27, %v5685_v29  ;;  %v6200_v21 = vor.u32 %v7641_v30, %v6197_v32  ;;  %v5397_v44 = vld [vmem:[#allocation5 + $0x178] sm:$0xf0]  ;;  %v4036_v37 = vpop.f32.mrf.mxu0 }
 0x308   : > { %v7505_v46 = vld [vmem:[#allocation5 + $0x35c] sm:$0xf]  ;;  %v4037_v8 = vadd.f32 %v4036_v37, %v8568_v31  ;;  %v5400_v13 = vor.u32 %v7441_v28, %v5397_v44  ;;  %4323 = vmatmul.bf16.vlgmr.msrb.gmra.mxu0 %v8398_v62 }
 0x309   : > { %4376 = vmatpush.bf16.msrb.mxu3 %v7028_v58  ;;  %4387 = vmatpush.bf16.msra.mxu0 %v5464_v61  ;;  %v5653_v38 = vld [vmem:[#allocation5 + $0x378] sm:$0xf0]  ;;  %v4054_v58 = vpop.f32.mrf.mxu1 }
 0x30a   : > { %v7633_v35 = vld [vmem:[#allocation5 + $0x75c] sm:$0xf]  ;;  %v5656_v17 = vor.u32 %v7505_v46, %v5653_v38  ;;  %4341 = vmatmul.bf16.vlgmr.msrb.gmra.mxu1 %v8400_v63 }
 0x30b   : > { %4405 = vmatpush.bf16.msra.mxu1 %v5720_v23  ;;  %4424 = vmatpush.bf16.msra.mxu2 %v5944_v6  ;;  %v6165_v1 = vld [vmem:[#allocation5 + $0x778] sm:$0xf0] }
 0x30c   : > { %v7561_v61 = vld [vmem:[#allocation5 + $0x51c] sm:$0xf]  ;;  %v6168_v18 = vor.u32 %v7633_v35, %v6165_v1  ;;  %4377 = vmatmul.bf16.vlgmr.msrb.gmra.mxu3 %v8404_v4 }
 0x30d   : > { %4441 = vmatpush.bf16.msra.mxu3 %v6232_v25  ;;  %4388 = vmatpush.bf16.msra.mxu0 %v5432_v50  ;;  %v5877_v14 = vld [vmem:[#allocation5 + $0x538] sm:$0xf0]  ;;  %v4055_v25 = vadd.f32 %v4054_v58, %v4037_v8  ;;  %v4072_v28 = vpop.f32.mrf.mxu2  ;;  %v4090_v44 = vpop.f32.mrf.mxu3 }
 0x30e   : > { %v5365_v22 = vld [vmem:[#allocation5 + $0x138] sm:$0xf0]  ;;  %v5880_v31 = vor.u32 %v7561_v61, %v5877_v14 }
 0x30f   : > { %4406 = vmatpush.bf16.msra.mxu1 %v5688_v26  ;;  %v7497_v23 = vld [vmem:[#allocation5 + $0x31c] sm:$0xf]  ;;  %4425 = vmatpush.bf16.msra.mxu2 %v5912_v11  ;;  %v5368_v29 = vor.u32 %v7433_v20, %v5365_v22  ;;  %v4073_v59 = vadd.f32 %v4072_v28, %v4055_v25  ;;  %v4038_v38 = vpop.f32.mrf.mxu0 }
 0x310   : > { %v5621_v7 = vld [vmem:[#allocation5 + $0x338] sm:$0xf0]  ;;  %v4039_v14 = vadd.f32 %v4038_v38, %v8570_v56 }
 0x311   : > { %4442 = vmatpush.bf16.msra.mxu3 %v6200_v21  ;;  %v7625_v60 = vld [vmem:[#allocation5 + $0x71c] sm:$0xf]  ;;  %4389 = vmatpush.bf16.msra.mxu0 %v5400_v13  ;;  %v5624_v50 = vor.u32 %v7497_v23, %v5621_v7  ;;  %v4056_v35 = vpop.f32.mrf.mxu1  ;;  %v4091_v61 = vadd.f32 %v4090_v44, %v4073_v59  ;;  %v4531_v7 = vmul.f32 %v8460_v39, %v8460_v39 }
 0x312   : > { %v6133_v27 = vld [vmem:[#allocation5 + $0x738] sm:$0xf0] }
 0x313   : > { %v7553_v30 = vld [vmem:[#allocation5 + $0x4dc] sm:$0xf]  ;;  %4407 = vmatpush.bf16.msra.mxu1 %v5656_v17  ;;  %v6136_v26 = vor.u32 %v7625_v60, %v6133_v27  ;;  %4426 = vmatpush.bf16.msra.mxu2 %v5880_v31  ;;  %v4543_v60 = vmul.f32 %v4091_v61, %v4091_v61 }
 0x314   : > { %v5845_v32 = vld [vmem:[#allocation5 + $0x4f8] sm:$0xf0] }
 0x315   : > { %v7425_v6 = vld [vmem:[#allocation5 + $0xdc] sm:$0xf]  ;;  %4443 = vmatpush.bf16.msra.mxu3 %v6168_v18  ;;  %4390 = vmatpush.bf16.msra.mxu0 %v5368_v29  ;;  %v5848_v1 = vor.u32 %v7553_v30, %v5845_v32  ;;  %v8586_v56 = vadd.f32 %v4543_v60, %v4531_v7  ;;  %v4092_v28 = vpop.f32.mrf.mxu3  ;;  %v4535_v60 = vmul.f32 %v8463_v24, %v8463_v24 }
 0x316   : > { %v5333_v21 = vld [vmem:[#allocation5 + $0xf8] sm:$0xf0]  ;;  %4364 = vmatmul.bf16.gmra.mxu2 %v8416_v9 }
 0x317   : > { %v7489_v36 = vld [vmem:[#allocation5 + $0x2dc] sm:$0xf]  ;;  %v5336_v37 = vor.u32 %v7425_v6, %v5333_v21  ;;  %4408 = vmatpush.bf16.msra.mxu1 %v5624_v50  ;;  %4427 = vmatpush.bf16.msra.mxu2 %v5848_v1  ;;  %v4057_v6 = vadd.f32 %v4056_v35, %v4039_v14  ;;  %8020 = vrsqrt.f32 %v8586_v56  ;;  %v4041_v59 = vpop.f32.mrf.mxu0  ;;  %vm4574_vm0 = vcmp.eq.f32.partialorder %v8586_v56, inf }
 0x318   : > { %v5589_v40 = vld [vmem:[#allocation5 + $0x2f8] sm:$0xf0]  ;;  %4328 = vmatmul.bf16.gmra.mxu0 %v8412_v2  ;;  %vm4576_vm2 = vcmp.eq.f32.partialorder %v8586_v56, 0.0 }
 0x319   : > { %v7617_v46 = vld [vmem:[#allocation5 + $0x6dc] sm:$0xf]  ;;  %v5592_v58 = vor.u32 %v7489_v36, %v5589_v40  ;;  %4444 = vmatpush.bf16.msra.mxu3 %v6136_v26  ;;  %4391 = vmatpush.bf16.msra.mxu0 %v5336_v37  ;;  %v4074_v40 = vpop.f32.mrf.mxu2  ;;  %v4059_v38 = vpop.f32.mrf.mxu1  ;;  %v4042_v37 = vadd.f32 %v4041_v59, %v8576_v33 }
 0x31a   : > { %v6101_v51 = vld [vmem:[#allocation5 + $0x6f8] sm:$0xf0]  ;;  %4346 = vmatmul.bf16.gmra.mxu1 %v8414_v5 }
 0x31b   : > { %v7545_v8 = vld [vmem:[#allocation5 + $0x49c] sm:$0xf]  ;;  %v6104_v17 = vor.u32 %v7617_v46, %v6101_v51  ;;  %4409 = vmatpush.bf16.msra.mxu1 %v5592_v58  ;;  %v4075_v51 = vadd.f32 %v4074_v40, %v4057_v6 }
 0x31c   : > { %v5813_v11 = vld [vmem:[#allocation5 + $0x4b8] sm:$0xf0]  ;;  %4382 = vmatmul.bf16.gmra.mxu3 %v8418_v10 }
 0x31d   : > { %v7417_v13 = vld [vmem:[#allocation5 + $0x9c] sm:$0xf]  ;;  %v5816_v27 = vor.u32 %v7545_v8, %v5813_v11  ;;  %4445 = vmatpush.bf16.msra.mxu3 %v6104_v17  ;;  %v4093_v61 = vadd.f32 %v4092_v28, %v4075_v51 }
 0x31e   : > { %v5301_v18 = vld [vmem:[#allocation5 + $0xb8] sm:$0xf0] }
 0x31f   : > { %v7481_v20 = vld [vmem:[#allocation5 + $0x29c] sm:$0xf]  ;;  %v5304_v31 = vor.u32 %v7417_v13, %v5301_v18  ;;  %4428 = vmatpush.bf16.msra.mxu2 %v5816_v27  ;;  %v4547_v27 = vmul.f32 %v4093_v61, %v4093_v61 }
 0x320   : > { %v5557_v22 = vld [vmem:[#allocation5 + $0x2b8] sm:$0xf0] }
 0x321   : > { %v7609_v23 = vld [vmem:[#allocation5 + $0x69c] sm:$0xf]  ;;  %v5560_v29 = vor.u32 %v7481_v20, %v5557_v22  ;;  %4392 = vmatpush.bf16.msra.mxu0 %v5304_v31  ;;  %v8598_v40 = vadd.f32 %v4547_v27, %v4535_v60 }
 0x322   : > { %v6069_v25 = vld [vmem:[#allocation5 + $0x6b8] sm:$0xf0] }
 0x323   : > { %v7537_v30 = vld [vmem:[#allocation5 + $0x45c] sm:$0xf]  ;;  %v6072_v50 = vor.u32 %v7609_v23, %v6069_v25  ;;  %4410 = vmatpush.bf16.msra.mxu1 %v5560_v29  ;;  %v4060_v23 = vadd.f32 %v4059_v38, %v4042_v37  ;;  %8022 = vrsqrt.f32 %v8598_v40  ;;  %vm4622_vm1 = vcmp.eq.f32.partialorder %v8598_v40, inf }
 0x324   : > { %v5781_v32 = vld [vmem:[#allocation5 + $0x478] sm:$0xf0]  ;;  %vm4624_vm3 = vcmp.eq.f32.partialorder %v8598_v40, 0.0 }
 0x325   : > { %v7409_v26 = vld [vmem:[#allocation5 + $0x5c] sm:$0xf]  ;;  %v5784_v35 = vor.u32 %v7537_v30, %v5781_v32  ;;  %4446 = vmatpush.bf16.msra.mxu3 %v6072_v50 }
 0x326   : > { %v5269_v21 = vld [vmem:[#allocation5 + $0x78] sm:$0xf0] }
 0x327   : > { %v7473_v36 = vld [vmem:[#allocation5 + $0x25c] sm:$0xf]  ;;  %v5272_v58 = vor.u32 %v7409_v26, %v5269_v21  ;;  %4429 = vmatpush.bf16.msra.mxu2 %v5784_v35  ;;  %v4043_v35 = vpop.f32.mrf.mxu0 }
 0x328   : > { %v5525_v39 = vld [vmem:[#allocation5 + $0x278] sm:$0xf0] }
 0x329   : > { %v7601_v44 = vld [vmem:[#allocation5 + $0x65c] sm:$0xf]  ;;  %v5528_v14 = vor.u32 %v7473_v36, %v5525_v39  ;;  %4393 = vmatpush.bf16.msra.mxu0 %v5272_v58  ;;  %v8596_v36 = vpop.eup %8020  ;;  %v4077_v39 = vpop.f32.mrf.mxu2 }
 0x32a   : > { %v6037_v46 = vld [vmem:[#allocation5 + $0x678] sm:$0xf0]  ;;  %v4078_v37 = vadd.f32 %v4077_v39, %v4060_v23  ;;  %v4061_v58 = vpop.f32.mrf.mxu1  ;;  %v4539_v23 = vmul.f32 %v8469_v15, %v8469_v15 }
 0x32b   : > { %v7529_v1 = vld [vmem:[#allocation5 + $0x41c] sm:$0xf]  ;;  %v6040_v17 = vor.u32 %v7601_v44, %v6037_v46  ;;  %4411 = vmatpush.bf16.msra.mxu1 %v5528_v14  ;;  %v4095_v44 = vpop.f32.mrf.mxu3 }
 0x32c   : > { %v5749_v8 = vld [vmem:[#allocation5 + $0x438] sm:$0xf0] }
 0x32d   : > { %v7401_v11 = vld [vmem:[#allocation5 + $0x1c] sm:$0xf]  ;;  %v5752_v32 = vor.u32 %v7529_v1, %v5749_v8  ;;  %4447 = vmatpush.bf16.msra.mxu3 %v6040_v17  ;;  %v4568_v1 = vmul.f32 %v8596_v36, %v8586_v56 }
 0x32e   : > { %v5237_v13 = vld [vmem:[#allocation5 + $0x38] sm:$0xf0] }
 0x32f   : > { %v7465_v18 = vld [vmem:[#allocation5 + $0x21c] sm:$0xf]  ;;  %v5240_v6 = vor.u32 %v7401_v11, %v5237_v13  ;;  %4430 = vmatpush.bf16.msra.mxu2 %v5752_v32 }
 0x330   : > { %v5493_v20 = vld [vmem:[#allocation5 + $0x238] sm:$0xf0] }
 0x331   : > { %v7593_v22 = vld [vmem:[#allocation5 + $0x61c] sm:$0xf]  ;;  %v5496_v24 = vor.u32 %v7465_v18, %v5493_v20  ;;  %4394 = vmatpush.bf16.msra.mxu0 %v5240_v6  ;;  %v8023_v6 = vpop.eup %8022 }
 0x332   : > { %v6005_v33 = vld [vmem:[#allocation5 + $0x638] sm:$0xf0]  ;;  %4431 = vmatmul.bf16.vlgmr.msra.gmra.mxu2 %v8368_v54 }
 0x333   : > { %v7841_v25 = vld [vmem:[#allocation5 + $0xddc] sm:$0xf]  ;;  %v6008_v28 = vor.u32 %v7593_v22, %v6005_v33  ;;  %v4569_v22 = vmul.f32 %v8596_v36, %v4568_v1  ;;  %v4096_v33 = vadd.f32 %v4095_v44, %v4078_v37  ;;  %4412 = vmatpush.bf16.msra.mxu1 %v5496_v24  ;;  %v4097_v15 = vpop.f32.mrf.mxu3 }
 0x334   : > { %v6997_v7 = vld [vmem:[#allocation5 + $0xdf8] sm:$0xf0]  ;;  %4395 = vmatmul.bf16.vlgmr.msra.gmra.mxu0 %v8364_v48 }
 0x335   : > { %v7713_v31 = vld [vmem:[#allocation5 + $0x9dc] sm:$0xf]  ;;  %v7000_v46 = vor.u32 %v7841_v25, %v6997_v7  ;;  %4448 = vmatpush.bf16.msra.mxu3 %v6008_v28  ;;  %v4551_v60 = vmul.f32 %v4096_v33, %v4096_v33  ;;  %v4079_v28 = vpop.f32.mrf.mxu2 }
 0x336   : > { %v6485_v29 = vld [vmem:[#allocation5 + $0x9f8] sm:$0xf0]  ;;  %4413 = vmatmul.bf16.vlgmr.msra.gmra.mxu1 %v8366_v53 }
 0x337   : > { %v7777_v30 = vld [vmem:[#allocation5 + $0xbdc] sm:$0xf]  ;;  %v6488_v51 = vor.u32 %v7713_v31, %v6485_v29  ;;  %4495 = vmatpush.bf16.msrb.mxu2 %v7000_v46  ;;  %v4570_v29 = vmul.f32 0.5, %v4569_v22 }
 0x338   : > { %v6741_v50 = vld [vmem:[#allocation5 + $0xbf8] sm:$0xf0]  ;;  %4449 = vmatmul.bf16.vlgmr.msra.gmra.mxu3 %v8370_v57 }
 0x339   : > { %v7905_v26 = vld [vmem:[#allocation5 + $0xfdc] sm:$0xf]  ;;  %v6744_v8 = vor.u32 %v7777_v30, %v6741_v50  ;;  %4459 = vmatpush.bf16.msrb.mxu0 %v6488_v51  ;;  %v8606_v50 = vadd.f32 %v4551_v60, %v4539_v23  ;;  %v4616_v51 = vmul.f32 %v8023_v6, %v8598_v40  ;;  %v4571_v1 = vsub.f32 1.5, %v4570_v29 }
 0x33a   : > { %v7253_v21 = vld [vmem:[#allocation5 + $0xff8] sm:$0xf0] }
 0x33b   : > { %v7833_v59 = vld [vmem:[#allocation5 + $0xd9c] sm:$0xf]  ;;  %v7256_v11 = vor.u32 %v7905_v26, %v7253_v21  ;;  %4477 = vmatpush.bf16.msrb.mxu1 %v6744_v8  ;;  %v4572_v22 = vmul.f32 %v8596_v36, %v4571_v1  ;;  %v8621_v54 = vpop.f32.mrf.mxu3  ;;  %v4577_v1 = vand.u32 2147483648, %v8586_v56  ;;  %8024 = vrsqrt.f32 %v8606_v50 }
 0x33c   : > { %v6965_v38 = vld [vmem:[#allocation5 + $0xdb8] sm:$0xf0]  ;;  %vm4670_vm5 = vcmp.eq.f32.partialorder %v8606_v50, inf  ;;  %vm4672_vm9 = vcmp.eq.f32.partialorder %v8606_v50, 0.0 }
 0x33d   : > { %v7705_v13 = vld [vmem:[#allocation5 + $0x99c] sm:$0xf]  ;;  %v6968_v25 = vor.u32 %v7833_v59, %v6965_v38  ;;  %4513 = vmatpush.bf16.msrb.mxu3 %v7256_v11  ;;  %v8609_v59 = vpop.f32.mrf.mxu0  ;;  %v8611_v38 = vpop.f32.mrf.mxu1  ;;  %v4573_v29 = vmul.f32 %v4572_v22, %v8586_v56 }
 0x33e   : > { %v6453_v61 = vld [vmem:[#allocation5 + $0x9b8] sm:$0xf0] }
 0x33f   : > { %v7769_v14 = vld [vmem:[#allocation5 + $0xb9c] sm:$0xf]  ;;  %v6456_v7 = vor.u32 %v7705_v13, %v6453_v61  ;;  %4496 = vmatpush.bf16.msrb.mxu2 %v6968_v25  ;;  %v4617_v13 = vmul.f32 %v8023_v6, %v4616_v51 }
 0x340   : > { %v6709_v17 = vld [vmem:[#allocation5 + $0xbb8] sm:$0xf0] }
 0x341   : > { %v7897_v18 = vld [vmem:[#allocation5 + $0xf9c] sm:$0xf]  ;;  %v6712_v27 = vor.u32 %v7769_v14, %v6709_v17  ;;  %4460 = vmatpush.bf16.msrb.mxu0 %v6456_v7  ;;  %v4618_v25 = vmul.f32 0.5, %v4617_v13 }
 0x342   : > { %v7221_v20 = vld [vmem:[#allocation5 + $0xfb8] sm:$0xf0]  ;;  %4436 = vmatmul.bf16.gmra.mxu2 %v8382_v49  ;;  %v4127_v49 = vadd.f32 %v8611_v38, %v8609_v59 }
 0x343   : > { %v7224_v31 = vor.u32 %v7897_v18, %v7221_v20  ;;  %v7825_v30 = vld [vmem:[#allocation5 + $0xd5c] sm:$0xf]  ;;  %4478 = vmatpush.bf16.msrb.mxu1 %v6712_v27  ;;  %v4619_v36 = vsub.f32 1.5, %v4618_v25 }
 0x344   : > { %v6933_v32 = vld [vmem:[#allocation5 + $0xd78] sm:$0xf0]  ;;  %4400 = vmatmul.bf16.gmra.mxu0 %v8378_v42 }
 0x345   : > { %v7697_v26 = vld [vmem:[#allocation5 + $0x95c] sm:$0xf]  ;;  %4514 = vmatpush.bf16.msrb.mxu3 %v7224_v31  ;;  %v6936_v37 = vor.u32 %v7825_v30, %v6933_v32  ;;  %v4620_v15 = vmul.f32 %v8023_v6, %v4619_v36 }
 0x346   : > { %v6421_v21 = vld [vmem:[#allocation5 + $0x978] sm:$0xf0]  ;;  %4418 = vmatmul.bf16.gmra.mxu1 %v8380_v47 }
 0x347   : > { %v7761_v24 = vld [vmem:[#allocation5 + $0xb5c] sm:$0xf]  ;;  %v6424_v35 = vor.u32 %v7697_v26, %v6421_v21  ;;  %4497 = vmatpush.bf16.msrb.mxu2 %v6936_v37  ;;  %v8619_v21 = vpop.f32.mrf.mxu2  ;;  %v4621_v6 = vmul.f32 %v4620_v15, %v8598_v40 }
 0x348   : > { %v6677_v39 = vld [vmem:[#allocation5 + $0xb78] sm:$0xf0]  ;;  %4454 = vmatmul.bf16.gmra.mxu3 %v8384_v52  ;;  %v7916_v52 = vld [vmem:[#allocation7 + $0x30] sm:$0xff] }
 0x349   : > { %v7889_v44 = vld [vmem:[#allocation5 + $0xf5c] sm:$0xf]  ;;  %v6680_v61 = vor.u32 %v7761_v24, %v6677_v39  ;;  %4461 = vmatpush.bf16.msrb.mxu0 %v6424_v35  ;;  %v8623_v39 = vpop.f32.mrf.mxu0 }
 0x34a   : > { %v7189_v46 = vld [vmem:[#allocation5 + $0xf78] sm:$0xf0] }
 0x34b   : > { %v7817_v58 = vld [vmem:[#allocation5 + $0xd1c] sm:$0xf]  ;;  %v7192_v14 = vor.u32 %v7889_v44, %v7189_v46  ;;  %4479 = vmatpush.bf16.msrb.mxu1 %v6680_v61  ;;  %v8625_v44 = vpop.f32.mrf.mxu1 }
 0x34c   : > { %v6901_v8 = vld [vmem:[#allocation5 + $0xd38] sm:$0xf0]  ;;  %v4129_v59 = vadd.f32 %v8625_v44, %v8623_v39 }
 0x34d   : > { %v7689_v11 = vld [vmem:[#allocation5 + $0x91c] sm:$0xf]  ;;  %v6904_v7 = vor.u32 %v7817_v58, %v6901_v8  ;;  %4515 = vmatpush.bf16.msrb.mxu3 %v7192_v14 }
 0x34e   : > { %v6389_v17 = vld [vmem:[#allocation5 + $0x938] sm:$0xf0] }
 0x34f   : > { %v7753_v18 = vld [vmem:[#allocation5 + $0xb1c] sm:$0xf]  ;;  %v6392_v60 = vor.u32 %v7689_v11, %v6389_v17  ;;  %4498 = vmatpush.bf16.msrb.mxu2 %v6904_v7  ;;  %v4575_v11 = vsel %vm4574_vm0, %v8586_v56, %v4573_v29 }
 0x350   : > { %v6645_v20 = vld [vmem:[#allocation5 + $0xb38] sm:$0xf0] }
 0x351   : > { %v7881_v33 = vld [vmem:[#allocation5 + $0xf1c] sm:$0xf]  ;;  %v6648_v48 = vor.u32 %v7753_v18, %v6645_v20  ;;  %4462 = vmatpush.bf16.msrb.mxu0 %v6392_v60  ;;  %v4625_v18 = vand.u32 2147483648, %v8598_v40 }
 0x352   : > { %v7157_v23 = vld [vmem:[#allocation5 + $0xf38] sm:$0xf0] }
 0x353   : > { %v7809_v27 = vld [vmem:[#allocation5 + $0xcdc] sm:$0xf]  ;;  %v7160_v53 = vor.u32 %v7881_v33, %v7157_v23  ;;  %4480 = vmatpush.bf16.msrb.mxu1 %v6648_v48  ;;  %v4623_v33 = vsel %vm4622_vm1, %v8598_v40, %v4621_v6  ;;  %v8636_v23 = vsel %vm4576_vm2, %v4577_v1, %v4575_v11  ;;  %v8648_v15 = vpop.f32.mrf.mxu1 }
 0x354   : > { %v6869_v31 = vld [vmem:[#allocation5 + $0xcf8] sm:$0xf0]  ;;  %v8638_v25 = vsel %vm4624_vm3, %v4625_v18, %v4623_v33 }
 0x355   : > { %v7681_v30 = vld [vmem:[#allocation5 + $0x8dc] sm:$0xf]  ;;  %v6872_v46 = vor.u32 %v7809_v27, %v6869_v31  ;;  %4516 = vmatpush.bf16.msrb.mxu3 %v7160_v53  ;;  %v4711_v29 = vpack.c.bf16 %v8638_v25, %v8636_v23 }
 0x356   : > { %v6357_v32 = vld [vmem:[#allocation5 + $0x8f8] sm:$0xf0] }
 0x357   : > { %v7745_v26 = vld [vmem:[#allocation5 + $0xadc] sm:$0xf]  ;;  %v6360_v37 = vor.u32 %v7681_v30, %v6357_v32  ;;  %4499 = vmatpush.bf16.msrb.mxu2 %v6872_v46  ;;  %v8642_v30 = vpop.f32.mrf.mxu2  ;;  %v8644_v32 = vpop.f32.mrf.mxu3 }
 0x358   : > { %v6613_v57 = vld [vmem:[#allocation5 + $0xaf8] sm:$0xf0] }
 0x359   : > { %v7873_v24 = vld [vmem:[#allocation5 + $0xedc] sm:$0xf]  ;;  %v6616_v13 = vor.u32 %v7745_v26, %v6613_v57  ;;  %4463 = vmatpush.bf16.msrb.mxu0 %v6360_v37 }
 0x35a   : > { %v7125_v28 = vld [vmem:[#allocation5 + $0xef8] sm:$0xf0] }
 0x35b   : > { %v7801_v51 = vld [vmem:[#allocation5 + $0xc9c] sm:$0xf]  ;;  %v7128_v61 = vor.u32 %v7873_v24, %v7125_v28  ;;  %4481 = vmatpush.bf16.msrb.mxu1 %v6616_v13  ;;  %v8646_v28 = vpop.f32.mrf.mxu0 }
 0x35c   : > { %v6837_v35 = vld [vmem:[#allocation5 + $0xcb8] sm:$0xf0] }
 0x35d   : > { %v7673_v58 = vld [vmem:[#allocation5 + $0x89c] sm:$0xf]  ;;  %v6840_v7 = vor.u32 %v7801_v51, %v6837_v35  ;;  %4517 = vmatpush.bf16.msrb.mxu3 %v7128_v61 }
 0x35e   : > { %v6325_v8 = vld [vmem:[#allocation5 + $0x8b8] sm:$0xf0] }
 0x35f   : > { %v7737_v14 = vld [vmem:[#allocation5 + $0xa9c] sm:$0xf]  ;;  %v6328_v60 = vor.u32 %v7673_v58, %v6325_v8  ;;  %4500 = vmatpush.bf16.msrb.mxu2 %v6840_v7  ;;  %v4149_v33 = vpop.f32.mrf.mxu2  ;;  %v4167_v7 = vpop.f32.mrf.mxu3 }
 0x360   : > { %v6581_v17 = vld [vmem:[#allocation5 + $0xab8] sm:$0xf0] }
 0x361   : > { %v7865_v20 = vld [vmem:[#allocation5 + $0xe9c] sm:$0xf]  ;;  %v6584_v56 = vor.u32 %v7737_v14, %v6581_v17  ;;  %4464 = vmatpush.bf16.msrb.mxu0 %v6328_v60 }
 0x362   : > { %v7093_v22 = vld [vmem:[#allocation5 + $0xeb8] sm:$0xf0] }
 0x363   : > { %v7793_v27 = vld [vmem:[#allocation5 + $0xc5c] sm:$0xf]  ;;  %v7096_v36 = vor.u32 %v7865_v20, %v7093_v22  ;;  %4482 = vmatpush.bf16.msrb.mxu1 %v6584_v56  ;;  %v4115_v47 = vpop.f32.mrf.mxu0  ;;  %v4145_v56 = vadd.f32 %v8619_v21, %v4127_v49  ;;  %v4147_v21 = vadd.f32 %v8642_v30, %v4129_v59 }
 0x364   : > { %v6805_v31 = vld [vmem:[#allocation5 + $0xc78] sm:$0xf0] }
 0x365   : > { %v7665_v48 = vld [vmem:[#allocation5 + $0x85c] sm:$0xf]  ;;  %v6808_v46 = vor.u32 %v7793_v27, %v6805_v31  ;;  %4518 = vmatpush.bf16.msrb.mxu3 %v7096_v36  ;;  %v4133_v27 = vpop.f32.mrf.mxu1  ;;  %v7924_v31 = vld [vmem:[#allocation7 + $0x70] sm:$0xff]  ;;  %v4165_v39 = vadd.f32 %v8644_v32, %v4147_v21 }
 0x366   : > { %v6293_v53 = vld [vmem:[#allocation5 + $0x878] sm:$0xf0]  ;;  %v7912_v32 = vld [vmem:[#allocation7 + $0x10] sm:$0xff] }
 0x367   : > { %v7729_v40 = vld [vmem:[#allocation5 + $0xa5c] sm:$0xf]  ;;  %v6296_v51 = vor.u32 %v7665_v48, %v6293_v53  ;;  %4501 = vmatpush.bf16.msrb.mxu2 %v6808_v46  ;;  %v4151_v36 = vpop.f32.mrf.mxu2  ;;  %v4169_v48 = vpop.f32.mrf.mxu3  ;;  %v4163_v53 = vadd.f32 %v8621_v54, %v4145_v56  ;;  %v7914_v54 = vld [vmem:[#allocation7 + $0x20] sm:$0xff] }
 0x368   : > { %v6549_v26 = vld [vmem:[#allocation5 + $0xa78] sm:$0xf0]  ;;  %v7922_v46 = vld [vmem:[#allocation7 + $0x60] sm:$0xff] }
 0x369   : > { %v7857_v57 = vld [vmem:[#allocation5 + $0xe5c] sm:$0xf]  ;;  %v6552_v35 = vor.u32 %v7729_v40, %v6549_v26  ;;  %4465 = vmatpush.bf16.msrb.mxu0 %v6296_v51 }
 0x36a   : > { %v7061_v24 = vld [vmem:[#allocation5 + $0xe78] sm:$0xf0] }
 0x36b   : > { %v7785_v1 = vld [vmem:[#allocation5 + $0xc1c] sm:$0xf]  ;;  %v7064_v58 = vor.u32 %v7857_v57, %v7061_v24  ;;  %4483 = vmatpush.bf16.msrb.mxu1 %v6552_v35  ;;  %v4180_v40 = vpop.f32.mrf.mxu0  ;;  %v7915_v57 = vld [vmem:[#allocation7 + $0x28] sm:$0xff] }
 0x36c   : > { %v6773_v37 = vld [vmem:[#allocation5 + $0xc38] sm:$0xf0]  ;;  %v7923_v24 = vld [vmem:[#allocation7 + $0x68] sm:$0xff]  ;;  %v4181_v38 = vadd.f32 %v4180_v40, %v4163_v53 }
 0x36d   : > { %v7657_v8 = vld [vmem:[#allocation5 + $0x81c] sm:$0xf]  ;;  %v6776_v17 = vor.u32 %v7785_v1, %v6773_v37  ;;  %4519 = vmatpush.bf16.msrb.mxu3 %v7064_v58  ;;  %v4198_v26 = vpop.f32.mrf.mxu1 }
 0x36e   : > { %v6261_v11 = vld [vmem:[#allocation5 + $0x838] sm:$0xf0]  ;;  %v4199_v51 = vadd.f32 %v4198_v26, %v4181_v38  ;;  %v4540_v38 = vmul.f32 %v8500_v41, %v8500_v41 }
 0x36f   : > { %v7721_v6 = vld [vmem:[#allocation5 + $0xa1c] sm:$0xf]  ;;  %v6264_v18 = vor.u32 %v7657_v8, %v6261_v11  ;;  %4502 = vmatpush.bf16.msrb.mxu2 %v6776_v17  ;;  %v4216_v1 = vpop.f32.mrf.mxu2  ;;  %v4234_v37 = vpop.f32.mrf.mxu3  ;;  %v4532_v8 = vmul.f32 %v8491_v12, %v8491_v12  ;;  %v7911_v12 = vld [vmem:[#allocation7 + $0x8] sm:$0xff] }
 0x370   : > { %v6517_v13 = vld [vmem:[#allocation5 + $0xa38] sm:$0xf0]  ;;  %v4217_v44 = vadd.f32 %v4216_v1, %v4199_v51  ;;  %v8025_v17 = vpop.eup %8024 }
 0x371   : > { %v7849_v61 = vld [vmem:[#allocation5 + $0xe1c] sm:$0xf]  ;;  %v6520_v20 = vor.u32 %v7721_v6, %v6517_v13  ;;  %4466 = vmatpush.bf16.msrb.mxu0 %v6264_v18  ;;  %v7920_v13 = vld [vmem:[#allocation7 + $0x50] sm:$0xff]  ;;  %v4664_v27 = vmul.f32 %v8025_v17, %v8606_v50 }
 0x372   : > { %v7029_v14 = vld [vmem:[#allocation5 + $0xe38] sm:$0xf0]  ;;  %4503 = vmatmul.bf16.vlgmr.msrb.gmra.mxu2 %v8402_v3  ;;  %v4235_v30 = vadd.f32 %v4234_v37, %v4217_v44 }
 0x373   : > { %v7032_v22 = vor.u32 %v7849_v61, %v7029_v14  ;;  %v7917_v42 = vld [vmem:[#allocation7 + $0x38] sm:$0xff]  ;;  %4484 = vmatpush.bf16.msrb.mxu1 %v6520_v20  ;;  %v4182_v35 = vpop.f32.mrf.mxu0  ;;  %v4665_v53 = vmul.f32 %v8025_v17, %v4664_v27 }
 0x374   : > { %v7925_v60 = vld [vmem:[#allocation7 + $0x78] sm:$0xff]  ;;  %4467 = vmatmul.bf16.vlgmr.msrb.gmra.mxu0 %v8398_v62  ;;  %v4183_v58 = vadd.f32 %v4182_v35, %v4165_v39  ;;  %v4544_v6 = vmul.f32 %v4235_v30, %v4235_v30 }
 0x375   : > { %4520 = vmatpush.bf16.msrb.mxu3 %v7032_v22  ;;  %4975 = vmatpush.bf16.msra.mxu0 %v7917_v42  ;;  %v4200_v62 = vpop.f32.mrf.mxu1  ;;  %v7921_v3 = vld [vmem:[#allocation7 + $0x58] sm:$0xff] }
 0x376   : > { %4485 = vmatmul.bf16.vlgmr.msrb.gmra.mxu1 %v8400_v63  ;;  %v7913_v63 = vld [vmem:[#allocation7 + $0x18] sm:$0xff]  ;;  %v8671_v61 = vadd.f32 %v4544_v6, %v4532_v8  ;;  %v4201_v14 = vadd.f32 %v4200_v62, %v4183_v58 }
 0x377   : > { %4993 = vmatpush.bf16.msra.mxu1 %v7925_v60  ;;  %v4218_v18 = vpop.f32.mrf.mxu2  ;;  %v4236_v20 = vpop.f32.mrf.mxu3 }
 0x378   : > { %4521 = vmatmul.bf16.vlgmr.msrb.gmra.mxu3 %v8404_v4  ;;  %v4132_v4 = vadd.f32 %v8648_v15, %v8646_v28  ;;  %8026 = vrsqrt.f32 %v8671_v61  ;;  %v4219_v28 = vadd.f32 %v4218_v18, %v4201_v14  ;;  %vm4586_vm4 = vcmp.eq.f32.partialorder %v8671_v61, inf }
 0x379   : > { %4976 = vmatpush.bf16.msra.mxu0 %v7916_v52  ;;  %v7910_v52 = vld [vmem:[#allocation7] sm:$0xff]  ;;  %vm4588_vm7 = vcmp.eq.f32.partialorder %v8671_v61, 0.0 }
 0x37a   : > { %v4150_v11 = vadd.f32 %v4149_v33, %v4132_v4  ;;  %v7919_v33 = vld [vmem:[#allocation7 + $0x48] sm:$0xff]  ;;  %v4237_v60 = vadd.f32 %v4236_v20, %v4219_v28 }
 0x37b   : > { %4994 = vmatpush.bf16.msra.mxu1 %v7924_v31  ;;  %v4185_v15 = vpop.f32.mrf.mxu0  ;;  %v7918_v31 = vld [vmem:[#allocation7 + $0x40] sm:$0xff] }
 0x37c   : > { %v4168_v22 = vadd.f32 %v4167_v7, %v4150_v11  ;;  %v4536_v7 = vmul.f32 %v8494_v55, %v8494_v55  ;;  %v4548_v49 = vmul.f32 %v4237_v60, %v4237_v60  ;;  %v4673_v60 = vand.u32 2147483648, %v8606_v50 }
 0x37d   : > { %4977 = vmatpush.bf16.msra.mxu0 %v7915_v57  ;;  %v4203_v42 = vpop.f32.mrf.mxu1 }
 0x37e   : > { %v4186_v47 = vadd.f32 %v4185_v15, %v4168_v22  ;;  %v8027_v56 = vpop.eup %8026  ;;  %v4560_v36 = vadd.f32 %v4548_v49, %v4536_v7 }
 0x37f   : > { %4995 = vmatpush.bf16.msra.mxu1 %v7923_v24  ;;  %v4221_v40 = vpop.f32.mrf.mxu2  ;;  %v4666_v24 = vmul.f32 0.5, %v4665_v53 }
 0x380   : > { %v4204_v48 = vadd.f32 %v4203_v42, %v4186_v47  ;;  %8028 = vrsqrt.f32 %v4560_v36  ;;  %vm4634_vm6 = vcmp.eq.f32.partialorder %v4560_v36, inf  ;;  %v4637_v22 = vand.u32 2147483648, %v4560_v36 }
 0x381   : > { %4978 = vmatpush.bf16.msra.mxu0 %v7914_v54  ;;  %v4667_v1 = vsub.f32 1.5, %v4666_v24  ;;  %vm4636_vm8 = vcmp.eq.f32.partialorder %v4560_v36, 0.0  ;;  %v7931_v24 = vld [vmem:[#allocation7 + $0xa8] sm:$0xff] }
 0x382   : > { %4508 = vmatmul.bf16.gmra.mxu2 %v8416_v9  ;;  %v4222_v26 = vadd.f32 %v4221_v40, %v4204_v48 }
 0x383   : > { %4996 = vmatpush.bf16.msra.mxu1 %v7922_v46  ;;  %v4187_v55 = vpop.f32.mrf.mxu0  ;;  %v4668_v4 = vmul.f32 %v8025_v17, %v4667_v1 }
 0x384   : > { %4472 = vmatmul.bf16.gmra.mxu0 %v8412_v2  ;;  %v4239_v2 = vpop.f32.mrf.mxu3 }
 0x385   : > { %4979 = vmatpush.bf16.msra.mxu0 %v7913_v63  ;;  %v4205_v57 = vpop.f32.mrf.mxu1  ;;  %v4669_v11 = vmul.f32 %v4668_v4, %v8606_v50 }
 0x386   : > { %4490 = vmatmul.bf16.gmra.mxu1 %v8414_v5  ;;  %v4580_v5 = vmul.f32 %v8027_v56, %v8671_v61  ;;  %v8029_v46 = vpop.eup %8028 }
 0x387   : > { %4997 = vmatpush.bf16.msra.mxu1 %v7921_v3  ;;  %v4223_v37 = vpop.f32.mrf.mxu2  ;;  %v4628_v44 = vmul.f32 %v8029_v46, %v4560_v36  ;;  %v4671_v28 = vsel %vm4670_vm5, %v8606_v50, %v4669_v11 }
 0x388   : > { %4526 = vmatmul.bf16.gmra.mxu3 %v8418_v10  ;;  %v4581_v9 = vmul.f32 %v8027_v56, %v4580_v5  ;;  %v4240_v10 = vadd.f32 %v4239_v2, %v4222_v26  ;;  %v4674_v7 = vsel %vm4672_vm9, %v4673_v60, %v4671_v28  ;;  %v7932_v5 = vld [vmem:[#allocation7 + $0xb0] sm:$0xff] }
 0x389   : > { %4980 = vmatpush.bf16.msra.mxu0 %v7912_v32  ;;  %v4629_v3 = vmul.f32 %v8029_v46, %v4628_v44  ;;  %v4715_v53 = vpack.c.bf16 %v4674_v7, %v4674_v7  ;;  %v7929_v44 = vld [vmem:[#allocation7 + $0x98] sm:$0xff] }
 0x38a   : > { %v4582_v59 = vmul.f32 0.5, %v4581_v9  ;;  %v4552_v21 = vmul.f32 %v4240_v10, %v4240_v10 }
 0x38b   : > { %4998 = vmatpush.bf16.msra.mxu1 %v7920_v13  ;;  %v4252_v35 = vpop.f32.mrf.mxu0  ;;  %v4630_v41 = vmul.f32 0.5, %v4629_v3 }
 0x38c   : > { %v4583_v54 = vsub.f32 1.5, %v4582_v59  ;;  %v8684_v51 = vadd.f32 %v4552_v21, %v4540_v38  ;;  %v4241_v39 = vpop.f32.mrf.mxu3 }
 0x38d   : > { %4981 = vmatpush.bf16.msra.mxu0 %v7911_v12  ;;  %v4270_v62 = vpop.f32.mrf.mxu1  ;;  %v4631_v58 = vsub.f32 1.5, %v4630_v41 }
 0x38e   : > { %8030 = vrsqrt.f32 %v8684_v51  ;;  %v4584_v63 = vmul.f32 %v8027_v56, %v4583_v54  ;;  %vm4682_vm10 = vcmp.eq.f32.partialorder %v8684_v51, inf  ;;  %v4685_v57 = vand.u32 2147483648, %v8684_v51 }
 0x38f   : > { %4999 = vmatpush.bf16.msra.mxu1 %v7919_v33  ;;  %v4288_v6 = vpop.f32.mrf.mxu2  ;;  %v4632_v13 = vmul.f32 %v8029_v46, %v4631_v58  ;;  %vm4684_vm11 = vcmp.eq.f32.partialorder %v8684_v51, 0.0  ;;  %v4271_v9 = vadd.f32 %v4270_v62, %v4252_v35  ;;  %v7930_v46 = vld [vmem:[#allocation7 + $0xa0] sm:$0xff] }
 0x390   : > { %v4585_v30 = vmul.f32 %v4584_v63, %v8671_v61 }
 0x391   : > { %4982 = vmatpush.bf16.msra.mxu0 %v7910_v52  ;;  %v4633_v23 = vmul.f32 %v4632_v13, %v4560_v36  ;;  %v4289_v59 = vadd.f32 %v4288_v6, %v4271_v9 }
 0x392   : > { %v4587_v17 = vsel %vm4586_vm4, %v8671_v61, %v4585_v30 }
 0x393   : > { %5000 = vmatpush.bf16.msra.mxu1 %v7918_v31  ;;  %v4254_v18 = vpop.f32.mrf.mxu0  ;;  %v4635_v15 = vsel %vm4634_vm6, %v4560_v36, %v4633_v23  ;;  %v7933_v36 = vld [vmem:[#allocation7 + $0xb8] sm:$0xff]  ;;  %v7926_v23 = vld [vmem:[#allocation7 + $0x80] sm:$0xff] }
 0x394   : > { %4983 = vmatmul.bf16.vlgmr.msra.gmra.mxu0 %v4711_v29  ;;  %v8031_v8 = vpop.eup %8030  ;;  %v4306_v32 = vpop.f32.mrf.mxu3  ;;  %v4589_v29 = vand.u32 2147483648, %v8671_v61  ;;  %v4638_v33 = vsel %vm4636_vm8, %v4637_v22, %v4635_v15  ;;  %5011 = vmatpush.bf16.msra.mxu2 %v7933_v36 }
 0x395   : > { %v4676_v14 = vmul.f32 %v8031_v8, %v8684_v51  ;;  %v4272_v20 = vpop.f32.mrf.mxu1  ;;  %v4307_v1 = vadd.f32 %v4306_v32, %v4289_v59 }
 0x396   : > { %v4590_v12 = vsel %vm4588_vm7, %v4589_v29, %v4587_v17  ;;  %v4273_v63 = vadd.f32 %v4272_v20, %v4254_v18  ;;  %v4533_v17 = vmul.f32 %v8522_v0, %v8522_v0  ;;  %v4537_v0 = vmul.f32 %v8525_v45, %v8525_v45 }
 0x397   : > { %v4677_v25 = vmul.f32 %v8031_v8, %v4676_v14  ;;  %v4712_v47 = vpack.c.bf16 %v4638_v33, %v4590_v12  ;;  %v4290_v49 = vpop.f32.mrf.mxu2  ;;  %v7927_v14 = vld [vmem:[#allocation7 + $0x88] sm:$0xff] }
 0x398   : > { %5012 = vmatpush.bf16.msra.mxu2 %v7932_v5  ;;  %v4291_v4 = vadd.f32 %v4290_v49, %v4273_v63  ;;  %v4541_v5 = vmul.f32 %v8531_v34, %v8531_v34 }
 0x399   : > { %v4678_v42 = vmul.f32 0.5, %v4677_v25  ;;  %5001 = vmatmul.bf16.vlgmr.msra.gmra.mxu1 %v4712_v47 }
 0x39b   : > { %v4679_v27 = vsub.f32 1.5, %v4678_v42  ;;  %v4257_v56 = vpop.f32.mrf.mxu0 }
 0x39c   : > { %v4308_v52 = vpop.f32.mrf.mxu3  ;;  %5013 = vmatpush.bf16.msra.mxu2 %v7931_v24 }
 0x39d   : > { %v4680_v31 = vmul.f32 %v8031_v8, %v4679_v27  ;;  %v4275_v48 = vpop.f32.mrf.mxu1  ;;  %v4309_v30 = vadd.f32 %v4308_v52, %v4291_v4 }
 0x39e   : > { %v4276_v6 = vadd.f32 %v4275_v48, %v4257_v56 }
 0x39f   : > { %v4681_v61 = vmul.f32 %v4680_v31, %v8684_v51  ;;  %v4293_v40 = vpop.f32.mrf.mxu2 }
 0x3a0   : > { %5014 = vmatpush.bf16.msra.mxu2 %v7930_v46  ;;  %v4294_v18 = vadd.f32 %v4293_v40, %v4276_v6 }
 0x3a1   : > { %v4683_v50 = vsel %vm4682_vm10, %v8684_v51, %v4681_v61  ;;  %v7928_v51 = vld [vmem:[#allocation7 + $0x90] sm:$0xff] }
 0x3a2   : > { %v4686_v10 = vsel %vm4684_vm11, %v4685_v57, %v4683_v50 }
 0x3a3   : > { %v4259_v26 = vpop.f32.mrf.mxu0  ;;  %v4716_v38 = vpack.c.bf16 %v4686_v10, %v4686_v10 }
 0x3a4   : > { %4988 = vmatmul.bf16.gmra.mxu0 %v4715_v53  ;;  %v4311_v2 = vpop.f32.mrf.mxu3  ;;  %5015 = vmatpush.bf16.msra.mxu2 %v7929_v44 }
 0x3a5   : > { %v4277_v55 = vpop.f32.mrf.mxu1  ;;  %v4312_v15 = vadd.f32 %v4311_v2, %v4294_v18 }
 0x3a7   : > { %v4295_v21 = vpop.f32.mrf.mxu2 }
 0x3a8   : > { %5016 = vmatpush.bf16.msra.mxu2 %v7928_v51 }
 0x3a9   : > { %5006 = vmatmul.bf16.gmra.mxu1 %v4716_v38 }
 0x3ab   : > { %v4324_v37 = vpop.f32.mrf.mxu0 }
 0x3ac   : > { %v4313_v54 = vpop.f32.mrf.mxu3  ;;  %v4325_v3 = vadd.f32 %v4324_v37, %v4307_v1  ;;  %5017 = vmatpush.bf16.msra.mxu2 %v7927_v14 }
 0x3ad   : > { %v4342_v39 = vpop.f32.mrf.mxu1 }
 0x3ae   : > { %v4343_v35 = vadd.f32 %v4342_v39, %v4325_v3 }
 0x3af   : > { %v4360_v62 = vpop.f32.mrf.mxu2 }
 0x3b0   : > { %v4361_v58 = vadd.f32 %v4360_v62, %v4343_v35  ;;  %5018 = vmatpush.bf16.msra.mxu2 %v7926_v23 }
 0x3b3   : > { %v4326_v8 = vpop.f32.mrf.mxu0 }
 0x3b4   : > { %v4378_v41 = vpop.f32.mrf.mxu3  ;;  %v4327_v32 = vadd.f32 %v4326_v8, %v4309_v30 }
 0x3b5   : > { %v4344_v11 = vpop.f32.mrf.mxu1  ;;  %v4379_v13 = vadd.f32 %v4378_v41, %v4361_v58 }
 0x3b6   : > { %v4345_v29 = vadd.f32 %v4344_v11, %v4327_v32 }
 0x3b7   : > { %v4545_v20 = vmul.f32 %v4379_v13, %v4379_v13  ;;  %v4362_v22 = vpop.f32.mrf.mxu2 }
 0x3b8   : > { %v4363_v42 = vadd.f32 %v4362_v22, %v4345_v29 }
 0x3b9   : > { %v8708_v25 = vadd.f32 %v4545_v20, %v4533_v17 }
 0x3bb   : > { %8032 = vrsqrt.f32 %v8708_v25  ;;  %v4329_v12 = vpop.f32.mrf.mxu0  ;;  %vm4598_vm12 = vcmp.eq.f32.partialorder %v8708_v25, inf  ;;  %v4601_v30 = vand.u32 2147483648, %v8708_v25  ;;  %vm4600_vm14 = vcmp.eq.f32.partialorder %v8708_v25, 0.0 }
 0x3bc   : > { %v4380_v28 = vpop.f32.mrf.mxu3  ;;  %v4330_v47 = vadd.f32 %v4329_v12, %v4312_v15  ;;  %v7940_v12 = vld [vmem:[#allocation7 + $0xf0] sm:$0xff] }
 0x3bd   : > { %v4347_v33 = vpop.f32.mrf.mxu1  ;;  %v4381_v60 = vadd.f32 %v4380_v28, %v4363_v42  ;;  %v7941_v28 = vld [vmem:[#allocation7 + $0xf8] sm:$0xff] }
 0x3be   : > { %v4348_v52 = vadd.f32 %v4347_v33, %v4330_v47  ;;  %5029 = vmatpush.bf16.msra.mxu3 %v7941_v28 }
 0x3bf   : > { %v4549_v27 = vmul.f32 %v4381_v60, %v4381_v60  ;;  %v4365_v31 = vpop.f32.mrf.mxu2 }
 0x3c0   : > { %v4366_v53 = vadd.f32 %v4365_v31, %v4348_v52 }
 0x3c1   : > { %v8033_v7 = vpop.eup %8032  ;;  %v4561_v49 = vadd.f32 %v4549_v27, %v4537_v0  ;;  %v7939_v0 = vld [vmem:[#allocation7 + $0xe8] sm:$0xff] }
 0x3c2   : > { %v4592_v48 = vmul.f32 %v8033_v7, %v8708_v25  ;;  %5030 = vmatpush.bf16.msra.mxu3 %v7940_v12 }
 0x3c3   : > { %8034 = vrsqrt.f32 %v4561_v49  ;;  %v4331_v61 = vpop.f32.mrf.mxu0  ;;  %vm4646_vm13 = vcmp.eq.f32.partialorder %v4561_v49, inf  ;;  %v4649_v58 = vand.u32 2147483648, %v4561_v49  ;;  %vm4648_vm15 = vcmp.eq.f32.partialorder %v4561_v49, 0.0 }
 0x3c4   : > { %v4383_v56 = vpop.f32.mrf.mxu3  ;;  %v4593_v40 = vmul.f32 %v8033_v7, %v4592_v48  ;;  %v7938_v48 = vld [vmem:[#allocation7 + $0xe0] sm:$0xff] }
 0x3c5   : > { %v4349_v36 = vpop.f32.mrf.mxu1  ;;  %v4384_v2 = vadd.f32 %v4383_v56, %v4366_v53 }
 0x3c6   : > { %v4594_v50 = vmul.f32 0.5, %v4593_v40  ;;  %5031 = vmatpush.bf16.msra.mxu3 %v7939_v0  ;;  %v7937_v40 = vld [vmem:[#allocation7 + $0xd8] sm:$0xff] }
 0x3c7   : > { %v4553_v26 = vmul.f32 %v4384_v2, %v4384_v2  ;;  %v4367_v9 = vpop.f32.mrf.mxu2 }
 0x3c8   : > { %v4595_v45 = vsub.f32 1.5, %v4594_v50 }
 0x3c9   : > { %v8035_v55 = vpop.eup %8034  ;;  %v4565_v57 = vadd.f32 %v4553_v26, %v4541_v5  ;;  %v7936_v26 = vld [vmem:[#allocation7 + $0xd0] sm:$0xff] }
 0x3ca   : > { %v4640_v24 = vmul.f32 %v8035_v55, %v4561_v49  ;;  %v4596_v21 = vmul.f32 %v8033_v7, %v4595_v45  ;;  %5032 = vmatpush.bf16.msra.mxu3 %v7938_v48 }
 0x3cb   : > { %8036 = vrsqrt.f32 %v4565_v57  ;;  %v4396_v59 = vpop.f32.mrf.mxu0  ;;  %vm4694_vm0 = vcmp.eq.f32.partialorder %v4565_v57, inf  ;;  %v4697_v47 = vand.u32 2147483648, %v4565_v57  ;;  %vm4696_vm1 = vcmp.eq.f32.partialorder %v4565_v57, 0.0 }
 0x3cc   : > { %v4385_v10 = vpop.f32.mrf.mxu3  ;;  %v4641_v54 = vmul.f32 %v8035_v55, %v4640_v24  ;;  %v4597_v1 = vmul.f32 %v4596_v21, %v8708_v25 }
 0x3cd   : > { %v4414_v38 = vpop.f32.mrf.mxu1 }
 0x3ce   : > { %v4642_v46 = vmul.f32 0.5, %v4641_v54  ;;  %v4599_v35 = vsel %vm4598_vm12, %v8708_v25, %v4597_v1  ;;  %v4415_v27 = vadd.f32 %v4414_v38, %v4396_v59  ;;  %5033 = vmatpush.bf16.msra.mxu3 %v7937_v40  ;;  %v7935_v38 = vld [vmem:[#allocation7 + $0xc8] sm:$0xff]  ;;  %v4534_v1 = vmul.f32 %v8553_v19, %v8553_v19 }
 0x3cf   : > { %v4432_v44 = vpop.f32.mrf.mxu2  ;;  %v4602_v6 = vsel %vm4600_vm14, %v4601_v30, %v4599_v35 }
 0x3d0   : > { %v4643_v37 = vsub.f32 1.5, %v4642_v46 }
 0x3d1   : > { %v8037_v39 = vpop.eup %8036 }
 0x3d2   : > { %v4644_v34 = vmul.f32 %v8035_v55, %v4643_v37  ;;  %v4688_v3 = vmul.f32 %v8037_v39, %v4565_v57  ;;  %5034 = vmatpush.bf16.msra.mxu3 %v7936_v26 }
 0x3d3   : > { %v4398_v4 = vpop.f32.mrf.mxu0 }
 0x3d4   : > { %v4450_v63 = vpop.f32.mrf.mxu3  ;;  %v4645_v62 = vmul.f32 %v4644_v34, %v4561_v49  ;;  %v4689_v41 = vmul.f32 %v8037_v39, %v4688_v3 }
 0x3d5   : > { %v4416_v51 = vpop.f32.mrf.mxu1 }
 0x3d6   : > { %v4647_v8 = vsel %vm4646_vm13, %v4561_v49, %v4645_v62  ;;  %v4690_v11 = vmul.f32 0.5, %v4689_v41  ;;  %v4433_v49 = vadd.f32 %v4432_v44, %v4415_v27  ;;  %v4417_v2 = vadd.f32 %v4416_v51, %v4398_v4  ;;  %5035 = vmatpush.bf16.msra.mxu3 %v7935_v38  ;;  %v7934_v44 = vld [vmem:[#allocation7 + $0xc0] sm:$0xff] }
 0x3d7   : > { %v4650_v13 = vsel %vm4648_vm15, %v4649_v58, %v4647_v8  ;;  %v4434_v17 = vpop.f32.mrf.mxu2  ;;  %v4538_v8 = vmul.f32 %v8556_v43, %v8556_v43 }
 0x3d8   : > { %v4713_v32 = vpack.c.bf16 %v4650_v13, %v4602_v6  ;;  %v4691_v14 = vsub.f32 1.5, %v4690_v11  ;;  %v4451_v53 = vadd.f32 %v4450_v63, %v4433_v49  ;;  %v4435_v5 = vadd.f32 %v4434_v17, %v4417_v2 }
 0x3da   : > { %5019 = vmatmul.bf16.vlgmr.msra.gmra.mxu2 %v4713_v32  ;;  %v4692_v20 = vmul.f32 %v8037_v39, %v4691_v14  ;;  %5036 = vmatpush.bf16.msra.mxu3 %v7934_v44 }
 0x3db   : > { %v4401_v23 = vpop.f32.mrf.mxu0 }
 0x3dc   : > { %v4452_v18 = vpop.f32.mrf.mxu3  ;;  %v4693_v22 = vmul.f32 %v4692_v20, %v4565_v57 }
 0x3dd   : > { %v4419_v29 = vpop.f32.mrf.mxu1  ;;  %v4453_v9 = vadd.f32 %v4452_v18, %v4435_v5 }
 0x3de   : > { %v4695_v25 = vsel %vm4694_vm0, %v4565_v57, %v4693_v22  ;;  %v4420_v21 = vadd.f32 %v4419_v29, %v4401_v23 }
 0x3df   : > { %v4437_v15 = vpop.f32.mrf.mxu2  ;;  %v4698_v7 = vsel %vm4696_vm1, %v4697_v47, %v4695_v25 }
 0x3e0   : > { %v4717_v52 = vpack.c.bf16 %v4698_v7, %v4698_v7  ;;  %v4438_v37 = vadd.f32 %v4437_v15, %v4420_v21  ;;  %v4542_v15 = vmul.f32 %v8562_v16, %v8562_v16 }
 0x3e3   : > { %v4403_v33 = vpop.f32.mrf.mxu0 }
 0x3e4   : > { %v4455_v42 = vpop.f32.mrf.mxu3 }
 0x3e5   : > { %v4421_v60 = vpop.f32.mrf.mxu1  ;;  %v4456_v51 = vadd.f32 %v4455_v42, %v4438_v37 }
 0x3e7   : > { %v4439_v31 = vpop.f32.mrf.mxu2 }
 0x3ea   : > { %5024 = vmatmul.bf16.gmra.mxu2 %v4717_v52 }
 0x3ec   : > { %v4457_v56 = vpop.f32.mrf.mxu3 }
 0x3f1   : > { %v4468_v61 = vpop.f32.mrf.mxu0 }
 0x3f2   : > { %v4469_v50 = vadd.f32 %v4468_v61, %v4451_v53 }
 0x3f3   : > { %v4486_v36 = vpop.f32.mrf.mxu1 }
 0x3f4   : > { %v4487_v45 = vadd.f32 %v4486_v36, %v4469_v50 }
 0x3f5   : > { %v4504_v55 = vpop.f32.mrf.mxu2 }
 0x3f6   : > { %v4505_v10 = vadd.f32 %v4504_v55, %v4487_v45 }
 0x3f9   : > { %v4470_v24 = vpop.f32.mrf.mxu0 }
 0x3fa   : > { %v4471_v46 = vadd.f32 %v4470_v24, %v4453_v9 }
 0x3fb   : > { %v4522_v57 = vpop.f32.mrf.mxu3  ;;  %v4488_v59 = vpop.f32.mrf.mxu1 }
 0x3fc   : > { %v4523_v54 = vadd.f32 %v4522_v57, %v4505_v10  ;;  %v4489_v34 = vadd.f32 %v4488_v59, %v4471_v46 }
 0x3fd   : > { %v4506_v3 = vpop.f32.mrf.mxu2 }
 0x3fe   : > { %v4546_v39 = vmul.f32 %v4523_v54, %v4523_v54  ;;  %v4507_v35 = vadd.f32 %v4506_v3, %v4489_v34 }
 0x400   : > { %v4558_v63 = vadd.f32 %v4546_v39, %v4534_v1 }
 0x401   : > { %v4473_v62 = vpop.f32.mrf.mxu0 }
 0x402   : > { %8038 = vrsqrt.f32 %v4558_v63  ;;  %v4474_v58 = vadd.f32 %v4473_v62, %v4456_v51  ;;  %vm4610_vm2 = vcmp.eq.f32.partialorder %v4558_v63, inf  ;;  %v4613_v2 = vand.u32 2147483648, %v4558_v63 }
 0x403   : > { %v4524_v4 = vpop.f32.mrf.mxu3  ;;  %v4491_v41 = vpop.f32.mrf.mxu1  ;;  %vm4612_vm4 = vcmp.eq.f32.partialorder %v4558_v63, 0.0 }
 0x404   : > { %v4525_v30 = vadd.f32 %v4524_v4, %v4507_v35  ;;  %v4492_v13 = vadd.f32 %v4491_v41, %v4474_v58 }
 0x405   : > { %v4509_v32 = vpop.f32.mrf.mxu2 }
 0x406   : > { %v4550_v19 = vmul.f32 %v4525_v30, %v4525_v30  ;;  %v4510_v18 = vadd.f32 %v4509_v32, %v4492_v13 }
 0x408   : > { %v8039_v11 = vpop.eup %8038  ;;  %v4562_v6 = vadd.f32 %v4550_v19, %v4538_v8 }
 0x409   : > { %v4604_v17 = vmul.f32 %v8039_v11, %v4558_v63  ;;  %v4475_v20 = vpop.f32.mrf.mxu0 }
 0x40a   : > { %8040 = vrsqrt.f32 %v4562_v6  ;;  %vm4658_vm3 = vcmp.eq.f32.partialorder %v4562_v6, inf  ;;  %v4661_v50 = vand.u32 2147483648, %v4562_v6  ;;  %vm4660_vm5 = vcmp.eq.f32.partialorder %v4562_v6, 0.0 }
 0x40b   : > { %v4527_v14 = vpop.f32.mrf.mxu3  ;;  %v4493_v23 = vpop.f32.mrf.mxu1  ;;  %v4605_v29 = vmul.f32 %v8039_v11, %v4604_v17 }
 0x40c   : > { %v4528_v22 = vadd.f32 %v4527_v14, %v4510_v18 }
 0x40d   : > { %v4606_v28 = vmul.f32 0.5, %v4605_v29  ;;  %v4511_v33 = vpop.f32.mrf.mxu2 }
 0x40e   : > { %v4554_v42 = vmul.f32 %v4528_v22, %v4528_v22 }
 0x40f   : > { %v4607_v25 = vsub.f32 1.5, %v4606_v28 }
 0x410   : > { %v8041_v43 = vpop.eup %8040  ;;  %v4566_v12 = vadd.f32 %v4554_v42, %v4542_v15 }
 0x411   : > { %v4652_v47 = vmul.f32 %v8041_v43, %v4562_v6  ;;  %v4984_v0 = vpop.f32.mrf.mxu0  ;;  %v4608_v27 = vmul.f32 %v8039_v11, %v4607_v25 }
 0x412   : > { %8042 = vrsqrt.f32 %v4566_v12  ;;  %vm4706_vm6 = vcmp.eq.f32.partialorder %v4566_v12, inf  ;;  %v4709_v39 = vand.u32 2147483648, %v4566_v12  ;;  %vm4708_vm7 = vcmp.eq.f32.partialorder %v4566_v12, 0.0 }
 0x413   : > { %v4529_v60 = vpop.f32.mrf.mxu3  ;;  %v4653_v7 = vmul.f32 %v8041_v43, %v4652_v47  ;;  %v4609_v52 = vmul.f32 %v4608_v27, %v4558_v63 }
 0x415   : > { %v4654_v49 = vmul.f32 0.5, %v4653_v7  ;;  %v4611_v16 = vsel %vm4610_vm2, %v4558_v63, %v4609_v52 }
 0x416   : > { %v5002_v45 = vpop.f32.mrf.mxu1  ;;  %v4614_v55 = vsel %vm4612_vm4, %v4613_v2, %v4611_v16 }
 0x417   : > { %v4655_v31 = vsub.f32 1.5, %v4654_v49  ;;  %v5003_v9 = vadd.f32 %v5002_v45, %v4984_v0 }
 0x418   : > { %v8043_v56 = vpop.eup %8042 }
 0x419   : > { %v4656_v48 = vmul.f32 %v8041_v43, %v4655_v31  ;;  %v4700_v53 = vmul.f32 %v8043_v56, %v4566_v12  ;;  %v4986_v61 = vpop.f32.mrf.mxu0 }
 0x41b   : > { %v4657_v36 = vmul.f32 %v4656_v48, %v4562_v6  ;;  %v4701_v40 = vmul.f32 %v8043_v56, %v4700_v53 }
 0x41d   : > { %v4659_v5 = vsel %vm4658_vm3, %v4562_v6, %v4657_v36  ;;  %v4702_v26 = vmul.f32 0.5, %v4701_v40 }
 0x41e   : > { %v4662_v57 = vsel %vm4660_vm5, %v4661_v50, %v4659_v5  ;;  %v5004_v54 = vpop.f32.mrf.mxu1 }
 0x41f   : > { %v4714_v10 = vpack.c.bf16 %v4662_v57, %v4614_v55  ;;  %v4703_v24 = vsub.f32 1.5, %v4702_v26  ;;  %v5005_v46 = vadd.f32 %v5004_v54, %v4986_v61 }
 0x421   : > { %5037 = vmatmul.bf16.vlgmr.msra.gmra.mxu3 %v4714_v10  ;;  %v4704_v59 = vmul.f32 %v8043_v56, %v4703_v24  ;;  %v4989_v38 = vpop.f32.mrf.mxu0 }
 0x423   : > { %v4705_v21 = vmul.f32 %v4704_v59, %v4566_v12 }
 0x425   : > { %v4707_v1 = vsel %vm4706_vm6, %v4566_v12, %v4705_v21 }
 0x426   : > { %v4710_v44 = vsel %vm4708_vm7, %v4709_v39, %v4707_v1  ;;  %v5007_v63 = vpop.f32.mrf.mxu1 }
 0x427   : > { %v5008_v34 = vadd.f32 %v5007_v63, %v4989_v38  ;;  %v4718_v3 = vpack.c.bf16 %v4710_v44, %v4710_v44 }
 0x429   : > { %v4991_v37 = vpop.f32.mrf.mxu0 }
 0x42e   : > { %v5009_v4 = vpop.f32.mrf.mxu1 }
 0x431   : > { %5042 = vmatmul.bf16.gmra.mxu3 %v4718_v3 }
 0x45d   : > { %v5020_v51 = vpop.f32.mrf.mxu2 }
 0x45e   : > { %v5021_v30 = vadd.f32 %v5020_v51, %v5003_v9 }
 0x465   : > { %v5022_v35 = vpop.f32.mrf.mxu2 }
 0x466   : > { %v5023_v11 = vadd.f32 %v5022_v35, %v5005_v46 }
 0x46d   : > { %v5025_v62 = vpop.f32.mrf.mxu2 }
 0x46e   : > { %v5026_v18 = vadd.f32 %v5025_v62, %v5008_v34 }
 0x475   : > { %v5027_v41 = vpop.f32.mrf.mxu2 }
 0x4a4   : > { %v5038_v58 = vpop.f32.mrf.mxu3 }
 0x4a5   : > { %v5039_v8 = vadd.f32 %v5038_v58, %v5021_v30 }
 0x4a7   : > { %v5047_v19 = vmax.f32 %v5039_v8, 1e-05 }
 0x4a9   : > { %8044 = vlog2.f32 %v5047_v19 }
 0x4ac   : > { %v5040_v6 = vpop.f32.mrf.mxu3 }
 0x4ad   : > { %v5041_v13 = vadd.f32 %v5040_v6, %v5023_v11 }
 0x4af   : > { %v8045_v32 = vpop.eup %8044  ;;  %v5048_v14 = vmax.f32 %v5041_v13, 1e-05 }
 0x4b0   : > { %v5051_v17 = vmul.f32 0.6931472, %v8045_v32 }
 0x4b1   : > { %8046 = vlog2.f32 %v5048_v14 }
 0x4b2   : > { %5056 = vst [vmem:[%s224_s23] sm:$0xff] %v5051_v17 }
 0x4b4   : > { %v5043_v20 = vpop.f32.mrf.mxu3 }
 0x4b5   : > { %v5044_v23 = vadd.f32 %v5043_v20, %v5026_v18 }
 0x4b7   : > { %v8047_v29 = vpop.eup %8046  ;;  %v5049_v22 = vmax.f32 %v5044_v23, 1e-05 }
 0x4b8   : > { %v5053_v28 = vmul.f32 0.6931472, %v8047_v29 }
 0x4b9   : > { %8048 = vlog2.f32 %v5049_v22 }
 0x4ba   : > { %5057 = vst [vmem:[%s224_s23 + $0x8] sm:$0xff] %v5053_v28 }
 0x4bc   : > { %v5045_v15 = vpop.f32.mrf.mxu3 }
 0x4bf   : > { %v8049_v42 = vpop.eup %8048 }
 0x4c0   : > { %v5055_v25 = vmul.f32 0.6931472, %v8049_v42 }
 0x4c2   : > { %5058 = vst [vmem:[%s224_s23 + $0x10] sm:$0xff] %v5055_v25 }
 0x4c3   : > { %8167 = shalt.err (!%p8164_p10)
}
 0x4c4   : > { %s8218_s29 = smov 128   ;;  %s8219_s27 = smov 8  }
 0x4c5   : > { %7957 = dma.vmem_to_hbm [thread:$0]  (%p8312_p5), %s5073_s6, 384, %s5075_s7, %s5060_s9, %s8218_s29, %s8218_s29, %s8219_s27  }
 0x4c6 PF: > { %s5089_s28 = sand.u32 1, %s8198_s12   ;;  %p8772_p12 = scmp.ge.s32.totalorder %s8210_s15, 2 }
 0x4c7   : > { %s5090_s18 = scalar_lea.sflag [#allocation4], %s5089_s28 }
 0x4c8   : > { %p7971_p13 = pnand %p8772_p12, %p8275_p6 }
 0x4ca   : > { %p7972_p0 = pneg %p7971_p13 }
 0x4cc   : > { %8193 = dma.done.wait (%p7972_p0), %s5090_s18, 384  }
 0x4cd   : > { %8195 = vsyncadd (%p7972_p0), %s5090_s18, 4294966912  ;;  %p17_p3 = scmp.ge.s32.totalorder %s8299_s8, 4   ;;  %s8773_s12 = smov %s8202_s13 }
 0x4ce   : > { %s8774_s13 = smov %s8206_s14  ;;  %s8775_s14 = smov %s8308_s11 }
 0x4cf   : > { %s8776_s15 = smov %s8299_s8  ;;  %19 = sbr.rel (!%p17_p3) target bundleno = 6 (0x6), region = 85 }
 0x4d4   :  { %5096 = vsyncpa [#allocation3], 1 }
 0x4d5   :  { %5098 = vsyncpa [#allocation3 + $0x1], 1 }
 0x4d6   :  { %5099 = vsyncpa [#allocation6], 1 }
 0x4d7   :  { %5100 = vsyncpa [#allocation4], 1 }
 0x4d8   :  { %5102 = vsyncpa [#allocation4 + $0x1], 1 }

// kernel: tpu_custom_call.1
= control target key start
LH: loop header
LB: loop body
LE: loop exit
PB: predicated region body
PF: predicated region fallthrough
CT: control target
= control target key end

     0   :  { %8 = vsyncpa [#allocation3], 0  ;;  %s8761_s0 = inlined_call_operand.hbm [shape: bf16[48,1024], index: 0, kind: input, shape index: {}]   ;;  %s8762_s1 = inlined_call_operand.hbm [shape: bf16[1024,1024], index: 1, kind: input, shape index: {}]   ;;  %s8763_s2 = inlined_call_operand.hbm [shape: bf16[512,128], index: 2, kind: input, shape index: {}]   ;;  %s8764_s3 = inlined_call_operand.hbm [shape: f32[48,128], index: 3, kind: output, shape index: {}]  }
   0x1   :  { %10 = vsyncpa [#allocation3 + $0x1], 0 }
   0x2   :  { %11 = vsyncpa [#allocation6], 0 }
   0x3   :  { %12 = vsyncpa [#allocation4], 0 }
   0x4   :  { %14 = vsyncpa [#allocation4 + $0x1], 0  ;;  %s8240_s12 = smov 0   ;;  %s8242_s13 = smov 0  }
   0x5   :  { %s8244_s14 = smov 0   ;;  %s8246_s15 = smov 0  }
   0x6 LB: > { %s8261_s16 = sadd.s32 4294967295, %s8210_s15   ;;  %s5167_s17 = sadd.s32 4294967294, %s8210_s15   ;;  %s8210_s15 = sphi %s8246_s15, %s8776_s15   ;;  %s8206_s14 = sphi %s8244_s14, %s8775_s14   ;;  %s8202_s13 = sphi %s8242_s13, %s8774_s13   ;;  %s8198_s12 = sphi %s8240_s12, %s8773_s12  }
   0x7   : > { %p40_p0 = scmp.ne.s32.totalorder %s8202_s13, %s8198_s12  ;;  %p41_p1 = scmp.eq.s32.totalorder %s8261_s16, 0 }
   0x8   : > { %p106_p2 = scmp.eq.s32.totalorder %s8261_s16, 1  ;;  %p112_p3 = scmp.eq.s32.totalorder %s5167_s17, 1 }
   0x9   : > { %p8270_p4 = por %p41_p1, %p40_p0  ;;  %p5168_p5 = scmp.ge.s32.totalorder %s8210_s15, 1 }
   0xa   : > { %p8275_p6 = por %p112_p3, %p40_p0  ;;  %p119_p7 = scmp.lt.s32.totalorder %s8210_s15, 3 }
   0xb   : > { %s130_s22 = sshll.u32 %s8762_s1, 4  ;;  %s8212_s24 = smov [#allocation5]   ;;  %s131_s22 = int_to_ptr.hbm [resolvable:$true] %s130_s22 }
   0xc   : > { %p8283_p8 = pnand %p5168_p5, %p119_p7  ;;  %s132_s25 = sshll.u32 %s8212_s24, 4  ;;  %s133_s25 = int_to_ptr.vmem [resolvable:$true] %s132_s25 }
   0xd   : > { %s144_s28 = sshll.u32 %s8763_s2, 4  ;;  %s8765_s29 = smov 512   ;;  %s145_s28 = int_to_ptr.hbm [resolvable:$true] %s144_s28 }
   0xe   : > { %p7959_p9 = pneg %p8283_p8  ;;  %s8214_s30 = smov 32  }
   0xf   : > { %s8215_s4 = smov [#allocation7]   ;;  %s8216_s6 = smov 64  }
  0x10   : > { %p7960_p10 = pnand %p7959_p9, %p41_p1  ;;  %s146_s5 = sshll.u32 %s8215_s4, 4  ;;  %s147_s5 = int_to_ptr.vmem [resolvable:$true] %s146_s5 }
  0x11   : > { %s8217_s7 = smov 4   ;;  %s8299_s8 = sadd.s32 1, %s8210_s15  }
  0x12   : > { %7962 = dma.hbm_to_vmem [thread:$0]  (!%p7960_p10), %s131_s22, 65536, %s133_s25, [#allocation6], %s8765_s29, %s8765_s29, %s8214_s30  }
  0x13   : > { %7965 = dma.hbm_to_vmem [thread:$0]  (!%p7960_p10), %s145_s28, 4096, %s147_s5, [#allocation6], %s8216_s6, %s8216_s6, %s8217_s7  }
  0x14   : > { %s24_s9 = ssub.s32 %s8210_s15, %s8299_s8  ;;  %s27_s10 = sadd.s32 1, %s8206_s14 }
  0x15   : > { %p25_p12 = scmp.eq.s32.totalorder %s24_s9, 0  ;;  %p34_p13 = scmp.ne.s32.totalorder %s8206_s14, %s8202_s13 }
  0x16   : > { %p35_p0 = scmp.eq.s32.totalorder %s8210_s15, 0  ;;  %p7976_p7 = scmp.lt.s32.totalorder %s8210_s15, 2 }
  0x17   : > { %s8308_s11 = scalar_select %p25_p12, %s8206_s14, %s27_s10  }
  0x18   : > { %p36_p3 = por %p35_p0, %p34_p13  ;;  %p8312_p5 = por %p106_p2, %p34_p13 }
  0x19   : > { %s160_s20 = sand.u32 1, %s8206_s14   ;;  %s7943_s22 = smul.u32 96, %s8210_s15 }
  0x1a   : > { %s7944_s21 = smul.u32 96, %s160_s20  ;;  %p8319_p9 = pnand %p7976_p7, %p36_p3 }
  0x1b   : > { %s170_s27 = scalar_lea.hbm %s8761_s0, %s7943_s22  ;;  %s161_s6 = scalar_lea.sflag [#allocation3], %s160_s20 }
  0x1c   : > { %s164_s28 = scalar_lea.vmem [#allocation2], %s7944_s21  ;;  %s171_s5 = sshll.u32 %s170_s27, 4  ;;  %s172_s5 = int_to_ptr.hbm [resolvable:$true] %s171_s5 }
  0x1d   : > { %s173_s4 = sshll.u32 %s164_s28, 4  ;;  %s8110_s7 = sshra.s32 %s172_s5, 4  ;;  %s174_s4 = int_to_ptr.vmem [resolvable:$true] %s173_s4  ;;  %s8111_s7 = int_to_ptr.hbm [resolvable:$true] %s8110_s7 }
  0x1e   : > { %s8112_s9 = scalar_lea.hbm %s8111_s7, 96  ;;  %p8114_p10 = pneg %p8319_p9 }
  0x1f   : > { %p8113_p2 = scmp.ne.s32.totalorder %s8111_s7, %s8112_s9  ;;  %s8117_s25 = scalar_lea.hbm %s8761_s0, 192 }
  0x20   : > { %p8118_p0 = scmp.lt.s32.totalorder %s8111_s7, %s8761_s0  ;;  %p8119_p3 = scmp.lt.s32.totalorder %s8117_s25, %s8112_s9 }
  0x21   : > { %p8115_p12 = pnand %p8114_p10, %p8113_p2 }
  0x22   : > { %p8120_p7 = por %p8119_p3, %p8118_p0 }
  0x23   : > { %p8116_p13 = pneg %p8115_p12 }
  0x25   : > { %p8121_p11 = pnand %p8120_p7, %p8116_p13 }
  0x27   : > { %8124 = shalt.err (!%p8121_p11)
}
  0x28   : > { %s8771_s20 = smov 512   ;;  %185 = sbr.rel (%p8283_p8) target bundleno = 1222 (0x4c6), region = 32 }
  0x29   : > { %7969 = dma.hbm_to_vmem [thread:$0]  (!%p8319_p9), %s172_s5, 1536, %s174_s4, %s161_s6, %s8771_s20, %s8771_s20, %s8214_s30  }
  0x2a   : > { %s8342_s29 = sand.u32 (!%p8283_p8), 1, %s8202_s13  }
  0x2b   : > { %s7945_s21 = smul.u32 (!%p8283_p8), 96, %s8342_s29  ;;  %s188_s27 = scalar_lea.sflag (!%p8283_p8), [#allocation3], %s8342_s29 }
  0x2d   : > { %s8346_s28 = scalar_lea.vmem [#allocation2], %s7945_s21 }
  0x2e   : > { %8185 = dma.done.wait (%p8270_p4), %s188_s27, 1536  }
  0x2f   : > { %8187 = vsyncadd (%p8270_p4), %s188_s27, 4294965760 }
  0x30   : > { %8189 = dma.done.wait (%p41_p1), [#allocation6], 69632  }
  0x31   : > { %8191 = vsyncadd (%p41_p1), [#allocation6], 4294897664  ;;  %v5435_v0 = vld [vmem:[#allocation5 + $0x1c0] sm:$0xf]  ;;  %s7946_s18 = smul.u32 24, %s8342_s29  ;;  %s5060_s9 = scalar_lea.sflag [#allocation4], %s8342_s29 }
  0x32   : > { %v7458_v1 = vld [vmem:[#allocation5 + $0x1dc] sm:$0xf0]  ;;  %s7942_s30 = smul.u32 24, %s8261_s16  ;;  %s8160_s22 = scalar_lea.hbm %s8764_s3, 48 }
  0x33   : > { %v5691_v2 = vld [vmem:[#allocation5 + $0x3c0] sm:$0xf]  ;;  %v5436_v3 = vor.u32 %v7458_v1, %v5435_v0  ;;  %s224_s23 = scalar_lea.vmem [#allocation8], %s7946_s18 }
  0x34   : > { %v7522_v4 = vld [vmem:[#allocation5 + $0x3dc] sm:$0xf0]  ;;  %s5071_s5 = scalar_lea.hbm %s8764_s3, %s7942_s30  ;;  %s5072_s6 = sshll.u32 %s224_s23, 4  ;;  %s5073_s6 = int_to_ptr.vmem [resolvable:$true] %s5072_s6 }
  0x35   : > { %v5947_v5 = vld [vmem:[#allocation5 + $0x5c0] sm:$0xf]  ;;  %v5692_v7 = vor.u32 %v7522_v4, %v5691_v2  ;;  %3379 = vmatpush.bf16.msra.mxu0 %v5436_v3  ;;  %s5074_s7 = sshll.u32 %s5071_s5, 4  ;;  %s5075_s7 = int_to_ptr.hbm [resolvable:$true] %s5074_s7 }
  0x36   : > { %v7586_v6 = vld [vmem:[#allocation5 + $0x5dc] sm:$0xf0]  ;;  %s8154_s16 = sshra.s32 %s5075_s7, 4  ;;  %s8155_s16 = int_to_ptr.hbm [resolvable:$true] %s8154_s16 }
  0x37   : > { %v5948_v8 = vor.u32 %v7586_v6, %v5947_v5  ;;  %v6203_v9 = vld [vmem:[#allocation5 + $0x7c0] sm:$0xf]  ;;  %3397 = vmatpush.bf16.msra.mxu1 %v5692_v7  ;;  %s8156_s10 = scalar_lea.hbm %s8155_s16, 24  ;;  %p8161_p11 = scmp.lt.s32.totalorder %s8155_s16, %s8764_s3 }
  0x38   : > { %v7650_v10 = vld [vmem:[#allocation5 + $0x7dc] sm:$0xf0]  ;;  %p8157_p1 = scmp.ne.s32.totalorder %s8155_s16, %s8156_s10  ;;  %p8162_p9 = scmp.lt.s32.totalorder %s8160_s22, %s8156_s10 }
  0x39   : > { %v5403_v11 = vld [vmem:[#allocation5 + $0x180] sm:$0xf]  ;;  %v6204_v12 = vor.u32 %v7650_v10, %v6203_v9  ;;  %3415 = vmatpush.bf16.msra.mxu2 %v5948_v8 }
  0x3a   : > { %v7450_v13 = vld [vmem:[#allocation5 + $0x19c] sm:$0xf0]  ;;  %p8158_p4 = pnand %p8157_p1, %p8312_p5  ;;  %p8163_p2 = por %p8162_p9, %p8161_p11 }
  0x3b   : > { %v5659_v14 = vld [vmem:[#allocation5 + $0x380] sm:$0xf]  ;;  %v5404_v16 = vor.u32 %v7450_v13, %v5403_v11  ;;  %3433 = vmatpush.bf16.msra.mxu3 %v6204_v12 }
  0x3c   : > { %v7514_v15 = vld [vmem:[#allocation5 + $0x39c] sm:$0xf0]  ;;  %p8159_p8 = pneg %p8158_p4 }
  0x3d   : > { %v5660_v17 = vor.u32 %v7514_v15, %v5659_v14  ;;  %v5915_v18 = vld [vmem:[#allocation5 + $0x580] sm:$0xf]  ;;  %3380 = vmatpush.bf16.msra.mxu0 %v5404_v16 }
  0x3e   : > { %v7578_v19 = vld [vmem:[#allocation5 + $0x59c] sm:$0xf0]  ;;  %p8164_p10 = pnand %p8163_p2, %p8159_p8 }
  0x3f   : > { %v6171_v20 = vld [vmem:[#allocation5 + $0x780] sm:$0xf]  ;;  %v5916_v21 = vor.u32 %v7578_v19, %v5915_v18  ;;  %3398 = vmatpush.bf16.msra.mxu1 %v5660_v17 }
  0x40   : > { %v7642_v22 = vld [vmem:[#allocation5 + $0x79c] sm:$0xf0] }
  0x41   : > { %v5371_v23 = vld [vmem:[#allocation5 + $0x140] sm:$0xf]  ;;  %v6172_v25 = vor.u32 %v7642_v22, %v6171_v20  ;;  %3416 = vmatpush.bf16.msra.mxu2 %v5916_v21 }
  0x42   : > { %v7442_v24 = vld [vmem:[#allocation5 + $0x15c] sm:$0xf0] }
  0x43   : > { %v5627_v26 = vld [vmem:[#allocation5 + $0x340] sm:$0xf]  ;;  %v5372_v29 = vor.u32 %v7442_v24, %v5371_v23  ;;  %3434 = vmatpush.bf16.msra.mxu3 %v6172_v25 }
  0x44   : > { %v7506_v27 = vld [vmem:[#allocation5 + $0x35c] sm:$0xf0] }
  0x45   : > { %v5883_v28 = vld [vmem:[#allocation5 + $0x540] sm:$0xf]  ;;  %v5628_v33 = vor.u32 %v7506_v27, %v5627_v26  ;;  %3381 = vmatpush.bf16.msra.mxu0 %v5372_v29 }
  0x46   : > { %v7570_v30 = vld [vmem:[#allocation5 + $0x55c] sm:$0xf0] }
  0x47   : > { %v6139_v31 = vld [vmem:[#allocation5 + $0x740] sm:$0xf]  ;;  %v5884_v34 = vor.u32 %v7570_v30, %v5883_v28  ;;  %3399 = vmatpush.bf16.msra.mxu1 %v5628_v33  ;;  %v7390_v30 = vld [vmem:[%s8346_s28 + $0x4] sm:$0xf] }
  0x48   : > { %v7634_v32 = vld [vmem:[#allocation5 + $0x75c] sm:$0xf0] }
  0x49   : > { %v5339_v35 = vld [vmem:[#allocation5 + $0x100] sm:$0xf]  ;;  %v6140_v38 = vor.u32 %v7634_v32, %v6139_v31  ;;  %3417 = vmatpush.bf16.msra.mxu2 %v5884_v34  ;;  %v5181_v31 = vld [vmem:[%s8346_s28 + $0x20] sm:$0xf0] }
  0x4a   : > { %v7434_v36 = vld [vmem:[#allocation5 + $0x11c] sm:$0xf0] }
  0x4b   : > { %v5595_v37 = vld [vmem:[#allocation5 + $0x300] sm:$0xf]  ;;  %v5340_v44 = vor.u32 %v7434_v36, %v5339_v35  ;;  %3435 = vmatpush.bf16.msra.mxu3 %v6140_v38  ;;  %v5187_v35 = vld [vmem:[%s8346_s28 + $0x8] sm:$0xf] }
  0x4c   : > { %v7498_v39 = vld [vmem:[#allocation5 + $0x31c] sm:$0xf0] }
  0x4d   : > { %v5851_v40 = vld [vmem:[#allocation5 + $0x500] sm:$0xf]  ;;  %v5596_v45 = vor.u32 %v7498_v39, %v5595_v37  ;;  %3382 = vmatpush.bf16.msra.mxu0 %v5340_v44 }
  0x4e   : > { %v7562_v41 = vld [vmem:[#allocation5 + $0x51c] sm:$0xf0] }
  0x4f   : > { %v6107_v42 = vld [vmem:[#allocation5 + $0x700] sm:$0xf]  ;;  %v5852_v46 = vor.u32 %v7562_v41, %v5851_v40  ;;  %3400 = vmatpush.bf16.msra.mxu1 %v5596_v45  ;;  %v7395_v40 = vld [vmem:[%s8346_s28 + $0x24] sm:$0xf0]  ;;  %v7391_v41 = vld [vmem:[%s8346_s28 + $0xc] sm:$0xf] }
  0x50   : > { %v7626_v43 = vld [vmem:[#allocation5 + $0x71c] sm:$0xf0] }
  0x51   : > { %v5307_v47 = vld [vmem:[#allocation5 + $0xc0] sm:$0xf]  ;;  %v6108_v50 = vor.u32 %v7626_v43, %v6107_v42  ;;  %3418 = vmatpush.bf16.msra.mxu2 %v5852_v46  ;;  %v5189_v42 = vld [vmem:[%s8346_s28 + $0x28] sm:$0xf0] }
  0x52   : > { %v7426_v48 = vld [vmem:[#allocation5 + $0xdc] sm:$0xf0] }
  0x53   : > { %v5563_v49 = vld [vmem:[#allocation5 + $0x2c0] sm:$0xf]  ;;  %v5308_v56 = vor.u32 %v7426_v48, %v5307_v47  ;;  %3436 = vmatpush.bf16.msra.mxu3 %v6108_v50 }
  0x54   : > { %v7490_v51 = vld [vmem:[#allocation5 + $0x2dc] sm:$0xf0] }
  0x55   : > { %v5819_v52 = vld [vmem:[#allocation5 + $0x4c0] sm:$0xf]  ;;  %v5564_v57 = vor.u32 %v7490_v51, %v5563_v49  ;;  %3383 = vmatpush.bf16.msra.mxu0 %v5308_v56 }
  0x56   : > { %v7554_v53 = vld [vmem:[#allocation5 + $0x4dc] sm:$0xf0] }
  0x57   : > { %v6075_v54 = vld [vmem:[#allocation5 + $0x6c0] sm:$0xf]  ;;  %v5820_v58 = vor.u32 %v7554_v53, %v5819_v52  ;;  %3401 = vmatpush.bf16.msra.mxu1 %v5564_v57  ;;  %v8366_v53 = vor.u32 %v7390_v30, %v5181_v31  ;;  %v8370_v57 = vor.u32 %v7391_v41, %v5189_v42 }
  0x58   : > { %v7618_v55 = vld [vmem:[#allocation5 + $0x6dc] sm:$0xf0] }
  0x59   : > { %v5275_v59 = vld [vmem:[#allocation5 + $0x80] sm:$0xf]  ;;  %v6076_v62 = vor.u32 %v7618_v55, %v6075_v54  ;;  %3419 = vmatpush.bf16.msra.mxu2 %v5820_v58  ;;  %v8368_v54 = vor.u32 %v7395_v40, %v5187_v35 }
  0x5a   : > { %v7418_v60 = vld [vmem:[#allocation5 + $0x9c] sm:$0xf0] }
  0x5b   : > { %v5531_v61 = vld [vmem:[#allocation5 + $0x280] sm:$0xf]  ;;  %v5276_v4 = vor.u32 %v7418_v60, %v5275_v59  ;;  %3437 = vmatpush.bf16.msra.mxu3 %v6076_v62 }
  0x5c   : > { %v7482_v63 = vld [vmem:[#allocation5 + $0x29c] sm:$0xf0] }
  0x5d   : > { %v5787_v0 = vld [vmem:[#allocation5 + $0x480] sm:$0xf]  ;;  %v5532_v5 = vor.u32 %v7482_v63, %v5531_v61  ;;  %3384 = vmatpush.bf16.msra.mxu0 %v5276_v4 }
  0x5e   : > { %v7546_v1 = vld [vmem:[#allocation5 + $0x49c] sm:$0xf0] }
  0x5f   : > { %v6043_v2 = vld [vmem:[#allocation5 + $0x680] sm:$0xf]  ;;  %v5788_v6 = vor.u32 %v7546_v1, %v5787_v0  ;;  %3402 = vmatpush.bf16.msra.mxu1 %v5532_v5 }
  0x60   : > { %v7610_v3 = vld [vmem:[#allocation5 + $0x69c] sm:$0xf0] }
  0x61   : > { %v5243_v7 = vld [vmem:[#allocation5 + $0x40] sm:$0xf]  ;;  %v6044_v10 = vor.u32 %v7610_v3, %v6043_v2  ;;  %3420 = vmatpush.bf16.msra.mxu2 %v5788_v6 }
  0x62   : > { %v7410_v8 = vld [vmem:[#allocation5 + $0x5c] sm:$0xf0] }
  0x63   : > { %v5499_v9 = vld [vmem:[#allocation5 + $0x240] sm:$0xf]  ;;  %v5244_v17 = vor.u32 %v7410_v8, %v5243_v7  ;;  %3438 = vmatpush.bf16.msra.mxu3 %v6044_v10 }
  0x64   : > { %v7474_v11 = vld [vmem:[#allocation5 + $0x25c] sm:$0xf0] }
  0x65   : > { %v5755_v12 = vld [vmem:[#allocation5 + $0x440] sm:$0xf]  ;;  %v5500_v21 = vor.u32 %v7474_v11, %v5499_v9  ;;  %3385 = vmatpush.bf16.msra.mxu0 %v5244_v17 }
  0x66   : > { %v7538_v13 = vld [vmem:[#allocation5 + $0x45c] sm:$0xf0] }
  0x67   : > { %v6011_v14 = vld [vmem:[#allocation5 + $0x640] sm:$0xf]  ;;  %v5756_v22 = vor.u32 %v7538_v13, %v5755_v12  ;;  %3403 = vmatpush.bf16.msra.mxu1 %v5500_v21 }
  0x68   : > { %v7602_v15 = vld [vmem:[#allocation5 + $0x65c] sm:$0xf0] }
  0x69   : > { %v5211_v16 = vld [vmem:[#allocation5] sm:$0xf]  ;;  %v6012_v26 = vor.u32 %v7602_v15, %v6011_v14  ;;  %3421 = vmatpush.bf16.msra.mxu2 %v5756_v22 }
  0x6a   : > { %v7402_v18 = vld [vmem:[#allocation5 + $0x1c] sm:$0xf0] }
  0x6b   : > { %v5467_v19 = vld [vmem:[#allocation5 + $0x200] sm:$0xf]  ;;  %v5212_v34 = vor.u32 %v7402_v18, %v5211_v16  ;;  %3439 = vmatpush.bf16.msra.mxu3 %v6012_v26 }
  0x6c   : > { %v7466_v20 = vld [vmem:[#allocation5 + $0x21c] sm:$0xf0] }
  0x6d   : > { %v5723_v23 = vld [vmem:[#allocation5 + $0x400] sm:$0xf]  ;;  %v5468_v38 = vor.u32 %v7466_v20, %v5467_v19  ;;  %3386 = vmatpush.bf16.msra.mxu0 %v5212_v34  ;;  %v236_v20 = vld [vmem:[%s8346_s28 + $0x48] sm:$0xff] }
  0x6e   : > { %v7530_v24 = vld [vmem:[#allocation5 + $0x41c] sm:$0xf0] }
  0x6f   : > { %v5979_v25 = vld [vmem:[#allocation5 + $0x600] sm:$0xf]  ;;  %v5724_v39 = vor.u32 %v7530_v24, %v5723_v23  ;;  %3404 = vmatpush.bf16.msra.mxu1 %v5468_v38 }
  0x70   : > { %v7594_v27 = vld [vmem:[#allocation5 + $0x61c] sm:$0xf0] }
  0x71   : > { %v5179_v28 = vld [vmem:[%s8346_s28] sm:$0xf]  ;;  %v5980_v43 = vor.u32 %v7594_v27, %v5979_v25  ;;  %3422 = vmatpush.bf16.msra.mxu2 %v5724_v39 }
  0x72   : > { %v7394_v29 = vld [vmem:[%s8346_s28 + $0x1c] sm:$0xf0]  ;;  %3405 = vmatmul.bf16.vlgmr.msra.gmra.mxu1 %v8366_v53 }
  0x73   : > { %v6971_v32 = vld [vmem:[#allocation5 + $0xdc0] sm:$0xf]  ;;  %v8364_v48 = vor.u32 %v7394_v29, %v5179_v28  ;;  %3440 = vmatpush.bf16.msra.mxu3 %v5980_v43 }
  0x74   : > { %v7842_v33 = vld [vmem:[#allocation5 + $0xddc] sm:$0xf0]  ;;  %3423 = vmatmul.bf16.vlgmr.msra.gmra.mxu2 %v8368_v54 }
  0x75   : > { %v6715_v36 = vld [vmem:[#allocation5 + $0xbc0] sm:$0xf]  ;;  %v6972_v44 = vor.u32 %v7842_v33, %v6971_v32  ;;  %3387 = vmatmul.bf16.vlgmr.msra.gmra.mxu0 %v8364_v48  ;;  %v781_v32 = vunpack.c.l.b16 %v236_v20 }
  0x76   : > { %v7778_v37 = vld [vmem:[#allocation5 + $0xbdc] sm:$0xf0]  ;;  %3441 = vmatmul.bf16.vlgmr.msra.gmra.mxu3 %v8370_v57 }
  0x77   : > { %v6459_v45 = vld [vmem:[#allocation5 + $0x9c0] sm:$0xf]  ;;  %v6716_v49 = vor.u32 %v7778_v37, %v6715_v36  ;;  %3487 = vmatpush.bf16.msrb.mxu2 %v6972_v44  ;;  %v782_v36 = vunpack.c.h.b16 %v236_v20  ;;  %v7518_v20 = vld [vmem:[#allocation5 + $0x3c4] sm:$0xf] }
  0x78   : > { %v7714_v46 = vld [vmem:[#allocation5 + $0x9dc] sm:$0xf0] }
  0x79   : > { %v7227_v47 = vld [vmem:[#allocation5 + $0xfc0] sm:$0xf]  ;;  %v6460_v58 = vor.u32 %v7714_v46, %v6459_v45  ;;  %3469 = vmatpush.bf16.msrb.mxu1 %v6716_v49  ;;  %v8382_v49 = vpack.c.b16 %v781_v32, %v781_v32 }
  0x7a   : > { %v7906_v50 = vld [vmem:[#allocation5 + $0xfdc] sm:$0xf0] }
  0x7b   : > { %v6939_v51 = vld [vmem:[#allocation5 + $0xd80] sm:$0xf]  ;;  %v7228_v59 = vor.u32 %v7906_v50, %v7227_v47  ;;  %3451 = vmatpush.bf16.msrb.mxu0 %v6460_v58 }
  0x7c   : > { %v7834_v52 = vld [vmem:[#allocation5 + $0xd9c] sm:$0xf0] }
  0x7d   : > { %v6683_v55 = vld [vmem:[#allocation5 + $0xb80] sm:$0xf]  ;;  %v6940_v60 = vor.u32 %v7834_v52, %v6939_v51  ;;  %3505 = vmatpush.bf16.msrb.mxu3 %v7228_v59  ;;  %v8384_v52 = vpack.c.b16 %v782_v36, %v782_v36 }
  0x7e   : > { %v7770_v56 = vld [vmem:[#allocation5 + $0xb9c] sm:$0xf0] }
  0x7f   : > { %v6427_v61 = vld [vmem:[#allocation5 + $0x980] sm:$0xf]  ;;  %v6684_v0 = vor.u32 %v7770_v56, %v6683_v55  ;;  %3488 = vmatpush.bf16.msrb.mxu2 %v6940_v60 }
  0x80   : > { %v7706_v62 = vld [vmem:[#allocation5 + $0x99c] sm:$0xf0] }
  0x81   : > { %v7195_v63 = vld [vmem:[#allocation5 + $0xf80] sm:$0xf]  ;;  %v6428_v6 = vor.u32 %v7706_v62, %v6427_v61  ;;  %3470 = vmatpush.bf16.msrb.mxu1 %v6684_v0 }
  0x82   : > { %v7898_v1 = vld [vmem:[#allocation5 + $0xf9c] sm:$0xf0] }
  0x83   : > { %v6907_v2 = vld [vmem:[#allocation5 + $0xd40] sm:$0xf]  ;;  %v7196_v7 = vor.u32 %v7898_v1, %v7195_v63  ;;  %3452 = vmatpush.bf16.msrb.mxu0 %v6428_v6 }
  0x84   : > { %v7826_v3 = vld [vmem:[#allocation5 + $0xd5c] sm:$0xf0]  ;;  %3428 = vmatmul.bf16.gmra.mxu2 %v8382_v49 }
  0x85   : > { %v6651_v4 = vld [vmem:[#allocation5 + $0xb40] sm:$0xf]  ;;  %v6908_v8 = vor.u32 %v7826_v3, %v6907_v2  ;;  %3506 = vmatpush.bf16.msrb.mxu3 %v7196_v7 }
  0x86   : > { %v7762_v5 = vld [vmem:[#allocation5 + $0xb5c] sm:$0xf0]  ;;  %3446 = vmatmul.bf16.gmra.mxu3 %v8384_v52 }
  0x87   : > { %v6395_v9 = vld [vmem:[#allocation5 + $0x940] sm:$0xf]  ;;  %v6652_v12 = vor.u32 %v7762_v5, %v6651_v4  ;;  %3489 = vmatpush.bf16.msrb.mxu2 %v6908_v8 }
  0x88   : > { %v7698_v10 = vld [vmem:[#allocation5 + $0x95c] sm:$0xf0] }
  0x89   : > { %v7163_v11 = vld [vmem:[#allocation5 + $0xf40] sm:$0xf]  ;;  %v6396_v19 = vor.u32 %v7698_v10, %v6395_v9  ;;  %3471 = vmatpush.bf16.msrb.mxu1 %v6652_v12 }
  0x8a   : > { %v7890_v13 = vld [vmem:[#allocation5 + $0xf5c] sm:$0xf0] }
  0x8b   : > { %v6875_v14 = vld [vmem:[#allocation5 + $0xd00] sm:$0xf]  ;;  %v7164_v21 = vor.u32 %v7890_v13, %v7163_v11  ;;  %3453 = vmatpush.bf16.msrb.mxu0 %v6396_v19 }
  0x8c   : > { %v7818_v15 = vld [vmem:[#allocation5 + $0xd1c] sm:$0xf0] }
  0x8d   : > { %v6619_v16 = vld [vmem:[#allocation5 + $0xb00] sm:$0xf]  ;;  %v6876_v22 = vor.u32 %v7818_v15, %v6875_v14  ;;  %3507 = vmatpush.bf16.msrb.mxu3 %v7164_v21  ;;  %v5693_v21 = vld [vmem:[#allocation5 + $0x3e0] sm:$0xf0] }
  0x8e   : > { %v7754_v17 = vld [vmem:[#allocation5 + $0xb1c] sm:$0xf0]  ;;  %v5696_v36 = vor.u32 %v7518_v20, %v5693_v21  ;;  %v5341_v20 = vld [vmem:[#allocation5 + $0x120] sm:$0xf0] }
  0x8f   : > { %v235_v18 = vld [vmem:[%s8346_s28 + $0x40] sm:$0xff]  ;;  %v6620_v26 = vor.u32 %v7754_v17, %v6619_v16  ;;  %3490 = vmatpush.bf16.msrb.mxu2 %v6876_v22 }
  0x90   : > { %v6363_v23 = vld [vmem:[#allocation5 + $0x900] sm:$0xf]  ;;  %v779_v28 = vunpack.c.l.b16 %v235_v18  ;;  %v780_v31 = vunpack.c.h.b16 %v235_v18  ;;  %v7582_v16 = vld [vmem:[#allocation5 + $0x5c4] sm:$0xf] }
  0x91   : > { %v7690_v24 = vld [vmem:[#allocation5 + $0x91c] sm:$0xf0]  ;;  %3472 = vmatpush.bf16.msrb.mxu1 %v6620_v26  ;;  %v5949_v17 = vld [vmem:[#allocation5 + $0x5e0] sm:$0xf0] }
  0x92   : > { %v7131_v25 = vld [vmem:[#allocation5 + $0xf00] sm:$0xf]  ;;  %v6364_v35 = vor.u32 %v7690_v24, %v6363_v23  ;;  %v8378_v42 = vpack.c.b16 %v779_v28, %v779_v28  ;;  %v8380_v47 = vpack.c.b16 %v780_v31, %v780_v31  ;;  %v5195_v28 = vld [vmem:[%s8346_s28 + $0x10] sm:$0xf]  ;;  %v5197_v31 = vld [vmem:[%s8346_s28 + $0x30] sm:$0xf0]  ;;  %v5952_v32 = vor.u32 %v7582_v16, %v5949_v17 }
  0x93   : > { %v7882_v27 = vld [vmem:[#allocation5 + $0xf1c] sm:$0xf0]  ;;  %v5853_v16 = vld [vmem:[#allocation5 + $0x520] sm:$0xf0] }
  0x94   : > { %v6843_v29 = vld [vmem:[#allocation5 + $0xcc0] sm:$0xf]  ;;  %v7132_v37 = vor.u32 %v7882_v27, %v7131_v25  ;;  %3454 = vmatpush.bf16.msrb.mxu0 %v6364_v35  ;;  %3410 = vmatmul.bf16.gmra.mxu1 %v8380_v47  ;;  %v7646_v35 = vld [vmem:[#allocation5 + $0x7c4] sm:$0xf] }
  0x95   : > { %v7810_v30 = vld [vmem:[#allocation5 + $0xcdc] sm:$0xf0]  ;;  %3392 = vmatmul.bf16.gmra.mxu0 %v8378_v42 }
  0x96   : > { %v6587_v33 = vld [vmem:[#allocation5 + $0xac0] sm:$0xf]  ;;  %v6844_v38 = vor.u32 %v7810_v30, %v6843_v29  ;;  %3508 = vmatpush.bf16.msrb.mxu3 %v7132_v37  ;;  %v7396_v29 = vld [vmem:[%s8346_s28 + $0x2c] sm:$0xf0]  ;;  %v7392_v30 = vld [vmem:[%s8346_s28 + $0x14] sm:$0xf] }
  0x97   : > { %v7746_v34 = vld [vmem:[#allocation5 + $0xadc] sm:$0xf0]  ;;  %v6205_v37 = vld [vmem:[#allocation5 + $0x7e0] sm:$0xf0] }
  0x98   : > { %v6331_v39 = vld [vmem:[#allocation5 + $0x8c0] sm:$0xf]  ;;  %v6588_v43 = vor.u32 %v7746_v34, %v6587_v33  ;;  %3491 = vmatpush.bf16.msrb.mxu2 %v6844_v38  ;;  %v7454_v33 = vld [vmem:[#allocation5 + $0x1c4] sm:$0xf] }
  0x99   : > { %v7682_v40 = vld [vmem:[#allocation5 + $0x8dc] sm:$0xf0]  ;;  %v5437_v34 = vld [vmem:[#allocation5 + $0x1e0] sm:$0xf0] }
  0x9a   : > { %v7099_v41 = vld [vmem:[#allocation5 + $0xec0] sm:$0xf]  ;;  %v6332_v55 = vor.u32 %v7682_v40, %v6331_v39  ;;  %3473 = vmatpush.bf16.msrb.mxu1 %v6588_v43  ;;  %v7574_v38 = vld [vmem:[#allocation5 + $0x584] sm:$0xf]  ;;  %v7397_v43 = vld [vmem:[%s8346_s28 + $0x34] sm:$0xf0] }
  0x9b   : > { %v7874_v44 = vld [vmem:[#allocation5 + $0xedc] sm:$0xf0]  ;;  %v5917_v39 = vld [vmem:[#allocation5 + $0x5a0] sm:$0xf0] }
  0x9c   : > { %v6811_v45 = vld [vmem:[#allocation5 + $0xc80] sm:$0xf]  ;;  %v7100_v56 = vor.u32 %v7874_v44, %v7099_v41  ;;  %3455 = vmatpush.bf16.msrb.mxu0 %v6332_v55  ;;  %v5203_v41 = vld [vmem:[%s8346_s28 + $0x18] sm:$0xf]  ;;  %v7393_v44 = vld [vmem:[%s8346_s28 + $0x1c] sm:$0xf] }
  0x9d   : > { %v7802_v46 = vld [vmem:[#allocation5 + $0xc9c] sm:$0xf0]  ;;  %v5405_v55 = vld [vmem:[#allocation5 + $0x1a0] sm:$0xf0] }
  0x9e   : > { %v6555_v50 = vld [vmem:[#allocation5 + $0xa80] sm:$0xf]  ;;  %v6812_v58 = vor.u32 %v7802_v46, %v6811_v45  ;;  %3509 = vmatpush.bf16.msrb.mxu3 %v7100_v56  ;;  %v5205_v46 = vld [vmem:[%s8346_s28 + $0x38] sm:$0xf0]  ;;  %v6208_v56 = vor.u32 %v7646_v35, %v6205_v37  ;;  %v7486_v37 = vld [vmem:[#allocation5 + $0x2c4] sm:$0xf] }
  0x9f   : > { %v7738_v51 = vld [vmem:[#allocation5 + $0xa9c] sm:$0xf0] }
  0xa0   : > { %v6299_v59 = vld [vmem:[#allocation5 + $0x880] sm:$0xf]  ;;  %v6556_v62 = vor.u32 %v7738_v51, %v6555_v50  ;;  %3492 = vmatpush.bf16.msrb.mxu2 %v6812_v58  ;;  %v5440_v50 = vor.u32 %v7454_v33, %v5437_v34  ;;  %v7446_v51 = vld [vmem:[#allocation5 + $0x184] sm:$0xf]  ;;  %v5920_v58 = vor.u32 %v7574_v38, %v5917_v39 }
  0xa1   : > { %v7674_v60 = vld [vmem:[#allocation5 + $0x89c] sm:$0xf0]  ;;  %v7422_v33 = vld [vmem:[#allocation5 + $0xc4] sm:$0xf] }
  0xa2   : > { %v7067_v61 = vld [vmem:[#allocation5 + $0xe80] sm:$0xf]  ;;  %v6300_v4 = vor.u32 %v7674_v60, %v6299_v59  ;;  %3474 = vmatpush.bf16.msrb.mxu1 %v6556_v62  ;;  %v7510_v59 = vld [vmem:[#allocation5 + $0x384] sm:$0xf]  ;;  %v8398_v62 = vor.u32 %v7396_v29, %v5195_v28  ;;  %v237_v29 = vld [vmem:[%s8346_s28 + $0x50] sm:$0xff] }
  0xa3   : > { %v7866_v63 = vld [vmem:[#allocation5 + $0xe9c] sm:$0xf0]  ;;  %v5661_v60 = vld [vmem:[#allocation5 + $0x3a0] sm:$0xf0] }
  0xa4   : > { %v6779_v0 = vld [vmem:[#allocation5 + $0xc40] sm:$0xf]  ;;  %v7068_v6 = vor.u32 %v7866_v63, %v7067_v61  ;;  %3456 = vmatpush.bf16.msrb.mxu0 %v6300_v4  ;;  %v7638_v61 = vld [vmem:[#allocation5 + $0x784] sm:$0xf]  ;;  %v8400_v63 = vor.u32 %v7392_v30, %v5197_v31  ;;  %v8404_v4 = vor.u32 %v7393_v44, %v5205_v46 }
  0xa5   : > { %v7794_v1 = vld [vmem:[#allocation5 + $0xc5c] sm:$0xf0]  ;;  %v5821_v28 = vld [vmem:[#allocation5 + $0x4e0] sm:$0xf0] }
  0xa6   : > { %v6523_v2 = vld [vmem:[#allocation5 + $0xa40] sm:$0xf]  ;;  %v6780_v7 = vor.u32 %v7794_v1, %v6779_v0  ;;  %3510 = vmatpush.bf16.msrb.mxu3 %v7068_v6  ;;  %v6173_v0 = vld [vmem:[#allocation5 + $0x7a0] sm:$0xf0]  ;;  %v5664_v6 = vor.u32 %v7510_v59, %v5661_v60 }
  0xa7   : > { %v7730_v3 = vld [vmem:[#allocation5 + $0xa5c] sm:$0xf0]  ;;  %v7566_v1 = vld [vmem:[#allocation5 + $0x544] sm:$0xf] }
  0xa8   : > { %v6267_v5 = vld [vmem:[#allocation5 + $0x840] sm:$0xf]  ;;  %v6524_v11 = vor.u32 %v7730_v3, %v6523_v2  ;;  %3493 = vmatpush.bf16.msrb.mxu2 %v6780_v7  ;;  %v5885_v2 = vld [vmem:[#allocation5 + $0x560] sm:$0xf0]  ;;  %v8402_v3 = vor.u32 %v7397_v43, %v5203_v41  ;;  %v784_v41 = vunpack.c.h.b16 %v237_v29 }
  0xa9   : > { %v7666_v8 = vld [vmem:[#allocation5 + $0x85c] sm:$0xf0]  ;;  %v7438_v7 = vld [vmem:[#allocation5 + $0x144] sm:$0xf] }
  0xaa   : > { %v7035_v9 = vld [vmem:[#allocation5 + $0xe40] sm:$0xf]  ;;  %v6268_v18 = vor.u32 %v7666_v8, %v6267_v5  ;;  %3475 = vmatpush.bf16.msrb.mxu1 %v6524_v11  ;;  %v5408_v5 = vor.u32 %v7446_v51, %v5405_v55  ;;  %v5373_v8 = vld [vmem:[#allocation5 + $0x160] sm:$0xf0] }
  0xab   : > { %v7858_v10 = vld [vmem:[#allocation5 + $0xe5c] sm:$0xf0]  ;;  %v7502_v11 = vld [vmem:[#allocation5 + $0x344] sm:$0xf]  ;;  %v5376_v17 = vor.u32 %v7438_v7, %v5373_v8 }
  0xac   : > { %v6747_v12 = vld [vmem:[#allocation5 + $0xc00] sm:$0xf]  ;;  %v7036_v22 = vor.u32 %v7858_v10, %v7035_v9  ;;  %3457 = vmatpush.bf16.msrb.mxu0 %v6268_v18  ;;  %v6176_v9 = vor.u32 %v7638_v61, %v6173_v0  ;;  %v5888_v10 = vor.u32 %v7566_v1, %v5885_v2  ;;  %v5309_v34 = vld [vmem:[#allocation5 + $0xe0] sm:$0xf0] }
  0xad   : > { %v7786_v13 = vld [vmem:[#allocation5 + $0xc1c] sm:$0xf0]  ;;  %v5565_v38 = vld [vmem:[#allocation5 + $0x2e0] sm:$0xf0]  ;;  %v5312_v51 = vor.u32 %v7422_v33, %v5309_v34 }
  0xae   : > { %v6491_v14 = vld [vmem:[#allocation5 + $0xa00] sm:$0xf]  ;;  %v6748_v23 = vor.u32 %v7786_v13, %v6747_v12  ;;  %3511 = vmatpush.bf16.msrb.mxu3 %v7036_v22  ;;  %v5629_v12 = vld [vmem:[#allocation5 + $0x360] sm:$0xf0]  ;;  %v5568_v55 = vor.u32 %v7486_v37, %v5565_v38 }
  0xaf   : > { %v7722_v15 = vld [vmem:[#allocation5 + $0xa1c] sm:$0xf0]  ;;  %v7630_v13 = vld [vmem:[#allocation5 + $0x744] sm:$0xf]  ;;  %v5632_v18 = vor.u32 %v7502_v11, %v5629_v12 }
  0xb0   : > { %v6235_v19 = vld [vmem:[#allocation5 + $0x800] sm:$0xf]  ;;  %v6492_v27 = vor.u32 %v7722_v15, %v6491_v14  ;;  %3494 = vmatpush.bf16.msrb.mxu2 %v6748_v23  ;;  %v6141_v14 = vld [vmem:[#allocation5 + $0x760] sm:$0xf0] }
  0xb1   : > { %v7658_v24 = vld [vmem:[#allocation5 + $0x81c] sm:$0xf0]  ;;  %v7558_v15 = vld [vmem:[#allocation5 + $0x504] sm:$0xf]  ;;  %v6144_v21 = vor.u32 %v7630_v13, %v6141_v14 }
  0xb2   : > { %v7003_v25 = vld [vmem:[#allocation5 + $0xe00] sm:$0xf]  ;;  %v6236_v40 = vor.u32 %v7658_v24, %v6235_v19  ;;  %3476 = vmatpush.bf16.msrb.mxu1 %v6492_v27  ;;  %v7430_v19 = vld [vmem:[#allocation5 + $0x104] sm:$0xf]  ;;  %v5856_v22 = vor.u32 %v7558_v15, %v5853_v16 }
  0xb3   : > { %v7850_v26 = vld [vmem:[#allocation5 + $0xe1c] sm:$0xf0]  ;;  %3495 = vmatmul.bf16.vlgmr.msrb.gmra.mxu2 %v8402_v3  ;;  %v7494_v23 = vld [vmem:[#allocation5 + $0x304] sm:$0xf]  ;;  %v5344_v30 = vor.u32 %v7430_v19, %v5341_v20 }
  0xb4   : > { %v7004_v45 = vor.u32 %v7850_v26, %v7003_v25  ;;  %3559 = vmatpush.bf16.msra.mxu2 %v5952_v32  ;;  %3458 = vmatpush.bf16.msrb.mxu0 %v6236_v40  ;;  %v5597_v24 = vld [vmem:[#allocation5 + $0x320] sm:$0xf0]  ;;  %v238_v32 = vld [vmem:[%s8346_s28 + $0x58] sm:$0xff]  ;;  %v783_v40 = vunpack.c.l.b16 %v237_v29 }
  0xb5   : > { %3477 = vmatmul.bf16.vlgmr.msrb.gmra.mxu1 %v8400_v63  ;;  %v7622_v25 = vld [vmem:[#allocation5 + $0x704] sm:$0xf]  ;;  %v5600_v31 = vor.u32 %v7494_v23, %v5597_v24  ;;  %v785_v46 = vunpack.c.l.b16 %v238_v32 }
  0xb6   : > { %3541 = vmatpush.bf16.msra.mxu1 %v5696_v36  ;;  %3512 = vmatpush.bf16.msrb.mxu3 %v7004_v45  ;;  %v6109_v26 = vld [vmem:[#allocation5 + $0x720] sm:$0xf0]  ;;  %v8412_v2 = vpack.c.b16 %v783_v40, %v783_v40 }
  0xb7   : > { %3459 = vmatmul.bf16.vlgmr.msrb.gmra.mxu0 %v8398_v62  ;;  %v7550_v27 = vld [vmem:[#allocation5 + $0x4c4] sm:$0xf]  ;;  %v6112_v35 = vor.u32 %v7622_v25, %v6109_v26 }
  0xb8   : > { %3523 = vmatpush.bf16.msra.mxu0 %v5440_v50  ;;  %3560 = vmatpush.bf16.msra.mxu2 %v5920_v58  ;;  %v5824_v36 = vor.u32 %v7550_v27, %v5821_v28  ;;  %v7614_v39 = vld [vmem:[#allocation5 + $0x6c4] sm:$0xf]  ;;  %v786_v50 = vunpack.c.h.b16 %v238_v32 }
  0xb9   : > { %3513 = vmatmul.bf16.vlgmr.msrb.gmra.mxu3 %v8404_v4  ;;  %v6077_v43 = vld [vmem:[#allocation5 + $0x6e0] sm:$0xf0] }
  0xba   : > { %3577 = vmatpush.bf16.msra.mxu3 %v6208_v56  ;;  %3542 = vmatpush.bf16.msra.mxu1 %v5664_v6  ;;  %v7542_v44 = vld [vmem:[#allocation5 + $0x484] sm:$0xf]  ;;  %v6080_v59 = vor.u32 %v7614_v39, %v6077_v43 }
  0xbb   : > { %v5789_v45 = vld [vmem:[#allocation5 + $0x4a0] sm:$0xf0] }
  0xbc   : > { %3524 = vmatpush.bf16.msra.mxu0 %v5408_v5  ;;  %3561 = vmatpush.bf16.msra.mxu2 %v5888_v10  ;;  %v7414_v56 = vld [vmem:[#allocation5 + $0x84] sm:$0xf]  ;;  %v5792_v60 = vor.u32 %v7542_v44, %v5789_v45  ;;  %v8414_v5 = vpack.c.b16 %v784_v41, %v784_v41  ;;  %v8418_v10 = vpack.c.b16 %v786_v50, %v786_v50 }
  0xbd   : > { %v5277_v58 = vld [vmem:[#allocation5 + $0xa0] sm:$0xf0] }
  0xbe   : > { %3578 = vmatpush.bf16.msra.mxu3 %v6176_v9  ;;  %3543 = vmatpush.bf16.msra.mxu1 %v5632_v18  ;;  %v7478_v61 = vld [vmem:[#allocation5 + $0x284] sm:$0xf]  ;;  %v8416_v9 = vpack.c.b16 %v785_v46, %v785_v46  ;;  %v5280_v11 = vor.u32 %v7414_v56, %v5277_v58 }
  0xbf   : > { %v5533_v0 = vld [vmem:[#allocation5 + $0x2a0] sm:$0xf0] }
  0xc0   : > { %3525 = vmatpush.bf16.msra.mxu0 %v5376_v17  ;;  %3562 = vmatpush.bf16.msra.mxu2 %v5856_v22  ;;  %v7606_v1 = vld [vmem:[#allocation5 + $0x684] sm:$0xf]  ;;  %v5536_v12 = vor.u32 %v7478_v61, %v5533_v0 }
  0xc1   : > { %v6045_v6 = vld [vmem:[#allocation5 + $0x6a0] sm:$0xf0] }
  0xc2   : > { %3579 = vmatpush.bf16.msra.mxu3 %v6144_v21  ;;  %3544 = vmatpush.bf16.msra.mxu1 %v5600_v31  ;;  %v7534_v7 = vld [vmem:[#allocation5 + $0x444] sm:$0xf]  ;;  %v6048_v15 = vor.u32 %v7606_v1, %v6045_v6 }
  0xc3   : > { %v5757_v8 = vld [vmem:[#allocation5 + $0x460] sm:$0xf0]  ;;  %3500 = vmatmul.bf16.gmra.mxu2 %v8416_v9 }
  0xc4   : > { %3526 = vmatpush.bf16.msra.mxu0 %v5344_v30  ;;  %3563 = vmatpush.bf16.msra.mxu2 %v5824_v36  ;;  %v7406_v13 = vld [vmem:[#allocation5 + $0x44] sm:$0xf]  ;;  %v5760_v16 = vor.u32 %v7534_v7, %v5757_v8 }
  0xc5   : > { %v5245_v14 = vld [vmem:[#allocation5 + $0x60] sm:$0xf0]  ;;  %3482 = vmatmul.bf16.gmra.mxu1 %v8414_v5 }
  0xc6   : > { %3580 = vmatpush.bf16.msra.mxu3 %v6112_v35  ;;  %3545 = vmatpush.bf16.msra.mxu1 %v5568_v55  ;;  %v7470_v17 = vld [vmem:[#allocation5 + $0x244] sm:$0xf]  ;;  %v5248_v25 = vor.u32 %v7406_v13, %v5245_v14 }
  0xc7   : > { %v5501_v18 = vld [vmem:[#allocation5 + $0x260] sm:$0xf0]  ;;  %3464 = vmatmul.bf16.gmra.mxu0 %v8412_v2 }
  0xc8   : > { %3527 = vmatpush.bf16.msra.mxu0 %v5312_v51  ;;  %3564 = vmatpush.bf16.msra.mxu2 %v5792_v60  ;;  %v7598_v19 = vld [vmem:[#allocation5 + $0x644] sm:$0xf]  ;;  %v5504_v26 = vor.u32 %v7470_v17, %v5501_v18 }
  0xc9   : > { %v6013_v20 = vld [vmem:[#allocation5 + $0x660] sm:$0xf0]  ;;  %3518 = vmatmul.bf16.gmra.mxu3 %v8418_v10 }
  0xca   : > { %3581 = vmatpush.bf16.msra.mxu3 %v6080_v59  ;;  %v7526_v21 = vld [vmem:[#allocation5 + $0x404] sm:$0xf]  ;;  %3546 = vmatpush.bf16.msra.mxu1 %v5536_v12  ;;  %v6016_v30 = vor.u32 %v7598_v19, %v6013_v20 }
  0xcb   : > { %v5725_v22 = vld [vmem:[#allocation5 + $0x420] sm:$0xf0] }
  0xcc   : > { %v7838_v23 = vld [vmem:[#allocation5 + $0xdc4] sm:$0xf]  ;;  %3528 = vmatpush.bf16.msra.mxu0 %v5280_v11  ;;  %3565 = vmatpush.bf16.msra.mxu2 %v5760_v16  ;;  %v5728_v31 = vor.u32 %v7526_v21, %v5725_v22 }
  0xcd   : > { %v6973_v24 = vld [vmem:[#allocation5 + $0xde0] sm:$0xf0] }
  0xce   : > { %v7398_v27 = vld [vmem:[#allocation5 + $0x4] sm:$0xf]  ;;  %3582 = vmatpush.bf16.msra.mxu3 %v6048_v15  ;;  %v6976_v35 = vor.u32 %v7838_v23, %v6973_v24  ;;  %3547 = vmatpush.bf16.msra.mxu1 %v5504_v26 }
  0xcf   : > { %v5213_v28 = vld [vmem:[#allocation5 + $0x20] sm:$0xf0] }
  0xd0   : > { %v7462_v29 = vld [vmem:[#allocation5 + $0x204] sm:$0xf]  ;;  %3529 = vmatpush.bf16.msra.mxu0 %v5248_v25  ;;  %v5216_v43 = vor.u32 %v7398_v27, %v5213_v28  ;;  %3566 = vmatpush.bf16.msra.mxu2 %v5728_v31 }
  0xd1   : > { %v5469_v32 = vld [vmem:[#allocation5 + $0x220] sm:$0xf0] }
  0xd2   : > { %v7590_v33 = vld [vmem:[#allocation5 + $0x604] sm:$0xf]  ;;  %v5472_v44 = vor.u32 %v7462_v29, %v5469_v32  ;;  %3583 = vmatpush.bf16.msra.mxu3 %v6016_v30 }
  0xd3   : > { %v5981_v34 = vld [vmem:[#allocation5 + $0x620] sm:$0xf0]  ;;  %3567 = vmatmul.bf16.vlgmr.msra.gmra.mxu2 %v8368_v54 }
  0xd4   : > { %v7710_v36 = vld [vmem:[#allocation5 + $0x9c4] sm:$0xf]  ;;  %v5984_v50 = vor.u32 %v7590_v33, %v5981_v34  ;;  %3631 = vmatpush.bf16.msrb.mxu2 %v6976_v35  ;;  %3530 = vmatpush.bf16.msra.mxu0 %v5216_v43 }
  0xd5   : > { %v6461_v37 = vld [vmem:[#allocation5 + $0x9e0] sm:$0xf0]  ;;  %3548 = vmatpush.bf16.msra.mxu1 %v5472_v44 }
  0xd6   : > { %v7774_v38 = vld [vmem:[#allocation5 + $0xbc4] sm:$0xf]  ;;  %v6464_v51 = vor.u32 %v7710_v36, %v6461_v37  ;;  %3584 = vmatpush.bf16.msra.mxu3 %v5984_v50 }
  0xd7   : > { %v6717_v39 = vld [vmem:[#allocation5 + $0xbe0] sm:$0xf0]  ;;  %3531 = vmatmul.bf16.vlgmr.msra.gmra.mxu0 %v8364_v48 }
  0xd8   : > { %v7902_v40 = vld [vmem:[#allocation5 + $0xfc4] sm:$0xf]  ;;  %v6720_v55 = vor.u32 %v7774_v38, %v6717_v39  ;;  %3595 = vmatpush.bf16.msrb.mxu0 %v6464_v51  ;;  %3549 = vmatmul.bf16.vlgmr.msra.gmra.mxu1 %v8366_v53 }
  0xd9   : > { %v7229_v41 = vld [vmem:[#allocation5 + $0xfe0] sm:$0xf0]  ;;  %3585 = vmatmul.bf16.vlgmr.msra.gmra.mxu3 %v8370_v57 }
  0xda   : > { %v7830_v45 = vld [vmem:[#allocation5 + $0xd84] sm:$0xf]  ;;  %v7232_v56 = vor.u32 %v7902_v40, %v7229_v41  ;;  %3613 = vmatpush.bf16.msrb.mxu1 %v6720_v55 }
  0xdb   : > { %v6941_v46 = vld [vmem:[#allocation5 + $0xda0] sm:$0xf0] }
  0xdc   : > { %v7702_v58 = vld [vmem:[#allocation5 + $0x984] sm:$0xf]  ;;  %v6944_v60 = vor.u32 %v7830_v45, %v6941_v46  ;;  %3649 = vmatpush.bf16.msrb.mxu3 %v7232_v56 }
  0xdd   : > { %v6429_v59 = vld [vmem:[#allocation5 + $0x9a0] sm:$0xf0] }
  0xde   : > { %v7766_v61 = vld [vmem:[#allocation5 + $0xb84] sm:$0xf]  ;;  %v6432_v1 = vor.u32 %v7702_v58, %v6429_v59  ;;  %3632 = vmatpush.bf16.msrb.mxu2 %v6944_v60 }
  0xdf   : > { %v6685_v0 = vld [vmem:[#allocation5 + $0xba0] sm:$0xf0] }
  0xe0   : > { %v7894_v6 = vld [vmem:[#allocation5 + $0xf84] sm:$0xf]  ;;  %v6688_v14 = vor.u32 %v7766_v61, %v6685_v0  ;;  %3596 = vmatpush.bf16.msrb.mxu0 %v6432_v1 }
  0xe1   : > { %v7197_v7 = vld [vmem:[#allocation5 + $0xfa0] sm:$0xf0] }
  0xe2   : > { %v7822_v8 = vld [vmem:[#allocation5 + $0xd44] sm:$0xf]  ;;  %v7200_v15 = vor.u32 %v7894_v6, %v7197_v7  ;;  %3614 = vmatpush.bf16.msrb.mxu1 %v6688_v14 }
  0xe3   : > { %v6909_v11 = vld [vmem:[#allocation5 + $0xd60] sm:$0xf0]  ;;  %3572 = vmatmul.bf16.gmra.mxu2 %v8382_v49 }
  0xe4   : > { %v7694_v12 = vld [vmem:[#allocation5 + $0x944] sm:$0xf]  ;;  %v6912_v18 = vor.u32 %v7822_v8, %v6909_v11  ;;  %3650 = vmatpush.bf16.msrb.mxu3 %v7200_v15 }
  0xe5   : > { %v6397_v13 = vld [vmem:[#allocation5 + $0x960] sm:$0xf0] }
  0xe6   : > { %v7758_v16 = vld [vmem:[#allocation5 + $0xb44] sm:$0xf]  ;;  %v6400_v19 = vor.u32 %v7694_v12, %v6397_v13  ;;  %3633 = vmatpush.bf16.msrb.mxu2 %v6912_v18 }
  0xe7   : > { %v6653_v17 = vld [vmem:[#allocation5 + $0xb60] sm:$0xf0]  ;;  %3536 = vmatmul.bf16.gmra.mxu0 %v8378_v42 }
  0xe8   : > { %v7886_v20 = vld [vmem:[#allocation5 + $0xf44] sm:$0xf]  ;;  %v6656_v26 = vor.u32 %v7758_v16, %v6653_v17  ;;  %3597 = vmatpush.bf16.msrb.mxu0 %v6400_v19  ;;  %3554 = vmatmul.bf16.gmra.mxu1 %v8380_v47 }
  0xe9   : > { %v7165_v21 = vld [vmem:[#allocation5 + $0xf60] sm:$0xf0]  ;;  %3590 = vmatmul.bf16.gmra.mxu3 %v8384_v52 }
  0xea   : > { %v7814_v22 = vld [vmem:[#allocation5 + $0xd04] sm:$0xf]  ;;  %v7168_v27 = vor.u32 %v7886_v20, %v7165_v21  ;;  %3615 = vmatpush.bf16.msrb.mxu1 %v6656_v26  ;;  %v5955_v26 = vld [vmem:[#allocation5 + $0x5c8] sm:$0xf] }
  0xeb   : > { %v6877_v23 = vld [vmem:[#allocation5 + $0xd20] sm:$0xf0] }
  0xec   : > { %v7686_v24 = vld [vmem:[#allocation5 + $0x904] sm:$0xf]  ;;  %v6880_v30 = vor.u32 %v7814_v22, %v6877_v23  ;;  %3651 = vmatpush.bf16.msrb.mxu3 %v7168_v27  ;;  %v7587_v27 = vld [vmem:[#allocation5 + $0x5e4] sm:$0xf0] }
  0xed   : > { %v6365_v25 = vld [vmem:[#allocation5 + $0x920] sm:$0xf0] }
  0xee   : > { %v7750_v28 = vld [vmem:[#allocation5 + $0xb04] sm:$0xf]  ;;  %v6368_v31 = vor.u32 %v7686_v24, %v6365_v25  ;;  %3634 = vmatpush.bf16.msrb.mxu2 %v6880_v30 }
  0xef   : > { %v6621_v29 = vld [vmem:[#allocation5 + $0xb20] sm:$0xf0] }
  0xf0   : > { %v7878_v32 = vld [vmem:[#allocation5 + $0xf04] sm:$0xf]  ;;  %v6624_v38 = vor.u32 %v7750_v28, %v6621_v29  ;;  %3598 = vmatpush.bf16.msrb.mxu0 %v6368_v31  ;;  %v5443_v28 = vld [vmem:[#allocation5 + $0x1c8] sm:$0xf] }
  0xf1   : > { %v7133_v33 = vld [vmem:[#allocation5 + $0xf20] sm:$0xf0]  ;;  %v7459_v29 = vld [vmem:[#allocation5 + $0x1e4] sm:$0xf0] }
  0xf2   : > { %v7806_v34 = vld [vmem:[#allocation5 + $0xcc4] sm:$0xf]  ;;  %v7136_v39 = vor.u32 %v7878_v32, %v7133_v33  ;;  %3616 = vmatpush.bf16.msrb.mxu1 %v6624_v38  ;;  %v5699_v38 = vld [vmem:[#allocation5 + $0x3c8] sm:$0xf] }
  0xf3   : > { %v6845_v35 = vld [vmem:[#allocation5 + $0xce0] sm:$0xf0] }
  0xf4   : > { %v7678_v36 = vld [vmem:[#allocation5 + $0x8c4] sm:$0xf]  ;;  %v6848_v43 = vor.u32 %v7806_v34, %v6845_v35  ;;  %3652 = vmatpush.bf16.msrb.mxu3 %v7136_v39  ;;  %v7523_v39 = vld [vmem:[#allocation5 + $0x3e4] sm:$0xf0] }
  0xf5   : > { %v6333_v37 = vld [vmem:[#allocation5 + $0x8e0] sm:$0xf0] }
  0xf6   : > { %v7742_v40 = vld [vmem:[#allocation5 + $0xac4] sm:$0xf]  ;;  %v6336_v44 = vor.u32 %v7678_v36, %v6333_v37  ;;  %3635 = vmatpush.bf16.msrb.mxu2 %v6848_v43  ;;  %v6211_v43 = vld [vmem:[#allocation5 + $0x7c8] sm:$0xf] }
  0xf7   : > { %v6589_v41 = vld [vmem:[#allocation5 + $0xae0] sm:$0xf0] }
  0xf8   : > { %v7870_v45 = vld [vmem:[#allocation5 + $0xec4] sm:$0xf]  ;;  %v6592_v58 = vor.u32 %v7742_v40, %v6589_v41  ;;  %3599 = vmatpush.bf16.msrb.mxu0 %v6336_v44  ;;  %v5956_v40 = vor.u32 %v7587_v27, %v5955_v26  ;;  %v5444_v41 = vor.u32 %v7459_v29, %v5443_v28  ;;  %v7651_v44 = vld [vmem:[#allocation5 + $0x7e4] sm:$0xf0] }
  0xf9   : > { %v7101_v46 = vld [vmem:[#allocation5 + $0xee0] sm:$0xf0]  ;;  %v5347_v26 = vld [vmem:[#allocation5 + $0x108] sm:$0xf] }
  0xfa   : > { %v7798_v50 = vld [vmem:[#allocation5 + $0xc84] sm:$0xf]  ;;  %v7104_v59 = vor.u32 %v7870_v45, %v7101_v46  ;;  %3617 = vmatpush.bf16.msrb.mxu1 %v6592_v58  ;;  %v5923_v45 = vld [vmem:[#allocation5 + $0x588] sm:$0xf]  ;;  %v5700_v58 = vor.u32 %v7523_v39, %v5699_v38 }
  0xfb   : > { %v6813_v51 = vld [vmem:[#allocation5 + $0xca0] sm:$0xf0]  ;;  %v7579_v46 = vld [vmem:[#allocation5 + $0x5a4] sm:$0xf0] }
  0xfc   : > { %v7670_v55 = vld [vmem:[#allocation5 + $0x884] sm:$0xf]  ;;  %v6816_v0 = vor.u32 %v7798_v50, %v6813_v51  ;;  %3653 = vmatpush.bf16.msrb.mxu3 %v7104_v59  ;;  %v5411_v50 = vld [vmem:[#allocation5 + $0x188] sm:$0xf]  ;;  %v6212_v59 = vor.u32 %v7651_v44, %v6211_v43 }
  0xfd   : > { %v6301_v56 = vld [vmem:[#allocation5 + $0x8a0] sm:$0xf0]  ;;  %v7451_v51 = vld [vmem:[#allocation5 + $0x1a4] sm:$0xf0] }
  0xfe   : > { %v7734_v60 = vld [vmem:[#allocation5 + $0xa84] sm:$0xf]  ;;  %v6304_v1 = vor.u32 %v7670_v55, %v6301_v56  ;;  %3636 = vmatpush.bf16.msrb.mxu2 %v6816_v0  ;;  %v5412_v0 = vor.u32 %v7451_v51, %v5411_v50  ;;  %v7435_v27 = vld [vmem:[#allocation5 + $0x124] sm:$0xf0] }
  0xff   : > { %v6557_v61 = vld [vmem:[#allocation5 + $0xaa0] sm:$0xf0]  ;;  %v5603_v28 = vld [vmem:[#allocation5 + $0x308] sm:$0xf] }
 0x100   : > { %v7862_v6 = vld [vmem:[#allocation5 + $0xe84] sm:$0xf]  ;;  %v6560_v14 = vor.u32 %v7734_v60, %v6557_v61  ;;  %3600 = vmatpush.bf16.msrb.mxu0 %v6304_v1  ;;  %v5667_v60 = vld [vmem:[#allocation5 + $0x388] sm:$0xf]  ;;  %v5924_v61 = vor.u32 %v7579_v46, %v5923_v45 }
 0x101   : > { %v7069_v7 = vld [vmem:[#allocation5 + $0xea0] sm:$0xf0]  ;;  %v7515_v1 = vld [vmem:[#allocation5 + $0x3a4] sm:$0xf0] }
 0x102   : > { %v7790_v8 = vld [vmem:[#allocation5 + $0xc44] sm:$0xf]  ;;  %v7072_v15 = vor.u32 %v7862_v6, %v7069_v7  ;;  %3618 = vmatpush.bf16.msrb.mxu1 %v6560_v14  ;;  %v6179_v6 = vld [vmem:[#allocation5 + $0x788] sm:$0xf] }
 0x103   : > { %v6781_v11 = vld [vmem:[#allocation5 + $0xc60] sm:$0xf0]  ;;  %v7643_v7 = vld [vmem:[#allocation5 + $0x7a4] sm:$0xf0] }
 0x104   : > { %v7662_v12 = vld [vmem:[#allocation5 + $0x844] sm:$0xf]  ;;  %v6784_v19 = vor.u32 %v7790_v8, %v6781_v11  ;;  %3654 = vmatpush.bf16.msrb.mxu3 %v7072_v15  ;;  %v5891_v8 = vld [vmem:[#allocation5 + $0x548] sm:$0xf] }
 0x105   : > { %v6269_v13 = vld [vmem:[#allocation5 + $0x860] sm:$0xf0]  ;;  %v7571_v11 = vld [vmem:[#allocation5 + $0x564] sm:$0xf0] }
 0x106   : > { %v7726_v16 = vld [vmem:[#allocation5 + $0xa44] sm:$0xf]  ;;  %v6272_v20 = vor.u32 %v7662_v12, %v6269_v13  ;;  %3637 = vmatpush.bf16.msrb.mxu2 %v6784_v19  ;;  %v5668_v12 = vor.u32 %v7515_v1, %v5667_v60  ;;  %v6180_v13 = vor.u32 %v7643_v7, %v6179_v6  ;;  %v5379_v14 = vld [vmem:[#allocation5 + $0x148] sm:$0xf] }
 0x107   : > { %v6525_v17 = vld [vmem:[#allocation5 + $0xa60] sm:$0xf0]  ;;  %v7443_v15 = vld [vmem:[#allocation5 + $0x164] sm:$0xf0] }
 0x108   : > { %v7854_v18 = vld [vmem:[#allocation5 + $0xe44] sm:$0xf]  ;;  %v6528_v30 = vor.u32 %v7726_v16, %v6525_v17  ;;  %3601 = vmatpush.bf16.msrb.mxu0 %v6272_v20  ;;  %v5635_v16 = vld [vmem:[#allocation5 + $0x348] sm:$0xf]  ;;  %v5892_v20 = vor.u32 %v7571_v11, %v5891_v8 }
 0x109   : > { %v7037_v21 = vld [vmem:[#allocation5 + $0xe60] sm:$0xf0]  ;;  %v7507_v17 = vld [vmem:[#allocation5 + $0x364] sm:$0xf0] }
 0x10a   : > { %v7782_v22 = vld [vmem:[#allocation5 + $0xc04] sm:$0xf]  ;;  %v7040_v31 = vor.u32 %v7854_v18, %v7037_v21  ;;  %3619 = vmatpush.bf16.msrb.mxu1 %v6528_v30  ;;  %v6147_v18 = vld [vmem:[#allocation5 + $0x748] sm:$0xf]  ;;  %v5380_v21 = vor.u32 %v7443_v15, %v5379_v14 }
 0x10b   : > { %v6749_v23 = vld [vmem:[#allocation5 + $0xc20] sm:$0xf0]  ;;  %v7635_v19 = vld [vmem:[#allocation5 + $0x764] sm:$0xf0] }
 0x10c   : > { %v7654_v24 = vld [vmem:[#allocation5 + $0x804] sm:$0xf]  ;;  %v6752_v35 = vor.u32 %v7782_v22, %v6749_v23  ;;  %3655 = vmatpush.bf16.msrb.mxu3 %v7040_v31  ;;  %v5859_v22 = vld [vmem:[#allocation5 + $0x508] sm:$0xf] }
 0x10d   : > { %v6237_v25 = vld [vmem:[#allocation5 + $0x820] sm:$0xf0]  ;;  %v7563_v23 = vld [vmem:[#allocation5 + $0x524] sm:$0xf0] }
 0x10e   : > { %v7718_v32 = vld [vmem:[#allocation5 + $0xa04] sm:$0xf]  ;;  %v6240_v36 = vor.u32 %v7654_v24, %v6237_v25  ;;  %3638 = vmatpush.bf16.msrb.mxu2 %v6752_v35  ;;  %v5636_v24 = vor.u32 %v7507_v17, %v5635_v16  ;;  %v6148_v25 = vor.u32 %v7635_v19, %v6147_v18  ;;  %v7499_v29 = vld [vmem:[#allocation5 + $0x324] sm:$0xf0] }
 0x10f   : > { %v6493_v33 = vld [vmem:[#allocation5 + $0xa20] sm:$0xf0]  ;;  %v6115_v30 = vld [vmem:[#allocation5 + $0x708] sm:$0xf] }
 0x110   : > { %v7846_v34 = vld [vmem:[#allocation5 + $0xe04] sm:$0xf]  ;;  %v6496_v55 = vor.u32 %v7718_v32, %v6493_v33  ;;  %3602 = vmatpush.bf16.msrb.mxu0 %v6240_v36  ;;  %v7627_v31 = vld [vmem:[#allocation5 + $0x724] sm:$0xf0]  ;;  %v5860_v32 = vor.u32 %v7563_v23, %v5859_v22  ;;  %v5348_v33 = vor.u32 %v7435_v27, %v5347_v26  ;;  %v5604_v36 = vor.u32 %v7499_v29, %v5603_v28 }
 0x111   : > { %v7005_v37 = vld [vmem:[#allocation5 + $0xe20] sm:$0xf0]  ;;  %3639 = vmatmul.bf16.vlgmr.msrb.gmra.mxu2 %v8402_v3  ;;  %v7555_v35 = vld [vmem:[#allocation5 + $0x4e4] sm:$0xf0] }
 0x112   : > { %v7008_v56 = vor.u32 %v7846_v34, %v7005_v37  ;;  %3703 = vmatpush.bf16.msra.mxu2 %v5956_v40  ;;  %3620 = vmatpush.bf16.msrb.mxu1 %v6496_v55  ;;  %v5827_v34 = vld [vmem:[#allocation5 + $0x4c8] sm:$0xf]  ;;  %v6116_v37 = vor.u32 %v7627_v31, %v6115_v30 }
 0x113   : > { %3603 = vmatmul.bf16.vlgmr.msrb.gmra.mxu0 %v8398_v62  ;;  %v5315_v38 = vld [vmem:[#allocation5 + $0xc8] sm:$0xf]  ;;  %v5828_v45 = vor.u32 %v7555_v35, %v5827_v34 }
 0x114   : > { %3667 = vmatpush.bf16.msra.mxu0 %v5444_v41  ;;  %3656 = vmatpush.bf16.msrb.mxu3 %v7008_v56  ;;  %v7427_v39 = vld [vmem:[#allocation5 + $0xe4] sm:$0xf0] }
 0x115   : > { %3621 = vmatmul.bf16.vlgmr.msrb.gmra.mxu1 %v8400_v63  ;;  %v5571_v40 = vld [vmem:[#allocation5 + $0x2c8] sm:$0xf]  ;;  %v5316_v46 = vor.u32 %v7427_v39, %v5315_v38 }
 0x116   : > { %3685 = vmatpush.bf16.msra.mxu1 %v5700_v58  ;;  %3704 = vmatpush.bf16.msra.mxu2 %v5924_v61  ;;  %v7491_v41 = vld [vmem:[#allocation5 + $0x2e4] sm:$0xf0] }
 0x117   : > { %3657 = vmatmul.bf16.vlgmr.msrb.gmra.mxu3 %v8404_v4  ;;  %v6083_v43 = vld [vmem:[#allocation5 + $0x6c8] sm:$0xf]  ;;  %v5572_v55 = vor.u32 %v7491_v41, %v5571_v40 }
 0x118   : > { %3721 = vmatpush.bf16.msra.mxu3 %v6212_v59  ;;  %3668 = vmatpush.bf16.msra.mxu0 %v5412_v0  ;;  %v7619_v44 = vld [vmem:[#allocation5 + $0x6e4] sm:$0xf0] }
 0x119   : > { %v5795_v50 = vld [vmem:[#allocation5 + $0x488] sm:$0xf]  ;;  %v6084_v56 = vor.u32 %v7619_v44, %v6083_v43 }
 0x11a   : > { %3686 = vmatpush.bf16.msra.mxu1 %v5668_v12  ;;  %3705 = vmatpush.bf16.msra.mxu2 %v5892_v20  ;;  %v7547_v51 = vld [vmem:[#allocation5 + $0x4a4] sm:$0xf0] }
 0x11b   : > { %v5283_v58 = vld [vmem:[#allocation5 + $0x88] sm:$0xf]  ;;  %v5796_v6 = vor.u32 %v7547_v51, %v5795_v50 }
 0x11c   : > { %3722 = vmatpush.bf16.msra.mxu3 %v6180_v13  ;;  %3669 = vmatpush.bf16.msra.mxu0 %v5380_v21  ;;  %v7419_v59 = vld [vmem:[#allocation5 + $0xa4] sm:$0xf0] }
 0x11d   : > { %v5539_v60 = vld [vmem:[#allocation5 + $0x288] sm:$0xf]  ;;  %v5284_v7 = vor.u32 %v7419_v59, %v5283_v58 }
 0x11e   : > { %3687 = vmatpush.bf16.msra.mxu1 %v5636_v24  ;;  %3706 = vmatpush.bf16.msra.mxu2 %v5860_v32  ;;  %v7483_v61 = vld [vmem:[#allocation5 + $0x2a4] sm:$0xf0] }
 0x11f   : > { %v6051_v0 = vld [vmem:[#allocation5 + $0x688] sm:$0xf]  ;;  %v5540_v12 = vor.u32 %v7483_v61, %v5539_v60 }
 0x120   : > { %3723 = vmatpush.bf16.msra.mxu3 %v6148_v25  ;;  %3670 = vmatpush.bf16.msra.mxu0 %v5348_v33  ;;  %v7611_v1 = vld [vmem:[#allocation5 + $0x6a4] sm:$0xf0] }
 0x121   : > { %v5763_v8 = vld [vmem:[#allocation5 + $0x448] sm:$0xf]  ;;  %v6052_v13 = vor.u32 %v7611_v1, %v6051_v0  ;;  %3644 = vmatmul.bf16.gmra.mxu2 %v8416_v9 }
 0x122   : > { %3688 = vmatpush.bf16.msra.mxu1 %v5604_v36  ;;  %3707 = vmatpush.bf16.msra.mxu2 %v5828_v45  ;;  %v7539_v11 = vld [vmem:[#allocation5 + $0x464] sm:$0xf0] }
 0x123   : > { %v5251_v14 = vld [vmem:[#allocation5 + $0x48] sm:$0xf]  ;;  %v5764_v21 = vor.u32 %v7539_v11, %v5763_v8  ;;  %3608 = vmatmul.bf16.gmra.mxu0 %v8412_v2 }
 0x124   : > { %3724 = vmatpush.bf16.msra.mxu3 %v6116_v37  ;;  %3671 = vmatpush.bf16.msra.mxu0 %v5316_v46  ;;  %v7411_v15 = vld [vmem:[#allocation5 + $0x64] sm:$0xf0] }
 0x125   : > { %v5507_v16 = vld [vmem:[#allocation5 + $0x248] sm:$0xf]  ;;  %v5252_v22 = vor.u32 %v7411_v15, %v5251_v14  ;;  %3626 = vmatmul.bf16.gmra.mxu1 %v8414_v5 }
 0x126   : > { %3689 = vmatpush.bf16.msra.mxu1 %v5572_v55  ;;  %v7475_v17 = vld [vmem:[#allocation5 + $0x264] sm:$0xf0]  ;;  %3708 = vmatpush.bf16.msra.mxu2 %v5796_v6 }
 0x127   : > { %v6019_v18 = vld [vmem:[#allocation5 + $0x648] sm:$0xf]  ;;  %v5508_v26 = vor.u32 %v7475_v17, %v5507_v16  ;;  %3662 = vmatmul.bf16.gmra.mxu3 %v8418_v10  ;;  %v3388_v17 = vpop.f32.mrf.mxu0 }
 0x128   : > { %3725 = vmatpush.bf16.msra.mxu3 %v6084_v56  ;;  %v7603_v19 = vld [vmem:[#allocation5 + $0x664] sm:$0xf0]  ;;  %3672 = vmatpush.bf16.msra.mxu0 %v5284_v7 }
 0x129   : > { %v5731_v20 = vld [vmem:[#allocation5 + $0x408] sm:$0xf]  ;;  %v6020_v27 = vor.u32 %v7603_v19, %v6019_v18 }
 0x12a   : > { %v7531_v23 = vld [vmem:[#allocation5 + $0x424] sm:$0xf0]  ;;  %3690 = vmatpush.bf16.msra.mxu1 %v5540_v12  ;;  %3709 = vmatpush.bf16.msra.mxu2 %v5764_v21  ;;  %v3406_v21 = vpop.f32.mrf.mxu1 }
 0x12b   : > { %v5219_v24 = vld [vmem:[#allocation5 + $0x8] sm:$0xf]  ;;  %v5732_v37 = vor.u32 %v7531_v23, %v5731_v20 }
 0x12c   : > { %v7403_v25 = vld [vmem:[#allocation5 + $0x24] sm:$0xf0]  ;;  %3726 = vmatpush.bf16.msra.mxu3 %v6052_v13  ;;  %3673 = vmatpush.bf16.msra.mxu0 %v5252_v22  ;;  %v3407_v22 = vadd.f32 %v3406_v21, %v3388_v17 }
 0x12d   : > { %v5475_v28 = vld [vmem:[#allocation5 + $0x208] sm:$0xf]  ;;  %v5220_v38 = vor.u32 %v7403_v25, %v5219_v24 }
 0x12e   : > { %v7467_v29 = vld [vmem:[#allocation5 + $0x224] sm:$0xf0]  ;;  %3691 = vmatpush.bf16.msra.mxu1 %v5508_v26  ;;  %3710 = vmatpush.bf16.msra.mxu2 %v5732_v37 }
 0x12f   : > { %v5987_v30 = vld [vmem:[#allocation5 + $0x608] sm:$0xf]  ;;  %v5476_v43 = vor.u32 %v7467_v29, %v5475_v28 }
 0x130   : > { %v7595_v31 = vld [vmem:[#allocation5 + $0x624] sm:$0xf0]  ;;  %3727 = vmatpush.bf16.msra.mxu3 %v6020_v27  ;;  %3674 = vmatpush.bf16.msra.mxu0 %v5220_v38 }
 0x131   : > { %v6979_v32 = vld [vmem:[#allocation5 + $0xdc8] sm:$0xf]  ;;  %v5988_v44 = vor.u32 %v7595_v31, %v5987_v30  ;;  %3711 = vmatmul.bf16.vlgmr.msra.gmra.mxu2 %v8368_v54 }
 0x132   : > { %v7843_v33 = vld [vmem:[#allocation5 + $0xde4] sm:$0xf0]  ;;  %3692 = vmatpush.bf16.msra.mxu1 %v5476_v43 }
 0x133   : > { %v6467_v34 = vld [vmem:[#allocation5 + $0x9c8] sm:$0xf]  ;;  %v6980_v45 = vor.u32 %v7843_v33, %v6979_v32  ;;  %3675 = vmatmul.bf16.vlgmr.msra.gmra.mxu0 %v8364_v48 }
 0x134   : > { %v7715_v35 = vld [vmem:[#allocation5 + $0x9e4] sm:$0xf0]  ;;  %3728 = vmatpush.bf16.msra.mxu3 %v5988_v44 }
 0x135   : > { %v6723_v36 = vld [vmem:[#allocation5 + $0xbc8] sm:$0xf]  ;;  %v6468_v46 = vor.u32 %v7715_v35, %v6467_v34  ;;  %3775 = vmatpush.bf16.msrb.mxu2 %v6980_v45  ;;  %3693 = vmatmul.bf16.vlgmr.msra.gmra.mxu1 %v8366_v53 }
 0x136   : > { %v7779_v39 = vld [vmem:[#allocation5 + $0xbe4] sm:$0xf0] }
 0x137   : > { %v7235_v40 = vld [vmem:[#allocation5 + $0xfc8] sm:$0xf]  ;;  %v6724_v55 = vor.u32 %v7779_v39, %v6723_v36  ;;  %3739 = vmatpush.bf16.msrb.mxu0 %v6468_v46  ;;  %3729 = vmatmul.bf16.vlgmr.msra.gmra.mxu3 %v8370_v57  ;;  %v3424_v39 = vpop.f32.mrf.mxu2 }
 0x138   : > { %v7907_v41 = vld [vmem:[#allocation5 + $0xfe4] sm:$0xf0]  ;;  %v3425_v46 = vadd.f32 %v3424_v39, %v3407_v22 }
 0x139   : > { %v6947_v50 = vld [vmem:[#allocation5 + $0xd88] sm:$0xf]  ;;  %v7236_v56 = vor.u32 %v7907_v41, %v7235_v40  ;;  %3757 = vmatpush.bf16.msrb.mxu1 %v6724_v55 }
 0x13a   : > { %v7835_v51 = vld [vmem:[#allocation5 + $0xda4] sm:$0xf0] }
 0x13b   : > { %v6435_v58 = vld [vmem:[#allocation5 + $0x988] sm:$0xf]  ;;  %v6948_v6 = vor.u32 %v7835_v51, %v6947_v50  ;;  %3793 = vmatpush.bf16.msrb.mxu3 %v7236_v56  ;;  %v3442_v50 = vpop.f32.mrf.mxu3  ;;  %v3390_v51 = vpop.f32.mrf.mxu0 }
 0x13c   : > { %v7707_v59 = vld [vmem:[#allocation5 + $0x9a4] sm:$0xf0] }
 0x13d   : > { %v6691_v60 = vld [vmem:[#allocation5 + $0xb88] sm:$0xf]  ;;  %v6436_v7 = vor.u32 %v7707_v59, %v6435_v58  ;;  %3776 = vmatpush.bf16.msrb.mxu2 %v6948_v6  ;;  %v3408_v59 = vpop.f32.mrf.mxu1 }
 0x13e   : > { %v7771_v61 = vld [vmem:[#allocation5 + $0xba4] sm:$0xf0] }
 0x13f   : > { %v7203_v0 = vld [vmem:[#allocation5 + $0xf88] sm:$0xf]  ;;  %v6692_v8 = vor.u32 %v7771_v61, %v6691_v60  ;;  %3740 = vmatpush.bf16.msrb.mxu0 %v6436_v7  ;;  %v8444_v61 = vadd.f32 %v3442_v50, %v3425_v46  ;;  %v3426_v22 = vpop.f32.mrf.mxu2 }
 0x140   : > { %v7899_v1 = vld [vmem:[#allocation5 + $0xfa4] sm:$0xf0] }
 0x141   : > { %v7204_v11 = vor.u32 %v7899_v1, %v7203_v0  ;;  %v6915_v12 = vld [vmem:[#allocation5 + $0xd48] sm:$0xf]  ;;  %3758 = vmatpush.bf16.msrb.mxu1 %v6692_v8  ;;  %v3409_v0 = vadd.f32 %v3408_v59, %v3390_v51  ;;  %3716 = vmatmul.bf16.gmra.mxu2 %v8382_v49  ;;  %v7455_v59 = vld [vmem:[#allocation5 + $0x1cc] sm:$0xf] }
 0x142   : > { %v7827_v13 = vld [vmem:[#allocation5 + $0xd64] sm:$0xf0] }
 0x143   : > { %v6403_v14 = vld [vmem:[#allocation5 + $0x948] sm:$0xf]  ;;  %3794 = vmatpush.bf16.msrb.mxu3 %v7204_v11  ;;  %v6916_v23 = vor.u32 %v7827_v13, %v6915_v12  ;;  %3680 = vmatmul.bf16.gmra.mxu0 %v8378_v42 }
 0x144   : > { %v7699_v15 = vld [vmem:[#allocation5 + $0x964] sm:$0xf0] }
 0x145   : > { %v6659_v16 = vld [vmem:[#allocation5 + $0xb48] sm:$0xf]  ;;  %v6404_v24 = vor.u32 %v7699_v15, %v6403_v14  ;;  %3777 = vmatpush.bf16.msrb.mxu2 %v6916_v23  ;;  %3698 = vmatmul.bf16.gmra.mxu1 %v8380_v47 }
 0x146   : > { %v7763_v18 = vld [vmem:[#allocation5 + $0xb64] sm:$0xf0] }
 0x147   : > { %v7171_v19 = vld [vmem:[#allocation5 + $0xf48] sm:$0xf]  ;;  %v6660_v27 = vor.u32 %v7763_v18, %v6659_v16  ;;  %3741 = vmatpush.bf16.msrb.mxu0 %v6404_v24  ;;  %3734 = vmatmul.bf16.gmra.mxu3 %v8384_v52 }
 0x148   : > { %v7891_v20 = vld [vmem:[#allocation5 + $0xf64] sm:$0xf0] }
 0x149   : > { %v6883_v25 = vld [vmem:[#allocation5 + $0xd08] sm:$0xf]  ;;  %v7172_v28 = vor.u32 %v7891_v20, %v7171_v19  ;;  %3759 = vmatpush.bf16.msrb.mxu1 %v6660_v27 }
 0x14a   : > { %v7819_v26 = vld [vmem:[#allocation5 + $0xd24] sm:$0xf0] }
 0x14b   : > { %v6371_v29 = vld [vmem:[#allocation5 + $0x908] sm:$0xf]  ;;  %v6884_v35 = vor.u32 %v7819_v26, %v6883_v25  ;;  %3795 = vmatpush.bf16.msrb.mxu3 %v7172_v28  ;;  %v3427_v28 = vadd.f32 %v3426_v22, %v3409_v0  ;;  %v7519_v0 = vld [vmem:[#allocation5 + $0x3cc] sm:$0xf] }
 0x14c   : > { %v7691_v30 = vld [vmem:[#allocation5 + $0x924] sm:$0xf0] }
 0x14d   : > { %v6627_v31 = vld [vmem:[#allocation5 + $0xb08] sm:$0xf]  ;;  %v6372_v36 = vor.u32 %v7691_v30, %v6371_v29  ;;  %3778 = vmatpush.bf16.msrb.mxu2 %v6884_v35  ;;  %v3444_v29 = vpop.f32.mrf.mxu3  ;;  %v3393_v30 = vpop.f32.mrf.mxu0 }
 0x14e   : > { %v7755_v32 = vld [vmem:[#allocation5 + $0xb24] sm:$0xf0] }
 0x14f   : > { %v7139_v33 = vld [vmem:[#allocation5 + $0xf08] sm:$0xf]  ;;  %v6628_v40 = vor.u32 %v7755_v32, %v6627_v31  ;;  %3742 = vmatpush.bf16.msrb.mxu0 %v6372_v36 }
 0x150   : > { %v7883_v34 = vld [vmem:[#allocation5 + $0xf24] sm:$0xf0] }
 0x151   : > { %v6851_v37 = vld [vmem:[#allocation5 + $0xcc8] sm:$0xf]  ;;  %v7140_v41 = vor.u32 %v7883_v34, %v7139_v33  ;;  %3760 = vmatpush.bf16.msrb.mxu1 %v6628_v40  ;;  %v3411_v34 = vpop.f32.mrf.mxu1 }
 0x152   : > { %v7811_v38 = vld [vmem:[#allocation5 + $0xce4] sm:$0xf0] }
 0x153   : > { %v6339_v43 = vld [vmem:[#allocation5 + $0x8c8] sm:$0xf]  ;;  %v6852_v60 = vor.u32 %v7811_v38, %v6851_v37  ;;  %3796 = vmatpush.bf16.msrb.mxu3 %v7140_v41  ;;  %v8446_v37 = vadd.f32 %v3444_v29, %v3427_v28  ;;  %v3412_v38 = vadd.f32 %v3411_v34, %v3393_v30  ;;  %v5669_v29 = vld [vmem:[#allocation5 + $0x3a8] sm:$0xf0] }
 0x154   : > { %v7683_v44 = vld [vmem:[#allocation5 + $0x8e4] sm:$0xf0]  ;;  %v7639_v30 = vld [vmem:[#allocation5 + $0x78c] sm:$0xf] }
 0x155   : > { %v6595_v45 = vld [vmem:[#allocation5 + $0xac8] sm:$0xf]  ;;  %v6340_v1 = vor.u32 %v7683_v44, %v6339_v43  ;;  %3779 = vmatpush.bf16.msrb.mxu2 %v6852_v60  ;;  %v5445_v60 = vld [vmem:[#allocation5 + $0x1e8] sm:$0xf0] }
 0x156   : > { %v7747_v55 = vld [vmem:[#allocation5 + $0xae4] sm:$0xf0] }
 0x157   : > { %v7107_v56 = vld [vmem:[#allocation5 + $0xec8] sm:$0xf]  ;;  %v6596_v8 = vor.u32 %v7747_v55, %v6595_v45  ;;  %3743 = vmatpush.bf16.msrb.mxu0 %v6340_v1 }
 0x158   : > { %v7875_v58 = vld [vmem:[#allocation5 + $0xee4] sm:$0xf0] }
 0x159   : > { %v6819_v6 = vld [vmem:[#allocation5 + $0xc88] sm:$0xf]  ;;  %v7108_v11 = vor.u32 %v7875_v58, %v7107_v56  ;;  %3761 = vmatpush.bf16.msrb.mxu1 %v6596_v8  ;;  %v7583_v56 = vld [vmem:[#allocation5 + $0x5cc] sm:$0xf]  ;;  %v3413_v22 = vpop.f32.mrf.mxu1 }
 0x15a   : > { %v7803_v7 = vld [vmem:[#allocation5 + $0xca4] sm:$0xf0]  ;;  %v5957_v58 = vld [vmem:[#allocation5 + $0x5e8] sm:$0xf0] }
 0x15b   : > { %v6307_v12 = vld [vmem:[#allocation5 + $0x888] sm:$0xf]  ;;  %v6820_v18 = vor.u32 %v7803_v7, %v6819_v6  ;;  %3797 = vmatpush.bf16.msrb.mxu3 %v7108_v11  ;;  %v5701_v7 = vld [vmem:[#allocation5 + $0x3e8] sm:$0xf0] }
 0x15c   : > { %v7675_v13 = vld [vmem:[#allocation5 + $0x8a4] sm:$0xf0]  ;;  %v7647_v8 = vld [vmem:[#allocation5 + $0x7cc] sm:$0xf] }
 0x15d   : > { %v6563_v14 = vld [vmem:[#allocation5 + $0xa88] sm:$0xf]  ;;  %v6308_v19 = vor.u32 %v7675_v13, %v6307_v12  ;;  %3780 = vmatpush.bf16.msrb.mxu2 %v6820_v18  ;;  %v6213_v11 = vld [vmem:[#allocation5 + $0x7e8] sm:$0xf0]  ;;  %v3429_v12 = vpop.f32.mrf.mxu2  ;;  %v5960_v18 = vor.u32 %v7583_v56, %v5957_v58 }
 0x15e   : > { %v7739_v15 = vld [vmem:[#allocation5 + $0xaa4] sm:$0xf0]  ;;  %v5317_v22 = vld [vmem:[#allocation5 + $0xe8] sm:$0xf0] }
 0x15f   : > { %v7075_v16 = vld [vmem:[#allocation5 + $0xe88] sm:$0xf]  ;;  %v6564_v23 = vor.u32 %v7739_v15, %v6563_v14  ;;  %3744 = vmatpush.bf16.msrb.mxu0 %v6308_v19  ;;  %v3430_v15 = vadd.f32 %v3429_v12, %v3412_v38  ;;  %v5448_v19 = vor.u32 %v7455_v59, %v5445_v60  ;;  %v5893_v38 = vld [vmem:[#allocation5 + $0x568] sm:$0xf0] }
 0x160   : > { %v7867_v17 = vld [vmem:[#allocation5 + $0xea4] sm:$0xf0]  ;;  %v7559_v60 = vld [vmem:[#allocation5 + $0x50c] sm:$0xf] }
 0x161   : > { %v6787_v20 = vld [vmem:[#allocation5 + $0xc48] sm:$0xf]  ;;  %v7076_v24 = vor.u32 %v7867_v17, %v7075_v16  ;;  %3762 = vmatpush.bf16.msrb.mxu1 %v6564_v23  ;;  %v3447_v16 = vpop.f32.mrf.mxu3  ;;  %v3395_v17 = vpop.f32.mrf.mxu0  ;;  %v5704_v23 = vor.u32 %v7519_v0, %v5701_v7  ;;  %v5861_v0 = vld [vmem:[#allocation5 + $0x528] sm:$0xf0] }
 0x162   : > { %v7795_v21 = vld [vmem:[#allocation5 + $0xc64] sm:$0xf0]  ;;  %v8452_v28 = vadd.f32 %v3447_v16, %v3430_v15  ;;  %v7431_v7 = vld [vmem:[#allocation5 + $0x10c] sm:$0xf] }
 0x163   : > { %v6275_v25 = vld [vmem:[#allocation5 + $0x848] sm:$0xf]  ;;  %v6788_v35 = vor.u32 %v7795_v21, %v6787_v20  ;;  %3798 = vmatpush.bf16.msrb.mxu3 %v7076_v24  ;;  %v7575_v20 = vld [vmem:[#allocation5 + $0x58c] sm:$0xf]  ;;  %v6216_v24 = vor.u32 %v7647_v8, %v6213_v11 }
 0x164   : > { %v7667_v26 = vld [vmem:[#allocation5 + $0x864] sm:$0xf0]  ;;  %v5925_v21 = vld [vmem:[#allocation5 + $0x5a8] sm:$0xf0] }
 0x165   : > { %v6531_v27 = vld [vmem:[#allocation5 + $0xa48] sm:$0xf]  ;;  %v6276_v39 = vor.u32 %v7667_v26, %v6275_v25  ;;  %3781 = vmatpush.bf16.msrb.mxu2 %v6788_v35  ;;  %v7447_v25 = vld [vmem:[#allocation5 + $0x18c] sm:$0xf] }
 0x166   : > { %v7731_v31 = vld [vmem:[#allocation5 + $0xa64] sm:$0xf0]  ;;  %v5413_v26 = vld [vmem:[#allocation5 + $0x1a8] sm:$0xf0] }
 0x167   : > { %v7043_v32 = vld [vmem:[#allocation5 + $0xe48] sm:$0xf]  ;;  %v6532_v44 = vor.u32 %v7731_v31, %v6531_v27  ;;  %3745 = vmatpush.bf16.msrb.mxu0 %v6276_v39  ;;  %v7511_v27 = vld [vmem:[#allocation5 + $0x38c] sm:$0xf]  ;;  %v3431_v39 = vpop.f32.mrf.mxu2 }
 0x168   : > { %v7859_v33 = vld [vmem:[#allocation5 + $0xe64] sm:$0xf0]  ;;  %v6181_v31 = vld [vmem:[#allocation5 + $0x7a8] sm:$0xf0]  ;;  %v5672_v34 = vor.u32 %v7511_v27, %v5669_v29 }
 0x169   : > { %v6755_v36 = vld [vmem:[#allocation5 + $0xc08] sm:$0xf]  ;;  %v7044_v45 = vor.u32 %v7859_v33, %v7043_v32  ;;  %3763 = vmatpush.bf16.msrb.mxu1 %v6532_v44  ;;  %v5928_v32 = vor.u32 %v7575_v20, %v5925_v21  ;;  %v5416_v33 = vor.u32 %v7447_v25, %v5413_v26  ;;  %v6184_v35 = vor.u32 %v7639_v30, %v6181_v31  ;;  %v3449_v44 = vpop.f32.mrf.mxu3  ;;  %v5349_v8 = vld [vmem:[#allocation5 + $0x128] sm:$0xf0] }
 0x16a   : > { %v7787_v40 = vld [vmem:[#allocation5 + $0xc24] sm:$0xf0]  ;;  %v7495_v11 = vld [vmem:[#allocation5 + $0x30c] sm:$0xf]  ;;  %v5352_v16 = vor.u32 %v7431_v7, %v5349_v8 }
 0x16b   : > { %v6243_v41 = vld [vmem:[#allocation5 + $0x808] sm:$0xf]  ;;  %v6756_v1 = vor.u32 %v7787_v40, %v6755_v36  ;;  %3799 = vmatpush.bf16.msrb.mxu3 %v7044_v45  ;;  %v7567_v36 = vld [vmem:[#allocation5 + $0x54c] sm:$0xf] }
 0x16c   : > { %v7659_v43 = vld [vmem:[#allocation5 + $0x824] sm:$0xf0]  ;;  %v7439_v40 = vld [vmem:[#allocation5 + $0x14c] sm:$0xf]  ;;  %v5896_v58 = vor.u32 %v7567_v36, %v5893_v38 }
 0x16d   : > { %v6499_v46 = vld [vmem:[#allocation5 + $0xa08] sm:$0xf]  ;;  %v6244_v6 = vor.u32 %v7659_v43, %v6243_v41  ;;  %3782 = vmatpush.bf16.msrb.mxu2 %v6756_v1  ;;  %v5381_v41 = vld [vmem:[#allocation5 + $0x168] sm:$0xf0] }
 0x16e   : > { %v7723_v50 = vld [vmem:[#allocation5 + $0xa24] sm:$0xf0]  ;;  %v7503_v43 = vld [vmem:[#allocation5 + $0x34c] sm:$0xf]  ;;  %v5384_v59 = vor.u32 %v7439_v40, %v5381_v41 }
 0x16f   : > { %v7011_v51 = vld [vmem:[#allocation5 + $0xe08] sm:$0xf]  ;;  %v6500_v13 = vor.u32 %v7723_v50, %v6499_v46  ;;  %3746 = vmatpush.bf16.msrb.mxu0 %v6244_v6  ;;  %v5637_v45 = vld [vmem:[#allocation5 + $0x368] sm:$0xf0] }
 0x170   : > { %v7851_v55 = vld [vmem:[#allocation5 + $0xe24] sm:$0xf0]  ;;  %v7631_v46 = vld [vmem:[#allocation5 + $0x74c] sm:$0xf]  ;;  %v5640_v1 = vor.u32 %v7503_v43, %v5637_v45  ;;  %3783 = vmatmul.bf16.vlgmr.msrb.gmra.mxu2 %v8402_v3 }
 0x171   : > { %v7012_v14 = vor.u32 %v7851_v55, %v7011_v51  ;;  %3764 = vmatpush.bf16.msrb.mxu1 %v6500_v13  ;;  %3847 = vmatpush.bf16.msra.mxu2 %v5960_v18  ;;  %v6149_v50 = vld [vmem:[#allocation5 + $0x768] sm:$0xf0]  ;;  %v3460_v51 = vpop.f32.mrf.mxu0  ;;  %v3478_v55 = vpop.f32.mrf.mxu1 }
 0x172   : > { %v3461_v56 = vadd.f32 %v3460_v51, %v8444_v61  ;;  %v6152_v6 = vor.u32 %v7631_v46, %v6149_v50  ;;  %3747 = vmatmul.bf16.vlgmr.msrb.gmra.mxu0 %v8398_v62  ;;  %v5605_v13 = vld [vmem:[#allocation5 + $0x328] sm:$0xf0]  ;;  %v5864_v61 = vor.u32 %v7559_v60, %v5861_v0  ;;  %v3514_v25 = vpop.f32.mrf.mxu3 }
 0x173   : > { %3800 = vmatpush.bf16.msrb.mxu3 %v7012_v14  ;;  %3811 = vmatpush.bf16.msra.mxu0 %v5448_v19  ;;  %v7623_v14 = vld [vmem:[#allocation5 + $0x70c] sm:$0xf]  ;;  %v5608_v19 = vor.u32 %v7495_v11, %v5605_v13 }
 0x174   : > { %v3479_v12 = vadd.f32 %v3478_v55, %v3461_v56  ;;  %3765 = vmatmul.bf16.vlgmr.msrb.gmra.mxu1 %v8400_v63  ;;  %v6117_v15 = vld [vmem:[#allocation5 + $0x728] sm:$0xf0] }
 0x175   : > { %3829 = vmatpush.bf16.msra.mxu1 %v5704_v23  ;;  %3848 = vmatpush.bf16.msra.mxu2 %v5928_v32  ;;  %v7551_v17 = vld [vmem:[#allocation5 + $0x4cc] sm:$0xf]  ;;  %v6120_v20 = vor.u32 %v7623_v14, %v6117_v15 }
 0x176   : > { %3801 = vmatmul.bf16.vlgmr.msrb.gmra.mxu3 %v8404_v4  ;;  %v5829_v18 = vld [vmem:[#allocation5 + $0x4e8] sm:$0xf0] }
 0x177   : > { %3865 = vmatpush.bf16.msra.mxu3 %v6216_v24  ;;  %3812 = vmatpush.bf16.msra.mxu0 %v5416_v33  ;;  %v7423_v21 = vld [vmem:[#allocation5 + $0xcc] sm:$0xf]  ;;  %v3496_v24 = vpop.f32.mrf.mxu2 }
 0x178   : > { %v7487_v23 = vld [vmem:[#allocation5 + $0x2cc] sm:$0xf]  ;;  %v3497_v30 = vadd.f32 %v3496_v24, %v3479_v12 }
 0x179   : > { %3830 = vmatpush.bf16.msra.mxu1 %v5672_v34  ;;  %3849 = vmatpush.bf16.msra.mxu2 %v5896_v58  ;;  %v5573_v26 = vld [vmem:[#allocation5 + $0x2e8] sm:$0xf0]  ;;  %v3462_v31 = vpop.f32.mrf.mxu0  ;;  %v3480_v32 = vpop.f32.mrf.mxu1  ;;  %v5832_v34 = vor.u32 %v7551_v17, %v5829_v18 }
 0x17a   : > { %v7615_v27 = vld [vmem:[#allocation5 + $0x6cc] sm:$0xf]  ;;  %v3463_v33 = vadd.f32 %v3462_v31, %v8446_v37  ;;  %v8460_v39 = vadd.f32 %v3514_v25, %v3497_v30  ;;  %v5576_v40 = vor.u32 %v7487_v23, %v5573_v26  ;;  %v3516_v11 = vpop.f32.mrf.mxu3 }
 0x17b   : > { %3866 = vmatpush.bf16.msra.mxu3 %v6184_v35  ;;  %3813 = vmatpush.bf16.msra.mxu0 %v5384_v59  ;;  %v6085_v29 = vld [vmem:[#allocation5 + $0x6e8] sm:$0xf0]  ;;  %v5320_v35 = vor.u32 %v7423_v21, %v5317_v22 }
 0x17c   : > { %v7543_v36 = vld [vmem:[#allocation5 + $0x48c] sm:$0xf]  ;;  %v6088_v41 = vor.u32 %v7615_v27, %v6085_v29  ;;  %v3481_v46 = vadd.f32 %v3480_v32, %v3463_v33 }
 0x17d   : > { %3831 = vmatpush.bf16.msra.mxu1 %v5640_v1  ;;  %3850 = vmatpush.bf16.msra.mxu2 %v5864_v61  ;;  %v5797_v38 = vld [vmem:[#allocation5 + $0x4a8] sm:$0xf0] }
 0x17e   : > { %v7415_v43 = vld [vmem:[#allocation5 + $0x8c] sm:$0xf]  ;;  %v5800_v37 = vor.u32 %v7543_v36, %v5797_v38 }
 0x17f   : > { %3867 = vmatpush.bf16.msra.mxu3 %v6152_v6  ;;  %3814 = vmatpush.bf16.msra.mxu0 %v5352_v16  ;;  %v5285_v44 = vld [vmem:[#allocation5 + $0xa8] sm:$0xf0]  ;;  %v3498_v8 = vpop.f32.mrf.mxu2 }
 0x180   : > { %v7479_v45 = vld [vmem:[#allocation5 + $0x28c] sm:$0xf]  ;;  %v5288_v56 = vor.u32 %v7415_v43, %v5285_v44  ;;  %v3499_v15 = vadd.f32 %v3498_v8, %v3481_v46  ;;  %3788 = vmatmul.bf16.gmra.mxu2 %v8416_v9 }
 0x181   : > { %3832 = vmatpush.bf16.msra.mxu1 %v5608_v19  ;;  %v5541_v50 = vld [vmem:[#allocation5 + $0x2a8] sm:$0xf0]  ;;  %3851 = vmatpush.bf16.msra.mxu2 %v5832_v34  ;;  %v3465_v61 = vpop.f32.mrf.mxu0  ;;  %v3483_v16 = vpop.f32.mrf.mxu1 }
 0x182   : > { %v7607_v51 = vld [vmem:[#allocation5 + $0x68c] sm:$0xf]  ;;  %v5544_v60 = vor.u32 %v7479_v45, %v5541_v50  ;;  %v3466_v18 = vadd.f32 %v3465_v61, %v8452_v28  ;;  %v8463_v24 = vadd.f32 %v3516_v11, %v3499_v15  ;;  %3752 = vmatmul.bf16.gmra.mxu0 %v8412_v2 }
 0x183   : > { %3868 = vmatpush.bf16.msra.mxu3 %v6120_v20  ;;  %v6053_v55 = vld [vmem:[#allocation5 + $0x6a8] sm:$0xf0]  ;;  %3815 = vmatpush.bf16.msra.mxu0 %v5320_v35 }
 0x184   : > { %v7535_v58 = vld [vmem:[#allocation5 + $0x44c] sm:$0xf]  ;;  %v6056_v0 = vor.u32 %v7607_v51, %v6053_v55  ;;  %v3484_v31 = vadd.f32 %v3483_v16, %v3466_v18  ;;  %3770 = vmatmul.bf16.gmra.mxu1 %v8414_v5  ;;  %v3519_v51 = vpop.f32.mrf.mxu3 }
 0x185   : > { %v5765_v59 = vld [vmem:[#allocation5 + $0x468] sm:$0xf0]  ;;  %3833 = vmatpush.bf16.msra.mxu1 %v5576_v40  ;;  %3852 = vmatpush.bf16.msra.mxu2 %v5800_v37 }
 0x186   : > { %v7407_v1 = vld [vmem:[#allocation5 + $0x4c] sm:$0xf]  ;;  %v5768_v19 = vor.u32 %v7535_v58, %v5765_v59  ;;  %3806 = vmatmul.bf16.gmra.mxu3 %v8418_v10 }
 0x187   : > { %3869 = vmatpush.bf16.msra.mxu3 %v6088_v41  ;;  %v5253_v6 = vld [vmem:[#allocation5 + $0x68] sm:$0xf0]  ;;  %3816 = vmatpush.bf16.msra.mxu0 %v5288_v56  ;;  %v3501_v50 = vpop.f32.mrf.mxu2 }
 0x188   : > { %v7471_v7 = vld [vmem:[#allocation5 + $0x24c] sm:$0xf]  ;;  %v5256_v20 = vor.u32 %v7407_v1, %v5253_v6  ;;  %v3502_v59 = vadd.f32 %v3501_v50, %v3484_v31 }
 0x189   : > { %v5509_v12 = vld [vmem:[#allocation5 + $0x268] sm:$0xf0]  ;;  %3834 = vmatpush.bf16.msra.mxu1 %v5544_v60  ;;  %3853 = vmatpush.bf16.msra.mxu2 %v5768_v19  ;;  %v3467_v60 = vpop.f32.mrf.mxu0 }
 0x18a   : > { %v7599_v13 = vld [vmem:[#allocation5 + $0x64c] sm:$0xf]  ;;  %v5512_v25 = vor.u32 %v7471_v7, %v5509_v12  ;;  %v8469_v15 = vadd.f32 %v3519_v51, %v3502_v59 }
 0x18b   : > { %v6021_v14 = vld [vmem:[#allocation5 + $0x668] sm:$0xf0]  ;;  %3870 = vmatpush.bf16.msra.mxu3 %v6056_v0  ;;  %3817 = vmatpush.bf16.msra.mxu0 %v5256_v20  ;;  %v3485_v0 = vpop.f32.mrf.mxu1 }
 0x18c   : > { %v7527_v17 = vld [vmem:[#allocation5 + $0x40c] sm:$0xf]  ;;  %v6024_v26 = vor.u32 %v7599_v13, %v6021_v14 }
 0x18d   : > { %v5733_v21 = vld [vmem:[#allocation5 + $0x428] sm:$0xf0]  ;;  %3835 = vmatpush.bf16.msra.mxu1 %v5512_v25 }
 0x18e   : > { %v7399_v22 = vld [vmem:[#allocation5 + $0xc] sm:$0xf]  ;;  %v5736_v38 = vor.u32 %v7527_v17, %v5733_v21 }
 0x18f   : > { %v5221_v23 = vld [vmem:[#allocation5 + $0x28] sm:$0xf0]  ;;  %3871 = vmatpush.bf16.msra.mxu3 %v6024_v26  ;;  %v3503_v25 = vpop.f32.mrf.mxu2  ;;  %v3521_v26 = vpop.f32.mrf.mxu3 }
 0x190   : > { %v7463_v27 = vld [vmem:[#allocation5 + $0x20c] sm:$0xf]  ;;  %v5224_v40 = vor.u32 %v7399_v22, %v5221_v23  ;;  %3854 = vmatpush.bf16.msra.mxu2 %v5736_v38 }
 0x191   : > { %v5477_v29 = vld [vmem:[#allocation5 + $0x228] sm:$0xf0]  ;;  %v3532_v31 = vpop.f32.mrf.mxu0 }
 0x192   : > { %v7591_v30 = vld [vmem:[#allocation5 + $0x60c] sm:$0xf]  ;;  %v5480_v45 = vor.u32 %v7463_v27, %v5477_v29  ;;  %3818 = vmatpush.bf16.msra.mxu0 %v5224_v40 }
 0x193   : > { %v5989_v28 = vld [vmem:[#allocation5 + $0x628] sm:$0xf0]  ;;  %3855 = vmatmul.bf16.vlgmr.msra.gmra.mxu2 %v8368_v54 }
 0x194   : > { %v7839_v32 = vld [vmem:[#allocation5 + $0xdcc] sm:$0xf]  ;;  %v5992_v46 = vor.u32 %v7591_v30, %v5989_v28  ;;  %3836 = vmatpush.bf16.msra.mxu1 %v5480_v45  ;;  %v3550_v28 = vpop.f32.mrf.mxu1 }
 0x195   : > { %v6981_v33 = vld [vmem:[#allocation5 + $0xde8] sm:$0xf0]  ;;  %3819 = vmatmul.bf16.vlgmr.msra.gmra.mxu0 %v8364_v48 }
 0x196   : > { %v7711_v34 = vld [vmem:[#allocation5 + $0x9cc] sm:$0xf]  ;;  %v6984_v55 = vor.u32 %v7839_v32, %v6981_v33  ;;  %3872 = vmatpush.bf16.msra.mxu3 %v5992_v46  ;;  %v3551_v32 = vadd.f32 %v3550_v28, %v3532_v31 }
 0x197   : > { %v6469_v35 = vld [vmem:[#allocation5 + $0x9e8] sm:$0xf0]  ;;  %3837 = vmatmul.bf16.vlgmr.msra.gmra.mxu1 %v8366_v53 }
 0x198   : > { %v7775_v36 = vld [vmem:[#allocation5 + $0xbcc] sm:$0xf]  ;;  %v6472_v37 = vor.u32 %v7711_v34, %v6469_v35  ;;  %3919 = vmatpush.bf16.msrb.mxu2 %v6984_v55 }
 0x199   : > { %v6725_v41 = vld [vmem:[#allocation5 + $0xbe8] sm:$0xf0]  ;;  %3873 = vmatmul.bf16.vlgmr.msra.gmra.mxu3 %v8370_v57 }
 0x19a   : > { %v7903_v43 = vld [vmem:[#allocation5 + $0xfcc] sm:$0xf]  ;;  %v6728_v1 = vor.u32 %v7775_v36, %v6725_v41  ;;  %3883 = vmatpush.bf16.msrb.mxu0 %v6472_v37 }
 0x19b   : > { %v7237_v44 = vld [vmem:[#allocation5 + $0xfe8] sm:$0xf0] }
 0x19c   : > { %v7831_v56 = vld [vmem:[#allocation5 + $0xd8c] sm:$0xf]  ;;  %v7240_v6 = vor.u32 %v7903_v43, %v7237_v44  ;;  %3901 = vmatpush.bf16.msrb.mxu1 %v6728_v1 }
 0x19d   : > { %v6949_v58 = vld [vmem:[#allocation5 + $0xda8] sm:$0xf0] }
 0x19e   : > { %v7703_v7 = vld [vmem:[#allocation5 + $0x98c] sm:$0xf]  ;;  %v6952_v61 = vor.u32 %v7831_v56, %v6949_v58  ;;  %3937 = vmatpush.bf16.msrb.mxu3 %v7240_v6  ;;  %v3568_v6 = vpop.f32.mrf.mxu2 }
 0x19f   : > { %v6437_v8 = vld [vmem:[#allocation5 + $0x9a8] sm:$0xf0] }
 0x1a0   : > { %v7767_v11 = vld [vmem:[#allocation5 + $0xb8c] sm:$0xf]  ;;  %v6440_v16 = vor.u32 %v7703_v7, %v6437_v8  ;;  %3920 = vmatpush.bf16.msrb.mxu2 %v6952_v61  ;;  %v3586_v7 = vpop.f32.mrf.mxu3  ;;  %v3552_v61 = vpop.f32.mrf.mxu1 }
 0x1a1   : > { %v6693_v12 = vld [vmem:[#allocation5 + $0xba8] sm:$0xf0] }
 0x1a2   : > { %v7895_v13 = vld [vmem:[#allocation5 + $0xf8c] sm:$0xf]  ;;  %v6696_v17 = vor.u32 %v7767_v11, %v6693_v12  ;;  %3884 = vmatpush.bf16.msrb.mxu0 %v6440_v16 }
 0x1a3   : > { %v7205_v14 = vld [vmem:[#allocation5 + $0xfa8] sm:$0xf0]  ;;  %3860 = vmatmul.bf16.gmra.mxu2 %v8382_v49 }
 0x1a4   : > { %v7208_v18 = vor.u32 %v7895_v13, %v7205_v14  ;;  %v7823_v19 = vld [vmem:[#allocation5 + $0xd4c] sm:$0xf]  ;;  %3902 = vmatpush.bf16.msrb.mxu1 %v6696_v17  ;;  %v3569_v13 = vadd.f32 %v3568_v6, %v3551_v32  ;;  %v3534_v14 = vpop.f32.mrf.mxu0 }
 0x1a5   : > { %v6917_v20 = vld [vmem:[#allocation5 + $0xd68] sm:$0xf0]  ;;  %v3553_v16 = vadd.f32 %v3552_v61, %v3534_v14  ;;  %3824 = vmatmul.bf16.gmra.mxu0 %v8378_v42 }
 0x1a6   : > { %v7695_v21 = vld [vmem:[#allocation5 + $0x94c] sm:$0xf]  ;;  %3938 = vmatpush.bf16.msrb.mxu3 %v7208_v18  ;;  %v6920_v33 = vor.u32 %v7823_v19, %v6917_v20 }
 0x1a7   : > { %v6405_v22 = vld [vmem:[#allocation5 + $0x968] sm:$0xf0]  ;;  %3842 = vmatmul.bf16.gmra.mxu1 %v8380_v47 }
 0x1a8   : > { %v7759_v23 = vld [vmem:[#allocation5 + $0xb4c] sm:$0xf]  ;;  %v6408_v34 = vor.u32 %v7695_v21, %v6405_v22  ;;  %3921 = vmatpush.bf16.msrb.mxu2 %v6920_v33  ;;  %v8475_v21 = vadd.f32 %v3586_v7, %v3569_v13 }
 0x1a9   : > { %v6661_v27 = vld [vmem:[#allocation5 + $0xb68] sm:$0xf0]  ;;  %3878 = vmatmul.bf16.gmra.mxu3 %v8384_v52 }
 0x1aa   : > { %v7887_v29 = vld [vmem:[#allocation5 + $0xf4c] sm:$0xf]  ;;  %v6664_v38 = vor.u32 %v7759_v23, %v6661_v27  ;;  %3885 = vmatpush.bf16.msrb.mxu0 %v6408_v34 }
 0x1ab   : > { %v7173_v30 = vld [vmem:[#allocation5 + $0xf68] sm:$0xf0] }
 0x1ac   : > { %v7815_v35 = vld [vmem:[#allocation5 + $0xd0c] sm:$0xf]  ;;  %v7176_v40 = vor.u32 %v7887_v29, %v7173_v30  ;;  %3903 = vmatpush.bf16.msrb.mxu1 %v6664_v38 }
 0x1ad   : > { %v6885_v36 = vld [vmem:[#allocation5 + $0xd28] sm:$0xf0] }
 0x1ae   : > { %v7687_v41 = vld [vmem:[#allocation5 + $0x90c] sm:$0xf]  ;;  %v6888_v51 = vor.u32 %v7815_v35, %v6885_v36  ;;  %3939 = vmatpush.bf16.msrb.mxu3 %v7176_v40 }
 0x1af   : > { %v6373_v43 = vld [vmem:[#allocation5 + $0x928] sm:$0xf0] }
 0x1b0   : > { %v7751_v44 = vld [vmem:[#allocation5 + $0xb0c] sm:$0xf]  ;;  %v6376_v55 = vor.u32 %v7687_v41, %v6373_v43  ;;  %3922 = vmatpush.bf16.msrb.mxu2 %v6888_v51  ;;  %v3570_v43 = vpop.f32.mrf.mxu2 }
 0x1b1   : > { %v6629_v45 = vld [vmem:[#allocation5 + $0xb28] sm:$0xf0]  ;;  %v3571_v51 = vadd.f32 %v3570_v43, %v3553_v16  ;;  %v5963_v16 = vld [vmem:[#allocation5 + $0x5d0] sm:$0xf] }
 0x1b2   : > { %v7879_v46 = vld [vmem:[#allocation5 + $0xf0c] sm:$0xf]  ;;  %v6632_v58 = vor.u32 %v7751_v44, %v6629_v45  ;;  %3886 = vmatpush.bf16.msrb.mxu0 %v6376_v55  ;;  %v3588_v44 = vpop.f32.mrf.mxu3  ;;  %v3537_v55 = vpop.f32.mrf.mxu0 }
 0x1b3   : > { %v7141_v50 = vld [vmem:[#allocation5 + $0xf28] sm:$0xf0]  ;;  %v8477_v7 = vadd.f32 %v3588_v44, %v3571_v51  ;;  %v5419_v44 = vld [vmem:[#allocation5 + $0x190] sm:$0xf] }
 0x1b4   : > { %v7807_v37 = vld [vmem:[#allocation5 + $0xccc] sm:$0xf]  ;;  %v7144_v59 = vor.u32 %v7879_v46, %v7141_v50  ;;  %3904 = vmatpush.bf16.msrb.mxu1 %v6632_v58  ;;  %v6187_v51 = vld [vmem:[#allocation5 + $0x790] sm:$0xf] }
 0x1b5   : > { %v6853_v56 = vld [vmem:[#allocation5 + $0xce8] sm:$0xf0] }
 0x1b6   : > { %v7679_v60 = vld [vmem:[#allocation5 + $0x8cc] sm:$0xf]  ;;  %v6856_v17 = vor.u32 %v7807_v37, %v6853_v56  ;;  %3940 = vmatpush.bf16.msrb.mxu3 %v7144_v59  ;;  %v3555_v37 = vpop.f32.mrf.mxu1 }
 0x1b7   : > { %v6341_v0 = vld [vmem:[#allocation5 + $0x8e8] sm:$0xf0]  ;;  %v3556_v58 = vadd.f32 %v3555_v37, %v3537_v55  ;;  %v7644_v55 = vld [vmem:[#allocation5 + $0x7ac] sm:$0xf0] }
 0x1b8   : > { %v7743_v1 = vld [vmem:[#allocation5 + $0xacc] sm:$0xf]  ;;  %v6344_v18 = vor.u32 %v7679_v60, %v6341_v0  ;;  %3923 = vmatpush.bf16.msrb.mxu2 %v6856_v17  ;;  %v7588_v17 = vld [vmem:[#allocation5 + $0x5ec] sm:$0xf0] }
 0x1b9   : > { %v6597_v8 = vld [vmem:[#allocation5 + $0xae8] sm:$0xf0] }
 0x1ba   : > { %v7871_v11 = vld [vmem:[#allocation5 + $0xecc] sm:$0xf]  ;;  %v6600_v22 = vor.u32 %v7743_v1, %v6597_v8  ;;  %3887 = vmatpush.bf16.msrb.mxu0 %v6344_v18  ;;  %v5451_v18 = vld [vmem:[#allocation5 + $0x1d0] sm:$0xf] }
 0x1bb   : > { %v7109_v12 = vld [vmem:[#allocation5 + $0xee8] sm:$0xf0] }
 0x1bc   : > { %v7799_v19 = vld [vmem:[#allocation5 + $0xc8c] sm:$0xf]  ;;  %v7112_v23 = vor.u32 %v7871_v11, %v7109_v12  ;;  %3905 = vmatpush.bf16.msrb.mxu1 %v6600_v22 }
 0x1bd   : > { %v6821_v20 = vld [vmem:[#allocation5 + $0xca8] sm:$0xf0] }
 0x1be   : > { %v7671_v25 = vld [vmem:[#allocation5 + $0x88c] sm:$0xf]  ;;  %v6824_v28 = vor.u32 %v7799_v19, %v6821_v20  ;;  %3941 = vmatpush.bf16.msrb.mxu3 %v7112_v23  ;;  %v7460_v19 = vld [vmem:[#allocation5 + $0x1ec] sm:$0xf0] }
 0x1bf   : > { %v6309_v26 = vld [vmem:[#allocation5 + $0x8a8] sm:$0xf0]  ;;  %v5707_v20 = vld [vmem:[#allocation5 + $0x3d0] sm:$0xf] }
 0x1c0   : > { %v7735_v27 = vld [vmem:[#allocation5 + $0xa8c] sm:$0xf]  ;;  %v6312_v32 = vor.u32 %v7671_v25, %v6309_v26  ;;  %3924 = vmatpush.bf16.msrb.mxu2 %v6824_v28  ;;  %v7524_v25 = vld [vmem:[#allocation5 + $0x3ec] sm:$0xf0]  ;;  %v3591_v28 = vpop.f32.mrf.mxu3 }
 0x1c1   : > { %v6565_v29 = vld [vmem:[#allocation5 + $0xaa8] sm:$0xf0]  ;;  %v6219_v26 = vld [vmem:[#allocation5 + $0x7d0] sm:$0xf] }
 0x1c2   : > { %v7863_v30 = vld [vmem:[#allocation5 + $0xe8c] sm:$0xf]  ;;  %v6568_v35 = vor.u32 %v7735_v27, %v6565_v29  ;;  %3888 = vmatpush.bf16.msrb.mxu0 %v6312_v32  ;;  %v7652_v27 = vld [vmem:[#allocation5 + $0x7ec] sm:$0xf0]  ;;  %v5964_v32 = vor.u32 %v7588_v17, %v5963_v16 }
 0x1c3   : > { %v7077_v31 = vld [vmem:[#allocation5 + $0xea8] sm:$0xf0]  ;;  %v6220_v43 = vor.u32 %v7652_v27, %v6219_v26  ;;  %v7636_v16 = vld [vmem:[#allocation5 + $0x76c] sm:$0xf0] }
 0x1c4   : > { %v7791_v33 = vld [vmem:[#allocation5 + $0xc4c] sm:$0xf]  ;;  %v7080_v36 = vor.u32 %v7863_v30, %v7077_v31  ;;  %3906 = vmatpush.bf16.msrb.mxu1 %v6568_v35  ;;  %v3573_v31 = vpop.f32.mrf.mxu2  ;;  %v7580_v35 = vld [vmem:[#allocation5 + $0x5ac] sm:$0xf0] }
 0x1c5   : > { %v6789_v34 = vld [vmem:[#allocation5 + $0xc68] sm:$0xf0] }
 0x1c6   : > { %v7663_v38 = vld [vmem:[#allocation5 + $0x84c] sm:$0xf]  ;;  %v6792_v59 = vor.u32 %v7791_v33, %v6789_v34  ;;  %3942 = vmatpush.bf16.msrb.mxu3 %v7080_v36  ;;  %v5452_v33 = vor.u32 %v7460_v19, %v5451_v18  ;;  %v5931_v34 = vld [vmem:[#allocation5 + $0x590] sm:$0xf]  ;;  %v3574_v36 = vadd.f32 %v3573_v31, %v3556_v58 }
 0x1c7   : > { %v6277_v40 = vld [vmem:[#allocation5 + $0x868] sm:$0xf0]  ;;  %v5611_v31 = vld [vmem:[#allocation5 + $0x310] sm:$0xf] }
 0x1c8   : > { %v7727_v41 = vld [vmem:[#allocation5 + $0xa4c] sm:$0xf]  ;;  %v6280_v60 = vor.u32 %v7663_v38, %v6277_v40  ;;  %3925 = vmatpush.bf16.msrb.mxu2 %v6792_v59  ;;  %v3539_v38 = vpop.f32.mrf.mxu0  ;;  %v3557_v40 = vpop.f32.mrf.mxu1  ;;  %v8483_v37 = vadd.f32 %v3591_v28, %v3574_v36  ;;  %v5835_v36 = vld [vmem:[#allocation5 + $0x4d0] sm:$0xf] }
 0x1c9   : > { %v6533_v45 = vld [vmem:[#allocation5 + $0xa68] sm:$0xf0]  ;;  %v7556_v38 = vld [vmem:[#allocation5 + $0x4ec] sm:$0xf0] }
 0x1ca   : > { %v7855_v46 = vld [vmem:[#allocation5 + $0xe4c] sm:$0xf]  ;;  %v6536_v8 = vor.u32 %v7727_v41, %v6533_v45  ;;  %3889 = vmatpush.bf16.msrb.mxu0 %v6280_v60  ;;  %v5708_v41 = vor.u32 %v7524_v25, %v5707_v20  ;;  %v7452_v45 = vld [vmem:[#allocation5 + $0x1ac] sm:$0xf0]  ;;  %v6188_v60 = vor.u32 %v7644_v55, %v6187_v51 }
 0x1cb   : > { %v7045_v50 = vld [vmem:[#allocation5 + $0xe68] sm:$0xf0]  ;;  %v5420_v58 = vor.u32 %v7452_v45, %v5419_v44  ;;  %v7564_v25 = vld [vmem:[#allocation5 + $0x52c] sm:$0xf0] }
 0x1cc   : > { %v7783_v56 = vld [vmem:[#allocation5 + $0xc0c] sm:$0xf]  ;;  %v7048_v11 = vor.u32 %v7855_v46, %v7045_v50  ;;  %3907 = vmatpush.bf16.msrb.mxu1 %v6536_v8  ;;  %v5675_v46 = vld [vmem:[#allocation5 + $0x390] sm:$0xf] }
 0x1cd   : > { %v6757_v0 = vld [vmem:[#allocation5 + $0xc28] sm:$0xf0]  ;;  %v7516_v50 = vld [vmem:[#allocation5 + $0x3ac] sm:$0xf0] }
 0x1ce   : > { %v7655_v1 = vld [vmem:[#allocation5 + $0x80c] sm:$0xf]  ;;  %v6760_v22 = vor.u32 %v7783_v56, %v6757_v0  ;;  %3943 = vmatpush.bf16.msrb.mxu3 %v7048_v11  ;;  %v5932_v56 = vor.u32 %v7580_v35, %v5931_v34  ;;  %v5676_v59 = vor.u32 %v7516_v50, %v5675_v46  ;;  %v5899_v0 = vld [vmem:[#allocation5 + $0x550] sm:$0xf] }
 0x1cf   : > { %v6245_v6 = vld [vmem:[#allocation5 + $0x828] sm:$0xf0]  ;;  %v7444_v8 = vld [vmem:[#allocation5 + $0x16c] sm:$0xf0] }
 0x1d0   : > { %v7719_v12 = vld [vmem:[#allocation5 + $0xa0c] sm:$0xf]  ;;  %v6248_v23 = vor.u32 %v7655_v1, %v6245_v6  ;;  %3926 = vmatpush.bf16.msrb.mxu2 %v6760_v22  ;;  %v7572_v1 = vld [vmem:[#allocation5 + $0x56c] sm:$0xf0]  ;;  %v3604_v17 = vpop.f32.mrf.mxu0  ;;  %v3622_v18 = vpop.f32.mrf.mxu1 }
 0x1d1   : > { %v6501_v13 = vld [vmem:[#allocation5 + $0xa28] sm:$0xf0]  ;;  %v5387_v6 = vld [vmem:[#allocation5 + $0x150] sm:$0xf]  ;;  %v3605_v19 = vadd.f32 %v3604_v17, %v8475_v21  ;;  %v5900_v20 = vor.u32 %v7572_v1, %v5899_v0  ;;  %v5836_v1 = vor.u32 %v7556_v38, %v5835_v36 }
 0x1d2   : > { %v7847_v14 = vld [vmem:[#allocation5 + $0xe0c] sm:$0xf]  ;;  %v6504_v29 = vor.u32 %v7719_v12, %v6501_v13  ;;  %3890 = vmatpush.bf16.msrb.mxu0 %v6248_v23  ;;  %v5643_v11 = vld [vmem:[#allocation5 + $0x350] sm:$0xf]  ;;  %v3575_v12 = vpop.f32.mrf.mxu2  ;;  %v3593_v13 = vpop.f32.mrf.mxu3  ;;  %v5388_v22 = vor.u32 %v7444_v8, %v5387_v6 }
 0x1d3   : > { %v7013_v61 = vld [vmem:[#allocation5 + $0xe28] sm:$0xf0]  ;;  %v5867_v23 = vld [vmem:[#allocation5 + $0x510] sm:$0xf]  ;;  %v3623_v28 = vadd.f32 %v3622_v18, %v3605_v19  ;;  %3927 = vmatmul.bf16.vlgmr.msrb.gmra.mxu2 %v8402_v3 }
 0x1d4   : > { %v7016_v30 = vor.u32 %v7847_v14, %v7013_v61  ;;  %3908 = vmatpush.bf16.msrb.mxu1 %v6504_v29  ;;  %3991 = vmatpush.bf16.msra.mxu2 %v5964_v32  ;;  %v7508_v14 = vld [vmem:[#allocation5 + $0x36c] sm:$0xf0]  ;;  %v5868_v21 = vor.u32 %v7564_v25, %v5867_v23 }
 0x1d5   : > { %v6155_v61 = vld [vmem:[#allocation5 + $0x750] sm:$0xf]  ;;  %v5644_v26 = vor.u32 %v7508_v14, %v5643_v11  ;;  %3891 = vmatmul.bf16.vlgmr.msrb.gmra.mxu0 %v8398_v62 }
 0x1d6   : > { %3944 = vmatpush.bf16.msrb.mxu3 %v7016_v30  ;;  %3955 = vmatpush.bf16.msra.mxu0 %v5452_v33  ;;  %v6156_v27 = vor.u32 %v7636_v16, %v6155_v61  ;;  %v5355_v29 = vld [vmem:[#allocation5 + $0x110] sm:$0xf] }
 0x1d7   : > { %v7436_v30 = vld [vmem:[#allocation5 + $0x12c] sm:$0xf0]  ;;  %3909 = vmatmul.bf16.vlgmr.msrb.gmra.mxu1 %v8400_v63 }
 0x1d8   : > { %3973 = vmatpush.bf16.msra.mxu1 %v5708_v41  ;;  %3992 = vmatpush.bf16.msra.mxu2 %v5932_v56  ;;  %v7500_v32 = vld [vmem:[#allocation5 + $0x32c] sm:$0xf0]  ;;  %v5356_v35 = vor.u32 %v7436_v30, %v5355_v29 }
 0x1d9   : > { %v6123_v33 = vld [vmem:[#allocation5 + $0x710] sm:$0xf]  ;;  %3945 = vmatmul.bf16.vlgmr.msrb.gmra.mxu3 %v8404_v4  ;;  %v5612_v40 = vor.u32 %v7500_v32, %v5611_v31 }
 0x1da   : > { %4009 = vmatpush.bf16.msra.mxu3 %v6220_v43  ;;  %3956 = vmatpush.bf16.msra.mxu0 %v5420_v58  ;;  %v7628_v34 = vld [vmem:[#allocation5 + $0x72c] sm:$0xf0]  ;;  %v3640_v46 = vpop.f32.mrf.mxu2  ;;  %v3658_v50 = vpop.f32.mrf.mxu3 }
 0x1db   : > { %v6124_v41 = vor.u32 %v7628_v34, %v6123_v33  ;;  %v5323_v43 = vld [vmem:[#allocation5 + $0xd0] sm:$0xf]  ;;  %v3641_v58 = vadd.f32 %v3640_v46, %v3623_v28 }
 0x1dc   : > { %3974 = vmatpush.bf16.msra.mxu1 %v5676_v59  ;;  %3993 = vmatpush.bf16.msra.mxu2 %v5900_v20  ;;  %v7428_v44 = vld [vmem:[#allocation5 + $0xec] sm:$0xf0]  ;;  %v3606_v59 = vpop.f32.mrf.mxu0 }
 0x1dd   : > { %v5579_v45 = vld [vmem:[#allocation5 + $0x2d0] sm:$0xf]  ;;  %v3607_v0 = vadd.f32 %v3606_v59, %v8477_v7  ;;  %v5324_v6 = vor.u32 %v7428_v44, %v5323_v43  ;;  %v8491_v12 = vadd.f32 %v3658_v50, %v3641_v58 }
 0x1de   : > { %4010 = vmatpush.bf16.msra.mxu3 %v6188_v60  ;;  %3957 = vmatpush.bf16.msra.mxu0 %v5388_v22  ;;  %v7492_v51 = vld [vmem:[#allocation5 + $0x2ec] sm:$0xf0]  ;;  %v3624_v60 = vpop.f32.mrf.mxu1 }
 0x1df   : > { %v6091_v55 = vld [vmem:[#allocation5 + $0x6d0] sm:$0xf]  ;;  %v5580_v13 = vor.u32 %v7492_v51, %v5579_v45  ;;  %v3625_v18 = vadd.f32 %v3624_v60, %v3607_v0 }
 0x1e0   : > { %3975 = vmatpush.bf16.msra.mxu1 %v5644_v26  ;;  %v7620_v56 = vld [vmem:[#allocation5 + $0x6ec] sm:$0xf0]  ;;  %3994 = vmatpush.bf16.msra.mxu2 %v5868_v21 }
 0x1e1   : > { %v5803_v8 = vld [vmem:[#allocation5 + $0x490] sm:$0xf]  ;;  %v6092_v14 = vor.u32 %v7620_v56, %v6091_v55 }
 0x1e2   : > { %4011 = vmatpush.bf16.msra.mxu3 %v6156_v27  ;;  %3958 = vmatpush.bf16.msra.mxu0 %v5356_v35  ;;  %v7548_v11 = vld [vmem:[#allocation5 + $0x4ac] sm:$0xf0]  ;;  %v3642_v32 = vpop.f32.mrf.mxu2  ;;  %v3660_v33 = vpop.f32.mrf.mxu3 }
 0x1e3   : > { %v5291_v61 = vld [vmem:[#allocation5 + $0x90] sm:$0xf]  ;;  %v5804_v7 = vor.u32 %v7548_v11, %v5803_v8  ;;  %v3643_v36 = vadd.f32 %v3642_v32, %v3625_v18  ;;  %3932 = vmatmul.bf16.gmra.mxu2 %v8416_v9 }
 0x1e4   : > { %3976 = vmatpush.bf16.msra.mxu1 %v5612_v40  ;;  %v7420_v16 = vld [vmem:[#allocation5 + $0xac] sm:$0xf0]  ;;  %3995 = vmatpush.bf16.msra.mxu2 %v5836_v1  ;;  %v3609_v38 = vpop.f32.mrf.mxu0 }
 0x1e5   : > { %v5547_v17 = vld [vmem:[#allocation5 + $0x290] sm:$0xf]  ;;  %v5292_v23 = vor.u32 %v7420_v16, %v5291_v61  ;;  %v3610_v43 = vadd.f32 %v3609_v38, %v8483_v37  ;;  %v8494_v55 = vadd.f32 %v3660_v33, %v3643_v36  ;;  %3896 = vmatmul.bf16.gmra.mxu0 %v8412_v2 }
 0x1e6   : > { %4012 = vmatpush.bf16.msra.mxu3 %v6124_v41  ;;  %v7484_v19 = vld [vmem:[#allocation5 + $0x2ac] sm:$0xf0]  ;;  %3959 = vmatpush.bf16.msra.mxu0 %v5324_v6  ;;  %v3627_v40 = vpop.f32.mrf.mxu1 }
 0x1e7   : > { %v6059_v20 = vld [vmem:[#allocation5 + $0x690] sm:$0xf]  ;;  %v5548_v27 = vor.u32 %v7484_v19, %v5547_v17  ;;  %v3628_v1 = vadd.f32 %v3627_v40, %v3610_v43  ;;  %3914 = vmatmul.bf16.gmra.mxu1 %v8414_v5 }
 0x1e8   : > { %v7612_v22 = vld [vmem:[#allocation5 + $0x6ac] sm:$0xf0]  ;;  %3977 = vmatpush.bf16.msra.mxu1 %v5580_v13  ;;  %3996 = vmatpush.bf16.msra.mxu2 %v5804_v7 }
 0x1e9   : > { %v5771_v25 = vld [vmem:[#allocation5 + $0x450] sm:$0xf]  ;;  %v6060_v29 = vor.u32 %v7612_v22, %v6059_v20  ;;  %3950 = vmatmul.bf16.gmra.mxu3 %v8418_v10 }
 0x1ea   : > { %v7540_v26 = vld [vmem:[#allocation5 + $0x46c] sm:$0xf0]  ;;  %4013 = vmatpush.bf16.msra.mxu3 %v6092_v14  ;;  %3960 = vmatpush.bf16.msra.mxu0 %v5292_v23  ;;  %v3645_v7 = vpop.f32.mrf.mxu2  ;;  %v3663_v23 = vpop.f32.mrf.mxu3 }
 0x1eb   : > { %v5259_v30 = vld [vmem:[#allocation5 + $0x50] sm:$0xf]  ;;  %v5772_v44 = vor.u32 %v7540_v26, %v5771_v25 }
 0x1ec   : > { %v7412_v31 = vld [vmem:[#allocation5 + $0x6c] sm:$0xf0]  ;;  %3978 = vmatpush.bf16.msra.mxu1 %v5548_v27 }
 0x1ed   : > { %v5515_v28 = vld [vmem:[#allocation5 + $0x250] sm:$0xf]  ;;  %v5260_v45 = vor.u32 %v7412_v31, %v5259_v30  ;;  %3997 = vmatpush.bf16.msra.mxu2 %v5772_v44  ;;  %v3646_v30 = vadd.f32 %v3645_v7, %v3628_v1  ;;  %v3611_v31 = vpop.f32.mrf.mxu0 }
 0x1ee   : > { %v7476_v34 = vld [vmem:[#allocation5 + $0x26c] sm:$0xf0]  ;;  %4014 = vmatpush.bf16.msra.mxu3 %v6060_v29 }
 0x1ef   : > { %v6027_v21 = vld [vmem:[#allocation5 + $0x650] sm:$0xf]  ;;  %v5516_v56 = vor.u32 %v7476_v34, %v5515_v28  ;;  %3961 = vmatpush.bf16.msra.mxu0 %v5260_v45  ;;  %v3629_v28 = vpop.f32.mrf.mxu1 }
 0x1f0   : > { %v7604_v35 = vld [vmem:[#allocation5 + $0x66c] sm:$0xf0] }
 0x1f1   : > { %v5739_v41 = vld [vmem:[#allocation5 + $0x410] sm:$0xf]  ;;  %v6028_v58 = vor.u32 %v7604_v35, %v6027_v21  ;;  %3979 = vmatpush.bf16.msra.mxu1 %v5516_v56 }
 0x1f2   : > { %v7532_v46 = vld [vmem:[#allocation5 + $0x42c] sm:$0xf0] }
 0x1f3   : > { %v5227_v50 = vld [vmem:[#allocation5 + $0x10] sm:$0xf]  ;;  %v5740_v61 = vor.u32 %v7532_v46, %v5739_v41  ;;  %4015 = vmatpush.bf16.msra.mxu3 %v6028_v58  ;;  %v8500_v41 = vadd.f32 %v3663_v23, %v3646_v30 }
 0x1f4   : > { %v7404_v51 = vld [vmem:[#allocation5 + $0x2c] sm:$0xf0] }
 0x1f5   : > { %v5483_v59 = vld [vmem:[#allocation5 + $0x210] sm:$0xf]  ;;  %v5228_v16 = vor.u32 %v7404_v51, %v5227_v50  ;;  %3998 = vmatpush.bf16.msra.mxu2 %v5740_v61 }
 0x1f6   : > { %v7468_v60 = vld [vmem:[#allocation5 + $0x22c] sm:$0xf0] }
 0x1f7   : > { %v5995_v0 = vld [vmem:[#allocation5 + $0x610] sm:$0xf]  ;;  %v5484_v20 = vor.u32 %v7468_v60, %v5483_v59  ;;  %3962 = vmatpush.bf16.msra.mxu0 %v5228_v16  ;;  %v3647_v60 = vpop.f32.mrf.mxu2 }
 0x1f8   : > { %v7596_v37 = vld [vmem:[#allocation5 + $0x62c] sm:$0xf0]  ;;  %3999 = vmatmul.bf16.vlgmr.msra.gmra.mxu2 %v8368_v54 }
 0x1f9   : > { %v6987_v6 = vld [vmem:[#allocation5 + $0xdd0] sm:$0xf]  ;;  %v5996_v22 = vor.u32 %v7596_v37, %v5995_v0  ;;  %3980 = vmatpush.bf16.msra.mxu1 %v5484_v20  ;;  %v3665_v0 = vpop.f32.mrf.mxu3 }
 0x1fa   : > { %v7844_v8 = vld [vmem:[#allocation5 + $0xdec] sm:$0xf0]  ;;  %3963 = vmatmul.bf16.vlgmr.msra.gmra.mxu0 %v8364_v48 }
 0x1fb   : > { %v6475_v11 = vld [vmem:[#allocation5 + $0x9d0] sm:$0xf]  ;;  %v6988_v25 = vor.u32 %v7844_v8, %v6987_v6  ;;  %4016 = vmatpush.bf16.msra.mxu3 %v5996_v22  ;;  %v3676_v8 = vpop.f32.mrf.mxu0 }
 0x1fc   : > { %v7716_v13 = vld [vmem:[#allocation5 + $0x9ec] sm:$0xf0]  ;;  %3981 = vmatmul.bf16.vlgmr.msra.gmra.mxu1 %v8366_v53 }
 0x1fd   : > { %v6731_v14 = vld [vmem:[#allocation5 + $0xbd0] sm:$0xf]  ;;  %v6476_v26 = vor.u32 %v7716_v13, %v6475_v11  ;;  %4063 = vmatpush.bf16.msrb.mxu2 %v6988_v25  ;;  %v3694_v11 = vpop.f32.mrf.mxu1 }
 0x1fe   : > { %v7780_v17 = vld [vmem:[#allocation5 + $0xbec] sm:$0xf0]  ;;  %v3695_v13 = vadd.f32 %v3694_v11, %v3676_v8  ;;  %4017 = vmatmul.bf16.vlgmr.msra.gmra.mxu3 %v8370_v57 }
 0x1ff   : > { %v7243_v18 = vld [vmem:[#allocation5 + $0xfd0] sm:$0xf]  ;;  %v6732_v32 = vor.u32 %v7780_v17, %v6731_v14  ;;  %4027 = vmatpush.bf16.msrb.mxu0 %v6476_v26 }
 0x200   : > { %v7908_v19 = vld [vmem:[#allocation5 + $0xfec] sm:$0xf0] }
 0x201   : > { %v6955_v27 = vld [vmem:[#allocation5 + $0xd90] sm:$0xf]  ;;  %v7244_v33 = vor.u32 %v7908_v19, %v7243_v18  ;;  %4045 = vmatpush.bf16.msrb.mxu1 %v6732_v32 }
 0x202   : > { %v7836_v29 = vld [vmem:[#allocation5 + $0xdac] sm:$0xf0] }
 0x203   : > { %v6443_v34 = vld [vmem:[#allocation5 + $0x990] sm:$0xf]  ;;  %v6956_v43 = vor.u32 %v7836_v29, %v6955_v27  ;;  %4081 = vmatpush.bf16.msrb.mxu3 %v7244_v33 }
 0x204   : > { %v7708_v21 = vld [vmem:[#allocation5 + $0x9ac] sm:$0xf0] }
 0x205   : > { %v6699_v35 = vld [vmem:[#allocation5 + $0xb90] sm:$0xf]  ;;  %v6444_v44 = vor.u32 %v7708_v21, %v6443_v34  ;;  %4064 = vmatpush.bf16.msrb.mxu2 %v6956_v43 }
 0x206   : > { %v7772_v36 = vld [vmem:[#allocation5 + $0xbac] sm:$0xf0] }
 0x207   : > { %v7211_v38 = vld [vmem:[#allocation5 + $0xf90] sm:$0xf]  ;;  %v6700_v45 = vor.u32 %v7772_v36, %v6699_v35  ;;  %4028 = vmatpush.bf16.msrb.mxu0 %v6444_v44  ;;  %v3712_v35 = vpop.f32.mrf.mxu2  ;;  %v3730_v36 = vpop.f32.mrf.mxu3 }
 0x208   : > { %v7900_v40 = vld [vmem:[#allocation5 + $0xfac] sm:$0xf0]  ;;  %v3713_v44 = vadd.f32 %v3712_v35, %v3695_v13  ;;  %4004 = vmatmul.bf16.gmra.mxu2 %v8382_v49 }
 0x209   : > { %v7212_v46 = vor.u32 %v7900_v40, %v7211_v38  ;;  %v6923_v50 = vld [vmem:[#allocation5 + $0xd50] sm:$0xf]  ;;  %4046 = vmatpush.bf16.msrb.mxu1 %v6700_v45  ;;  %v3678_v45 = vpop.f32.mrf.mxu0 }
 0x20a   : > { %v7828_v51 = vld [vmem:[#allocation5 + $0xd6c] sm:$0xf0]  ;;  %v8506_v60 = vadd.f32 %v3730_v36, %v3713_v44  ;;  %3968 = vmatmul.bf16.gmra.mxu0 %v8378_v42 }
 0x20b   : > { %v6411_v56 = vld [vmem:[#allocation5 + $0x950] sm:$0xf]  ;;  %4082 = vmatpush.bf16.msrb.mxu3 %v7212_v46  ;;  %v6924_v14 = vor.u32 %v7828_v51, %v6923_v50  ;;  %v3696_v46 = vpop.f32.mrf.mxu1 }
 0x20c   : > { %v7700_v58 = vld [vmem:[#allocation5 + $0x96c] sm:$0xf0]  ;;  %v3697_v50 = vadd.f32 %v3696_v46, %v3678_v45  ;;  %3986 = vmatmul.bf16.gmra.mxu1 %v8380_v47 }
 0x20d   : > { %v6667_v59 = vld [vmem:[#allocation5 + $0xb50] sm:$0xf]  ;;  %v6412_v61 = vor.u32 %v7700_v58, %v6411_v56  ;;  %4065 = vmatpush.bf16.msrb.mxu2 %v6924_v14 }
 0x20e   : > { %v7764_v1 = vld [vmem:[#allocation5 + $0xb6c] sm:$0xf0]  ;;  %4022 = vmatmul.bf16.gmra.mxu3 %v8384_v52 }
 0x20f   : > { %v7179_v37 = vld [vmem:[#allocation5 + $0xf50] sm:$0xf]  ;;  %v6668_v18 = vor.u32 %v7764_v1, %v6667_v59  ;;  %4029 = vmatpush.bf16.msrb.mxu0 %v6412_v61 }
 0x210   : > { %v7892_v6 = vld [vmem:[#allocation5 + $0xf6c] sm:$0xf0] }
 0x211   : > { %v6891_v16 = vld [vmem:[#allocation5 + $0xd10] sm:$0xf]  ;;  %v7180_v19 = vor.u32 %v7892_v6, %v7179_v37  ;;  %4047 = vmatpush.bf16.msrb.mxu1 %v6668_v18 }
 0x212   : > { %v7820_v17 = vld [vmem:[#allocation5 + $0xd2c] sm:$0xf0] }
 0x213   : > { %v6379_v20 = vld [vmem:[#allocation5 + $0x910] sm:$0xf]  ;;  %v6892_v27 = vor.u32 %v7820_v17, %v6891_v16  ;;  %4083 = vmatpush.bf16.msrb.mxu3 %v7180_v19 }
 0x214   : > { %v7692_v22 = vld [vmem:[#allocation5 + $0x92c] sm:$0xf0] }
 0x215   : > { %v6635_v7 = vld [vmem:[#allocation5 + $0xb10] sm:$0xf]  ;;  %v6380_v29 = vor.u32 %v7692_v22, %v6379_v20  ;;  %4066 = vmatpush.bf16.msrb.mxu2 %v6892_v27 }
 0x216   : > { %v7756_v23 = vld [vmem:[#allocation5 + $0xb2c] sm:$0xf0] }
 0x217   : > { %v7147_v25 = vld [vmem:[#allocation5 + $0xf10] sm:$0xf]  ;;  %v6636_v28 = vor.u32 %v7756_v23, %v6635_v7  ;;  %4030 = vmatpush.bf16.msrb.mxu0 %v6380_v29 }
 0x218   : > { %v7884_v26 = vld [vmem:[#allocation5 + $0xf2c] sm:$0xf0] }
 0x219   : > { %v6859_v30 = vld [vmem:[#allocation5 + $0xcd0] sm:$0xf]  ;;  %v7148_v32 = vor.u32 %v7884_v26, %v7147_v25  ;;  %4048 = vmatpush.bf16.msrb.mxu1 %v6636_v28  ;;  %v3714_v25 = vpop.f32.mrf.mxu2  ;;  %v3732_v26 = vpop.f32.mrf.mxu3 }
 0x21a   : > { %v7812_v31 = vld [vmem:[#allocation5 + $0xcec] sm:$0xf0]  ;;  %v3681_v28 = vpop.f32.mrf.mxu0 }
 0x21b   : > { %v6347_v33 = vld [vmem:[#allocation5 + $0x8d0] sm:$0xf]  ;;  %v6860_v51 = vor.u32 %v7812_v31, %v6859_v30  ;;  %4084 = vmatpush.bf16.msrb.mxu3 %v7148_v32  ;;  %v3715_v31 = vadd.f32 %v3714_v25, %v3697_v50  ;;  %v3699_v32 = vpop.f32.mrf.mxu1 }
 0x21c   : > { %v7684_v34 = vld [vmem:[#allocation5 + $0x8ec] sm:$0xf0] }
 0x21d   : > { %v6603_v21 = vld [vmem:[#allocation5 + $0xad0] sm:$0xf]  ;;  %v6348_v56 = vor.u32 %v7684_v34, %v6347_v33  ;;  %4067 = vmatpush.bf16.msrb.mxu2 %v6860_v51  ;;  %v3700_v34 = vadd.f32 %v3699_v32, %v3681_v28  ;;  %v7512_v28 = vld [vmem:[#allocation5 + $0x394] sm:$0xf] }
 0x21e   : > { %v7748_v38 = vld [vmem:[#allocation5 + $0xaec] sm:$0xf0]  ;;  %v5677_v32 = vld [vmem:[#allocation5 + $0x3b0] sm:$0xf0] }
 0x21f   : > { %v7115_v40 = vld [vmem:[#allocation5 + $0xed0] sm:$0xf]  ;;  %v6604_v0 = vor.u32 %v7748_v38, %v6603_v21  ;;  %4031 = vmatpush.bf16.msrb.mxu0 %v6348_v56 }
 0x220   : > { %v7876_v43 = vld [vmem:[#allocation5 + $0xeec] sm:$0xf0] }
 0x221   : > { %v6827_v58 = vld [vmem:[#allocation5 + $0xc90] sm:$0xf]  ;;  %v7116_v1 = vor.u32 %v7876_v43, %v7115_v40  ;;  %4049 = vmatpush.bf16.msrb.mxu1 %v6604_v0  ;;  %v8508_v43 = vadd.f32 %v3732_v26, %v3715_v31  ;;  %v7456_v0 = vld [vmem:[#allocation5 + $0x1d4] sm:$0xf] }
 0x222   : > { %v7804_v59 = vld [vmem:[#allocation5 + $0xcac] sm:$0xf0]  ;;  %v3683_v25 = vpop.f32.mrf.mxu0  ;;  %v5421_v31 = vld [vmem:[#allocation5 + $0x1b0] sm:$0xf0] }
 0x223   : > { %v6315_v37 = vld [vmem:[#allocation5 + $0x890] sm:$0xf]  ;;  %v6828_v61 = vor.u32 %v7804_v59, %v6827_v58  ;;  %4085 = vmatpush.bf16.msrb.mxu3 %v7116_v1  ;;  %v7584_v58 = vld [vmem:[#allocation5 + $0x5d4] sm:$0xf]  ;;  %v3701_v26 = vpop.f32.mrf.mxu1 }
 0x224   : > { %v7676_v6 = vld [vmem:[#allocation5 + $0x8ac] sm:$0xf0]  ;;  %v5965_v59 = vld [vmem:[#allocation5 + $0x5f0] sm:$0xf0] }
 0x225   : > { %v6571_v8 = vld [vmem:[#allocation5 + $0xa90] sm:$0xf]  ;;  %v6316_v16 = vor.u32 %v7676_v6, %v6315_v37  ;;  %4068 = vmatpush.bf16.msrb.mxu2 %v6828_v61  ;;  %v5453_v1 = vld [vmem:[#allocation5 + $0x1f0] sm:$0xf0] }
 0x226   : > { %v7740_v11 = vld [vmem:[#allocation5 + $0xaac] sm:$0xf0]  ;;  %v7520_v37 = vld [vmem:[#allocation5 + $0x3d4] sm:$0xf] }
 0x227   : > { %v7083_v13 = vld [vmem:[#allocation5 + $0xe90] sm:$0xf]  ;;  %v6572_v19 = vor.u32 %v7740_v11, %v6571_v8  ;;  %4032 = vmatpush.bf16.msrb.mxu0 %v6316_v16  ;;  %v5709_v11 = vld [vmem:[#allocation5 + $0x3f0] sm:$0xf0] }
 0x228   : > { %v7868_v14 = vld [vmem:[#allocation5 + $0xeac] sm:$0xf0]  ;;  %v6125_v25 = vld [vmem:[#allocation5 + $0x730] sm:$0xf0] }
 0x229   : > { %v6795_v17 = vld [vmem:[#allocation5 + $0xc50] sm:$0xf]  ;;  %v7084_v20 = vor.u32 %v7868_v14, %v7083_v13  ;;  %4050 = vmatpush.bf16.msrb.mxu1 %v6572_v19  ;;  %v7648_v13 = vld [vmem:[#allocation5 + $0x7d4] sm:$0xf]  ;;  %v5968_v19 = vor.u32 %v7584_v58, %v5965_v59 }
 0x22a   : > { %v7796_v18 = vld [vmem:[#allocation5 + $0xc6c] sm:$0xf0]  ;;  %v6221_v14 = vld [vmem:[#allocation5 + $0x7f0] sm:$0xf0] }
 0x22b   : > { %v6283_v22 = vld [vmem:[#allocation5 + $0x850] sm:$0xf]  ;;  %v6796_v21 = vor.u32 %v7796_v18, %v6795_v17  ;;  %4086 = vmatpush.bf16.msrb.mxu3 %v7084_v20  ;;  %v3717_v17 = vpop.f32.mrf.mxu2  ;;  %v3735_v18 = vpop.f32.mrf.mxu3  ;;  %v5456_v20 = vor.u32 %v7456_v0, %v5453_v1  ;;  %v5645_v59 = vld [vmem:[#allocation5 + $0x370] sm:$0xf0] }
 0x22c   : > { %v7668_v7 = vld [vmem:[#allocation5 + $0x86c] sm:$0xf0]  ;;  %v7632_v0 = vld [vmem:[#allocation5 + $0x754] sm:$0xf] }
 0x22d   : > { %v6539_v23 = vld [vmem:[#allocation5 + $0xa50] sm:$0xf]  ;;  %v6284_v35 = vor.u32 %v7668_v7, %v6283_v22  ;;  %4069 = vmatpush.bf16.msrb.mxu2 %v6796_v21  ;;  %v7576_v22 = vld [vmem:[#allocation5 + $0x594] sm:$0xf] }
 0x22e   : > { %v7732_v27 = vld [vmem:[#allocation5 + $0xa6c] sm:$0xf0]  ;;  %v5933_v7 = vld [vmem:[#allocation5 + $0x5b0] sm:$0xf0] }
 0x22f   : > { %v7051_v29 = vld [vmem:[#allocation5 + $0xe50] sm:$0xf]  ;;  %v6540_v44 = vor.u32 %v7732_v27, %v6539_v23  ;;  %4033 = vmatpush.bf16.msrb.mxu0 %v6284_v35  ;;  %v3718_v23 = vadd.f32 %v3717_v17, %v3700_v34  ;;  %v5712_v27 = vor.u32 %v7520_v37, %v5709_v11  ;;  %v6189_v21 = vld [vmem:[#allocation5 + $0x7b0] sm:$0xf0]  ;;  %v3748_v37 = vpop.f32.mrf.mxu0 }
 0x230   : > { %v7860_v30 = vld [vmem:[#allocation5 + $0xe6c] sm:$0xf0]  ;;  %v6157_v1 = vld [vmem:[#allocation5 + $0x770] sm:$0xf0] }
 0x231   : > { %v6763_v33 = vld [vmem:[#allocation5 + $0xc10] sm:$0xf]  ;;  %v7052_v45 = vor.u32 %v7860_v30, %v7051_v29  ;;  %4051 = vmatpush.bf16.msrb.mxu1 %v6540_v44  ;;  %v6224_v29 = vor.u32 %v7648_v13, %v6221_v14  ;;  %v7448_v30 = vld [vmem:[#allocation5 + $0x194] sm:$0xf]  ;;  %v8514_v35 = vadd.f32 %v3735_v18, %v3718_v23  ;;  %v6160_v17 = vor.u32 %v7632_v0, %v6157_v1 }
 0x232   : > { %v7788_v36 = vld [vmem:[#allocation5 + $0xc2c] sm:$0xf0]  ;;  %v5424_v34 = vor.u32 %v7448_v30, %v5421_v31  ;;  %v7568_v44 = vld [vmem:[#allocation5 + $0x554] sm:$0xf] }
 0x233   : > { %v6251_v38 = vld [vmem:[#allocation5 + $0x810] sm:$0xf]  ;;  %v6764_v6 = vor.u32 %v7788_v36, %v6763_v33  ;;  %4087 = vmatpush.bf16.msrb.mxu3 %v7052_v45  ;;  %v7640_v33 = vld [vmem:[#allocation5 + $0x794] sm:$0xf]  ;;  %v5936_v36 = vor.u32 %v7576_v22, %v5933_v7  ;;  %v3737_v58 = vpop.f32.mrf.mxu3 }
 0x234   : > { %v7660_v40 = vld [vmem:[#allocation5 + $0x82c] sm:$0xf0]  ;;  %v5901_v45 = vld [vmem:[#allocation5 + $0x570] sm:$0xf0] }
 0x235   : > { %v6507_v46 = vld [vmem:[#allocation5 + $0xa10] sm:$0xf]  ;;  %v6252_v8 = vor.u32 %v7660_v40, %v6251_v38  ;;  %4070 = vmatpush.bf16.msrb.mxu2 %v6764_v6  ;;  %v5680_v38 = vor.u32 %v7512_v28, %v5677_v32  ;;  %v6192_v40 = vor.u32 %v7640_v33, %v6189_v21  ;;  %v3766_v6 = vpop.f32.mrf.mxu1  ;;  %v5904_v11 = vor.u32 %v7568_v44, %v5901_v45  ;;  %v7560_v14 = vld [vmem:[#allocation5 + $0x514] sm:$0xf] }
 0x236   : > { %v7724_v51 = vld [vmem:[#allocation5 + $0xa2c] sm:$0xf0]  ;;  %v7432_v18 = vld [vmem:[#allocation5 + $0x114] sm:$0xf] }
 0x237   : > { %v7019_v50 = vld [vmem:[#allocation5 + $0xe10] sm:$0xf]  ;;  %v6508_v61 = vor.u32 %v7724_v51, %v6507_v46  ;;  %4034 = vmatpush.bf16.msrb.mxu0 %v6252_v8  ;;  %v7440_v46 = vld [vmem:[#allocation5 + $0x154] sm:$0xf]  ;;  %v3749_v8 = vadd.f32 %v3748_v37, %v8506_v60  ;;  %v3750_v45 = vpop.f32.mrf.mxu0 }
 0x238   : > { %v7852_v56 = vld [vmem:[#allocation5 + $0xe2c] sm:$0xf0]  ;;  %v5389_v51 = vld [vmem:[#allocation5 + $0x170] sm:$0xf0]  ;;  %4071 = vmatmul.bf16.vlgmr.msrb.gmra.mxu2 %v8402_v3 }
 0x239   : > { %v7020_v16 = vor.u32 %v7852_v56, %v7019_v50  ;;  %4052 = vmatpush.bf16.msrb.mxu1 %v6508_v61  ;;  %4135 = vmatpush.bf16.msra.mxu2 %v5968_v19  ;;  %v7504_v50 = vld [vmem:[#allocation5 + $0x354] sm:$0xf]  ;;  %v3719_v56 = vpop.f32.mrf.mxu2  ;;  %v5392_v13 = vor.u32 %v7440_v46, %v5389_v51  ;;  %v3767_v22 = vadd.f32 %v3766_v6, %v3749_v8 }
 0x23a   : > { %v5869_v61 = vld [vmem:[#allocation5 + $0x530] sm:$0xf0]  ;;  %4035 = vmatmul.bf16.vlgmr.msrb.gmra.mxu0 %v8398_v62  ;;  %v3751_v51 = vadd.f32 %v3750_v45, %v8508_v43 }
 0x23b   : > { %4088 = vmatpush.bf16.msrb.mxu3 %v7020_v16  ;;  %4099 = vmatpush.bf16.msra.mxu0 %v5456_v20  ;;  %v5648_v16 = vor.u32 %v7504_v50, %v5645_v59  ;;  %v5357_v19 = vld [vmem:[#allocation5 + $0x130] sm:$0xf0]  ;;  %v5872_v60 = vor.u32 %v7560_v14, %v5869_v61 }
 0x23c   : > { %v7496_v20 = vld [vmem:[#allocation5 + $0x314] sm:$0xf]  ;;  %4053 = vmatmul.bf16.vlgmr.msrb.gmra.mxu1 %v8400_v63  ;;  %v5360_v26 = vor.u32 %v7432_v18, %v5357_v19 }
 0x23d   : > { %4117 = vmatpush.bf16.msra.mxu1 %v5712_v27  ;;  %4136 = vmatpush.bf16.msra.mxu2 %v5936_v36  ;;  %v5613_v7 = vld [vmem:[#allocation5 + $0x330] sm:$0xf0]  ;;  %v3802_v36 = vpop.f32.mrf.mxu3  ;;  %v3768_v46 = vpop.f32.mrf.mxu1 }
 0x23e   : > { %v7624_v23 = vld [vmem:[#allocation5 + $0x714] sm:$0xf]  ;;  %4089 = vmatmul.bf16.vlgmr.msrb.gmra.mxu3 %v8404_v4  ;;  %v5616_v30 = vor.u32 %v7496_v20, %v5613_v7 }
 0x23f   : > { %4153 = vmatpush.bf16.msra.mxu3 %v6224_v29  ;;  %4100 = vmatpush.bf16.msra.mxu0 %v5424_v34  ;;  %v7552_v27 = vld [vmem:[#allocation5 + $0x4d4] sm:$0xf]  ;;  %v6128_v31 = vor.u32 %v7624_v23, %v6125_v25 }
 0x240   : > { %v5837_v29 = vld [vmem:[#allocation5 + $0x4f0] sm:$0xf0] }
 0x241   : > { %4118 = vmatpush.bf16.msra.mxu1 %v5680_v38  ;;  %4137 = vmatpush.bf16.msra.mxu2 %v5904_v11  ;;  %v7424_v28 = vld [vmem:[#allocation5 + $0xd4] sm:$0xf]  ;;  %v3784_v21 = vpop.f32.mrf.mxu2  ;;  %v5840_v50 = vor.u32 %v7552_v27, %v5837_v29 }
 0x242   : > { %v5325_v32 = vld [vmem:[#allocation5 + $0xf0] sm:$0xf0]  ;;  %v3785_v44 = vadd.f32 %v3784_v21, %v3767_v22 }
 0x243   : > { %4154 = vmatpush.bf16.msra.mxu3 %v6192_v40  ;;  %4101 = vmatpush.bf16.msra.mxu0 %v5392_v13  ;;  %v7488_v33 = vld [vmem:[#allocation5 + $0x2d4] sm:$0xf]  ;;  %v5328_v56 = vor.u32 %v7424_v28, %v5325_v32  ;;  %v3769_v13 = vadd.f32 %v3768_v46, %v3751_v51  ;;  %v3753_v28 = vpop.f32.mrf.mxu0 }
 0x244   : > { %v5581_v34 = vld [vmem:[#allocation5 + $0x2f0] sm:$0xf0]  ;;  %v8522_v0 = vadd.f32 %v3802_v36, %v3785_v44  ;;  %v3754_v21 = vadd.f32 %v3753_v28, %v8514_v35 }
 0x245   : > { %4119 = vmatpush.bf16.msra.mxu1 %v5648_v16  ;;  %v7616_v38 = vld [vmem:[#allocation5 + $0x6d4] sm:$0xf]  ;;  %4138 = vmatpush.bf16.msra.mxu2 %v5872_v60  ;;  %v5584_v1 = vor.u32 %v7488_v33, %v5581_v34  ;;  %v3771_v32 = vpop.f32.mrf.mxu1 }
 0x246   : > { %v6093_v40 = vld [vmem:[#allocation5 + $0x6f0] sm:$0xf0] }
 0x247   : > { %4155 = vmatpush.bf16.msra.mxu3 %v6160_v17  ;;  %4102 = vmatpush.bf16.msra.mxu0 %v5360_v26  ;;  %v7544_v58 = vld [vmem:[#allocation5 + $0x494] sm:$0xf]  ;;  %v6096_v37 = vor.u32 %v7616_v38, %v6093_v40  ;;  %v3804_v26 = vpop.f32.mrf.mxu3 }
 0x248   : > { %v5805_v59 = vld [vmem:[#allocation5 + $0x4b0] sm:$0xf0]  ;;  %4076 = vmatmul.bf16.gmra.mxu2 %v8416_v9 }
 0x249   : > { %4120 = vmatpush.bf16.msra.mxu1 %v5616_v30  ;;  %v7416_v6 = vld [vmem:[#allocation5 + $0x94] sm:$0xf]  ;;  %4139 = vmatpush.bf16.msra.mxu2 %v5840_v50  ;;  %v5808_v43 = vor.u32 %v7544_v58, %v5805_v59  ;;  %v3786_v60 = vpop.f32.mrf.mxu2  ;;  %v3772_v59 = vadd.f32 %v3771_v32, %v3754_v21 }
 0x24a   : > { %v5293_v8 = vld [vmem:[#allocation5 + $0xb0] sm:$0xf0]  ;;  %4040 = vmatmul.bf16.gmra.mxu0 %v8412_v2 }
 0x24b   : > { %4156 = vmatpush.bf16.msra.mxu3 %v6128_v31  ;;  %v7480_v11 = vld [vmem:[#allocation5 + $0x294] sm:$0xf]  ;;  %4103 = vmatpush.bf16.msra.mxu0 %v5328_v56  ;;  %v5296_v17 = vor.u32 %v7416_v6, %v5293_v8  ;;  %v3787_v31 = vadd.f32 %v3786_v60, %v3769_v13 }
 0x24c   : > { %v5549_v14 = vld [vmem:[#allocation5 + $0x2b0] sm:$0xf0]  ;;  %4058 = vmatmul.bf16.gmra.mxu1 %v8414_v5 }
 0x24d   : > { %v7608_v61 = vld [vmem:[#allocation5 + $0x694] sm:$0xf]  ;;  %4121 = vmatpush.bf16.msra.mxu1 %v5584_v1  ;;  %v5552_v20 = vor.u32 %v7480_v11, %v5549_v14  ;;  %4140 = vmatpush.bf16.msra.mxu2 %v5808_v43  ;;  %v8525_v45 = vadd.f32 %v3804_v26, %v3787_v31  ;;  %v3755_v26 = vpop.f32.mrf.mxu0 }
 0x24e   : > { %v6061_v16 = vld [vmem:[#allocation5 + $0x6b0] sm:$0xf0]  ;;  %4094 = vmatmul.bf16.gmra.mxu3 %v8418_v10 }
 0x24f   : > { %v7536_v18 = vld [vmem:[#allocation5 + $0x454] sm:$0xf]  ;;  %4157 = vmatpush.bf16.msra.mxu3 %v6096_v37  ;;  %v6064_v22 = vor.u32 %v7608_v61, %v6061_v16  ;;  %4104 = vmatpush.bf16.msra.mxu0 %v5296_v17 }
 0x250   : > { %v5773_v19 = vld [vmem:[#allocation5 + $0x470] sm:$0xf0] }
 0x251   : > { %v7408_v7 = vld [vmem:[#allocation5 + $0x54] sm:$0xf]  ;;  %v5776_v36 = vor.u32 %v7536_v18, %v5773_v19  ;;  %4122 = vmatpush.bf16.msra.mxu1 %v5552_v20  ;;  %v3789_v19 = vpop.f32.mrf.mxu2  ;;  %v3807_v20 = vpop.f32.mrf.mxu3 }
 0x252   : > { %v5261_v23 = vld [vmem:[#allocation5 + $0x70] sm:$0xf0]  ;;  %v3790_v60 = vadd.f32 %v3789_v19, %v3772_v59 }
 0x253   : > { %v7472_v25 = vld [vmem:[#allocation5 + $0x254] sm:$0xf]  ;;  %v5264_v34 = vor.u32 %v7408_v7, %v5261_v23  ;;  %4158 = vmatpush.bf16.msra.mxu3 %v6064_v22  ;;  %4141 = vmatpush.bf16.msra.mxu2 %v5776_v36 }
 0x254   : > { %v5517_v27 = vld [vmem:[#allocation5 + $0x270] sm:$0xf0] }
 0x255   : > { %v7600_v29 = vld [vmem:[#allocation5 + $0x654] sm:$0xf]  ;;  %v5520_v46 = vor.u32 %v7472_v25, %v5517_v27  ;;  %4105 = vmatpush.bf16.msra.mxu0 %v5264_v34  ;;  %v3773_v27 = vpop.f32.mrf.mxu1  ;;  %v8531_v34 = vadd.f32 %v3807_v20, %v3790_v60 }
 0x256   : > { %v6029_v30 = vld [vmem:[#allocation5 + $0x670] sm:$0xf0] }
 0x257   : > { %v7528_v33 = vld [vmem:[#allocation5 + $0x414] sm:$0xf]  ;;  %v6032_v51 = vor.u32 %v7600_v29, %v6029_v30  ;;  %4123 = vmatpush.bf16.msra.mxu1 %v5520_v46 }
 0x258   : > { %v5741_v38 = vld [vmem:[#allocation5 + $0x430] sm:$0xf0] }
 0x259   : > { %v7400_v40 = vld [vmem:[#allocation5 + $0x14] sm:$0xf]  ;;  %v5744_v13 = vor.u32 %v7528_v33, %v5741_v38  ;;  %4159 = vmatpush.bf16.msra.mxu3 %v6032_v51 }
 0x25a   : > { %v5229_v44 = vld [vmem:[#allocation5 + $0x30] sm:$0xf0] }
 0x25b   : > { %v7464_v50 = vld [vmem:[#allocation5 + $0x214] sm:$0xf]  ;;  %v5232_v14 = vor.u32 %v7400_v40, %v5229_v44  ;;  %4142 = vmatpush.bf16.msra.mxu2 %v5744_v13 }
 0x25c   : > { %v5485_v56 = vld [vmem:[#allocation5 + $0x230] sm:$0xf0] }
 0x25d   : > { %v7592_v58 = vld [vmem:[#allocation5 + $0x614] sm:$0xf]  ;;  %v5488_v17 = vor.u32 %v7464_v50, %v5485_v56  ;;  %4106 = vmatpush.bf16.msra.mxu0 %v5232_v14  ;;  %v3838_v13 = vpop.f32.mrf.mxu1 }
 0x25e   : > { %v5997_v35 = vld [vmem:[#allocation5 + $0x630] sm:$0xf0]  ;;  %4143 = vmatmul.bf16.vlgmr.msra.gmra.mxu2 %v8368_v54 }
 0x25f   : > { %v7840_v1 = vld [vmem:[#allocation5 + $0xdd4] sm:$0xf]  ;;  %v6000_v18 = vor.u32 %v7592_v58, %v5997_v35  ;;  %4124 = vmatpush.bf16.msra.mxu1 %v5488_v17  ;;  %v3791_v35 = vpop.f32.mrf.mxu2 }
 0x260   : > { %v6989_v37 = vld [vmem:[#allocation5 + $0xdf0] sm:$0xf0]  ;;  %4107 = vmatmul.bf16.vlgmr.msra.gmra.mxu0 %v8364_v48 }
 0x261   : > { %v7712_v6 = vld [vmem:[#allocation5 + $0x9d4] sm:$0xf]  ;;  %v6992_v22 = vor.u32 %v7840_v1, %v6989_v37  ;;  %4160 = vmatpush.bf16.msra.mxu3 %v6000_v18  ;;  %v3809_v1 = vpop.f32.mrf.mxu3 }
 0x262   : > { %v6477_v8 = vld [vmem:[#allocation5 + $0x9f0] sm:$0xf0]  ;;  %4125 = vmatmul.bf16.vlgmr.msra.gmra.mxu1 %v8366_v53 }
 0x263   : > { %v7776_v11 = vld [vmem:[#allocation5 + $0xbd4] sm:$0xf]  ;;  %v6480_v7 = vor.u32 %v7712_v6, %v6477_v8  ;;  %4207 = vmatpush.bf16.msrb.mxu2 %v6992_v22 }
 0x264   : > { %v6733_v61 = vld [vmem:[#allocation5 + $0xbf0] sm:$0xf0]  ;;  %4161 = vmatmul.bf16.vlgmr.msra.gmra.mxu3 %v8370_v57 }
 0x265   : > { %v7904_v16 = vld [vmem:[#allocation5 + $0xfd4] sm:$0xf]  ;;  %v6736_v29 = vor.u32 %v7776_v11, %v6733_v61  ;;  %4171 = vmatpush.bf16.msrb.mxu0 %v6480_v7  ;;  %v3820_v11 = vpop.f32.mrf.mxu0 }
 0x266   : > { %v7245_v43 = vld [vmem:[#allocation5 + $0xff0] sm:$0xf0]  ;;  %v3839_v14 = vadd.f32 %v3838_v13, %v3820_v11 }
 0x267   : > { %v7832_v23 = vld [vmem:[#allocation5 + $0xd94] sm:$0xf]  ;;  %v7248_v30 = vor.u32 %v7904_v16, %v7245_v43  ;;  %4189 = vmatpush.bf16.msrb.mxu1 %v6736_v29 }
 0x268   : > { %v6957_v25 = vld [vmem:[#allocation5 + $0xdb0] sm:$0xf0] }
 0x269   : > { %v7704_v31 = vld [vmem:[#allocation5 + $0x994] sm:$0xf]  ;;  %v6960_v38 = vor.u32 %v7832_v23, %v6957_v25  ;;  %4225 = vmatpush.bf16.msrb.mxu3 %v7248_v30 }
 0x26a   : > { %v6445_v28 = vld [vmem:[#allocation5 + $0x9b0] sm:$0xf0] }
 0x26b   : > { %v7768_v32 = vld [vmem:[#allocation5 + $0xb94] sm:$0xf]  ;;  %v6448_v40 = vor.u32 %v7704_v31, %v6445_v28  ;;  %4208 = vmatpush.bf16.msrb.mxu2 %v6960_v38  ;;  %v3874_v38 = vpop.f32.mrf.mxu3 }
 0x26c   : > { %v6701_v33 = vld [vmem:[#allocation5 + $0xbb0] sm:$0xf0] }
 0x26d   : > { %v7896_v21 = vld [vmem:[#allocation5 + $0xf94] sm:$0xf]  ;;  %v6704_v44 = vor.u32 %v7768_v32, %v6701_v33  ;;  %4172 = vmatpush.bf16.msrb.mxu0 %v6448_v40 }
 0x26e   : > { %v7213_v36 = vld [vmem:[#allocation5 + $0xfb0] sm:$0xf0]  ;;  %4148 = vmatmul.bf16.gmra.mxu2 %v8382_v49 }
 0x26f   : > { %v7216_v46 = vor.u32 %v7896_v21, %v7213_v36  ;;  %v7824_v51 = vld [vmem:[#allocation5 + $0xd54] sm:$0xf]  ;;  %4190 = vmatpush.bf16.msrb.mxu1 %v6704_v44  ;;  %v3856_v36 = vpop.f32.mrf.mxu2 }
 0x270   : > { %v6925_v50 = vld [vmem:[#allocation5 + $0xd70] sm:$0xf0]  ;;  %4112 = vmatmul.bf16.gmra.mxu0 %v8378_v42 }
 0x271   : > { %v7696_v56 = vld [vmem:[#allocation5 + $0x954] sm:$0xf]  ;;  %4226 = vmatpush.bf16.msrb.mxu3 %v7216_v46  ;;  %v6928_v61 = vor.u32 %v7824_v51, %v6925_v50  ;;  %v3857_v51 = vadd.f32 %v3856_v36, %v3839_v14  ;;  %v3822_v50 = vpop.f32.mrf.mxu0 }
 0x272   : > { %v6413_v58 = vld [vmem:[#allocation5 + $0x970] sm:$0xf0]  ;;  %4130 = vmatmul.bf16.gmra.mxu1 %v8380_v47 }
 0x273   : > { %v7760_v59 = vld [vmem:[#allocation5 + $0xb54] sm:$0xf]  ;;  %v6416_v16 = vor.u32 %v7696_v56, %v6413_v58  ;;  %4209 = vmatpush.bf16.msrb.mxu2 %v6928_v61  ;;  %v3840_v56 = vpop.f32.mrf.mxu1 }
 0x274   : > { %v6669_v37 = vld [vmem:[#allocation5 + $0xb70] sm:$0xf0]  ;;  %v3841_v58 = vadd.f32 %v3840_v56, %v3822_v50  ;;  %4166 = vmatmul.bf16.gmra.mxu3 %v8384_v52 }
 0x275   : > { %v7888_v6 = vld [vmem:[#allocation5 + $0xf54] sm:$0xf]  ;;  %v6672_v18 = vor.u32 %v7760_v59, %v6669_v37  ;;  %4173 = vmatpush.bf16.msrb.mxu0 %v6416_v16 }
 0x276   : > { %v7181_v8 = vld [vmem:[#allocation5 + $0xf70] sm:$0xf0] }
 0x277   : > { %v7816_v43 = vld [vmem:[#allocation5 + $0xd14] sm:$0xf]  ;;  %v7184_v19 = vor.u32 %v7888_v6, %v7181_v8  ;;  %4191 = vmatpush.bf16.msrb.mxu1 %v6672_v18  ;;  %v8537_v6 = vadd.f32 %v3874_v38, %v3857_v51 }
 0x278   : > { %v6893_v17 = vld [vmem:[#allocation5 + $0xd30] sm:$0xf0] }
 0x279   : > { %v7688_v20 = vld [vmem:[#allocation5 + $0x914] sm:$0xf]  ;;  %v6896_v26 = vor.u32 %v7816_v43, %v6893_v17  ;;  %4227 = vmatpush.bf16.msrb.mxu3 %v7184_v19 }
 0x27a   : > { %v6381_v22 = vld [vmem:[#allocation5 + $0x930] sm:$0xf0] }
 0x27b   : > { %v7752_v7 = vld [vmem:[#allocation5 + $0xb14] sm:$0xf]  ;;  %v6384_v27 = vor.u32 %v7688_v20, %v6381_v22  ;;  %4210 = vmatpush.bf16.msrb.mxu2 %v6896_v26 }
 0x27c   : > { %v6637_v23 = vld [vmem:[#allocation5 + $0xb30] sm:$0xf0] }
 0x27d   : > { %v7880_v25 = vld [vmem:[#allocation5 + $0xf14] sm:$0xf]  ;;  %v6640_v31 = vor.u32 %v7752_v7, %v6637_v23  ;;  %4174 = vmatpush.bf16.msrb.mxu0 %v6384_v27  ;;  %v3858_v27 = vpop.f32.mrf.mxu2 }
 0x27e   : > { %v7149_v60 = vld [vmem:[#allocation5 + $0xf30] sm:$0xf0] }
 0x27f   : > { %v7808_v29 = vld [vmem:[#allocation5 + $0xcd4] sm:$0xf]  ;;  %v7152_v28 = vor.u32 %v7880_v25, %v7149_v60  ;;  %4192 = vmatpush.bf16.msrb.mxu1 %v6640_v31 }
 0x280   : > { %v6861_v30 = vld [vmem:[#allocation5 + $0xcf0] sm:$0xf0] }
 0x281   : > { %v7680_v32 = vld [vmem:[#allocation5 + $0x8d4] sm:$0xf]  ;;  %v6864_v59 = vor.u32 %v7808_v29, %v6861_v30  ;;  %4228 = vmatpush.bf16.msrb.mxu3 %v7152_v28  ;;  %v3876_v29 = vpop.f32.mrf.mxu3 }
 0x282   : > { %v6349_v33 = vld [vmem:[#allocation5 + $0x8f0] sm:$0xf0] }
 0x283   : > { %v7744_v21 = vld [vmem:[#allocation5 + $0xad4] sm:$0xf]  ;;  %v6352_v35 = vor.u32 %v7680_v32, %v6349_v33  ;;  %4211 = vmatpush.bf16.msrb.mxu2 %v6864_v59  ;;  %v3859_v32 = vadd.f32 %v3858_v27, %v3841_v58  ;;  %v3825_v33 = vpop.f32.mrf.mxu0  ;;  %v5939_v27 = vld [vmem:[#allocation5 + $0x598] sm:$0xf] }
 0x284   : > { %v6605_v40 = vld [vmem:[#allocation5 + $0xaf0] sm:$0xf0] }
 0x285   : > { %v7872_v44 = vld [vmem:[#allocation5 + $0xed4] sm:$0xf]  ;;  %v6608_v8 = vor.u32 %v7744_v21, %v6605_v40  ;;  %4175 = vmatpush.bf16.msrb.mxu0 %v6352_v35  ;;  %v3843_v21 = vpop.f32.mrf.mxu1  ;;  %v8539_v56 = vadd.f32 %v3876_v29, %v3859_v32  ;;  %v7581_v29 = vld [vmem:[#allocation5 + $0x5b4] sm:$0xf0] }
 0x286   : > { %v7117_v46 = vld [vmem:[#allocation5 + $0xef0] sm:$0xf0]  ;;  %v3844_v38 = vadd.f32 %v3843_v21, %v3825_v33  ;;  %v5427_v21 = vld [vmem:[#allocation5 + $0x198] sm:$0xf] }
 0x287   : > { %v7800_v1 = vld [vmem:[#allocation5 + $0xc94] sm:$0xf]  ;;  %v7120_v11 = vor.u32 %v7872_v44, %v7117_v46  ;;  %4193 = vmatpush.bf16.msrb.mxu1 %v6608_v8 }
 0x288   : > { %v6829_v37 = vld [vmem:[#allocation5 + $0xcb0] sm:$0xf0] }
 0x289   : > { %v7672_v13 = vld [vmem:[#allocation5 + $0x894] sm:$0xf]  ;;  %v6832_v18 = vor.u32 %v7800_v1, %v6829_v37  ;;  %4229 = vmatpush.bf16.msrb.mxu3 %v7120_v11  ;;  %v5971_v11 = vld [vmem:[#allocation5 + $0x5d8] sm:$0xf] }
 0x28a   : > { %v6317_v61 = vld [vmem:[#allocation5 + $0x8b0] sm:$0xf0] }
 0x28b   : > { %v7736_v16 = vld [vmem:[#allocation5 + $0xa94] sm:$0xf]  ;;  %v6320_v19 = vor.u32 %v7672_v13, %v6317_v61  ;;  %4212 = vmatpush.bf16.msrb.mxu2 %v6832_v18  ;;  %v7589_v13 = vld [vmem:[#allocation5 + $0x5f4] sm:$0xf0] }
 0x28c   : > { %v6573_v43 = vld [vmem:[#allocation5 + $0xab0] sm:$0xf0]  ;;  %v5459_v61 = vld [vmem:[#allocation5 + $0x1d8] sm:$0xf] }
 0x28d   : > { %v7864_v14 = vld [vmem:[#allocation5 + $0xe94] sm:$0xf]  ;;  %v6576_v7 = vor.u32 %v7736_v16, %v6573_v43  ;;  %4176 = vmatpush.bf16.msrb.mxu0 %v6320_v19  ;;  %v7461_v16 = vld [vmem:[#allocation5 + $0x1f4] sm:$0xf0] }
 0x28e   : > { %v7085_v17 = vld [vmem:[#allocation5 + $0xeb0] sm:$0xf0]  ;;  %v5715_v43 = vld [vmem:[#allocation5 + $0x3d8] sm:$0xf] }
 0x28f   : > { %v7792_v20 = vld [vmem:[#allocation5 + $0xc54] sm:$0xf]  ;;  %v7088_v23 = vor.u32 %v7864_v14, %v7085_v17  ;;  %4194 = vmatpush.bf16.msrb.mxu1 %v6576_v7  ;;  %v7525_v18 = vld [vmem:[#allocation5 + $0x3f4] sm:$0xf0] }
 0x290   : > { %v6797_v22 = vld [vmem:[#allocation5 + $0xc70] sm:$0xf0]  ;;  %v6227_v19 = vld [vmem:[#allocation5 + $0x7d8] sm:$0xf]  ;;  %v5716_v32 = vor.u32 %v7525_v18, %v5715_v43 }
 0x291   : > { %v7664_v25 = vld [vmem:[#allocation5 + $0x854] sm:$0xf]  ;;  %v6800_v40 = vor.u32 %v7792_v20, %v6797_v22  ;;  %4230 = vmatpush.bf16.msrb.mxu3 %v7088_v23  ;;  %v7653_v20 = vld [vmem:[#allocation5 + $0x7f4] sm:$0xf0]  ;;  %v3861_v23 = vpop.f32.mrf.mxu2 }
 0x292   : > { %v6285_v60 = vld [vmem:[#allocation5 + $0x870] sm:$0xf0]  ;;  %v6228_v33 = vor.u32 %v7653_v20, %v6227_v19  ;;  %v7509_v43 = vld [vmem:[#allocation5 + $0x374] sm:$0xf0] }
 0x293   : > { %v7728_v26 = vld [vmem:[#allocation5 + $0xa54] sm:$0xf]  ;;  %v6288_v44 = vor.u32 %v7664_v25, %v6285_v60  ;;  %4213 = vmatpush.bf16.msrb.mxu2 %v6800_v40  ;;  %v3879_v25 = vpop.f32.mrf.mxu3  ;;  %v5972_v60 = vor.u32 %v7589_v13, %v5971_v11  ;;  %v5683_v40 = vld [vmem:[#allocation5 + $0x398] sm:$0xf] }
 0x294   : > { %v6541_v30 = vld [vmem:[#allocation5 + $0xa70] sm:$0xf0]  ;;  %v7445_v11 = vld [vmem:[#allocation5 + $0x174] sm:$0xf0] }
 0x295   : > { %v7856_v31 = vld [vmem:[#allocation5 + $0xe54] sm:$0xf]  ;;  %v6544_v59 = vor.u32 %v7728_v26, %v6541_v30  ;;  %4177 = vmatpush.bf16.msrb.mxu0 %v6288_v44  ;;  %v5460_v26 = vor.u32 %v7461_v16, %v5459_v61  ;;  %v3862_v30 = vadd.f32 %v3861_v23, %v3844_v38  ;;  %v7517_v44 = vld [vmem:[#allocation5 + $0x3b4] sm:$0xf0] }
 0x296   : > { %v7053_v28 = vld [vmem:[#allocation5 + $0xe70] sm:$0xf0]  ;;  %v5651_v13 = vld [vmem:[#allocation5 + $0x358] sm:$0xf] }
 0x297   : > { %v7784_v36 = vld [vmem:[#allocation5 + $0xc14] sm:$0xf]  ;;  %v7056_v35 = vor.u32 %v7856_v31, %v7053_v28  ;;  %4195 = vmatpush.bf16.msrb.mxu1 %v6544_v59  ;;  %v3827_v31 = vpop.f32.mrf.mxu0  ;;  %v3845_v28 = vpop.f32.mrf.mxu1  ;;  %v5940_v59 = vor.u32 %v7581_v29, %v5939_v27  ;;  %v5875_v23 = vld [vmem:[#allocation5 + $0x518] sm:$0xf] }
 0x298   : > { %v6765_v46 = vld [vmem:[#allocation5 + $0xc30] sm:$0xf0]  ;;  %v5363_v27 = vld [vmem:[#allocation5 + $0x118] sm:$0xf] }
 0x299   : > { %v7656_v51 = vld [vmem:[#allocation5 + $0x814] sm:$0xf]  ;;  %v6768_v14 = vor.u32 %v7784_v36, %v6765_v46  ;;  %4231 = vmatpush.bf16.msrb.mxu3 %v7056_v35  ;;  %v7453_v36 = vld [vmem:[#allocation5 + $0x1b4] sm:$0xf0]  ;;  %v5684_v35 = vor.u32 %v7517_v44, %v5683_v40  ;;  %v3863_v61 = vpop.f32.mrf.mxu2 }
 0x29a   : > { %v6253_v50 = vld [vmem:[#allocation5 + $0x830] sm:$0xf0]  ;;  %v6195_v46 = vld [vmem:[#allocation5 + $0x798] sm:$0xf]  ;;  %v5428_v38 = vor.u32 %v7453_v36, %v5427_v21 }
 0x29b   : > { %v7720_v1 = vld [vmem:[#allocation5 + $0xa14] sm:$0xf]  ;;  %v6256_v17 = vor.u32 %v7656_v51, %v6253_v50  ;;  %4214 = vmatpush.bf16.msrb.mxu2 %v6768_v14  ;;  %v7645_v51 = vld [vmem:[#allocation5 + $0x7b4] sm:$0xf0]  ;;  %v8545_v50 = vadd.f32 %v3879_v25, %v3862_v30  ;;  %v3881_v16 = vpop.f32.mrf.mxu3 }
 0x29c   : > { %v6509_v37 = vld [vmem:[#allocation5 + $0xa30] sm:$0xf0]  ;;  %v6163_v14 = vld [vmem:[#allocation5 + $0x758] sm:$0xf] }
 0x29d   : > { %v7848_v58 = vld [vmem:[#allocation5 + $0xe14] sm:$0xf]  ;;  %v6512_v22 = vor.u32 %v7720_v1, %v6509_v37  ;;  %4178 = vmatpush.bf16.msrb.mxu0 %v6256_v17  ;;  %v6196_v1 = vor.u32 %v7645_v51, %v6195_v46  ;;  %v5907_v37 = vld [vmem:[#allocation5 + $0x558] sm:$0xf] }
 0x29e   : > { %v7021_v8 = vld [vmem:[#allocation5 + $0xe30] sm:$0xf0]  ;;  %v7637_v17 = vld [vmem:[#allocation5 + $0x774] sm:$0xf0]  ;;  %4215 = vmatmul.bf16.vlgmr.msrb.gmra.mxu2 %v8402_v3 }
 0x29f   : > { %v7024_v7 = vor.u32 %v7848_v58, %v7021_v8  ;;  %4196 = vmatpush.bf16.msrb.mxu1 %v6512_v22  ;;  %4279 = vmatpush.bf16.msra.mxu2 %v5972_v60  ;;  %v7573_v58 = vld [vmem:[#allocation5 + $0x574] sm:$0xf0]  ;;  %v3892_v18 = vpop.f32.mrf.mxu0  ;;  %v3910_v19 = vpop.f32.mrf.mxu1  ;;  %v5652_v60 = vor.u32 %v7509_v43, %v5651_v13 }
 0x2a0   : > { %v5395_v8 = vld [vmem:[#allocation5 + $0x158] sm:$0xf]  ;;  %v3893_v20 = vadd.f32 %v3892_v18, %v8537_v6  ;;  %v5908_v22 = vor.u32 %v7573_v58, %v5907_v37  ;;  %4179 = vmatmul.bf16.vlgmr.msrb.gmra.mxu0 %v8398_v62 }
 0x2a1   : > { %4232 = vmatpush.bf16.msrb.mxu3 %v7024_v7  ;;  %4243 = vmatpush.bf16.msra.mxu0 %v5460_v26  ;;  %v5396_v7 = vor.u32 %v7445_v11, %v5395_v8  ;;  %v7565_v25 = vld [vmem:[#allocation5 + $0x534] sm:$0xf0]  ;;  %v6164_v26 = vor.u32 %v7637_v17, %v6163_v14 }
 0x2a2   : > { %v7437_v29 = vld [vmem:[#allocation5 + $0x134] sm:$0xf0]  ;;  %v3911_v31 = vadd.f32 %v3910_v19, %v3893_v20  ;;  %4197 = vmatmul.bf16.vlgmr.msrb.gmra.mxu1 %v8400_v63  ;;  %v5876_v6 = vor.u32 %v7565_v25, %v5875_v23 }
 0x2a3   : > { %4261 = vmatpush.bf16.msra.mxu1 %v5716_v32  ;;  %4280 = vmatpush.bf16.msra.mxu2 %v5940_v59  ;;  %v5619_v30 = vld [vmem:[#allocation5 + $0x318] sm:$0xf]  ;;  %v5364_v21 = vor.u32 %v7437_v29, %v5363_v27 }
 0x2a4   : > { %v7501_v28 = vld [vmem:[#allocation5 + $0x334] sm:$0xf0]  ;;  %4233 = vmatmul.bf16.vlgmr.msrb.gmra.mxu3 %v8404_v4 }
 0x2a5   : > { %4297 = vmatpush.bf16.msra.mxu3 %v6228_v33  ;;  %4244 = vmatpush.bf16.msra.mxu0 %v5428_v38  ;;  %v6131_v32 = vld [vmem:[#allocation5 + $0x718] sm:$0xf]  ;;  %v5620_v44 = vor.u32 %v7501_v28, %v5619_v30 }
 0x2a6   : > { %v7629_v33 = vld [vmem:[#allocation5 + $0x734] sm:$0xf0] }
 0x2a7   : > { %4262 = vmatpush.bf16.msra.mxu1 %v5684_v35  ;;  %4281 = vmatpush.bf16.msra.mxu2 %v5908_v22  ;;  %v5843_v36 = vld [vmem:[#allocation5 + $0x4d8] sm:$0xf]  ;;  %v6132_v46 = vor.u32 %v7629_v33, %v6131_v32  ;;  %v3928_v35 = vpop.f32.mrf.mxu2  ;;  %v3894_v13 = vpop.f32.mrf.mxu0 }
 0x2a8   : > { %v7557_v40 = vld [vmem:[#allocation5 + $0x4f4] sm:$0xf0]  ;;  %v3929_v11 = vadd.f32 %v3928_v35, %v3911_v31  ;;  %v3912_v61 = vpop.f32.mrf.mxu1  ;;  %v3895_v16 = vadd.f32 %v3894_v13, %v8539_v56 }
 0x2a9   : > { %4298 = vmatpush.bf16.msra.mxu3 %v6196_v1  ;;  %4245 = vmatpush.bf16.msra.mxu0 %v5396_v7  ;;  %v5331_v51 = vld [vmem:[#allocation5 + $0xd8] sm:$0xf]  ;;  %v3946_v1 = vpop.f32.mrf.mxu3  ;;  %v5844_v43 = vor.u32 %v7557_v40, %v5843_v36 }
 0x2aa   : > { %v7429_v59 = vld [vmem:[#allocation5 + $0xf4] sm:$0xf0]  ;;  %v8553_v19 = vadd.f32 %v3946_v1, %v3929_v11 }
 0x2ab   : > { %4263 = vmatpush.bf16.msra.mxu1 %v5652_v60  ;;  %v5587_v38 = vld [vmem:[#allocation5 + $0x2d8] sm:$0xf]  ;;  %4282 = vmatpush.bf16.msra.mxu2 %v5876_v6  ;;  %v5332_v14 = vor.u32 %v7429_v59, %v5331_v51  ;;  %v3913_v60 = vadd.f32 %v3912_v61, %v3895_v16 }
 0x2ac   : > { %v7493_v37 = vld [vmem:[#allocation5 + $0x2f4] sm:$0xf0] }
 0x2ad   : > { %4299 = vmatpush.bf16.msra.mxu3 %v6164_v26  ;;  %v6099_v58 = vld [vmem:[#allocation5 + $0x6d8] sm:$0xf]  ;;  %4246 = vmatpush.bf16.msra.mxu0 %v5364_v21  ;;  %v5588_v20 = vor.u32 %v7493_v37, %v5587_v38 }
 0x2ae   : > { %v7621_v8 = vld [vmem:[#allocation5 + $0x6f4] sm:$0xf0]  ;;  %4220 = vmatmul.bf16.gmra.mxu2 %v8416_v9 }
 0x2af   : > { %v5811_v17 = vld [vmem:[#allocation5 + $0x498] sm:$0xf]  ;;  %4264 = vmatpush.bf16.msra.mxu1 %v5620_v44  ;;  %v6100_v22 = vor.u32 %v7621_v8, %v6099_v58  ;;  %4283 = vmatpush.bf16.msra.mxu2 %v5844_v43  ;;  %v3930_v40 = vpop.f32.mrf.mxu2  ;;  %v3897_v35 = vpop.f32.mrf.mxu0 }
 0x2b0   : > { %v7549_v18 = vld [vmem:[#allocation5 + $0x4b4] sm:$0xf0]  ;;  %v3931_v38 = vadd.f32 %v3930_v40, %v3913_v60  ;;  %v3915_v1 = vpop.f32.mrf.mxu1  ;;  %v3898_v58 = vadd.f32 %v3897_v35, %v8545_v50  ;;  %4184 = vmatmul.bf16.gmra.mxu0 %v8412_v2 }
 0x2b1   : > { %4300 = vmatpush.bf16.msra.mxu3 %v6132_v46  ;;  %v5299_v7 = vld [vmem:[#allocation5 + $0x98] sm:$0xf]  ;;  %4247 = vmatpush.bf16.msra.mxu0 %v5332_v14  ;;  %v5812_v56 = vor.u32 %v7549_v18, %v5811_v17  ;;  %v3948_v44 = vpop.f32.mrf.mxu3 }
 0x2b2   : > { %v7421_v23 = vld [vmem:[#allocation5 + $0xb4] sm:$0xf0]  ;;  %v8556_v43 = vadd.f32 %v3948_v44, %v3931_v38  ;;  %4202 = vmatmul.bf16.gmra.mxu1 %v8414_v5 }
 0x2b3   : > { %v5555_v25 = vld [vmem:[#allocation5 + $0x298] sm:$0xf]  ;;  %v5300_v30 = vor.u32 %v7421_v23, %v5299_v7  ;;  %4265 = vmatpush.bf16.msra.mxu1 %v5588_v20  ;;  %4284 = vmatpush.bf16.msra.mxu2 %v5812_v56  ;;  %v3916_v7 = vadd.f32 %v3915_v1, %v3898_v58 }
 0x2b4   : > { %v7485_v26 = vld [vmem:[#allocation5 + $0x2b4] sm:$0xf0]  ;;  %4238 = vmatmul.bf16.gmra.mxu3 %v8418_v10 }
 0x2b5   : > { %v6067_v27 = vld [vmem:[#allocation5 + $0x698] sm:$0xf]  ;;  %4301 = vmatpush.bf16.msra.mxu3 %v6100_v22  ;;  %v5556_v32 = vor.u32 %v7485_v26, %v5555_v25  ;;  %4248 = vmatpush.bf16.msra.mxu0 %v5300_v30 }
 0x2b6   : > { %v7613_v29 = vld [vmem:[#allocation5 + $0x6b4] sm:$0xf0] }
 0x2b7   : > { %v5779_v31 = vld [vmem:[#allocation5 + $0x458] sm:$0xf]  ;;  %v6068_v33 = vor.u32 %v7613_v29, %v6067_v27  ;;  %4266 = vmatpush.bf16.msra.mxu1 %v5556_v32 }
 0x2b8   : > { %v7541_v28 = vld [vmem:[#allocation5 + $0x474] sm:$0xf0]  ;;  %v3917_v38 = vpop.f32.mrf.mxu1 }
 0x2b9   : > { %v5267_v6 = vld [vmem:[#allocation5 + $0x58] sm:$0xf]  ;;  %v5780_v8 = vor.u32 %v7541_v28, %v5779_v31  ;;  %4302 = vmatpush.bf16.msra.mxu3 %v6068_v33 }
 0x2ba   : > { %v7413_v21 = vld [vmem:[#allocation5 + $0x74] sm:$0xf0] }
 0x2bb   : > { %v5523_v36 = vld [vmem:[#allocation5 + $0x258] sm:$0xf]  ;;  %v5268_v11 = vor.u32 %v7413_v21, %v5267_v6  ;;  %4285 = vmatpush.bf16.msra.mxu2 %v5780_v8  ;;  %v3933_v6 = vpop.f32.mrf.mxu2  ;;  %v3951_v21 = vpop.f32.mrf.mxu3 }
 0x2bc   : > { %v7477_v46 = vld [vmem:[#allocation5 + $0x274] sm:$0xf0] }
 0x2bd   : > { %v6035_v51 = vld [vmem:[#allocation5 + $0x658] sm:$0xf]  ;;  %v5524_v14 = vor.u32 %v7477_v46, %v5523_v36  ;;  %4249 = vmatpush.bf16.msra.mxu0 %v5268_v11 }
 0x2be   : > { %v7605_v59 = vld [vmem:[#allocation5 + $0x674] sm:$0xf0] }
 0x2bf   : > { %v5747_v37 = vld [vmem:[#allocation5 + $0x418] sm:$0xf]  ;;  %v6036_v17 = vor.u32 %v7605_v59, %v6035_v51  ;;  %4267 = vmatpush.bf16.msra.mxu1 %v5524_v14  ;;  %v3934_v51 = vadd.f32 %v3933_v6, %v3916_v7  ;;  %v3899_v59 = vpop.f32.mrf.mxu0 }
 0x2c0   : > { %v7533_v13 = vld [vmem:[#allocation5 + $0x434] sm:$0xf0] }
 0x2c1   : > { %v5235_v61 = vld [vmem:[#allocation5 + $0x18] sm:$0xf]  ;;  %v5748_v29 = vor.u32 %v7533_v13, %v5747_v37  ;;  %4303 = vmatpush.bf16.msra.mxu3 %v6036_v17 }
 0x2c2   : > { %v7405_v16 = vld [vmem:[#allocation5 + $0x34] sm:$0xf0] }
 0x2c3   : > { %v5491_v18 = vld [vmem:[#allocation5 + $0x218] sm:$0xf]  ;;  %v5236_v56 = vor.u32 %v7405_v16, %v5235_v61  ;;  %4286 = vmatpush.bf16.msra.mxu2 %v5748_v29  ;;  %v8562_v16 = vadd.f32 %v3951_v21, %v3934_v51 }
 0x2c4   : > { %v7469_v20 = vld [vmem:[#allocation5 + $0x234] sm:$0xf0] }
 0x2c5   : > { %v6003_v22 = vld [vmem:[#allocation5 + $0x618] sm:$0xf]  ;;  %v5492_v32 = vor.u32 %v7469_v20, %v5491_v18  ;;  %4250 = vmatpush.bf16.msra.mxu0 %v5236_v56 }
 0x2c6   : > { %v7597_v50 = vld [vmem:[#allocation5 + $0x634] sm:$0xf0]  ;;  %4287 = vmatmul.bf16.vlgmr.msra.gmra.mxu2 %v8368_v54 }
 0x2c7   : > { %v6995_v23 = vld [vmem:[#allocation5 + $0xdd8] sm:$0xf]  ;;  %v6004_v33 = vor.u32 %v7597_v50, %v6003_v22  ;;  %4268 = vmatpush.bf16.msra.mxu1 %v5492_v32 }
 0x2c8   : > { %v7845_v25 = vld [vmem:[#allocation5 + $0xdf4] sm:$0xf0]  ;;  %4251 = vmatmul.bf16.vlgmr.msra.gmra.mxu0 %v8364_v48 }
 0x2c9   : > { %v6483_v60 = vld [vmem:[#allocation5 + $0x9d8] sm:$0xf]  ;;  %v6996_v36 = vor.u32 %v7845_v25, %v6995_v23  ;;  %4304 = vmatpush.bf16.msra.mxu3 %v6004_v33 }
 0x2ca   : > { %v7717_v26 = vld [vmem:[#allocation5 + $0x9f4] sm:$0xf0]  ;;  %4269 = vmatmul.bf16.vlgmr.msra.gmra.mxu1 %v8366_v53 }
 0x2cb   : > { %v6739_v27 = vld [vmem:[#allocation5 + $0xbd8] sm:$0xf]  ;;  %v6484_v40 = vor.u32 %v7717_v26, %v6483_v60  ;;  %4351 = vmatpush.bf16.msrb.mxu2 %v6996_v36  ;;  %v3935_v60 = vpop.f32.mrf.mxu2  ;;  %v3953_v26 = vpop.f32.mrf.mxu3 }
 0x2cc   : > { %v7781_v30 = vld [vmem:[#allocation5 + $0xbf4] sm:$0xf0]  ;;  %4305 = vmatmul.bf16.vlgmr.msra.gmra.mxu3 %v8370_v57 }
 0x2cd   : > { %v7251_v31 = vld [vmem:[#allocation5 + $0xfd8] sm:$0xf]  ;;  %v6740_v35 = vor.u32 %v7781_v30, %v6739_v27  ;;  %4315 = vmatpush.bf16.msrb.mxu0 %v6484_v40  ;;  %v3964_v30 = vpop.f32.mrf.mxu0 }
 0x2ce   : > { %v7909_v28 = vld [vmem:[#allocation5 + $0xff4] sm:$0xf0] }
 0x2cf   : > { %v6963_v44 = vld [vmem:[#allocation5 + $0xd98] sm:$0xf]  ;;  %v7252_v1 = vor.u32 %v7909_v28, %v7251_v31  ;;  %4333 = vmatpush.bf16.msrb.mxu1 %v6740_v35  ;;  %v3982_v31 = vpop.f32.mrf.mxu1 }
 0x2d0   : > { %v7837_v46 = vld [vmem:[#allocation5 + $0xdb4] sm:$0xf0]  ;;  %v3983_v28 = vadd.f32 %v3982_v31, %v3964_v30 }
 0x2d1   : > { %v6451_v37 = vld [vmem:[#allocation5 + $0x998] sm:$0xf]  ;;  %v6964_v14 = vor.u32 %v7837_v46, %v6963_v44  ;;  %4369 = vmatpush.bf16.msrb.mxu3 %v7252_v1 }
 0x2d2   : > { %v7709_v58 = vld [vmem:[#allocation5 + $0x9b4] sm:$0xf0] }
 0x2d3   : > { %v6707_v8 = vld [vmem:[#allocation5 + $0xb98] sm:$0xf]  ;;  %v6452_v17 = vor.u32 %v7709_v58, %v6451_v37  ;;  %4352 = vmatpush.bf16.msrb.mxu2 %v6964_v14 }
 0x2d4   : > { %v7773_v11 = vld [vmem:[#allocation5 + $0xbb4] sm:$0xf0] }
 0x2d5   : > { %v7219_v13 = vld [vmem:[#allocation5 + $0xf98] sm:$0xf]  ;;  %v6708_v18 = vor.u32 %v7773_v11, %v6707_v8  ;;  %4316 = vmatpush.bf16.msrb.mxu0 %v6452_v17 }
 0x2d6   : > { %v7901_v61 = vld [vmem:[#allocation5 + $0xfb4] sm:$0xf0]  ;;  %4292 = vmatmul.bf16.gmra.mxu2 %v8382_v49 }
 0x2d7   : > { %v7220_v20 = vor.u32 %v7901_v61, %v7219_v13  ;;  %v6931_v22 = vld [vmem:[#allocation5 + $0xd58] sm:$0xf]  ;;  %4334 = vmatpush.bf16.msrb.mxu1 %v6708_v18  ;;  %v4000_v18 = vpop.f32.mrf.mxu2  ;;  %v3984_v60 = vpop.f32.mrf.mxu1 }
 0x2d8   : > { %v7829_v7 = vld [vmem:[#allocation5 + $0xd74] sm:$0xf0]  ;;  %4256 = vmatmul.bf16.gmra.mxu0 %v8378_v42 }
 0x2d9   : > { %v6419_v50 = vld [vmem:[#allocation5 + $0x958] sm:$0xf]  ;;  %4370 = vmatpush.bf16.msrb.mxu3 %v7220_v20  ;;  %v6932_v32 = vor.u32 %v7829_v7, %v6931_v22  ;;  %v4018_v20 = vpop.f32.mrf.mxu3 }
 0x2da   : > { %v7701_v23 = vld [vmem:[#allocation5 + $0x974] sm:$0xf0]  ;;  %4274 = vmatmul.bf16.gmra.mxu1 %v8380_v47 }
 0x2db   : > { %v6675_v25 = vld [vmem:[#allocation5 + $0xb58] sm:$0xf]  ;;  %v6420_v33 = vor.u32 %v7701_v23, %v6419_v50  ;;  %4353 = vmatpush.bf16.msrb.mxu2 %v6932_v32  ;;  %v4001_v23 = vadd.f32 %v4000_v18, %v3983_v28 }
 0x2dc   : > { %v7765_v27 = vld [vmem:[#allocation5 + $0xb74] sm:$0xf0]  ;;  %4310 = vmatmul.bf16.gmra.mxu3 %v8384_v52 }
 0x2dd   : > { %v7187_v29 = vld [vmem:[#allocation5 + $0xf58] sm:$0xf]  ;;  %v6676_v36 = vor.u32 %v7765_v27, %v6675_v25  ;;  %4317 = vmatpush.bf16.msrb.mxu0 %v6420_v33  ;;  %v3966_v25 = vpop.f32.mrf.mxu0  ;;  %v8568_v31 = vadd.f32 %v4018_v20, %v4001_v23 }
 0x2de   : > { %v7893_v56 = vld [vmem:[#allocation5 + $0xf74] sm:$0xf0]  ;;  %v3985_v26 = vadd.f32 %v3984_v60, %v3966_v25 }
 0x2df   : > { %v6899_v6 = vld [vmem:[#allocation5 + $0xd18] sm:$0xf]  ;;  %v7188_v40 = vor.u32 %v7893_v56, %v7187_v29  ;;  %4335 = vmatpush.bf16.msrb.mxu1 %v6676_v36 }
 0x2e0   : > { %v7821_v21 = vld [vmem:[#allocation5 + $0xd34] sm:$0xf0] }
 0x2e1   : > { %v6387_v44 = vld [vmem:[#allocation5 + $0x918] sm:$0xf]  ;;  %v6900_v1 = vor.u32 %v7821_v21, %v6899_v6  ;;  %4371 = vmatpush.bf16.msrb.mxu3 %v7188_v40 }
 0x2e2   : > { %v7693_v46 = vld [vmem:[#allocation5 + $0x934] sm:$0xf0] }
 0x2e3   : > { %v6643_v51 = vld [vmem:[#allocation5 + $0xb18] sm:$0xf]  ;;  %v6388_v37 = vor.u32 %v7693_v46, %v6387_v44  ;;  %4354 = vmatpush.bf16.msrb.mxu2 %v6900_v1 }
 0x2e4   : > { %v7757_v59 = vld [vmem:[#allocation5 + $0xb34] sm:$0xf0] }
 0x2e5   : > { %v7155_v38 = vld [vmem:[#allocation5 + $0xf18] sm:$0xf]  ;;  %v6644_v11 = vor.u32 %v7757_v59, %v6643_v51  ;;  %4318 = vmatpush.bf16.msrb.mxu0 %v6388_v37  ;;  %v3969_v20 = vpop.f32.mrf.mxu0 }
 0x2e6   : > { %v7885_v35 = vld [vmem:[#allocation5 + $0xf34] sm:$0xf0] }
 0x2e7   : > { %v6867_v58 = vld [vmem:[#allocation5 + $0xcd8] sm:$0xf]  ;;  %v7156_v13 = vor.u32 %v7885_v35, %v7155_v38  ;;  %4336 = vmatpush.bf16.msrb.mxu1 %v6644_v11  ;;  %v4002_v11 = vpop.f32.mrf.mxu2 }
 0x2e8   : > { %v7813_v8 = vld [vmem:[#allocation5 + $0xcf4] sm:$0xf0]  ;;  %v4003_v18 = vadd.f32 %v4002_v11, %v3985_v26 }
 0x2e9   : > { %v6355_v61 = vld [vmem:[#allocation5 + $0x8d8] sm:$0xf]  ;;  %v6868_v27 = vor.u32 %v7813_v8, %v6867_v58  ;;  %4372 = vmatpush.bf16.msrb.mxu3 %v7156_v13  ;;  %v4020_v13 = vpop.f32.mrf.mxu3 }
 0x2ea   : > { %v7685_v14 = vld [vmem:[#allocation5 + $0x8f4] sm:$0xf0] }
 0x2eb   : > { %v6611_v17 = vld [vmem:[#allocation5 + $0xad8] sm:$0xf]  ;;  %v6356_v29 = vor.u32 %v7685_v14, %v6355_v61  ;;  %4355 = vmatpush.bf16.msrb.mxu2 %v6868_v27 }
 0x2ec   : > { %v7749_v22 = vld [vmem:[#allocation5 + $0xaf4] sm:$0xf0] }
 0x2ed   : > { %v7123_v7 = vld [vmem:[#allocation5 + $0xed8] sm:$0xf]  ;;  %v6612_v32 = vor.u32 %v7749_v22, %v6611_v17  ;;  %4319 = vmatpush.bf16.msrb.mxu0 %v6356_v29  ;;  %v3987_v22 = vpop.f32.mrf.mxu1 }
 0x2ee   : > { %v7877_v50 = vld [vmem:[#allocation5 + $0xef4] sm:$0xf0] }
 0x2ef   : > { %v6835_v56 = vld [vmem:[#allocation5 + $0xc98] sm:$0xf]  ;;  %v7124_v33 = vor.u32 %v7877_v50, %v7123_v7  ;;  %4337 = vmatpush.bf16.msrb.mxu1 %v6612_v32  ;;  %v3988_v50 = vadd.f32 %v3987_v22, %v3969_v20  ;;  %v3971_v20 = vpop.f32.mrf.mxu0 }
 0x2f0   : > { %v7805_v30 = vld [vmem:[#allocation5 + $0xcb4] sm:$0xf0]  ;;  %v7433_v20 = vld [vmem:[#allocation5 + $0x11c] sm:$0xf] }
 0x2f1   : > { %v6323_v6 = vld [vmem:[#allocation5 + $0x898] sm:$0xf]  ;;  %v6836_v46 = vor.u32 %v7805_v30, %v6835_v56  ;;  %4373 = vmatpush.bf16.msrb.mxu3 %v7124_v33  ;;  %v8570_v56 = vadd.f32 %v4020_v13, %v4003_v18  ;;  %v4023_v11 = vpop.f32.mrf.mxu3 }
 0x2f2   : > { %v7677_v21 = vld [vmem:[#allocation5 + $0x8b4] sm:$0xf0] }
 0x2f3   : > { %v6579_v36 = vld [vmem:[#allocation5 + $0xa98] sm:$0xf]  ;;  %v6324_v51 = vor.u32 %v7677_v21, %v6323_v6  ;;  %4356 = vmatpush.bf16.msrb.mxu2 %v6836_v46  ;;  %v7521_v46 = vld [vmem:[#allocation5 + $0x3dc] sm:$0xf] }
 0x2f4   : > { %v7741_v40 = vld [vmem:[#allocation5 + $0xab4] sm:$0xf0] }
 0x2f5   : > { %v7091_v28 = vld [vmem:[#allocation5 + $0xe98] sm:$0xf]  ;;  %v6580_v35 = vor.u32 %v7741_v40, %v6579_v36  ;;  %4320 = vmatpush.bf16.msrb.mxu0 %v6324_v51  ;;  %v7585_v36 = vld [vmem:[#allocation5 + $0x5dc] sm:$0xf]  ;;  %v3989_v22 = vpop.f32.mrf.mxu1 }
 0x2f6   : > { %v7869_v44 = vld [vmem:[#allocation5 + $0xeb4] sm:$0xf0]  ;;  %v5973_v40 = vld [vmem:[#allocation5 + $0x5f8] sm:$0xf0] }
 0x2f7   : > { %v6803_v59 = vld [vmem:[#allocation5 + $0xc58] sm:$0xf]  ;;  %v7092_v1 = vor.u32 %v7869_v44, %v7091_v28  ;;  %4338 = vmatpush.bf16.msrb.mxu1 %v6580_v35  ;;  %v7457_v28 = vld [vmem:[#allocation5 + $0x1dc] sm:$0xf]  ;;  %v5976_v13 = vor.u32 %v7585_v36, %v5973_v40 }
 0x2f8   : > { %v7797_v38 = vld [vmem:[#allocation5 + $0xc74] sm:$0xf0]  ;;  %v5461_v44 = vld [vmem:[#allocation5 + $0x1f8] sm:$0xf0] }
 0x2f9   : > { %v6291_v37 = vld [vmem:[#allocation5 + $0x858] sm:$0xf]  ;;  %v6804_v23 = vor.u32 %v7797_v38, %v6803_v59  ;;  %4374 = vmatpush.bf16.msrb.mxu3 %v7092_v1  ;;  %v5717_v38 = vld [vmem:[#allocation5 + $0x3f8] sm:$0xf0] }
 0x2fa   : > { %v7669_v58 = vld [vmem:[#allocation5 + $0x874] sm:$0xf0]  ;;  %v7649_v35 = vld [vmem:[#allocation5 + $0x7dc] sm:$0xf] }
 0x2fb   : > { %v6547_v8 = vld [vmem:[#allocation5 + $0xa58] sm:$0xf]  ;;  %v6292_v25 = vor.u32 %v7669_v58, %v6291_v37  ;;  %4357 = vmatpush.bf16.msrb.mxu2 %v6804_v23  ;;  %v6229_v1 = vld [vmem:[#allocation5 + $0x7f8] sm:$0xf0]  ;;  %v5720_v23 = vor.u32 %v7521_v46, %v5717_v38 }
 0x2fc   : > { %v7733_v61 = vld [vmem:[#allocation5 + $0xa74] sm:$0xf0]  ;;  %v7569_v36 = vld [vmem:[#allocation5 + $0x55c] sm:$0xf] }
 0x2fd   : > { %v7059_v14 = vld [vmem:[#allocation5 + $0xe58] sm:$0xf]  ;;  %v6548_v30 = vor.u32 %v7733_v61, %v6547_v8  ;;  %4321 = vmatpush.bf16.msrb.mxu0 %v6292_v25  ;;  %v4005_v8 = vpop.f32.mrf.mxu2  ;;  %v5464_v61 = vor.u32 %v7457_v28, %v5461_v44  ;;  %v6232_v25 = vor.u32 %v7649_v35, %v6229_v1  ;;  %v5909_v40 = vld [vmem:[#allocation5 + $0x578] sm:$0xf0] }
 0x2fe   : > { %v7861_v17 = vld [vmem:[#allocation5 + $0xe74] sm:$0xf0]  ;;  %v4006_v18 = vadd.f32 %v4005_v8, %v3988_v50  ;;  %v7441_v28 = vld [vmem:[#allocation5 + $0x15c] sm:$0xf] }
 0x2ff   : > { %v6771_v7 = vld [vmem:[#allocation5 + $0xc18] sm:$0xf]  ;;  %v7060_v32 = vor.u32 %v7861_v17, %v7059_v14  ;;  %4339 = vmatpush.bf16.msrb.mxu1 %v6548_v30  ;;  %v7577_v14 = vld [vmem:[#allocation5 + $0x59c] sm:$0xf] }
 0x300   : > { %v7789_v60 = vld [vmem:[#allocation5 + $0xc34] sm:$0xf0]  ;;  %v5941_v17 = vld [vmem:[#allocation5 + $0x5b8] sm:$0xf0] }
 0x301   : > { %v6259_v27 = vld [vmem:[#allocation5 + $0x818] sm:$0xf]  ;;  %v6772_v51 = vor.u32 %v7789_v60, %v6771_v7  ;;  %4375 = vmatpush.bf16.msrb.mxu3 %v7060_v32  ;;  %v7449_v7 = vld [vmem:[#allocation5 + $0x19c] sm:$0xf] }
 0x302   : > { %v7661_v29 = vld [vmem:[#allocation5 + $0x834] sm:$0xf0]  ;;  %v5429_v60 = vld [vmem:[#allocation5 + $0x1b8] sm:$0xf0] }
 0x303   : > { %v6515_v33 = vld [vmem:[#allocation5 + $0xa18] sm:$0xf]  ;;  %v6260_v59 = vor.u32 %v7661_v29, %v6259_v27  ;;  %v7513_v27 = vld [vmem:[#allocation5 + $0x39c] sm:$0xf]  ;;  %4358 = vmatpush.bf16.msrb.mxu2 %v6772_v51  ;;  %v5432_v50 = vor.u32 %v7449_v7, %v5429_v60 }
 0x304   : > { %v7725_v6 = vld [vmem:[#allocation5 + $0xa34] sm:$0xf0]  ;;  %v5685_v29 = vld [vmem:[#allocation5 + $0x3b8] sm:$0xf0] }
 0x305   : > { %v7027_v26 = vld [vmem:[#allocation5 + $0xe18] sm:$0xf]  ;;  %v6516_v37 = vor.u32 %v7725_v6, %v6515_v33  ;;  %4322 = vmatpush.bf16.msrb.mxu0 %v6260_v59  ;;  %v7641_v30 = vld [vmem:[#allocation5 + $0x79c] sm:$0xf]  ;;  %v8576_v33 = vadd.f32 %v4023_v11, %v4006_v18  ;;  %v5944_v6 = vor.u32 %v7577_v14, %v5941_v17  ;;  %v4007_v51 = vpop.f32.mrf.mxu2  ;;  %v4025_v59 = vpop.f32.mrf.mxu3  ;;  %v5912_v11 = vor.u32 %v7569_v36, %v5909_v40 }
 0x306   : > { %v7853_v21 = vld [vmem:[#allocation5 + $0xe34] sm:$0xf0]  ;;  %v6197_v32 = vld [vmem:[#allocation5 + $0x7b8] sm:$0xf0]  ;;  %4359 = vmatmul.bf16.vlgmr.msrb.gmra.mxu2 %v8402_v3 }
 0x307   : > { %v7028_v58 = vor.u32 %v7853_v21, %v7027_v26  ;;  %4340 = vmatpush.bf16.msrb.mxu1 %v6516_v37  ;;  %4423 = vmatpush.bf16.msra.mxu2 %v5976_v13  ;;  %v5688_v26 = vor.u32 %v7513_v27, %v5685_v29  ;;  %v6200_v21 = vor.u32 %v7641_v30, %v6197_v32  ;;  %v5397_v44 = vld [vmem:[#allocation5 + $0x178] sm:$0xf0]  ;;  %v4036_v37 = vpop.f32.mrf.mxu0 }
 0x308   : > { %v7505_v46 = vld [vmem:[#allocation5 + $0x35c] sm:$0xf]  ;;  %v4037_v8 = vadd.f32 %v4036_v37, %v8568_v31  ;;  %v5400_v13 = vor.u32 %v7441_v28, %v5397_v44  ;;  %4323 = vmatmul.bf16.vlgmr.msrb.gmra.mxu0 %v8398_v62 }
 0x309   : > { %4376 = vmatpush.bf16.msrb.mxu3 %v7028_v58  ;;  %4387 = vmatpush.bf16.msra.mxu0 %v5464_v61  ;;  %v5653_v38 = vld [vmem:[#allocation5 + $0x378] sm:$0xf0]  ;;  %v4054_v58 = vpop.f32.mrf.mxu1 }
 0x30a   : > { %v7633_v35 = vld [vmem:[#allocation5 + $0x75c] sm:$0xf]  ;;  %v5656_v17 = vor.u32 %v7505_v46, %v5653_v38  ;;  %4341 = vmatmul.bf16.vlgmr.msrb.gmra.mxu1 %v8400_v63 }
 0x30b   : > { %4405 = vmatpush.bf16.msra.mxu1 %v5720_v23  ;;  %4424 = vmatpush.bf16.msra.mxu2 %v5944_v6  ;;  %v6165_v1 = vld [vmem:[#allocation5 + $0x778] sm:$0xf0] }
 0x30c   : > { %v7561_v61 = vld [vmem:[#allocation5 + $0x51c] sm:$0xf]  ;;  %v6168_v18 = vor.u32 %v7633_v35, %v6165_v1  ;;  %4377 = vmatmul.bf16.vlgmr.msrb.gmra.mxu3 %v8404_v4 }
 0x30d   : > { %4441 = vmatpush.bf16.msra.mxu3 %v6232_v25  ;;  %4388 = vmatpush.bf16.msra.mxu0 %v5432_v50  ;;  %v5877_v14 = vld [vmem:[#allocation5 + $0x538] sm:$0xf0]  ;;  %v4055_v25 = vadd.f32 %v4054_v58, %v4037_v8  ;;  %v4072_v28 = vpop.f32.mrf.mxu2  ;;  %v4090_v44 = vpop.f32.mrf.mxu3 }
 0x30e   : > { %v5365_v22 = vld [vmem:[#allocation5 + $0x138] sm:$0xf0]  ;;  %v5880_v31 = vor.u32 %v7561_v61, %v5877_v14 }
 0x30f   : > { %4406 = vmatpush.bf16.msra.mxu1 %v5688_v26  ;;  %v7497_v23 = vld [vmem:[#allocation5 + $0x31c] sm:$0xf]  ;;  %4425 = vmatpush.bf16.msra.mxu2 %v5912_v11  ;;  %v5368_v29 = vor.u32 %v7433_v20, %v5365_v22  ;;  %v4073_v59 = vadd.f32 %v4072_v28, %v4055_v25  ;;  %v4038_v38 = vpop.f32.mrf.mxu0 }
 0x310   : > { %v5621_v7 = vld [vmem:[#allocation5 + $0x338] sm:$0xf0]  ;;  %v4039_v14 = vadd.f32 %v4038_v38, %v8570_v56 }
 0x311   : > { %4442 = vmatpush.bf16.msra.mxu3 %v6200_v21  ;;  %v7625_v60 = vld [vmem:[#allocation5 + $0x71c] sm:$0xf]  ;;  %4389 = vmatpush.bf16.msra.mxu0 %v5400_v13  ;;  %v5624_v50 = vor.u32 %v7497_v23, %v5621_v7  ;;  %v4056_v35 = vpop.f32.mrf.mxu1  ;;  %v4091_v61 = vadd.f32 %v4090_v44, %v4073_v59  ;;  %v4531_v7 = vmul.f32 %v8460_v39, %v8460_v39 }
 0x312   : > { %v6133_v27 = vld [vmem:[#allocation5 + $0x738] sm:$0xf0] }
 0x313   : > { %v7553_v30 = vld [vmem:[#allocation5 + $0x4dc] sm:$0xf]  ;;  %4407 = vmatpush.bf16.msra.mxu1 %v5656_v17  ;;  %v6136_v26 = vor.u32 %v7625_v60, %v6133_v27  ;;  %4426 = vmatpush.bf16.msra.mxu2 %v5880_v31  ;;  %v4543_v60 = vmul.f32 %v4091_v61, %v4091_v61 }
 0x314   : > { %v5845_v32 = vld [vmem:[#allocation5 + $0x4f8] sm:$0xf0] }
 0x315   : > { %v7425_v6 = vld [vmem:[#allocation5 + $0xdc] sm:$0xf]  ;;  %4443 = vmatpush.bf16.msra.mxu3 %v6168_v18  ;;  %4390 = vmatpush.bf16.msra.mxu0 %v5368_v29  ;;  %v5848_v1 = vor.u32 %v7553_v30, %v5845_v32  ;;  %v8586_v56 = vadd.f32 %v4543_v60, %v4531_v7  ;;  %v4092_v28 = vpop.f32.mrf.mxu3  ;;  %v4535_v60 = vmul.f32 %v8463_v24, %v8463_v24 }
 0x316   : > { %v5333_v21 = vld [vmem:[#allocation5 + $0xf8] sm:$0xf0]  ;;  %4364 = vmatmul.bf16.gmra.mxu2 %v8416_v9 }
 0x317   : > { %v7489_v36 = vld [vmem:[#allocation5 + $0x2dc] sm:$0xf]  ;;  %v5336_v37 = vor.u32 %v7425_v6, %v5333_v21  ;;  %4408 = vmatpush.bf16.msra.mxu1 %v5624_v50  ;;  %4427 = vmatpush.bf16.msra.mxu2 %v5848_v1  ;;  %v4057_v6 = vadd.f32 %v4056_v35, %v4039_v14  ;;  %8020 = vrsqrt.f32 %v8586_v56  ;;  %v4041_v59 = vpop.f32.mrf.mxu0  ;;  %vm4574_vm0 = vcmp.eq.f32.partialorder %v8586_v56, inf }
 0x318   : > { %v5589_v40 = vld [vmem:[#allocation5 + $0x2f8] sm:$0xf0]  ;;  %4328 = vmatmul.bf16.gmra.mxu0 %v8412_v2  ;;  %vm4576_vm2 = vcmp.eq.f32.partialorder %v8586_v56, 0.0 }
 0x319   : > { %v7617_v46 = vld [vmem:[#allocation5 + $0x6dc] sm:$0xf]  ;;  %v5592_v58 = vor.u32 %v7489_v36, %v5589_v40  ;;  %4444 = vmatpush.bf16.msra.mxu3 %v6136_v26  ;;  %4391 = vmatpush.bf16.msra.mxu0 %v5336_v37  ;;  %v4074_v40 = vpop.f32.mrf.mxu2  ;;  %v4059_v38 = vpop.f32.mrf.mxu1  ;;  %v4042_v37 = vadd.f32 %v4041_v59, %v8576_v33 }
 0x31a   : > { %v6101_v51 = vld [vmem:[#allocation5 + $0x6f8] sm:$0xf0]  ;;  %4346 = vmatmul.bf16.gmra.mxu1 %v8414_v5 }
 0x31b   : > { %v7545_v8 = vld [vmem:[#allocation5 + $0x49c] sm:$0xf]  ;;  %v6104_v17 = vor.u32 %v7617_v46, %v6101_v51  ;;  %4409 = vmatpush.bf16.msra.mxu1 %v5592_v58  ;;  %v4075_v51 = vadd.f32 %v4074_v40, %v4057_v6 }
 0x31c   : > { %v5813_v11 = vld [vmem:[#allocation5 + $0x4b8] sm:$0xf0]  ;;  %4382 = vmatmul.bf16.gmra.mxu3 %v8418_v10 }
 0x31d   : > { %v7417_v13 = vld [vmem:[#allocation5 + $0x9c] sm:$0xf]  ;;  %v5816_v27 = vor.u32 %v7545_v8, %v5813_v11  ;;  %4445 = vmatpush.bf16.msra.mxu3 %v6104_v17  ;;  %v4093_v61 = vadd.f32 %v4092_v28, %v4075_v51 }
 0x31e   : > { %v5301_v18 = vld [vmem:[#allocation5 + $0xb8] sm:$0xf0] }
 0x31f   : > { %v7481_v20 = vld [vmem:[#allocation5 + $0x29c] sm:$0xf]  ;;  %v5304_v31 = vor.u32 %v7417_v13, %v5301_v18  ;;  %4428 = vmatpush.bf16.msra.mxu2 %v5816_v27  ;;  %v4547_v27 = vmul.f32 %v4093_v61, %v4093_v61 }
 0x320   : > { %v5557_v22 = vld [vmem:[#allocation5 + $0x2b8] sm:$0xf0] }
 0x321   : > { %v7609_v23 = vld [vmem:[#allocation5 + $0x69c] sm:$0xf]  ;;  %v5560_v29 = vor.u32 %v7481_v20, %v5557_v22  ;;  %4392 = vmatpush.bf16.msra.mxu0 %v5304_v31  ;;  %v8598_v40 = vadd.f32 %v4547_v27, %v4535_v60 }
 0x322   : > { %v6069_v25 = vld [vmem:[#allocation5 + $0x6b8] sm:$0xf0] }
 0x323   : > { %v7537_v30 = vld [vmem:[#allocation5 + $0x45c] sm:$0xf]  ;;  %v6072_v50 = vor.u32 %v7609_v23, %v6069_v25  ;;  %4410 = vmatpush.bf16.msra.mxu1 %v5560_v29  ;;  %v4060_v23 = vadd.f32 %v4059_v38, %v4042_v37  ;;  %8022 = vrsqrt.f32 %v8598_v40  ;;  %vm4622_vm1 = vcmp.eq.f32.partialorder %v8598_v40, inf }
 0x324   : > { %v5781_v32 = vld [vmem:[#allocation5 + $0x478] sm:$0xf0]  ;;  %vm4624_vm3 = vcmp.eq.f32.partialorder %v8598_v40, 0.0 }
 0x325   : > { %v7409_v26 = vld [vmem:[#allocation5 + $0x5c] sm:$0xf]  ;;  %v5784_v35 = vor.u32 %v7537_v30, %v5781_v32  ;;  %4446 = vmatpush.bf16.msra.mxu3 %v6072_v50 }
 0x326   : > { %v5269_v21 = vld [vmem:[#allocation5 + $0x78] sm:$0xf0] }
 0x327   : > { %v7473_v36 = vld [vmem:[#allocation5 + $0x25c] sm:$0xf]  ;;  %v5272_v58 = vor.u32 %v7409_v26, %v5269_v21  ;;  %4429 = vmatpush.bf16.msra.mxu2 %v5784_v35  ;;  %v4043_v35 = vpop.f32.mrf.mxu0 }
 0x328   : > { %v5525_v39 = vld [vmem:[#allocation5 + $0x278] sm:$0xf0] }
 0x329   : > { %v7601_v44 = vld [vmem:[#allocation5 + $0x65c] sm:$0xf]  ;;  %v5528_v14 = vor.u32 %v7473_v36, %v5525_v39  ;;  %4393 = vmatpush.bf16.msra.mxu0 %v5272_v58  ;;  %v8596_v36 = vpop.eup %8020  ;;  %v4077_v39 = vpop.f32.mrf.mxu2 }
 0x32a   : > { %v6037_v46 = vld [vmem:[#allocation5 + $0x678] sm:$0xf0]  ;;  %v4078_v37 = vadd.f32 %v4077_v39, %v4060_v23  ;;  %v4061_v58 = vpop.f32.mrf.mxu1  ;;  %v4539_v23 = vmul.f32 %v8469_v15, %v8469_v15 }
 0x32b   : > { %v7529_v1 = vld [vmem:[#allocation5 + $0x41c] sm:$0xf]  ;;  %v6040_v17 = vor.u32 %v7601_v44, %v6037_v46  ;;  %4411 = vmatpush.bf16.msra.mxu1 %v5528_v14  ;;  %v4095_v44 = vpop.f32.mrf.mxu3 }
 0x32c   : > { %v5749_v8 = vld [vmem:[#allocation5 + $0x438] sm:$0xf0] }
 0x32d   : > { %v7401_v11 = vld [vmem:[#allocation5 + $0x1c] sm:$0xf]  ;;  %v5752_v32 = vor.u32 %v7529_v1, %v5749_v8  ;;  %4447 = vmatpush.bf16.msra.mxu3 %v6040_v17  ;;  %v4568_v1 = vmul.f32 %v8596_v36, %v8586_v56 }
 0x32e   : > { %v5237_v13 = vld [vmem:[#allocation5 + $0x38] sm:$0xf0] }
 0x32f   : > { %v7465_v18 = vld [vmem:[#allocation5 + $0x21c] sm:$0xf]  ;;  %v5240_v6 = vor.u32 %v7401_v11, %v5237_v13  ;;  %4430 = vmatpush.bf16.msra.mxu2 %v5752_v32 }
 0x330   : > { %v5493_v20 = vld [vmem:[#allocation5 + $0x238] sm:$0xf0] }
 0x331   : > { %v7593_v22 = vld [vmem:[#allocation5 + $0x61c] sm:$0xf]  ;;  %v5496_v24 = vor.u32 %v7465_v18, %v5493_v20  ;;  %4394 = vmatpush.bf16.msra.mxu0 %v5240_v6  ;;  %v8023_v6 = vpop.eup %8022 }
 0x332   : > { %v6005_v33 = vld [vmem:[#allocation5 + $0x638] sm:$0xf0]  ;;  %4431 = vmatmul.bf16.vlgmr.msra.gmra.mxu2 %v8368_v54 }
 0x333   : > { %v7841_v25 = vld [vmem:[#allocation5 + $0xddc] sm:$0xf]  ;;  %v6008_v28 = vor.u32 %v7593_v22, %v6005_v33  ;;  %v4569_v22 = vmul.f32 %v8596_v36, %v4568_v1  ;;  %v4096_v33 = vadd.f32 %v4095_v44, %v4078_v37  ;;  %4412 = vmatpush.bf16.msra.mxu1 %v5496_v24  ;;  %v4097_v15 = vpop.f32.mrf.mxu3 }
 0x334   : > { %v6997_v7 = vld [vmem:[#allocation5 + $0xdf8] sm:$0xf0]  ;;  %4395 = vmatmul.bf16.vlgmr.msra.gmra.mxu0 %v8364_v48 }
 0x335   : > { %v7713_v31 = vld [vmem:[#allocation5 + $0x9dc] sm:$0xf]  ;;  %v7000_v46 = vor.u32 %v7841_v25, %v6997_v7  ;;  %4448 = vmatpush.bf16.msra.mxu3 %v6008_v28  ;;  %v4551_v60 = vmul.f32 %v4096_v33, %v4096_v33  ;;  %v4079_v28 = vpop.f32.mrf.mxu2 }
 0x336   : > { %v6485_v29 = vld [vmem:[#allocation5 + $0x9f8] sm:$0xf0]  ;;  %4413 = vmatmul.bf16.vlgmr.msra.gmra.mxu1 %v8366_v53 }
 0x337   : > { %v7777_v30 = vld [vmem:[#allocation5 + $0xbdc] sm:$0xf]  ;;  %v6488_v51 = vor.u32 %v7713_v31, %v6485_v29  ;;  %4495 = vmatpush.bf16.msrb.mxu2 %v7000_v46  ;;  %v4570_v29 = vmul.f32 0.5, %v4569_v22 }
 0x338   : > { %v6741_v50 = vld [vmem:[#allocation5 + $0xbf8] sm:$0xf0]  ;;  %4449 = vmatmul.bf16.vlgmr.msra.gmra.mxu3 %v8370_v57 }
 0x339   : > { %v7905_v26 = vld [vmem:[#allocation5 + $0xfdc] sm:$0xf]  ;;  %v6744_v8 = vor.u32 %v7777_v30, %v6741_v50  ;;  %4459 = vmatpush.bf16.msrb.mxu0 %v6488_v51  ;;  %v8606_v50 = vadd.f32 %v4551_v60, %v4539_v23  ;;  %v4616_v51 = vmul.f32 %v8023_v6, %v8598_v40  ;;  %v4571_v1 = vsub.f32 1.5, %v4570_v29 }
 0x33a   : > { %v7253_v21 = vld [vmem:[#allocation5 + $0xff8] sm:$0xf0] }
 0x33b   : > { %v7833_v59 = vld [vmem:[#allocation5 + $0xd9c] sm:$0xf]  ;;  %v7256_v11 = vor.u32 %v7905_v26, %v7253_v21  ;;  %4477 = vmatpush.bf16.msrb.mxu1 %v6744_v8  ;;  %v4572_v22 = vmul.f32 %v8596_v36, %v4571_v1  ;;  %v8621_v54 = vpop.f32.mrf.mxu3  ;;  %v4577_v1 = vand.u32 2147483648, %v8586_v56  ;;  %8024 = vrsqrt.f32 %v8606_v50 }
 0x33c   : > { %v6965_v38 = vld [vmem:[#allocation5 + $0xdb8] sm:$0xf0]  ;;  %vm4670_vm5 = vcmp.eq.f32.partialorder %v8606_v50, inf  ;;  %vm4672_vm9 = vcmp.eq.f32.partialorder %v8606_v50, 0.0 }
 0x33d   : > { %v7705_v13 = vld [vmem:[#allocation5 + $0x99c] sm:$0xf]  ;;  %v6968_v25 = vor.u32 %v7833_v59, %v6965_v38  ;;  %4513 = vmatpush.bf16.msrb.mxu3 %v7256_v11  ;;  %v8609_v59 = vpop.f32.mrf.mxu0  ;;  %v8611_v38 = vpop.f32.mrf.mxu1  ;;  %v4573_v29 = vmul.f32 %v4572_v22, %v8586_v56 }
 0x33e   : > { %v6453_v61 = vld [vmem:[#allocation5 + $0x9b8] sm:$0xf0] }
 0x33f   : > { %v7769_v14 = vld [vmem:[#allocation5 + $0xb9c] sm:$0xf]  ;;  %v6456_v7 = vor.u32 %v7705_v13, %v6453_v61  ;;  %4496 = vmatpush.bf16.msrb.mxu2 %v6968_v25  ;;  %v4617_v13 = vmul.f32 %v8023_v6, %v4616_v51 }
 0x340   : > { %v6709_v17 = vld [vmem:[#allocation5 + $0xbb8] sm:$0xf0] }
 0x341   : > { %v7897_v18 = vld [vmem:[#allocation5 + $0xf9c] sm:$0xf]  ;;  %v6712_v27 = vor.u32 %v7769_v14, %v6709_v17  ;;  %4460 = vmatpush.bf16.msrb.mxu0 %v6456_v7  ;;  %v4618_v25 = vmul.f32 0.5, %v4617_v13 }
 0x342   : > { %v7221_v20 = vld [vmem:[#allocation5 + $0xfb8] sm:$0xf0]  ;;  %4436 = vmatmul.bf16.gmra.mxu2 %v8382_v49  ;;  %v4127_v49 = vadd.f32 %v8611_v38, %v8609_v59 }
 0x343   : > { %v7224_v31 = vor.u32 %v7897_v18, %v7221_v20  ;;  %v7825_v30 = vld [vmem:[#allocation5 + $0xd5c] sm:$0xf]  ;;  %4478 = vmatpush.bf16.msrb.mxu1 %v6712_v27  ;;  %v4619_v36 = vsub.f32 1.5, %v4618_v25 }
 0x344   : > { %v6933_v32 = vld [vmem:[#allocation5 + $0xd78] sm:$0xf0]  ;;  %4400 = vmatmul.bf16.gmra.mxu0 %v8378_v42 }
 0x345   : > { %v7697_v26 = vld [vmem:[#allocation5 + $0x95c] sm:$0xf]  ;;  %4514 = vmatpush.bf16.msrb.mxu3 %v7224_v31  ;;  %v6936_v37 = vor.u32 %v7825_v30, %v6933_v32  ;;  %v4620_v15 = vmul.f32 %v8023_v6, %v4619_v36 }
 0x346   : > { %v6421_v21 = vld [vmem:[#allocation5 + $0x978] sm:$0xf0]  ;;  %4418 = vmatmul.bf16.gmra.mxu1 %v8380_v47 }
 0x347   : > { %v7761_v24 = vld [vmem:[#allocation5 + $0xb5c] sm:$0xf]  ;;  %v6424_v35 = vor.u32 %v7697_v26, %v6421_v21  ;;  %4497 = vmatpush.bf16.msrb.mxu2 %v6936_v37  ;;  %v8619_v21 = vpop.f32.mrf.mxu2  ;;  %v4621_v6 = vmul.f32 %v4620_v15, %v8598_v40 }
 0x348   : > { %v6677_v39 = vld [vmem:[#allocation5 + $0xb78] sm:$0xf0]  ;;  %4454 = vmatmul.bf16.gmra.mxu3 %v8384_v52  ;;  %v7916_v52 = vld [vmem:[#allocation7 + $0x30] sm:$0xff] }
 0x349   : > { %v7889_v44 = vld [vmem:[#allocation5 + $0xf5c] sm:$0xf]  ;;  %v6680_v61 = vor.u32 %v7761_v24, %v6677_v39  ;;  %4461 = vmatpush.bf16.msrb.mxu0 %v6424_v35  ;;  %v8623_v39 = vpop.f32.mrf.mxu0 }
 0x34a   : > { %v7189_v46 = vld [vmem:[#allocation5 + $0xf78] sm:$0xf0] }
 0x34b   : > { %v7817_v58 = vld [vmem:[#allocation5 + $0xd1c] sm:$0xf]  ;;  %v7192_v14 = vor.u32 %v7889_v44, %v7189_v46  ;;  %4479 = vmatpush.bf16.msrb.mxu1 %v6680_v61  ;;  %v8625_v44 = vpop.f32.mrf.mxu1 }
 0x34c   : > { %v6901_v8 = vld [vmem:[#allocation5 + $0xd38] sm:$0xf0]  ;;  %v4129_v59 = vadd.f32 %v8625_v44, %v8623_v39 }
 0x34d   : > { %v7689_v11 = vld [vmem:[#allocation5 + $0x91c] sm:$0xf]  ;;  %v6904_v7 = vor.u32 %v7817_v58, %v6901_v8  ;;  %4515 = vmatpush.bf16.msrb.mxu3 %v7192_v14 }
 0x34e   : > { %v6389_v17 = vld [vmem:[#allocation5 + $0x938] sm:$0xf0] }
 0x34f   : > { %v7753_v18 = vld [vmem:[#allocation5 + $0xb1c] sm:$0xf]  ;;  %v6392_v60 = vor.u32 %v7689_v11, %v6389_v17  ;;  %4498 = vmatpush.bf16.msrb.mxu2 %v6904_v7  ;;  %v4575_v11 = vsel %vm4574_vm0, %v8586_v56, %v4573_v29 }
 0x350   : > { %v6645_v20 = vld [vmem:[#allocation5 + $0xb38] sm:$0xf0] }
 0x351   : > { %v7881_v33 = vld [vmem:[#allocation5 + $0xf1c] sm:$0xf]  ;;  %v6648_v48 = vor.u32 %v7753_v18, %v6645_v20  ;;  %4462 = vmatpush.bf16.msrb.mxu0 %v6392_v60  ;;  %v4625_v18 = vand.u32 2147483648, %v8598_v40 }
 0x352   : > { %v7157_v23 = vld [vmem:[#allocation5 + $0xf38] sm:$0xf0] }
 0x353   : > { %v7809_v27 = vld [vmem:[#allocation5 + $0xcdc] sm:$0xf]  ;;  %v7160_v53 = vor.u32 %v7881_v33, %v7157_v23  ;;  %4480 = vmatpush.bf16.msrb.mxu1 %v6648_v48  ;;  %v4623_v33 = vsel %vm4622_vm1, %v8598_v40, %v4621_v6  ;;  %v8636_v23 = vsel %vm4576_vm2, %v4577_v1, %v4575_v11  ;;  %v8648_v15 = vpop.f32.mrf.mxu1 }
 0x354   : > { %v6869_v31 = vld [vmem:[#allocation5 + $0xcf8] sm:$0xf0]  ;;  %v8638_v25 = vsel %vm4624_vm3, %v4625_v18, %v4623_v33 }
 0x355   : > { %v7681_v30 = vld [vmem:[#allocation5 + $0x8dc] sm:$0xf]  ;;  %v6872_v46 = vor.u32 %v7809_v27, %v6869_v31  ;;  %4516 = vmatpush.bf16.msrb.mxu3 %v7160_v53  ;;  %v4711_v29 = vpack.c.bf16 %v8638_v25, %v8636_v23 }
 0x356   : > { %v6357_v32 = vld [vmem:[#allocation5 + $0x8f8] sm:$0xf0] }
 0x357   : > { %v7745_v26 = vld [vmem:[#allocation5 + $0xadc] sm:$0xf]  ;;  %v6360_v37 = vor.u32 %v7681_v30, %v6357_v32  ;;  %4499 = vmatpush.bf16.msrb.mxu2 %v6872_v46  ;;  %v8642_v30 = vpop.f32.mrf.mxu2  ;;  %v8644_v32 = vpop.f32.mrf.mxu3 }
 0x358   : > { %v6613_v57 = vld [vmem:[#allocation5 + $0xaf8] sm:$0xf0] }
 0x359   : > { %v7873_v24 = vld [vmem:[#allocation5 + $0xedc] sm:$0xf]  ;;  %v6616_v13 = vor.u32 %v7745_v26, %v6613_v57  ;;  %4463 = vmatpush.bf16.msrb.mxu0 %v6360_v37 }
 0x35a   : > { %v7125_v28 = vld [vmem:[#allocation5 + $0xef8] sm:$0xf0] }
 0x35b   : > { %v7801_v51 = vld [vmem:[#allocation5 + $0xc9c] sm:$0xf]  ;;  %v7128_v61 = vor.u32 %v7873_v24, %v7125_v28  ;;  %4481 = vmatpush.bf16.msrb.mxu1 %v6616_v13  ;;  %v8646_v28 = vpop.f32.mrf.mxu0 }
 0x35c   : > { %v6837_v35 = vld [vmem:[#allocation5 + $0xcb8] sm:$0xf0] }
 0x35d   : > { %v7673_v58 = vld [vmem:[#allocation5 + $0x89c] sm:$0xf]  ;;  %v6840_v7 = vor.u32 %v7801_v51, %v6837_v35  ;;  %4517 = vmatpush.bf16.msrb.mxu3 %v7128_v61 }
 0x35e   : > { %v6325_v8 = vld [vmem:[#allocation5 + $0x8b8] sm:$0xf0] }
 0x35f   : > { %v7737_v14 = vld [vmem:[#allocation5 + $0xa9c] sm:$0xf]  ;;  %v6328_v60 = vor.u32 %v7673_v58, %v6325_v8  ;;  %4500 = vmatpush.bf16.msrb.mxu2 %v6840_v7  ;;  %v4149_v33 = vpop.f32.mrf.mxu2  ;;  %v4167_v7 = vpop.f32.mrf.mxu3 }
 0x360   : > { %v6581_v17 = vld [vmem:[#allocation5 + $0xab8] sm:$0xf0] }
 0x361   : > { %v7865_v20 = vld [vmem:[#allocation5 + $0xe9c] sm:$0xf]  ;;  %v6584_v56 = vor.u32 %v7737_v14, %v6581_v17  ;;  %4464 = vmatpush.bf16.msrb.mxu0 %v6328_v60 }
 0x362   : > { %v7093_v22 = vld [vmem:[#allocation5 + $0xeb8] sm:$0xf0] }
 0x363   : > { %v7793_v27 = vld [vmem:[#allocation5 + $0xc5c] sm:$0xf]  ;;  %v7096_v36 = vor.u32 %v7865_v20, %v7093_v22  ;;  %4482 = vmatpush.bf16.msrb.mxu1 %v6584_v56  ;;  %v4115_v47 = vpop.f32.mrf.mxu0  ;;  %v4145_v56 = vadd.f32 %v8619_v21, %v4127_v49  ;;  %v4147_v21 = vadd.f32 %v8642_v30, %v4129_v59 }
 0x364   : > { %v6805_v31 = vld [vmem:[#allocation5 + $0xc78] sm:$0xf0] }
 0x365   : > { %v7665_v48 = vld [vmem:[#allocation5 + $0x85c] sm:$0xf]  ;;  %v6808_v46 = vor.u32 %v7793_v27, %v6805_v31  ;;  %4518 = vmatpush.bf16.msrb.mxu3 %v7096_v36  ;;  %v4133_v27 = vpop.f32.mrf.mxu1  ;;  %v7924_v31 = vld [vmem:[#allocation7 + $0x70] sm:$0xff]  ;;  %v4165_v39 = vadd.f32 %v8644_v32, %v4147_v21 }
 0x366   : > { %v6293_v53 = vld [vmem:[#allocation5 + $0x878] sm:$0xf0]  ;;  %v7912_v32 = vld [vmem:[#allocation7 + $0x10] sm:$0xff] }
 0x367   : > { %v7729_v40 = vld [vmem:[#allocation5 + $0xa5c] sm:$0xf]  ;;  %v6296_v51 = vor.u32 %v7665_v48, %v6293_v53  ;;  %4501 = vmatpush.bf16.msrb.mxu2 %v6808_v46  ;;  %v4151_v36 = vpop.f32.mrf.mxu2  ;;  %v4169_v48 = vpop.f32.mrf.mxu3  ;;  %v4163_v53 = vadd.f32 %v8621_v54, %v4145_v56  ;;  %v7914_v54 = vld [vmem:[#allocation7 + $0x20] sm:$0xff] }
 0x368   : > { %v6549_v26 = vld [vmem:[#allocation5 + $0xa78] sm:$0xf0]  ;;  %v7922_v46 = vld [vmem:[#allocation7 + $0x60] sm:$0xff] }
 0x369   : > { %v7857_v57 = vld [vmem:[#allocation5 + $0xe5c] sm:$0xf]  ;;  %v6552_v35 = vor.u32 %v7729_v40, %v6549_v26  ;;  %4465 = vmatpush.bf16.msrb.mxu0 %v6296_v51 }
 0x36a   : > { %v7061_v24 = vld [vmem:[#allocation5 + $0xe78] sm:$0xf0] }
 0x36b   : > { %v7785_v1 = vld [vmem:[#allocation5 + $0xc1c] sm:$0xf]  ;;  %v7064_v58 = vor.u32 %v7857_v57, %v7061_v24  ;;  %4483 = vmatpush.bf16.msrb.mxu1 %v6552_v35  ;;  %v4180_v40 = vpop.f32.mrf.mxu0  ;;  %v7915_v57 = vld [vmem:[#allocation7 + $0x28] sm:$0xff] }
 0x36c   : > { %v6773_v37 = vld [vmem:[#allocation5 + $0xc38] sm:$0xf0]  ;;  %v7923_v24 = vld [vmem:[#allocation7 + $0x68] sm:$0xff]  ;;  %v4181_v38 = vadd.f32 %v4180_v40, %v4163_v53 }
 0x36d   : > { %v7657_v8 = vld [vmem:[#allocation5 + $0x81c] sm:$0xf]  ;;  %v6776_v17 = vor.u32 %v7785_v1, %v6773_v37  ;;  %4519 = vmatpush.bf16.msrb.mxu3 %v7064_v58  ;;  %v4198_v26 = vpop.f32.mrf.mxu1 }
 0x36e   : > { %v6261_v11 = vld [vmem:[#allocation5 + $0x838] sm:$0xf0]  ;;  %v4199_v51 = vadd.f32 %v4198_v26, %v4181_v38  ;;  %v4540_v38 = vmul.f32 %v8500_v41, %v8500_v41 }
 0x36f   : > { %v7721_v6 = vld [vmem:[#allocation5 + $0xa1c] sm:$0xf]  ;;  %v6264_v18 = vor.u32 %v7657_v8, %v6261_v11  ;;  %4502 = vmatpush.bf16.msrb.mxu2 %v6776_v17  ;;  %v4216_v1 = vpop.f32.mrf.mxu2  ;;  %v4234_v37 = vpop.f32.mrf.mxu3  ;;  %v4532_v8 = vmul.f32 %v8491_v12, %v8491_v12  ;;  %v7911_v12 = vld [vmem:[#allocation7 + $0x8] sm:$0xff] }
 0x370   : > { %v6517_v13 = vld [vmem:[#allocation5 + $0xa38] sm:$0xf0]  ;;  %v4217_v44 = vadd.f32 %v4216_v1, %v4199_v51  ;;  %v8025_v17 = vpop.eup %8024 }
 0x371   : > { %v7849_v61 = vld [vmem:[#allocation5 + $0xe1c] sm:$0xf]  ;;  %v6520_v20 = vor.u32 %v7721_v6, %v6517_v13  ;;  %4466 = vmatpush.bf16.msrb.mxu0 %v6264_v18  ;;  %v7920_v13 = vld [vmem:[#allocation7 + $0x50] sm:$0xff]  ;;  %v4664_v27 = vmul.f32 %v8025_v17, %v8606_v50 }
 0x372   : > { %v7029_v14 = vld [vmem:[#allocation5 + $0xe38] sm:$0xf0]  ;;  %4503 = vmatmul.bf16.vlgmr.msrb.gmra.mxu2 %v8402_v3  ;;  %v4235_v30 = vadd.f32 %v4234_v37, %v4217_v44 }
 0x373   : > { %v7032_v22 = vor.u32 %v7849_v61, %v7029_v14  ;;  %v7917_v42 = vld [vmem:[#allocation7 + $0x38] sm:$0xff]  ;;  %4484 = vmatpush.bf16.msrb.mxu1 %v6520_v20  ;;  %v4182_v35 = vpop.f32.mrf.mxu0  ;;  %v4665_v53 = vmul.f32 %v8025_v17, %v4664_v27 }
 0x374   : > { %v7925_v60 = vld [vmem:[#allocation7 + $0x78] sm:$0xff]  ;;  %4467 = vmatmul.bf16.vlgmr.msrb.gmra.mxu0 %v8398_v62  ;;  %v4183_v58 = vadd.f32 %v4182_v35, %v4165_v39  ;;  %v4544_v6 = vmul.f32 %v4235_v30, %v4235_v30 }
 0x375   : > { %4520 = vmatpush.bf16.msrb.mxu3 %v7032_v22  ;;  %4975 = vmatpush.bf16.msra.mxu0 %v7917_v42  ;;  %v4200_v62 = vpop.f32.mrf.mxu1  ;;  %v7921_v3 = vld [vmem:[#allocation7 + $0x58] sm:$0xff] }
 0x376   : > { %4485 = vmatmul.bf16.vlgmr.msrb.gmra.mxu1 %v8400_v63  ;;  %v7913_v63 = vld [vmem:[#allocation7 + $0x18] sm:$0xff]  ;;  %v8671_v61 = vadd.f32 %v4544_v6, %v4532_v8  ;;  %v4201_v14 = vadd.f32 %v4200_v62, %v4183_v58 }
 0x377   : > { %4993 = vmatpush.bf16.msra.mxu1 %v7925_v60  ;;  %v4218_v18 = vpop.f32.mrf.mxu2  ;;  %v4236_v20 = vpop.f32.mrf.mxu3 }
 0x378   : > { %4521 = vmatmul.bf16.vlgmr.msrb.gmra.mxu3 %v8404_v4  ;;  %v4132_v4 = vadd.f32 %v8648_v15, %v8646_v28  ;;  %8026 = vrsqrt.f32 %v8671_v61  ;;  %v4219_v28 = vadd.f32 %v4218_v18, %v4201_v14  ;;  %vm4586_vm4 = vcmp.eq.f32.partialorder %v8671_v61, inf }
 0x379   : > { %4976 = vmatpush.bf16.msra.mxu0 %v7916_v52  ;;  %v7910_v52 = vld [vmem:[#allocation7] sm:$0xff]  ;;  %vm4588_vm7 = vcmp.eq.f32.partialorder %v8671_v61, 0.0 }
 0x37a   : > { %v4150_v11 = vadd.f32 %v4149_v33, %v4132_v4  ;;  %v7919_v33 = vld [vmem:[#allocation7 + $0x48] sm:$0xff]  ;;  %v4237_v60 = vadd.f32 %v4236_v20, %v4219_v28 }
 0x37b   : > { %4994 = vmatpush.bf16.msra.mxu1 %v7924_v31  ;;  %v4185_v15 = vpop.f32.mrf.mxu0  ;;  %v7918_v31 = vld [vmem:[#allocation7 + $0x40] sm:$0xff] }
 0x37c   : > { %v4168_v22 = vadd.f32 %v4167_v7, %v4150_v11  ;;  %v4536_v7 = vmul.f32 %v8494_v55, %v8494_v55  ;;  %v4548_v49 = vmul.f32 %v4237_v60, %v4237_v60  ;;  %v4673_v60 = vand.u32 2147483648, %v8606_v50 }
 0x37d   : > { %4977 = vmatpush.bf16.msra.mxu0 %v7915_v57  ;;  %v4203_v42 = vpop.f32.mrf.mxu1 }
 0x37e   : > { %v4186_v47 = vadd.f32 %v4185_v15, %v4168_v22  ;;  %v8027_v56 = vpop.eup %8026  ;;  %v4560_v36 = vadd.f32 %v4548_v49, %v4536_v7 }
 0x37f   : > { %4995 = vmatpush.bf16.msra.mxu1 %v7923_v24  ;;  %v4221_v40 = vpop.f32.mrf.mxu2  ;;  %v4666_v24 = vmul.f32 0.5, %v4665_v53 }
 0x380   : > { %v4204_v48 = vadd.f32 %v4203_v42, %v4186_v47  ;;  %8028 = vrsqrt.f32 %v4560_v36  ;;  %vm4634_vm6 = vcmp.eq.f32.partialorder %v4560_v36, inf  ;;  %v4637_v22 = vand.u32 2147483648, %v4560_v36 }
 0x381   : > { %4978 = vmatpush.bf16.msra.mxu0 %v7914_v54  ;;  %v4667_v1 = vsub.f32 1.5, %v4666_v24  ;;  %vm4636_vm8 = vcmp.eq.f32.partialorder %v4560_v36, 0.0  ;;  %v7931_v24 = vld [vmem:[#allocation7 + $0xa8] sm:$0xff] }
 0x382   : > { %4508 = vmatmul.bf16.gmra.mxu2 %v8416_v9  ;;  %v4222_v26 = vadd.f32 %v4221_v40, %v4204_v48 }
 0x383   : > { %4996 = vmatpush.bf16.msra.mxu1 %v7922_v46  ;;  %v4187_v55 = vpop.f32.mrf.mxu0  ;;  %v4668_v4 = vmul.f32 %v8025_v17, %v4667_v1 }
 0x384   : > { %4472 = vmatmul.bf16.gmra.mxu0 %v8412_v2  ;;  %v4239_v2 = vpop.f32.mrf.mxu3 }
 0x385   : > { %4979 = vmatpush.bf16.msra.mxu0 %v7913_v63  ;;  %v4205_v57 = vpop.f32.mrf.mxu1  ;;  %v4669_v11 = vmul.f32 %v4668_v4, %v8606_v50 }
 0x386   : > { %4490 = vmatmul.bf16.gmra.mxu1 %v8414_v5  ;;  %v4580_v5 = vmul.f32 %v8027_v56, %v8671_v61  ;;  %v8029_v46 = vpop.eup %8028 }
 0x387   : > { %4997 = vmatpush.bf16.msra.mxu1 %v7921_v3  ;;  %v4223_v37 = vpop.f32.mrf.mxu2  ;;  %v4628_v44 = vmul.f32 %v8029_v46, %v4560_v36  ;;  %v4671_v28 = vsel %vm4670_vm5, %v8606_v50, %v4669_v11 }
 0x388   : > { %4526 = vmatmul.bf16.gmra.mxu3 %v8418_v10  ;;  %v4581_v9 = vmul.f32 %v8027_v56, %v4580_v5  ;;  %v4240_v10 = vadd.f32 %v4239_v2, %v4222_v26  ;;  %v4674_v7 = vsel %vm4672_vm9, %v4673_v60, %v4671_v28  ;;  %v7932_v5 = vld [vmem:[#allocation7 + $0xb0] sm:$0xff] }
 0x389   : > { %4980 = vmatpush.bf16.msra.mxu0 %v7912_v32  ;;  %v4629_v3 = vmul.f32 %v8029_v46, %v4628_v44  ;;  %v4715_v53 = vpack.c.bf16 %v4674_v7, %v4674_v7  ;;  %v7929_v44 = vld [vmem:[#allocation7 + $0x98] sm:$0xff] }
 0x38a   : > { %v4582_v59 = vmul.f32 0.5, %v4581_v9  ;;  %v4552_v21 = vmul.f32 %v4240_v10, %v4240_v10 }
 0x38b   : > { %4998 = vmatpush.bf16.msra.mxu1 %v7920_v13  ;;  %v4252_v35 = vpop.f32.mrf.mxu0  ;;  %v4630_v41 = vmul.f32 0.5, %v4629_v3 }
 0x38c   : > { %v4583_v54 = vsub.f32 1.5, %v4582_v59  ;;  %v8684_v51 = vadd.f32 %v4552_v21, %v4540_v38  ;;  %v4241_v39 = vpop.f32.mrf.mxu3 }
 0x38d   : > { %4981 = vmatpush.bf16.msra.mxu0 %v7911_v12  ;;  %v4270_v62 = vpop.f32.mrf.mxu1  ;;  %v4631_v58 = vsub.f32 1.5, %v4630_v41 }
 0x38e   : > { %8030 = vrsqrt.f32 %v8684_v51  ;;  %v4584_v63 = vmul.f32 %v8027_v56, %v4583_v54  ;;  %vm4682_vm10 = vcmp.eq.f32.partialorder %v8684_v51, inf  ;;  %v4685_v57 = vand.u32 2147483648, %v8684_v51 }
 0x38f   : > { %4999 = vmatpush.bf16.msra.mxu1 %v7919_v33  ;;  %v4288_v6 = vpop.f32.mrf.mxu2  ;;  %v4632_v13 = vmul.f32 %v8029_v46, %v4631_v58  ;;  %vm4684_vm11 = vcmp.eq.f32.partialorder %v8684_v51, 0.0  ;;  %v4271_v9 = vadd.f32 %v4270_v62, %v4252_v35  ;;  %v7930_v46 = vld [vmem:[#allocation7 + $0xa0] sm:$0xff] }
 0x390   : > { %v4585_v30 = vmul.f32 %v4584_v63, %v8671_v61 }
 0x391   : > { %4982 = vmatpush.bf16.msra.mxu0 %v7910_v52  ;;  %v4633_v23 = vmul.f32 %v4632_v13, %v4560_v36  ;;  %v4289_v59 = vadd.f32 %v4288_v6, %v4271_v9 }
 0x392   : > { %v4587_v17 = vsel %vm4586_vm4, %v8671_v61, %v4585_v30 }
 0x393   : > { %5000 = vmatpush.bf16.msra.mxu1 %v7918_v31  ;;  %v4254_v18 = vpop.f32.mrf.mxu0  ;;  %v4635_v15 = vsel %vm4634_vm6, %v4560_v36, %v4633_v23  ;;  %v7933_v36 = vld [vmem:[#allocation7 + $0xb8] sm:$0xff]  ;;  %v7926_v23 = vld [vmem:[#allocation7 + $0x80] sm:$0xff] }
 0x394   : > { %4983 = vmatmul.bf16.vlgmr.msra.gmra.mxu0 %v4711_v29  ;;  %v8031_v8 = vpop.eup %8030  ;;  %v4306_v32 = vpop.f32.mrf.mxu3  ;;  %v4589_v29 = vand.u32 2147483648, %v8671_v61  ;;  %v4638_v33 = vsel %vm4636_vm8, %v4637_v22, %v4635_v15  ;;  %5011 = vmatpush.bf16.msra.mxu2 %v7933_v36 }
 0x395   : > { %v4676_v14 = vmul.f32 %v8031_v8, %v8684_v51  ;;  %v4272_v20 = vpop.f32.mrf.mxu1  ;;  %v4307_v1 = vadd.f32 %v4306_v32, %v4289_v59 }
 0x396   : > { %v4590_v12 = vsel %vm4588_vm7, %v4589_v29, %v4587_v17  ;;  %v4273_v63 = vadd.f32 %v4272_v20, %v4254_v18  ;;  %v4533_v17 = vmul.f32 %v8522_v0, %v8522_v0  ;;  %v4537_v0 = vmul.f32 %v8525_v45, %v8525_v45 }
 0x397   : > { %v4677_v25 = vmul.f32 %v8031_v8, %v4676_v14  ;;  %v4712_v47 = vpack.c.bf16 %v4638_v33, %v4590_v12  ;;  %v4290_v49 = vpop.f32.mrf.mxu2  ;;  %v7927_v14 = vld [vmem:[#allocation7 + $0x88] sm:$0xff] }
 0x398   : > { %5012 = vmatpush.bf16.msra.mxu2 %v7932_v5  ;;  %v4291_v4 = vadd.f32 %v4290_v49, %v4273_v63  ;;  %v4541_v5 = vmul.f32 %v8531_v34, %v8531_v34 }
 0x399   : > { %v4678_v42 = vmul.f32 0.5, %v4677_v25  ;;  %5001 = vmatmul.bf16.vlgmr.msra.gmra.mxu1 %v4712_v47 }
 0x39b   : > { %v4679_v27 = vsub.f32 1.5, %v4678_v42  ;;  %v4257_v56 = vpop.f32.mrf.mxu0 }
 0x39c   : > { %v4308_v52 = vpop.f32.mrf.mxu3  ;;  %5013 = vmatpush.bf16.msra.mxu2 %v7931_v24 }
 0x39d   : > { %v4680_v31 = vmul.f32 %v8031_v8, %v4679_v27  ;;  %v4275_v48 = vpop.f32.mrf.mxu1  ;;  %v4309_v30 = vadd.f32 %v4308_v52, %v4291_v4 }
 0x39e   : > { %v4276_v6 = vadd.f32 %v4275_v48, %v4257_v56 }
 0x39f   : > { %v4681_v61 = vmul.f32 %v4680_v31, %v8684_v51  ;;  %v4293_v40 = vpop.f32.mrf.mxu2 }
 0x3a0   : > { %5014 = vmatpush.bf16.msra.mxu2 %v7930_v46  ;;  %v4294_v18 = vadd.f32 %v4293_v40, %v4276_v6 }
 0x3a1   : > { %v4683_v50 = vsel %vm4682_vm10, %v8684_v51, %v4681_v61  ;;  %v7928_v51 = vld [vmem:[#allocation7 + $0x90] sm:$0xff] }
 0x3a2   : > { %v4686_v10 = vsel %vm4684_vm11, %v4685_v57, %v4683_v50 }
 0x3a3   : > { %v4259_v26 = vpop.f32.mrf.mxu0  ;;  %v4716_v38 = vpack.c.bf16 %v4686_v10, %v4686_v10 }
 0x3a4   : > { %4988 = vmatmul.bf16.gmra.mxu0 %v4715_v53  ;;  %v4311_v2 = vpop.f32.mrf.mxu3  ;;  %5015 = vmatpush.bf16.msra.mxu2 %v7929_v44 }
 0x3a5   : > { %v4277_v55 = vpop.f32.mrf.mxu1  ;;  %v4312_v15 = vadd.f32 %v4311_v2, %v4294_v18 }
 0x3a7   : > { %v4295_v21 = vpop.f32.mrf.mxu2 }
 0x3a8   : > { %5016 = vmatpush.bf16.msra.mxu2 %v7928_v51 }
 0x3a9   : > { %5006 = vmatmul.bf16.gmra.mxu1 %v4716_v38 }
 0x3ab   : > { %v4324_v37 = vpop.f32.mrf.mxu0 }
 0x3ac   : > { %v4313_v54 = vpop.f32.mrf.mxu3  ;;  %v4325_v3 = vadd.f32 %v4324_v37, %v4307_v1  ;;  %5017 = vmatpush.bf16.msra.mxu2 %v7927_v14 }
 0x3ad   : > { %v4342_v39 = vpop.f32.mrf.mxu1 }
 0x3ae   : > { %v4343_v35 = vadd.f32 %v4342_v39, %v4325_v3 }
 0x3af   : > { %v4360_v62 = vpop.f32.mrf.mxu2 }
 0x3b0   : > { %v4361_v58 = vadd.f32 %v4360_v62, %v4343_v35  ;;  %5018 = vmatpush.bf16.msra.mxu2 %v7926_v23 }
 0x3b3   : > { %v4326_v8 = vpop.f32.mrf.mxu0 }
 0x3b4   : > { %v4378_v41 = vpop.f32.mrf.mxu3  ;;  %v4327_v32 = vadd.f32 %v4326_v8, %v4309_v30 }
 0x3b5   : > { %v4344_v11 = vpop.f32.mrf.mxu1  ;;  %v4379_v13 = vadd.f32 %v4378_v41, %v4361_v58 }
 0x3b6   : > { %v4345_v29 = vadd.f32 %v4344_v11, %v4327_v32 }
 0x3b7   : > { %v4545_v20 = vmul.f32 %v4379_v13, %v4379_v13  ;;  %v4362_v22 = vpop.f32.mrf.mxu2 }
 0x3b8   : > { %v4363_v42 = vadd.f32 %v4362_v22, %v4345_v29 }
 0x3b9   : > { %v8708_v25 = vadd.f32 %v4545_v20, %v4533_v17 }
 0x3bb   : > { %8032 = vrsqrt.f32 %v8708_v25  ;;  %v4329_v12 = vpop.f32.mrf.mxu0  ;;  %vm4598_vm12 = vcmp.eq.f32.partialorder %v8708_v25, inf  ;;  %v4601_v30 = vand.u32 2147483648, %v8708_v25  ;;  %vm4600_vm14 = vcmp.eq.f32.partialorder %v8708_v25, 0.0 }
 0x3bc   : > { %v4380_v28 = vpop.f32.mrf.mxu3  ;;  %v4330_v47 = vadd.f32 %v4329_v12, %v4312_v15  ;;  %v7940_v12 = vld [vmem:[#allocation7 + $0xf0] sm:$0xff] }
 0x3bd   : > { %v4347_v33 = vpop.f32.mrf.mxu1  ;;  %v4381_v60 = vadd.f32 %v4380_v28, %v4363_v42  ;;  %v7941_v28 = vld [vmem:[#allocation7 + $0xf8] sm:$0xff] }
 0x3be   : > { %v4348_v52 = vadd.f32 %v4347_v33, %v4330_v47  ;;  %5029 = vmatpush.bf16.msra.mxu3 %v7941_v28 }
 0x3bf   : > { %v4549_v27 = vmul.f32 %v4381_v60, %v4381_v60  ;;  %v4365_v31 = vpop.f32.mrf.mxu2 }
 0x3c0   : > { %v4366_v53 = vadd.f32 %v4365_v31, %v4348_v52 }
 0x3c1   : > { %v8033_v7 = vpop.eup %8032  ;;  %v4561_v49 = vadd.f32 %v4549_v27, %v4537_v0  ;;  %v7939_v0 = vld [vmem:[#allocation7 + $0xe8] sm:$0xff] }
 0x3c2   : > { %v4592_v48 = vmul.f32 %v8033_v7, %v8708_v25  ;;  %5030 = vmatpush.bf16.msra.mxu3 %v7940_v12 }
 0x3c3   : > { %8034 = vrsqrt.f32 %v4561_v49  ;;  %v4331_v61 = vpop.f32.mrf.mxu0  ;;  %vm4646_vm13 = vcmp.eq.f32.partialorder %v4561_v49, inf  ;;  %v4649_v58 = vand.u32 2147483648, %v4561_v49  ;;  %vm4648_vm15 = vcmp.eq.f32.partialorder %v4561_v49, 0.0 }
 0x3c4   : > { %v4383_v56 = vpop.f32.mrf.mxu3  ;;  %v4593_v40 = vmul.f32 %v8033_v7, %v4592_v48  ;;  %v7938_v48 = vld [vmem:[#allocation7 + $0xe0] sm:$0xff] }
 0x3c5   : > { %v4349_v36 = vpop.f32.mrf.mxu1  ;;  %v4384_v2 = vadd.f32 %v4383_v56, %v4366_v53 }
 0x3c6   : > { %v4594_v50 = vmul.f32 0.5, %v4593_v40  ;;  %5031 = vmatpush.bf16.msra.mxu3 %v7939_v0  ;;  %v7937_v40 = vld [vmem:[#allocation7 + $0xd8] sm:$0xff] }
 0x3c7   : > { %v4553_v26 = vmul.f32 %v4384_v2, %v4384_v2  ;;  %v4367_v9 = vpop.f32.mrf.mxu2 }
 0x3c8   : > { %v4595_v45 = vsub.f32 1.5, %v4594_v50 }
 0x3c9   : > { %v8035_v55 = vpop.eup %8034  ;;  %v4565_v57 = vadd.f32 %v4553_v26, %v4541_v5  ;;  %v7936_v26 = vld [vmem:[#allocation7 + $0xd0] sm:$0xff] }
 0x3ca   : > { %v4640_v24 = vmul.f32 %v8035_v55, %v4561_v49  ;;  %v4596_v21 = vmul.f32 %v8033_v7, %v4595_v45  ;;  %5032 = vmatpush.bf16.msra.mxu3 %v7938_v48 }
 0x3cb   : > { %8036 = vrsqrt.f32 %v4565_v57  ;;  %v4396_v59 = vpop.f32.mrf.mxu0  ;;  %vm4694_vm0 = vcmp.eq.f32.partialorder %v4565_v57, inf  ;;  %v4697_v47 = vand.u32 2147483648, %v4565_v57  ;;  %vm4696_vm1 = vcmp.eq.f32.partialorder %v4565_v57, 0.0 }
 0x3cc   : > { %v4385_v10 = vpop.f32.mrf.mxu3  ;;  %v4641_v54 = vmul.f32 %v8035_v55, %v4640_v24  ;;  %v4597_v1 = vmul.f32 %v4596_v21, %v8708_v25 }
 0x3cd   : > { %v4414_v38 = vpop.f32.mrf.mxu1 }
 0x3ce   : > { %v4642_v46 = vmul.f32 0.5, %v4641_v54  ;;  %v4599_v35 = vsel %vm4598_vm12, %v8708_v25, %v4597_v1  ;;  %v4415_v27 = vadd.f32 %v4414_v38, %v4396_v59  ;;  %5033 = vmatpush.bf16.msra.mxu3 %v7937_v40  ;;  %v7935_v38 = vld [vmem:[#allocation7 + $0xc8] sm:$0xff]  ;;  %v4534_v1 = vmul.f32 %v8553_v19, %v8553_v19 }
 0x3cf   : > { %v4432_v44 = vpop.f32.mrf.mxu2  ;;  %v4602_v6 = vsel %vm4600_vm14, %v4601_v30, %v4599_v35 }
 0x3d0   : > { %v4643_v37 = vsub.f32 1.5, %v4642_v46 }
 0x3d1   : > { %v8037_v39 = vpop.eup %8036 }
 0x3d2   : > { %v4644_v34 = vmul.f32 %v8035_v55, %v4643_v37  ;;  %v4688_v3 = vmul.f32 %v8037_v39, %v4565_v57  ;;  %5034 = vmatpush.bf16.msra.mxu3 %v7936_v26 }
 0x3d3   : > { %v4398_v4 = vpop.f32.mrf.mxu0 }
 0x3d4   : > { %v4450_v63 = vpop.f32.mrf.mxu3  ;;  %v4645_v62 = vmul.f32 %v4644_v34, %v4561_v49  ;;  %v4689_v41 = vmul.f32 %v8037_v39, %v4688_v3 }
 0x3d5   : > { %v4416_v51 = vpop.f32.mrf.mxu1 }
 0x3d6   : > { %v4647_v8 = vsel %vm4646_vm13, %v4561_v49, %v4645_v62  ;;  %v4690_v11 = vmul.f32 0.5, %v4689_v41  ;;  %v4433_v49 = vadd.f32 %v4432_v44, %v4415_v27  ;;  %v4417_v2 = vadd.f32 %v4416_v51, %v4398_v4  ;;  %5035 = vmatpush.bf16.msra.mxu3 %v7935_v38  ;;  %v7934_v44 = vld [vmem:[#allocation7 + $0xc0] sm:$0xff] }
 0x3d7   : > { %v4650_v13 = vsel %vm4648_vm15, %v4649_v58, %v4647_v8  ;;  %v4434_v17 = vpop.f32.mrf.mxu2  ;;  %v4538_v8 = vmul.f32 %v8556_v43, %v8556_v43 }
 0x3d8   : > { %v4713_v32 = vpack.c.bf16 %v4650_v13, %v4602_v6  ;;  %v4691_v14 = vsub.f32 1.5, %v4690_v11  ;;  %v4451_v53 = vadd.f32 %v4450_v63, %v4433_v49  ;;  %v4435_v5 = vadd.f32 %v4434_v17, %v4417_v2 }
 0x3da   : > { %5019 = vmatmul.bf16.vlgmr.msra.gmra.mxu2 %v4713_v32  ;;  %v4692_v20 = vmul.f32 %v8037_v39, %v4691_v14  ;;  %5036 = vmatpush.bf16.msra.mxu3 %v7934_v44 }
 0x3db   : > { %v4401_v23 = vpop.f32.mrf.mxu0 }
 0x3dc   : > { %v4452_v18 = vpop.f32.mrf.mxu3  ;;  %v4693_v22 = vmul.f32 %v4692_v20, %v4565_v57 }
 0x3dd   : > { %v4419_v29 = vpop.f32.mrf.mxu1  ;;  %v4453_v9 = vadd.f32 %v4452_v18, %v4435_v5 }
 0x3de   : > { %v4695_v25 = vsel %vm4694_vm0, %v4565_v57, %v4693_v22  ;;  %v4420_v21 = vadd.f32 %v4419_v29, %v4401_v23 }
 0x3df   : > { %v4437_v15 = vpop.f32.mrf.mxu2  ;;  %v4698_v7 = vsel %vm4696_vm1, %v4697_v47, %v4695_v25 }
 0x3e0   : > { %v4717_v52 = vpack.c.bf16 %v4698_v7, %v4698_v7  ;;  %v4438_v37 = vadd.f32 %v4437_v15, %v4420_v21  ;;  %v4542_v15 = vmul.f32 %v8562_v16, %v8562_v16 }
 0x3e3   : > { %v4403_v33 = vpop.f32.mrf.mxu0 }
 0x3e4   : > { %v4455_v42 = vpop.f32.mrf.mxu3 }
 0x3e5   : > { %v4421_v60 = vpop.f32.mrf.mxu1  ;;  %v4456_v51 = vadd.f32 %v4455_v42, %v4438_v37 }
 0x3e7   : > { %v4439_v31 = vpop.f32.mrf.mxu2 }
 0x3ea   : > { %5024 = vmatmul.bf16.gmra.mxu2 %v4717_v52 }
 0x3ec   : > { %v4457_v56 = vpop.f32.mrf.mxu3 }
 0x3f1   : > { %v4468_v61 = vpop.f32.mrf.mxu0 }
 0x3f2   : > { %v4469_v50 = vadd.f32 %v4468_v61, %v4451_v53 }
 0x3f3   : > { %v4486_v36 = vpop.f32.mrf.mxu1 }
 0x3f4   : > { %v4487_v45 = vadd.f32 %v4486_v36, %v4469_v50 }
 0x3f5   : > { %v4504_v55 = vpop.f32.mrf.mxu2 }
 0x3f6   : > { %v4505_v10 = vadd.f32 %v4504_v55, %v4487_v45 }
 0x3f9   : > { %v4470_v24 = vpop.f32.mrf.mxu0 }
 0x3fa   : > { %v4471_v46 = vadd.f32 %v4470_v24, %v4453_v9 }
 0x3fb   : > { %v4522_v57 = vpop.f32.mrf.mxu3  ;;  %v4488_v59 = vpop.f32.mrf.mxu1 }
 0x3fc   : > { %v4523_v54 = vadd.f32 %v4522_v57, %v4505_v10  ;;  %v4489_v34 = vadd.f32 %v4488_v59, %v4471_v46 }
 0x3fd   : > { %v4506_v3 = vpop.f32.mrf.mxu2 }
 0x3fe   : > { %v4546_v39 = vmul.f32 %v4523_v54, %v4523_v54  ;;  %v4507_v35 = vadd.f32 %v4506_v3, %v4489_v34 }
 0x400   : > { %v4558_v63 = vadd.f32 %v4546_v39, %v4534_v1 }
 0x401   : > { %v4473_v62 = vpop.f32.mrf.mxu0 }
 0x402   : > { %8038 = vrsqrt.f32 %v4558_v63  ;;  %v4474_v58 = vadd.f32 %v4473_v62, %v4456_v51  ;;  %vm4610_vm2 = vcmp.eq.f32.partialorder %v4558_v63, inf  ;;  %v4613_v2 = vand.u32 2147483648, %v4558_v63 }
 0x403   : > { %v4524_v4 = vpop.f32.mrf.mxu3  ;;  %v4491_v41 = vpop.f32.mrf.mxu1  ;;  %vm4612_vm4 = vcmp.eq.f32.partialorder %v4558_v63, 0.0 }
 0x404   : > { %v4525_v30 = vadd.f32 %v4524_v4, %v4507_v35  ;;  %v4492_v13 = vadd.f32 %v4491_v41, %v4474_v58 }
 0x405   : > { %v4509_v32 = vpop.f32.mrf.mxu2 }
 0x406   : > { %v4550_v19 = vmul.f32 %v4525_v30, %v4525_v30  ;;  %v4510_v18 = vadd.f32 %v4509_v32, %v4492_v13 }
 0x408   : > { %v8039_v11 = vpop.eup %8038  ;;  %v4562_v6 = vadd.f32 %v4550_v19, %v4538_v8 }
 0x409   : > { %v4604_v17 = vmul.f32 %v8039_v11, %v4558_v63  ;;  %v4475_v20 = vpop.f32.mrf.mxu0 }
 0x40a   : > { %8040 = vrsqrt.f32 %v4562_v6  ;;  %vm4658_vm3 = vcmp.eq.f32.partialorder %v4562_v6, inf  ;;  %v4661_v50 = vand.u32 2147483648, %v4562_v6  ;;  %vm4660_vm5 = vcmp.eq.f32.partialorder %v4562_v6, 0.0 }
 0x40b   : > { %v4527_v14 = vpop.f32.mrf.mxu3  ;;  %v4493_v23 = vpop.f32.mrf.mxu1  ;;  %v4605_v29 = vmul.f32 %v8039_v11, %v4604_v17 }
 0x40c   : > { %v4528_v22 = vadd.f32 %v4527_v14, %v4510_v18 }
 0x40d   : > { %v4606_v28 = vmul.f32 0.5, %v4605_v29  ;;  %v4511_v33 = vpop.f32.mrf.mxu2 }
 0x40e   : > { %v4554_v42 = vmul.f32 %v4528_v22, %v4528_v22 }
 0x40f   : > { %v4607_v25 = vsub.f32 1.5, %v4606_v28 }
 0x410   : > { %v8041_v43 = vpop.eup %8040  ;;  %v4566_v12 = vadd.f32 %v4554_v42, %v4542_v15 }
 0x411   : > { %v4652_v47 = vmul.f32 %v8041_v43, %v4562_v6  ;;  %v4984_v0 = vpop.f32.mrf.mxu0  ;;  %v4608_v27 = vmul.f32 %v8039_v11, %v4607_v25 }
 0x412   : > { %8042 = vrsqrt.f32 %v4566_v12  ;;  %vm4706_vm6 = vcmp.eq.f32.partialorder %v4566_v12, inf  ;;  %v4709_v39 = vand.u32 2147483648, %v4566_v12  ;;  %vm4708_vm7 = vcmp.eq.f32.partialorder %v4566_v12, 0.0 }
 0x413   : > { %v4529_v60 = vpop.f32.mrf.mxu3  ;;  %v4653_v7 = vmul.f32 %v8041_v43, %v4652_v47  ;;  %v4609_v52 = vmul.f32 %v4608_v27, %v4558_v63 }
 0x415   : > { %v4654_v49 = vmul.f32 0.5, %v4653_v7  ;;  %v4611_v16 = vsel %vm4610_vm2, %v4558_v63, %v4609_v52 }
 0x416   : > { %v5002_v45 = vpop.f32.mrf.mxu1  ;;  %v4614_v55 = vsel %vm4612_vm4, %v4613_v2, %v4611_v16 }
 0x417   : > { %v4655_v31 = vsub.f32 1.5, %v4654_v49  ;;  %v5003_v9 = vadd.f32 %v5002_v45, %v4984_v0 }
 0x418   : > { %v8043_v56 = vpop.eup %8042 }
 0x419   : > { %v4656_v48 = vmul.f32 %v8041_v43, %v4655_v31  ;;  %v4700_v53 = vmul.f32 %v8043_v56, %v4566_v12  ;;  %v4986_v61 = vpop.f32.mrf.mxu0 }
 0x41b   : > { %v4657_v36 = vmul.f32 %v4656_v48, %v4562_v6  ;;  %v4701_v40 = vmul.f32 %v8043_v56, %v4700_v53 }
 0x41d   : > { %v4659_v5 = vsel %vm4658_vm3, %v4562_v6, %v4657_v36  ;;  %v4702_v26 = vmul.f32 0.5, %v4701_v40 }
 0x41e   : > { %v4662_v57 = vsel %vm4660_vm5, %v4661_v50, %v4659_v5  ;;  %v5004_v54 = vpop.f32.mrf.mxu1 }
 0x41f   : > { %v4714_v10 = vpack.c.bf16 %v4662_v57, %v4614_v55  ;;  %v4703_v24 = vsub.f32 1.5, %v4702_v26  ;;  %v5005_v46 = vadd.f32 %v5004_v54, %v4986_v61 }
 0x421   : > { %5037 = vmatmul.bf16.vlgmr.msra.gmra.mxu3 %v4714_v10  ;;  %v4704_v59 = vmul.f32 %v8043_v56, %v4703_v24  ;;  %v4989_v38 = vpop.f32.mrf.mxu0 }
 0x423   : > { %v4705_v21 = vmul.f32 %v4704_v59, %v4566_v12 }
 0x425   : > { %v4707_v1 = vsel %vm4706_vm6, %v4566_v12, %v4705_v21 }
 0x426   : > { %v4710_v44 = vsel %vm4708_vm7, %v4709_v39, %v4707_v1  ;;  %v5007_v63 = vpop.f32.mrf.mxu1 }
 0x427   : > { %v5008_v34 = vadd.f32 %v5007_v63, %v4989_v38  ;;  %v4718_v3 = vpack.c.bf16 %v4710_v44, %v4710_v44 }
 0x429   : > { %v4991_v37 = vpop.f32.mrf.mxu0 }
 0x42e   : > { %v5009_v4 = vpop.f32.mrf.mxu1 }
 0x431   : > { %5042 = vmatmul.bf16.gmra.mxu3 %v4718_v3 }
 0x45d   : > { %v5020_v51 = vpop.f32.mrf.mxu2 }
 0x45e   : > { %v5021_v30 = vadd.f32 %v5020_v51, %v5003_v9 }
 0x465   : > { %v5022_v35 = vpop.f32.mrf.mxu2 }
 0x466   : > { %v5023_v11 = vadd.f32 %v5022_v35, %v5005_v46 }
 0x46d   : > { %v5025_v62 = vpop.f32.mrf.mxu2 }
 0x46e   : > { %v5026_v18 = vadd.f32 %v5025_v62, %v5008_v34 }
 0x475   : > { %v5027_v41 = vpop.f32.mrf.mxu2 }
 0x4a4   : > { %v5038_v58 = vpop.f32.mrf.mxu3 }
 0x4a5   : > { %v5039_v8 = vadd.f32 %v5038_v58, %v5021_v30 }
 0x4a7   : > { %v5047_v19 = vmax.f32 %v5039_v8, 1e-05 }
 0x4a9   : > { %8044 = vlog2.f32 %v5047_v19 }
 0x4ac   : > { %v5040_v6 = vpop.f32.mrf.mxu3 }
 0x4ad   : > { %v5041_v13 = vadd.f32 %v5040_v6, %v5023_v11 }
 0x4af   : > { %v8045_v32 = vpop.eup %8044  ;;  %v5048_v14 = vmax.f32 %v5041_v13, 1e-05 }
 0x4b0   : > { %v5051_v17 = vmul.f32 0.6931472, %v8045_v32 }
 0x4b1   : > { %8046 = vlog2.f32 %v5048_v14 }
 0x4b2   : > { %5056 = vst [vmem:[%s224_s23] sm:$0xff] %v5051_v17 }
 0x4b4   : > { %v5043_v20 = vpop.f32.mrf.mxu3 }
 0x4b5   : > { %v5044_v23 = vadd.f32 %v5043_v20, %v5026_v18 }
 0x4b7   : > { %v8047_v29 = vpop.eup %8046  ;;  %v5049_v22 = vmax.f32 %v5044_v23, 1e-05 }
 0x4b8   : > { %v5053_v28 = vmul.f32 0.6931472, %v8047_v29 }
 0x4b9   : > { %8048 = vlog2.f32 %v5049_v22 }
 0x4ba   : > { %5057 = vst [vmem:[%s224_s23 + $0x8] sm:$0xff] %v5053_v28 }
 0x4bc   : > { %v5045_v15 = vpop.f32.mrf.mxu3 }
 0x4bf   : > { %v8049_v42 = vpop.eup %8048 }
 0x4c0   : > { %v5055_v25 = vmul.f32 0.6931472, %v8049_v42 }
 0x4c2   : > { %5058 = vst [vmem:[%s224_s23 + $0x10] sm:$0xff] %v5055_v25 }
 0x4c3   : > { %8167 = shalt.err (!%p8164_p10)
}
 0x4c4   : > { %s8218_s29 = smov 128   ;;  %s8219_s27 = smov 8  }
 0x4c5   : > { %7957 = dma.vmem_to_hbm [thread:$0]  (%p8312_p5), %s5073_s6, 384, %s5075_s7, %s5060_s9, %s8218_s29, %s8218_s29, %s8219_s27  }
 0x4c6 PF: > { %s5089_s28 = sand.u32 1, %s8198_s12   ;;  %p8772_p12 = scmp.ge.s32.totalorder %s8210_s15, 2 }
 0x4c7   : > { %s5090_s18 = scalar_lea.sflag [#allocation4], %s5089_s28 }
 0x4c8   : > { %p7971_p13 = pnand %p8772_p12, %p8275_p6 }
 0x4ca   : > { %p7972_p0 = pneg %p7971_p13 }
 0x4cc   : > { %8193 = dma.done.wait (%p7972_p0), %s5090_s18, 384  }
 0x4cd   : > { %8195 = vsyncadd (%p7972_p0), %s5090_s18, 4294966912  ;;  %p17_p3 = scmp.ge.s32.totalorder %s8299_s8, 4   ;;  %s8773_s12 = smov %s8202_s13 }
 0x4ce   : > { %s8774_s13 = smov %s8206_s14  ;;  %s8775_s14 = smov %s8308_s11 }
 0x4cf   : > { %s8776_s15 = smov %s8299_s8  ;;  %19 = sbr.rel (!%p17_p3) target bundleno = 6 (0x6), region = 85 }
 0x4d4   :  { %5096 = vsyncpa [#allocation3], 1 }
 0x4d5   :  { %5098 = vsyncpa [#allocation3 + $0x1], 1 }
 0x4d6   :  { %5099 = vsyncpa [#allocation6], 1 }
 0x4d7   :  { %5100 = vsyncpa [#allocation4], 1 }
 0x4d8   :  { %5102 = vsyncpa [#allocation4 + $0x1], 1 }

</bundles_post_ra>
